<compile_context>
chip_gen: v7x
topology: tpu7x:2x2x1
jax: 0.10.0
libtpu: 0.0.40
codegen_flags: <defaults>
</compile_context>

<pallas_src>
import functools

import jax
import jax.numpy as jnp
from jax.experimental import pallas as pl
from jax.experimental.pallas import tpu as pltpu

BN_EPS = 1e-5


def _pick_vmem_limit():
    # ~3/4 of physical VMEM, capped at 96 MiB (v5e/v6e -> 96 MiB, v7x -> 48 MiB).
    try:
        cap = int(pltpu.get_tpu_info().vmem_capacity_bytes)
        return min((cap * 3) // 4, 96 * 1024 * 1024)
    except Exception:
        return 32 * 1024 * 1024


# ----------------------------- Pallas kernels -----------------------------

def conv3x3_kernel(x_ref, w_ref, y_ref, stat_ref, *, H, W):
    """3x3 / stride-1 / pad-1 conv as implicit-im2col GEMMs + BN partial stats.

    The zero-padded image is flattened to rows q = h_pad*(W+2) + w_pad, so the
    operand of tap (dy, dx) is the contiguous row window starting at
    dy*(W+2)+dx.  Accumulator row q = h*(W+2)+w holds the conv output at
    (h, w) for w < W; the two trailing columns per row are garbage and are
    dropped when writing y (and excluded from the statistics).

    x_ref:    (1, (H+3)*(W+2), Cin)  bf16  zero-padded, flattened input block
    w_ref:    (9, Cin, Cout)         bf16  resident across the grid
    y_ref:    (1, H, W, Cout)        bf16  compacted pre-BN conv output
    stat_ref: (1, 2, Cout)           f32   per-block [sum, sum-of-squares]
    """
    Wp = W + 2
    M2 = H * Wp
    C = y_ref.shape[-1]

    # 9 shifted taps, fully unrolled: bf16 operands on the MXU, f32 accumulation
    # kept as a value (register / compiler-managed spill) -- no scratch copy.
    acc = jnp.dot(x_ref[0, 0:M2, :], w_ref[0], preferred_element_type=jnp.float32)
    for t in range(1, 9):
        dy, dx = divmod(t, 3)
        off = dy * Wp + dx
        acc = acc + jnp.dot(x_ref[0, off:off + M2, :], w_ref[t],
                            preferred_element_type=jnp.float32)

    # Store y compacted (garbage columns dropped) in bf16 and accumulate the
    # BN batch statistics from the valid positions only.
    ssum = jnp.zeros((1, C), jnp.float32)
    ssq = jnp.zeros((1, C), jnp.float32)
    for h in range(H):
        row = acc[h * Wp:h * Wp + W, :]              # (W, C) valid outputs, row h
        y_ref[0, h] = row.astype(y_ref.dtype)
        ssum = ssum + jnp.sum(row, axis=0, keepdims=True)
        ssq = ssq + jnp.sum(row * row, axis=0, keepdims=True)
    stat_ref[0, 0:1, :] = ssum
    stat_ref[0, 1:2, :] = ssq


def bn_relu_pad_kernel(y_ref, scale_ref, shift_ref, o_ref, *, pool):
    """Folded BN (scale/shift) + ReLU [+ fused MaxPool2d(2,2)].

    Writes the result directly into the zero-padded NHWC layout that the next
    conv layer consumes (1 top / 2 bottom zero rows, 1 zero column each side),
    so no XLA pad pass is needed between layers.

    pool=True : y_ref (1, Ho, 2, Wo, 2, C) bf16   (free reshape of (1,H,W,C))
    pool=False: y_ref (1, H, W, C)         bf16
    scale/shift: (1, C) f32
    o_ref: (1, Hn+3, Wn+2, C) bf16, zero borders, interior = result
    """
    s = scale_ref[...]                      # (1, C)
    b = shift_ref[...]
    if pool:
        def phase(i, j):
            return y_ref[0, :, i, :, j, :].astype(jnp.float32) * s + b
        z = jnp.maximum(jnp.maximum(phase(0, 0), phase(0, 1)),
                        jnp.maximum(phase(1, 0), phase(1, 1)))
    else:
        z = y_ref[0].astype(jnp.float32) * s + b
    z = jnp.maximum(z, 0.0)                 # single ReLU (commutes with max-pool)
    Hn, Wn = z.shape[0], z.shape[1]
    o_ref[...] = jnp.zeros(o_ref.shape, o_ref.dtype)   # zero borders
    o_ref[0, 1:Hn + 1, 1:Wn + 1, :] = z.astype(o_ref.dtype)


def mlp_kernel(x_ref, w1_ref, b1_ref, w2_ref, b2_ref, w3_ref, b3_ref, o_ref):
    """Linear -> ReLU -> Linear -> ReLU -> Linear -> Softmax(dim=1).

    bf16 MXU matmuls, f32 accumulation / bias / softmax.
    """
    h = jnp.dot(x_ref[...], w1_ref[...], preferred_element_type=jnp.float32) + b1_ref[...]
    h = jnp.maximum(h, 0.0)
    h = jnp.dot(h.astype(jnp.bfloat16), w2_ref[...],
                preferred_element_type=jnp.float32) + b2_ref[...]
    h = jnp.maximum(h, 0.0)
    logits = jnp.dot(h.astype(jnp.bfloat16), w3_ref[...],
                     preferred_element_type=jnp.float32) + b3_ref[...]
    z = logits - jnp.max(logits, axis=-1, keepdims=True)
    e = jnp.exp(z)
    o_ref[...] = e / jnp.sum(e, axis=-1, keepdims=True)


# ------------------------------- wrappers ---------------------------------

def conv_bn_relu_pool(xflat, H, W, w9, gamma, beta, pool, vmem_limit):
    """One VGG block: Conv2d(3,3,1,1) + BatchNorm2d (batch stats) + ReLU
    [+ MaxPool2d(2,2)].  Consumes / produces the padded bf16 activation layout."""
    N, P, Cin = xflat.shape
    Cout = w9.shape[2]
    Wp = W + 2
    assert P == (H + 3) * Wp, (P, H, W)
    if pool:
        assert H % 2 == 0 and W % 2 == 0, "MaxPool2d(2,2) needs even spatial dims"
        Hn, Wn = H // 2, W // 2
    else:
        Hn, Wn = H, W

    # Pass 1: conv (implicit im2col) + per-block BN partial statistics.
    y, stats = pl.pallas_call(
        functools.partial(conv3x3_kernel, H=H, W=W),
        grid=(N,),
        out_shape=(jax.ShapeDtypeStruct((N, H, W, Cout), jnp.bfloat16),
                   jax.ShapeDtypeStruct((N, 2, Cout), jnp.float32)),
        in_specs=[pl.BlockSpec((1, P, Cin), lambda n: (n, 0, 0)),
                  pl.BlockSpec((9, Cin, Cout), lambda n: (0, 0, 0))],
        out_specs=(pl.BlockSpec((1, H, W, Cout), lambda n: (n, 0, 0, 0)),
                   pl.BlockSpec((1, 2, Cout), lambda n: (n, 0, 0))),
        compiler_params=pltpu.CompilerParams(
            dimension_semantics=("parallel",), vmem_limit_bytes=vmem_limit),
    )(xflat, w9)

    # Glue (O(Cout)): fold batch stats into a per-channel scale/shift
    # (biased variance as in PyTorch train-mode normalization).
    m = float(N * H * W)
    s = jnp.sum(stats, axis=0)                        # (2, Cout)
    mean = s[0] / m
    var = jnp.maximum(s[1] / m - mean * mean, 0.0)    # clamp fp cancellation
    scale = gamma.reshape(-1) * jax.lax.rsqrt(var + BN_EPS)
    shift = beta.reshape(-1) - mean * scale
    scale = scale.reshape(1, Cout)
    shift = shift.reshape(1, Cout)

    # Pass 2: BN + ReLU (+ pool), written straight into the next layer's
    # padded layout.  The reshape below is free (row-major split of H and W).
    if pool:
        y_in = y.reshape(N, Hn, 2, Wn, 2, Cout)
        y_spec = pl.BlockSpec((1, Hn, 2, Wn, 2, Cout),
                              lambda n: (n, 0, 0, 0, 0, 0))
    else:
        y_in = y
        y_spec = pl.BlockSpec((1, H, W, Cout), lambda n: (n, 0, 0, 0))

    out = pl.pallas_call(
        functools.partial(bn_relu_pad_kernel, pool=pool),
        grid=(N,),
        out_shape=jax.ShapeDtypeStruct((N, Hn + 3, Wn + 2, Cout), jnp.bfloat16),
        in_specs=[y_spec,
                  pl.BlockSpec((1, Cout), lambda n: (0, 0)),
                  pl.BlockSpec((1, Cout), lambda n: (0, 0))],
        out_specs=pl.BlockSpec((1, Hn + 3, Wn + 2, Cout), lambda n: (n, 0, 0, 0)),
        compiler_params=pltpu.CompilerParams(
            dimension_semantics=("parallel",), vmem_limit_bytes=vmem_limit),
    )(y_in, scale, shift)
    return out, Hn, Wn


def mlp_forward(x_bf16, mlp_params, vmem_limit):
    N = x_bf16.shape[0]
    out_dim = mlp_params["w3"].shape[1]
    return pl.pallas_call(
        mlp_kernel,
        out_shape=jax.ShapeDtypeStruct((N, out_dim), jnp.float32),
        compiler_params=pltpu.CompilerParams(vmem_limit_bytes=vmem_limit),
    )(x_bf16, mlp_params["w1"], mlp_params["b1"],
      mlp_params["w2"], mlp_params["b2"],
      mlp_params["w3"], mlp_params["b3"])


# ----------------------- model config / parameters ------------------------

def get_vgg_config(vgg_layers=None):
    if vgg_layers == 13:
        return [64, 64, 'M', 128, 128, 'M', 256, 256, 'M', 512, 512, 'M', 512, 512, 'M']
    if vgg_layers == 16:
        return [64, 64, 'M', 128, 128, 'M', 256, 256, 256, 'M',
                512, 512, 512, 'M', 512, 512, 512, 'M']
    if vgg_layers == 19:
        return [64, 64, 'M', 128, 128, 'M', 256, 256, 256, 256, 'M',
                512, 512, 512, 512, 'M', 512, 512, 512, 512, 'M']
    return [64, 'M', 128, 'M', 256, 256, 'M', 512, 512, 'M', 512, 512, 'M']


def build_conv_plan(image_channel, vgg_layers=None):
    channels = get_vgg_config(vgg_layers)
    plan, in_ch = [], image_channel
    for idx in range(len(channels)):
        if channels[idx] in ('M', 'A'):
            continue
        pool = channels[idx + 1] == 'M'
        out_ch = channels[idx]
        plan.append((in_ch, out_ch, pool))
        in_ch = out_ch
    return plan


def init_params(key, image_channel, features, vgg_layers=None):
    plan = build_conv_plan(image_channel, vgg_layers)
    conv_params = []
    for (cin, cout, pool) in plan:
        key, kw = jax.random.split(key)
        # conceptual HWIO weight == transpose of torch's (Cout, Cin, kh, kw).
        w_hwio = jax.random.normal(kw, (3, 3, cin, cout), jnp.float32) / jnp.sqrt(9.0 * cin)
        conv_params.append(dict(
            w9=w_hwio.reshape(9, cin, cout).astype(jnp.bfloat16),
            gamma=jnp.ones((1, cout), jnp.float32),     # BatchNorm2d default init
            beta=jnp.zeros((1, cout), jnp.float32),
            pool=pool,
        ))
    mlp_params = {}
    for i in range(len(features) - 1):
        fi, fo = features[i], features[i + 1]
        key, kw, kb = jax.random.split(key, 3)
        mlp_params[f"w{i + 1}"] = (
            jax.random.normal(kw, (fi, fo), jnp.float32) / jnp.sqrt(float(fi))
        ).astype(jnp.bfloat16)
        mlp_params[f"b{i + 1}"] = jax.random.normal(kb, (1, fo), jnp.float32) * 0.01
    return conv_params, mlp_params


# ------------------------------- forward ----------------------------------

def vggnet_forward(x_nchw, conv_params, mlp_params):
    vmem_limit = _pick_vmem_limit()
    # layout: accept NCHW (PyTorch convention); kernels run NHWC bf16.
    x = jnp.transpose(x_nchw, (0, 2, 3, 1)).astype(jnp.bfloat16)
    N, H, W, C = x.shape
    # One-time zero pad (1 top / 2 bottom rows, 1 column each side) for layer 1;
    # later layers arrive pre-padded straight from the epilogue kernel.
    xflat = jnp.pad(x, ((0, 0), (1, 2), (1, 1), (0, 0))).reshape(
        N, (H + 3) * (W + 2), C)
    out4 = None
    for p in conv_params:
        out4, H, W = conv_bn_relu_pool(xflat, H, W, p["w9"], p["gamma"],
                                       p["beta"], p["pool"], vmem_limit)
        xflat = out4.reshape(N, (H + 3) * (W + 2), out4.shape[-1])
    # Recover the unpadded NHWC feature map; PyTorch's .view(N, -1) flattens
    # NCHW (channel-major), so transpose before flattening.
    feat = out4[:, 1:H + 1, 1:W + 1, :]
    feat = jnp.transpose(feat, (0, 3, 1, 2)).reshape(N, -1)
    return mlp_forward(feat, mlp_params, vmem_limit)


if __name__ == "__main__":
    key = jax.random.PRNGKey(0)
    key, kx = jax.random.split(key)

    N, C, S = 2, 3, 32          # small image; 5 maxpools -> 1x1x512 feature map
    features = (512 * (S // 32) ** 2, 128, 64, 10)

    x = jax.random.normal(kx, (N, C, S, S), jnp.float32)
    conv_params, mlp_params = init_params(key, image_channel=C, features=features)

    out = vggnet_forward(x, conv_params, mlp_params)
    out = jax.block_until_ready(out)

    assert out.shape == (N, features[-1]), out.shape
    assert bool(jnp.all(jnp.isfinite(out)))
    # final Softmax(dim=1): rows must sum to 1
    assert bool(jnp.allclose(jnp.sum(out, axis=1), 1.0, atol=1e-4))
    print("KERNEL_OK")
</pallas_src>

<mosaic_0001>
module attributes {stable_mosaic.version = 11 : i64} {
  func.func @conv3x3_kernel(%arg0: i32, %arg1: memref<1x1190x3xbf16, #tpu.memory_space<vmem>>, %arg2: memref<9x3x64xbf16, #tpu.memory_space<vmem>>, %arg3: memref<1x32x32x64xbf16, #tpu.memory_space<vmem>>, %arg4: memref<1x2x64xf32, #tpu.memory_space<vmem>>) attributes {dimension_semantics = [#tpu.dimension_semantics<parallel>], iteration_bounds = array<i64: 2>, scalar_prefetch = 0 : i64, scratch_operands = 0 : i64, tpu.core_type = #tpu.core_type<tc>, window_params = [{transform_indices = @transform_0, window_bounds = array<i64: 1, 1190, 3>}, {pipeline_mode = #tpu.pipeline_mode<synchronous>, transform_indices = @transform_1, window_bounds = array<i64: 9, 3, 64>}, {transform_indices = @transform_2, window_bounds = array<i64: 1, 32, 32, 64>}, {transform_indices = @transform_3, window_bounds = array<i64: 1, 2, 64>}]} {
    %c0 = arith.constant 0 : index
    %c0_0 = arith.constant 0 : index
    %c0_1 = arith.constant 0 : index
    %0 = vector.load %arg1[%c0, %c0_0, %c0_1] : memref<1x1190x3xbf16, #tpu.memory_space<vmem>>, vector<1x1088x3xbf16>
    %1 = vector.shape_cast %0 : vector<1x1088x3xbf16> to vector<1088x3xbf16>
    %c0_2 = arith.constant 0 : index
    %c0_3 = arith.constant 0 : index
    %c0_4 = arith.constant 0 : index
    %2 = vector.load %arg2[%c0_2, %c0_3, %c0_4] : memref<9x3x64xbf16, #tpu.memory_space<vmem>>, vector<1x3x64xbf16>
    %3 = vector.shape_cast %2 : vector<1x3x64xbf16> to vector<3x64xbf16>
    %cst = arith.constant dense<0.000000e+00> : vector<1088x64xf32>
    %4 = tpu.matmul %1, %3, %cst {dimension_numbers = #tpu.dot_dimension_numbers<[1], [0], [0], [1], [0, 0, 1, 1], [], []>} : vector<1088x3xbf16>, vector<3x64xbf16>, vector<1088x64xf32> -> vector<1088x64xf32>
    %c0_5 = arith.constant 0 : index
    %c1 = arith.constant 1 : index
    %c0_6 = arith.constant 0 : index
    %5 = vector.load %arg1[%c0_5, %c1, %c0_6] : memref<1x1190x3xbf16, #tpu.memory_space<vmem>>, vector<1x1088x3xbf16>
    %6 = vector.shape_cast %5 : vector<1x1088x3xbf16> to vector<1088x3xbf16>
    %c1_7 = arith.constant 1 : index
    %c0_8 = arith.constant 0 : index
    %c0_9 = arith.constant 0 : index
    %7 = vector.load %arg2[%c1_7, %c0_8, %c0_9] : memref<9x3x64xbf16, #tpu.memory_space<vmem>>, vector<1x3x64xbf16>
    %8 = vector.shape_cast %7 : vector<1x3x64xbf16> to vector<3x64xbf16>
    %cst_10 = arith.constant dense<0.000000e+00> : vector<1088x64xf32>
    %9 = tpu.matmul %6, %8, %cst_10 {dimension_numbers = #tpu.dot_dimension_numbers<[1], [0], [0], [1], [0, 0, 1, 1], [], []>} : vector<1088x3xbf16>, vector<3x64xbf16>, vector<1088x64xf32> -> vector<1088x64xf32>
    %10 = arith.addf %4, %9 : vector<1088x64xf32>
    %c0_11 = arith.constant 0 : index
    %c2 = arith.constant 2 : index
    %c0_12 = arith.constant 0 : index
    %11 = vector.load %arg1[%c0_11, %c2, %c0_12] : memref<1x1190x3xbf16, #tpu.memory_space<vmem>>, vector<1x1088x3xbf16>
    %12 = vector.shape_cast %11 : vector<1x1088x3xbf16> to vector<1088x3xbf16>
    %c2_13 = arith.constant 2 : index
    %c0_14 = arith.constant 0 : index
    %c0_15 = arith.constant 0 : index
    %13 = vector.load %arg2[%c2_13, %c0_14, %c0_15] : memref<9x3x64xbf16, #tpu.memory_space<vmem>>, vector<1x3x64xbf16>
    %14 = vector.shape_cast %13 : vector<1x3x64xbf16> to vector<3x64xbf16>
    %cst_16 = arith.constant dense<0.000000e+00> : vector<1088x64xf32>
    %15 = tpu.matmul %12, %14, %cst_16 {dimension_numbers = #tpu.dot_dimension_numbers<[1], [0], [0], [1], [0, 0, 1, 1], [], []>} : vector<1088x3xbf16>, vector<3x64xbf16>, vector<1088x64xf32> -> vector<1088x64xf32>
    %16 = arith.addf %10, %15 : vector<1088x64xf32>
    %c0_17 = arith.constant 0 : index
    %c34 = arith.constant 34 : index
    %c0_18 = arith.constant 0 : index
    %17 = vector.load %arg1[%c0_17, %c34, %c0_18] : memref<1x1190x3xbf16, #tpu.memory_space<vmem>>, vector<1x1088x3xbf16>
    %18 = vector.shape_cast %17 : vector<1x1088x3xbf16> to vector<1088x3xbf16>
    %c3 = arith.constant 3 : index
    %c0_19 = arith.constant 0 : index
    %c0_20 = arith.constant 0 : index
    %19 = vector.load %arg2[%c3, %c0_19, %c0_20] : memref<9x3x64xbf16, #tpu.memory_space<vmem>>, vector<1x3x64xbf16>
    %20 = vector.shape_cast %19 : vector<1x3x64xbf16> to vector<3x64xbf16>
    %cst_21 = arith.constant dense<0.000000e+00> : vector<1088x64xf32>
    %21 = tpu.matmul %18, %20, %cst_21 {dimension_numbers = #tpu.dot_dimension_numbers<[1], [0], [0], [1], [0, 0, 1, 1], [], []>} : vector<1088x3xbf16>, vector<3x64xbf16>, vector<1088x64xf32> -> vector<1088x64xf32>
    %22 = arith.addf %16, %21 : vector<1088x64xf32>
    %c0_22 = arith.constant 0 : index
    %c35 = arith.constant 35 : index
    %c0_23 = arith.constant 0 : index
    %23 = vector.load %arg1[%c0_22, %c35, %c0_23] : memref<1x1190x3xbf16, #tpu.memory_space<vmem>>, vector<1x1088x3xbf16>
    %24 = vector.shape_cast %23 : vector<1x1088x3xbf16> to vector<1088x3xbf16>
    %c4 = arith.constant 4 : index
    %c0_24 = arith.constant 0 : index
    %c0_25 = arith.constant 0 : index
    %25 = vector.load %arg2[%c4, %c0_24, %c0_25] : memref<9x3x64xbf16, #tpu.memory_space<vmem>>, vector<1x3x64xbf16>
    %26 = vector.shape_cast %25 : vector<1x3x64xbf16> to vector<3x64xbf16>
    %cst_26 = arith.constant dense<0.000000e+00> : vector<1088x64xf32>
    %27 = tpu.matmul %24, %26, %cst_26 {dimension_numbers = #tpu.dot_dimension_numbers<[1], [0], [0], [1], [0, 0, 1, 1], [], []>} : vector<1088x3xbf16>, vector<3x64xbf16>, vector<1088x64xf32> -> vector<1088x64xf32>
    %28 = arith.addf %22, %27 : vector<1088x64xf32>
    %c0_27 = arith.constant 0 : index
    %c36 = arith.constant 36 : index
    %c0_28 = arith.constant 0 : index
    %29 = vector.load %arg1[%c0_27, %c36, %c0_28] : memref<1x1190x3xbf16, #tpu.memory_space<vmem>>, vector<1x1088x3xbf16>
    %30 = vector.shape_cast %29 : vector<1x1088x3xbf16> to vector<1088x3xbf16>
    %c5 = arith.constant 5 : index
    %c0_29 = arith.constant 0 : index
    %c0_30 = arith.constant 0 : index
    %31 = vector.load %arg2[%c5, %c0_29, %c0_30] : memref<9x3x64xbf16, #tpu.memory_space<vmem>>, vector<1x3x64xbf16>
    %32 = vector.shape_cast %31 : vector<1x3x64xbf16> to vector<3x64xbf16>
    %cst_31 = arith.constant dense<0.000000e+00> : vector<1088x64xf32>
    %33 = tpu.matmul %30, %32, %cst_31 {dimension_numbers = #tpu.dot_dimension_numbers<[1], [0], [0], [1], [0, 0, 1, 1], [], []>} : vector<1088x3xbf16>, vector<3x64xbf16>, vector<1088x64xf32> -> vector<1088x64xf32>
    %34 = arith.addf %28, %33 : vector<1088x64xf32>
    %c0_32 = arith.constant 0 : index
    %c68 = arith.constant 68 : index
    %c0_33 = arith.constant 0 : index
    %35 = vector.load %arg1[%c0_32, %c68, %c0_33] : memref<1x1190x3xbf16, #tpu.memory_space<vmem>>, vector<1x1088x3xbf16>
    %36 = vector.shape_cast %35 : vector<1x1088x3xbf16> to vector<1088x3xbf16>
    %c6 = arith.constant 6 : index
    %c0_34 = arith.constant 0 : index
    %c0_35 = arith.constant 0 : index
    %37 = vector.load %arg2[%c6, %c0_34, %c0_35] : memref<9x3x64xbf16, #tpu.memory_space<vmem>>, vector<1x3x64xbf16>
    %38 = vector.shape_cast %37 : vector<1x3x64xbf16> to vector<3x64xbf16>
    %cst_36 = arith.constant dense<0.000000e+00> : vector<1088x64xf32>
    %39 = tpu.matmul %36, %38, %cst_36 {dimension_numbers = #tpu.dot_dimension_numbers<[1], [0], [0], [1], [0, 0, 1, 1], [], []>} : vector<1088x3xbf16>, vector<3x64xbf16>, vector<1088x64xf32> -> vector<1088x64xf32>
    %40 = arith.addf %34, %39 : vector<1088x64xf32>
    %c0_37 = arith.constant 0 : index
    %c69 = arith.constant 69 : index
    %c0_38 = arith.constant 0 : index
    %41 = vector.load %arg1[%c0_37, %c69, %c0_38] : memref<1x1190x3xbf16, #tpu.memory_space<vmem>>, vector<1x1088x3xbf16>
    %42 = vector.shape_cast %41 : vector<1x1088x3xbf16> to vector<1088x3xbf16>
    %c7 = arith.constant 7 : index
    %c0_39 = arith.constant 0 : index
    %c0_40 = arith.constant 0 : index
    %43 = vector.load %arg2[%c7, %c0_39, %c0_40] : memref<9x3x64xbf16, #tpu.memory_space<vmem>>, vector<1x3x64xbf16>
    %44 = vector.shape_cast %43 : vector<1x3x64xbf16> to vector<3x64xbf16>
    %cst_41 = arith.constant dense<0.000000e+00> : vector<1088x64xf32>
    %45 = tpu.matmul %42, %44, %cst_41 {dimension_numbers = #tpu.dot_dimension_numbers<[1], [0], [0], [1], [0, 0, 1, 1], [], []>} : vector<1088x3xbf16>, vector<3x64xbf16>, vector<1088x64xf32> -> vector<1088x64xf32>
    %46 = arith.addf %40, %45 : vector<1088x64xf32>
    %c0_42 = arith.constant 0 : index
    %c70 = arith.constant 70 : index
    %c0_43 = arith.constant 0 : index
    %47 = vector.load %arg1[%c0_42, %c70, %c0_43] : memref<1x1190x3xbf16, #tpu.memory_space<vmem>>, vector<1x1088x3xbf16>
    %48 = vector.shape_cast %47 : vector<1x1088x3xbf16> to vector<1088x3xbf16>
    %c8 = arith.constant 8 : index
    %c0_44 = arith.constant 0 : index
    %c0_45 = arith.constant 0 : index
    %49 = vector.load %arg2[%c8, %c0_44, %c0_45] : memref<9x3x64xbf16, #tpu.memory_space<vmem>>, vector<1x3x64xbf16>
    %50 = vector.shape_cast %49 : vector<1x3x64xbf16> to vector<3x64xbf16>
    %cst_46 = arith.constant dense<0.000000e+00> : vector<1088x64xf32>
    %51 = tpu.matmul %48, %50, %cst_46 {dimension_numbers = #tpu.dot_dimension_numbers<[1], [0], [0], [1], [0, 0, 1, 1], [], []>} : vector<1088x3xbf16>, vector<3x64xbf16>, vector<1088x64xf32> -> vector<1088x64xf32>
    %52 = arith.addf %46, %51 : vector<1088x64xf32>
    %cst_47 = arith.constant 0.000000e+00 : f32
    %53 = vector.broadcast %cst_47 : f32 to vector<1x64xf32>
    %cst_48 = arith.constant 0.000000e+00 : f32
    %54 = vector.broadcast %cst_48 : f32 to vector<1x64xf32>
    %55 = vector.extract_strided_slice %52 {offsets = [0, 0], sizes = [32, 64], strides = [1, 1]} : vector<1088x64xf32> to vector<32x64xf32>
    %56 = arith.truncf %55 : vector<32x64xf32> to vector<32x64xbf16>
    %c0_49 = arith.constant 0 : index
    %c0_50 = arith.constant 0 : index
    %c0_51 = arith.constant 0 : index
    %c0_52 = arith.constant 0 : index
    %57 = vector.load %arg3[%c0_49, %c0_50, %c0_51, %c0_52] : memref<1x32x32x64xbf16, #tpu.memory_space<vmem>>, vector<1x1x32x64xbf16>
    %58 = vector.shape_cast %57 : vector<1x1x32x64xbf16> to vector<32x64xbf16>
    %59 = vector.shape_cast %56 : vector<32x64xbf16> to vector<1x1x32x64xbf16>
    tpu.vector_store %arg3[%c0_49, %c0_50, %c0_51, %c0_52], %59 {strides = array<i32>} : memref<1x32x32x64xbf16, #tpu.memory_space<vmem>>, vector<1x1x32x64xbf16>,
    %cst_53 = arith.constant dense<0.000000e+00> : vector<64xf32>
    %60 = vector.multi_reduction <add>, %55, %cst_53 [0] : vector<32x64xf32> to vector<64xf32>
    %61 = vector.shape_cast %60 : vector<64xf32> to vector<1x64xf32>
    %62 = arith.addf %53, %61 : vector<1x64xf32>
    %63 = arith.mulf %55, %55 : vector<32x64xf32>
    %cst_54 = arith.constant dense<0.000000e+00> : vector<64xf32>
    %64 = vector.multi_reduction <add>, %63, %cst_54 [0] : vector<32x64xf32> to vector<64xf32>
    %65 = vector.shape_cast %64 : vector<64xf32> to vector<1x64xf32>
    %66 = arith.addf %54, %65 : vector<1x64xf32>
    %67 = vector.extract_strided_slice %52 {offsets = [34, 0], sizes = [32, 64], strides = [1, 1]} : vector<1088x64xf32> to vector<32x64xf32>
    %68 = arith.truncf %67 : vector<32x64xf32> to vector<32x64xbf16>
    %c0_55 = arith.constant 0 : index
    %c1_56 = arith.constant 1 : index
    %c0_57 = arith.constant 0 : index
    %c0_58 = arith.constant 0 : index
    %69 = vector.load %arg3[%c0_55, %c1_56, %c0_57, %c0_58] : memref<1x32x32x64xbf16, #tpu.memory_space<vmem>>, vector<1x1x32x64xbf16>
    %70 = vector.shape_cast %69 : vector<1x1x32x64xbf16> to vector<32x64xbf16>
    %71 = vector.shape_cast %68 : vector<32x64xbf16> to vector<1x1x32x64xbf16>
    tpu.vector_store %arg3[%c0_55, %c1_56, %c0_57, %c0_58], %71 {strides = array<i32>} : memref<1x32x32x64xbf16, #tpu.memory_space<vmem>>, vector<1x1x32x64xbf16>,
    %cst_59 = arith.constant dense<0.000000e+00> : vector<64xf32>
    %72 = vector.multi_reduction <add>, %67, %cst_59 [0] : vector<32x64xf32> to vector<64xf32>
    %73 = vector.shape_cast %72 : vector<64xf32> to vector<1x64xf32>
    %74 = arith.addf %62, %73 : vector<1x64xf32>
    %75 = arith.mulf %67, %67 : vector<32x64xf32>
    %cst_60 = arith.constant dense<0.000000e+00> : vector<64xf32>
    %76 = vector.multi_reduction <add>, %75, %cst_60 [0] : vector<32x64xf32> to vector<64xf32>
    %77 = vector.shape_cast %76 : vector<64xf32> to vector<1x64xf32>
    %78 = arith.addf %66, %77 : vector<1x64xf32>
    %79 = vector.extract_strided_slice %52 {offsets = [68, 0], sizes = [32, 64], strides = [1, 1]} : vector<1088x64xf32> to vector<32x64xf32>
    %80 = arith.truncf %79 : vector<32x64xf32> to vector<32x64xbf16>
    %c0_61 = arith.constant 0 : index
    %c2_62 = arith.constant 2 : index
    %c0_63 = arith.constant 0 : index
    %c0_64 = arith.constant 0 : index
    %81 = vector.load %arg3[%c0_61, %c2_62, %c0_63, %c0_64] : memref<1x32x32x64xbf16, #tpu.memory_space<vmem>>, vector<1x1x32x64xbf16>
    %82 = vector.shape_cast %81 : vector<1x1x32x64xbf16> to vector<32x64xbf16>
    %83 = vector.shape_cast %80 : vector<32x64xbf16> to vector<1x1x32x64xbf16>
    tpu.vector_store %arg3[%c0_61, %c2_62, %c0_63, %c0_64], %83 {strides = array<i32>} : memref<1x32x32x64xbf16, #tpu.memory_space<vmem>>, vector<1x1x32x64xbf16>,
    %cst_65 = arith.constant dense<0.000000e+00> : vector<64xf32>
    %84 = vector.multi_reduction <add>, %79, %cst_65 [0] : vector<32x64xf32> to vector<64xf32>
    %85 = vector.shape_cast %84 : vector<64xf32> to vector<1x64xf32>
    %86 = arith.addf %74, %85 : vector<1x64xf32>
    %87 = arith.mulf %79, %79 : vector<32x64xf32>
    %cst_66 = arith.constant dense<0.000000e+00> : vector<64xf32>
    %88 = vector.multi_reduction <add>, %87, %cst_66 [0] : vector<32x64xf32> to vector<64xf32>
    %89 = vector.shape_cast %88 : vector<64xf32> to vector<1x64xf32>
    %90 = arith.addf %78, %89 : vector<1x64xf32>
    %91 = vector.extract_strided_slice %52 {offsets = [102, 0], sizes = [32, 64], strides = [1, 1]} : vector<1088x64xf32> to vector<32x64xf32>
    %92 = arith.truncf %91 : vector<32x64xf32> to vector<32x64xbf16>
    %c0_67 = arith.constant 0 : index
    %c3_68 = arith.constant 3 : index
    %c0_69 = arith.constant 0 : index
    %c0_70 = arith.constant 0 : index
    %93 = vector.load %arg3[%c0_67, %c3_68, %c0_69, %c0_70] : memref<1x32x32x64xbf16, #tpu.memory_space<vmem>>, vector<1x1x32x64xbf16>
    %94 = vector.shape_cast %93 : vector<1x1x32x64xbf16> to vector<32x64xbf16>
    %95 = vector.shape_cast %92 : vector<32x64xbf16> to vector<1x1x32x64xbf16>
    tpu.vector_store %arg3[%c0_67, %c3_68, %c0_69, %c0_70], %95 {strides = array<i32>} : memref<1x32x32x64xbf16, #tpu.memory_space<vmem>>, vector<1x1x32x64xbf16>,
    %cst_71 = arith.constant dense<0.000000e+00> : vector<64xf32>
    %96 = vector.multi_reduction <add>, %91, %cst_71 [0] : vector<32x64xf32> to vector<64xf32>
    %97 = vector.shape_cast %96 : vector<64xf32> to vector<1x64xf32>
    %98 = arith.addf %86, %97 : vector<1x64xf32>
    %99 = arith.mulf %91, %91 : vector<32x64xf32>
    %cst_72 = arith.constant dense<0.000000e+00> : vector<64xf32>
    %100 = vector.multi_reduction <add>, %99, %cst_72 [0] : vector<32x64xf32> to vector<64xf32>
    %101 = vector.shape_cast %100 : vector<64xf32> to vector<1x64xf32>
    %102 = arith.addf %90, %101 : vector<1x64xf32>
    %103 = vector.extract_strided_slice %52 {offsets = [136, 0], sizes = [32, 64], strides = [1, 1]} : vector<1088x64xf32> to vector<32x64xf32>
    %104 = arith.truncf %103 : vector<32x64xf32> to vector<32x64xbf16>
    %c0_73 = arith.constant 0 : index
    %c4_74 = arith.constant 4 : index
    %c0_75 = arith.constant 0 : index
    %c0_76 = arith.constant 0 : index
    %105 = vector.load %arg3[%c0_73, %c4_74, %c0_75, %c0_76] : memref<1x32x32x64xbf16, #tpu.memory_space<vmem>>, vector<1x1x32x64xbf16>
    %106 = vector.shape_cast %105 : vector<1x1x32x64xbf16> to vector<32x64xbf16>
    %107 = vector.shape_cast %104 : vector<32x64xbf16> to vector<1x1x32x64xbf16>
    tpu.vector_store %arg3[%c0_73, %c4_74, %c0_75, %c0_76], %107 {strides = array<i32>} : memref<1x32x32x64xbf16, #tpu.memory_space<vmem>>, vector<1x1x32x64xbf16>,
    %cst_77 = arith.constant dense<0.000000e+00> : vector<64xf32>
    %108 = vector.multi_reduction <add>, %103, %cst_77 [0] : vector<32x64xf32> to vector<64xf32>
    %109 = vector.shape_cast %108 : vector<64xf32> to vector<1x64xf32>
    %110 = arith.addf %98, %109 : vector<1x64xf32>
    %111 = arith.mulf %103, %103 : vector<32x64xf32>
    %cst_78 = arith.constant dense<0.000000e+00> : vector<64xf32>
    %112 = vector.multi_reduction <add>, %111, %cst_78 [0] : vector<32x64xf32> to vector<64xf32>
    %113 = vector.shape_cast %112 : vector<64xf32> to vector<1x64xf32>
    %114 = arith.addf %102, %113 : vector<1x64xf32>
    %115 = vector.extract_strided_slice %52 {offsets = [170, 0], sizes = [32, 64], strides = [1, 1]} : vector<1088x64xf32> to vector<32x64xf32>
    %116 = arith.truncf %115 : vector<32x64xf32> to vector<32x64xbf16>
    %c0_79 = arith.constant 0 : index
    %c5_80 = arith.constant 5 : index
    %c0_81 = arith.constant 0 : index
    %c0_82 = arith.constant 0 : index
    %117 = vector.load %arg3[%c0_79, %c5_80, %c0_81, %c0_82] : memref<1x32x32x64xbf16, #tpu.memory_space<vmem>>, vector<1x1x32x64xbf16>
    %118 = vector.shape_cast %117 : vector<1x1x32x64xbf16> to vector<32x64xbf16>
    %119 = vector.shape_cast %116 : vector<32x64xbf16> to vector<1x1x32x64xbf16>
    tpu.vector_store %arg3[%c0_79, %c5_80, %c0_81, %c0_82], %119 {strides = array<i32>} : memref<1x32x32x64xbf16, #tpu.memory_space<vmem>>, vector<1x1x32x64xbf16>,
    %cst_83 = arith.constant dense<0.000000e+00> : vector<64xf32>
    %120 = vector.multi_reduction <add>, %115, %cst_83 [0] : vector<32x64xf32> to vector<64xf32>
    %121 = vector.shape_cast %120 : vector<64xf32> to vector<1x64xf32>
    %122 = arith.addf %110, %121 : vector<1x64xf32>
    %123 = arith.mulf %115, %115 : vector<32x64xf32>
    %cst_84 = arith.constant dense<0.000000e+00> : vector<64xf32>
    %124 = vector.multi_reduction <add>, %123, %cst_84 [0] : vector<32x64xf32> to vector<64xf32>
    %125 = vector.shape_cast %124 : vector<64xf32> to vector<1x64xf32>
    %126 = arith.addf %114, %125 : vector<1x64xf32>
    %127 = vector.extract_strided_slice %52 {offsets = [204, 0], sizes = [32, 64], strides = [1, 1]} : vector<1088x64xf32> to vector<32x64xf32>
    %128 = arith.truncf %127 : vector<32x64xf32> to vector<32x64xbf16>
    %c0_85 = arith.constant 0 : index
    %c6_86 = arith.constant 6 : index
    %c0_87 = arith.constant 0 : index
    %c0_88 = arith.constant 0 : index
    %129 = vector.load %arg3[%c0_85, %c6_86, %c0_87, %c0_88] : memref<1x32x32x64xbf16, #tpu.memory_space<vmem>>, vector<1x1x32x64xbf16>
    %130 = vector.shape_cast %129 : vector<1x1x32x64xbf16> to vector<32x64xbf16>
    %131 = vector.shape_cast %128 : vector<32x64xbf16> to vector<1x1x32x64xbf16>
    tpu.vector_store %arg3[%c0_85, %c6_86, %c0_87, %c0_88], %131 {strides = array<i32>} : memref<1x32x32x64xbf16, #tpu.memory_space<vmem>>, vector<1x1x32x64xbf16>,
    %cst_89 = arith.constant dense<0.000000e+00> : vector<64xf32>
    %132 = vector.multi_reduction <add>, %127, %cst_89 [0] : vector<32x64xf32> to vector<64xf32>
    %133 = vector.shape_cast %132 : vector<64xf32> to vector<1x64xf32>
    %134 = arith.addf %122, %133 : vector<1x64xf32>
    %135 = arith.mulf %127, %127 : vector<32x64xf32>
    %cst_90 = arith.constant dense<0.000000e+00> : vector<64xf32>
    %136 = vector.multi_reduction <add>, %135, %cst_90 [0] : vector<32x64xf32> to vector<64xf32>
    %137 = vector.shape_cast %136 : vector<64xf32> to vector<1x64xf32>
    %138 = arith.addf %126, %137 : vector<1x64xf32>
    %139 = vector.extract_strided_slice %52 {offsets = [238, 0], sizes = [32, 64], strides = [1, 1]} : vector<1088x64xf32> to vector<32x64xf32>
    %140 = arith.truncf %139 : vector<32x64xf32> to vector<32x64xbf16>
    %c0_91 = arith.constant 0 : index
    %c7_92 = arith.constant 7 : index
    %c0_93 = arith.constant 0 : index
    %c0_94 = arith.constant 0 : index
    %141 = vector.load %arg3[%c0_91, %c7_92, %c0_93, %c0_94] : memref<1x32x32x64xbf16, #tpu.memory_space<vmem>>, vector<1x1x32x64xbf16>
    %142 = vector.shape_cast %141 : vector<1x1x32x64xbf16> to vector<32x64xbf16>
    %143 = vector.shape_cast %140 : vector<32x64xbf16> to vector<1x1x32x64xbf16>
    tpu.vector_store %arg3[%c0_91, %c7_92, %c0_93, %c0_94], %143 {strides = array<i32>} : memref<1x32x32x64xbf16, #tpu.memory_space<vmem>>, vector<1x1x32x64xbf16>,
    %cst_95 = arith.constant dense<0.000000e+00> : vector<64xf32>
    %144 = vector.multi_reduction <add>, %139, %cst_95 [0] : vector<32x64xf32> to vector<64xf32>
    %145 = vector.shape_cast %144 : vector<64xf32> to vector<1x64xf32>
    %146 = arith.addf %134, %145 : vector<1x64xf32>
    %147 = arith.mulf %139, %139 : vector<32x64xf32>
    %cst_96 = arith.constant dense<0.000000e+00> : vector<64xf32>
    %148 = vector.multi_reduction <add>, %147, %cst_96 [0] : vector<32x64xf32> to vector<64xf32>
    %149 = vector.shape_cast %148 : vector<64xf32> to vector<1x64xf32>
    %150 = arith.addf %138, %149 : vector<1x64xf32>
    %151 = vector.extract_strided_slice %52 {offsets = [272, 0], sizes = [32, 64], strides = [1, 1]} : vector<1088x64xf32> to vector<32x64xf32>
    %152 = arith.truncf %151 : vector<32x64xf32> to vector<32x64xbf16>
    %c0_97 = arith.constant 0 : index
    %c8_98 = arith.constant 8 : index
    %c0_99 = arith.constant 0 : index
    %c0_100 = arith.constant 0 : index
    %153 = vector.load %arg3[%c0_97, %c8_98, %c0_99, %c0_100] : memref<1x32x32x64xbf16, #tpu.memory_space<vmem>>, vector<1x1x32x64xbf16>
    %154 = vector.shape_cast %153 : vector<1x1x32x64xbf16> to vector<32x64xbf16>
    %155 = vector.shape_cast %152 : vector<32x64xbf16> to vector<1x1x32x64xbf16>
    tpu.vector_store %arg3[%c0_97, %c8_98, %c0_99, %c0_100], %155 {strides = array<i32>} : memref<1x32x32x64xbf16, #tpu.memory_space<vmem>>, vector<1x1x32x64xbf16>,
    %cst_101 = arith.constant dense<0.000000e+00> : vector<64xf32>
    %156 = vector.multi_reduction <add>, %151, %cst_101 [0] : vector<32x64xf32> to vector<64xf32>
    %157 = vector.shape_cast %156 : vector<64xf32> to vector<1x64xf32>
    %158 = arith.addf %146, %157 : vector<1x64xf32>
    %159 = arith.mulf %151, %151 : vector<32x64xf32>
    %cst_102 = arith.constant dense<0.000000e+00> : vector<64xf32>
    %160 = vector.multi_reduction <add>, %159, %cst_102 [0] : vector<32x64xf32> to vector<64xf32>
    %161 = vector.shape_cast %160 : vector<64xf32> to vector<1x64xf32>
    %162 = arith.addf %150, %161 : vector<1x64xf32>
    %163 = vector.extract_strided_slice %52 {offsets = [306, 0], sizes = [32, 64], strides = [1, 1]} : vector<1088x64xf32> to vector<32x64xf32>
    %164 = arith.truncf %163 : vector<32x64xf32> to vector<32x64xbf16>
    %c0_103 = arith.constant 0 : index
    %c9 = arith.constant 9 : index
    %c0_104 = arith.constant 0 : index
    %c0_105 = arith.constant 0 : index
    %165 = vector.load %arg3[%c0_103, %c9, %c0_104, %c0_105] : memref<1x32x32x64xbf16, #tpu.memory_space<vmem>>, vector<1x1x32x64xbf16>
    %166 = vector.shape_cast %165 : vector<1x1x32x64xbf16> to vector<32x64xbf16>
    %167 = vector.shape_cast %164 : vector<32x64xbf16> to vector<1x1x32x64xbf16>
    tpu.vector_store %arg3[%c0_103, %c9, %c0_104, %c0_105], %167 {strides = array<i32>} : memref<1x32x32x64xbf16, #tpu.memory_space<vmem>>, vector<1x1x32x64xbf16>,
    %cst_106 = arith.constant dense<0.000000e+00> : vector<64xf32>
    %168 = vector.multi_reduction <add>, %163, %cst_106 [0] : vector<32x64xf32> to vector<64xf32>
    %169 = vector.shape_cast %168 : vector<64xf32> to vector<1x64xf32>
    %170 = arith.addf %158, %169 : vector<1x64xf32>
    %171 = arith.mulf %163, %163 : vector<32x64xf32>
    %cst_107 = arith.constant dense<0.000000e+00> : vector<64xf32>
    %172 = vector.multi_reduction <add>, %171, %cst_107 [0] : vector<32x64xf32> to vector<64xf32>
    %173 = vector.shape_cast %172 : vector<64xf32> to vector<1x64xf32>
    %174 = arith.addf %162, %173 : vector<1x64xf32>
    %175 = vector.extract_strided_slice %52 {offsets = [340, 0], sizes = [32, 64], strides = [1, 1]} : vector<1088x64xf32> to vector<32x64xf32>
    %176 = arith.truncf %175 : vector<32x64xf32> to vector<32x64xbf16>
    %c0_108 = arith.constant 0 : index
    %c10 = arith.constant 10 : index
    %c0_109 = arith.constant 0 : index
    %c0_110 = arith.constant 0 : index
    %177 = vector.load %arg3[%c0_108, %c10, %c0_109, %c0_110] : memref<1x32x32x64xbf16, #tpu.memory_space<vmem>>, vector<1x1x32x64xbf16>
    %178 = vector.shape_cast %177 : vector<1x1x32x64xbf16> to vector<32x64xbf16>
    %179 = vector.shape_cast %176 : vector<32x64xbf16> to vector<1x1x32x64xbf16>
    tpu.vector_store %arg3[%c0_108, %c10, %c0_109, %c0_110], %179 {strides = array<i32>} : memref<1x32x32x64xbf16, #tpu.memory_space<vmem>>, vector<1x1x32x64xbf16>,
    %cst_111 = arith.constant dense<0.000000e+00> : vector<64xf32>
    %180 = vector.multi_reduction <add>, %175, %cst_111 [0] : vector<32x64xf32> to vector<64xf32>
    %181 = vector.shape_cast %180 : vector<64xf32> to vector<1x64xf32>
    %182 = arith.addf %170, %181 : vector<1x64xf32>
    %183 = arith.mulf %175, %175 : vector<32x64xf32>
    %cst_112 = arith.constant dense<0.000000e+00> : vector<64xf32>
    %184 = vector.multi_reduction <add>, %183, %cst_112 [0] : vector<32x64xf32> to vector<64xf32>
    %185 = vector.shape_cast %184 : vector<64xf32> to vector<1x64xf32>
    %186 = arith.addf %174, %185 : vector<1x64xf32>
    %187 = vector.extract_strided_slice %52 {offsets = [374, 0], sizes = [32, 64], strides = [1, 1]} : vector<1088x64xf32> to vector<32x64xf32>
    %188 = arith.truncf %187 : vector<32x64xf32> to vector<32x64xbf16>
    %c0_113 = arith.constant 0 : index
    %c11 = arith.constant 11 : index
    %c0_114 = arith.constant 0 : index
    %c0_115 = arith.constant 0 : index
    %189 = vector.load %arg3[%c0_113, %c11, %c0_114, %c0_115] : memref<1x32x32x64xbf16, #tpu.memory_space<vmem>>, vector<1x1x32x64xbf16>
    %190 = vector.shape_cast %189 : vector<1x1x32x64xbf16> to vector<32x64xbf16>
    %191 = vector.shape_cast %188 : vector<32x64xbf16> to vector<1x1x32x64xbf16>
    tpu.vector_store %arg3[%c0_113, %c11, %c0_114, %c0_115], %191 {strides = array<i32>} : memref<1x32x32x64xbf16, #tpu.memory_space<vmem>>, vector<1x1x32x64xbf16>,
    %cst_116 = arith.constant dense<0.000000e+00> : vector<64xf32>
    %192 = vector.multi_reduction <add>, %187, %cst_116 [0] : vector<32x64xf32> to vector<64xf32>
    %193 = vector.shape_cast %192 : vector<64xf32> to vector<1x64xf32>
    %194 = arith.addf %182, %193 : vector<1x64xf32>
    %195 = arith.mulf %187, %187 : vector<32x64xf32>
    %cst_117 = arith.constant dense<0.000000e+00> : vector<64xf32>
    %196 = vector.multi_reduction <add>, %195, %cst_117 [0] : vector<32x64xf32> to vector<64xf32>
    %197 = vector.shape_cast %196 : vector<64xf32> to vector<1x64xf32>
    %198 = arith.addf %186, %197 : vector<1x64xf32>
    %199 = vector.extract_strided_slice %52 {offsets = [408, 0], sizes = [32, 64], strides = [1, 1]} : vector<1088x64xf32> to vector<32x64xf32>
    %200 = arith.truncf %199 : vector<32x64xf32> to vector<32x64xbf16>
    %c0_118 = arith.constant 0 : index
    %c12 = arith.constant 12 : index
    %c0_119 = arith.constant 0 : index
    %c0_120 = arith.constant 0 : index
    %201 = vector.load %arg3[%c0_118, %c12, %c0_119, %c0_120] : memref<1x32x32x64xbf16, #tpu.memory_space<vmem>>, vector<1x1x32x64xbf16>
    %202 = vector.shape_cast %201 : vector<1x1x32x64xbf16> to vector<32x64xbf16>
    %203 = vector.shape_cast %200 : vector<32x64xbf16> to vector<1x1x32x64xbf16>
    tpu.vector_store %arg3[%c0_118, %c12, %c0_119, %c0_120], %203 {strides = array<i32>} : memref<1x32x32x64xbf16, #tpu.memory_space<vmem>>, vector<1x1x32x64xbf16>,
    %cst_121 = arith.constant dense<0.000000e+00> : vector<64xf32>
    %204 = vector.multi_reduction <add>, %199, %cst_121 [0] : vector<32x64xf32> to vector<64xf32>
    %205 = vector.shape_cast %204 : vector<64xf32> to vector<1x64xf32>
    %206 = arith.addf %194, %205 : vector<1x64xf32>
    %207 = arith.mulf %199, %199 : vector<32x64xf32>
    %cst_122 = arith.constant dense<0.000000e+00> : vector<64xf32>
    %208 = vector.multi_reduction <add>, %207, %cst_122 [0] : vector<32x64xf32> to vector<64xf32>
    %209 = vector.shape_cast %208 : vector<64xf32> to vector<1x64xf32>
    %210 = arith.addf %198, %209 : vector<1x64xf32>
    %211 = vector.extract_strided_slice %52 {offsets = [442, 0], sizes = [32, 64], strides = [1, 1]} : vector<1088x64xf32> to vector<32x64xf32>
    %212 = arith.truncf %211 : vector<32x64xf32> to vector<32x64xbf16>
    %c0_123 = arith.constant 0 : index
    %c13 = arith.constant 13 : index
    %c0_124 = arith.constant 0 : index
    %c0_125 = arith.constant 0 : index
    %213 = vector.load %arg3[%c0_123, %c13, %c0_124, %c0_125] : memref<1x32x32x64xbf16, #tpu.memory_space<vmem>>, vector<1x1x32x64xbf16>
    %214 = vector.shape_cast %213 : vector<1x1x32x64xbf16> to vector<32x64xbf16>
    %215 = vector.shape_cast %212 : vector<32x64xbf16> to vector<1x1x32x64xbf16>
    tpu.vector_store %arg3[%c0_123, %c13, %c0_124, %c0_125], %215 {strides = array<i32>} : memref<1x32x32x64xbf16, #tpu.memory_space<vmem>>, vector<1x1x32x64xbf16>,
    %cst_126 = arith.constant dense<0.000000e+00> : vector<64xf32>
    %216 = vector.multi_reduction <add>, %211, %cst_126 [0] : vector<32x64xf32> to vector<64xf32>
    %217 = vector.shape_cast %216 : vector<64xf32> to vector<1x64xf32>
    %218 = arith.addf %206, %217 : vector<1x64xf32>
    %219 = arith.mulf %211, %211 : vector<32x64xf32>
    %cst_127 = arith.constant dense<0.000000e+00> : vector<64xf32>
    %220 = vector.multi_reduction <add>, %219, %cst_127 [0] : vector<32x64xf32> to vector<64xf32>
    %221 = vector.shape_cast %220 : vector<64xf32> to vector<1x64xf32>
    %222 = arith.addf %210, %221 : vector<1x64xf32>
    %223 = vector.extract_strided_slice %52 {offsets = [476, 0], sizes = [32, 64], strides = [1, 1]} : vector<1088x64xf32> to vector<32x64xf32>
    %224 = arith.truncf %223 : vector<32x64xf32> to vector<32x64xbf16>
    %c0_128 = arith.constant 0 : index
    %c14 = arith.constant 14 : index
    %c0_129 = arith.constant 0 : index
    %c0_130 = arith.constant 0 : index
    %225 = vector.load %arg3[%c0_128, %c14, %c0_129, %c0_130] : memref<1x32x32x64xbf16, #tpu.memory_space<vmem>>, vector<1x1x32x64xbf16>
    %226 = vector.shape_cast %225 : vector<1x1x32x64xbf16> to vector<32x64xbf16>
    %227 = vector.shape_cast %224 : vector<32x64xbf16> to vector<1x1x32x64xbf16>
    tpu.vector_store %arg3[%c0_128, %c14, %c0_129, %c0_130], %227 {strides = array<i32>} : memref<1x32x32x64xbf16, #tpu.memory_space<vmem>>, vector<1x1x32x64xbf16>,
    %cst_131 = arith.constant dense<0.000000e+00> : vector<64xf32>
    %228 = vector.multi_reduction <add>, %223, %cst_131 [0] : vector<32x64xf32> to vector<64xf32>
    %229 = vector.shape_cast %228 : vector<64xf32> to vector<1x64xf32>
    %230 = arith.addf %218, %229 : vector<1x64xf32>
    %231 = arith.mulf %223, %223 : vector<32x64xf32>
    %cst_132 = arith.constant dense<0.000000e+00> : vector<64xf32>
    %232 = vector.multi_reduction <add>, %231, %cst_132 [0] : vector<32x64xf32> to vector<64xf32>
    %233 = vector.shape_cast %232 : vector<64xf32> to vector<1x64xf32>
    %234 = arith.addf %222, %233 : vector<1x64xf32>
    %235 = vector.extract_strided_slice %52 {offsets = [510, 0], sizes = [32, 64], strides = [1, 1]} : vector<1088x64xf32> to vector<32x64xf32>
    %236 = arith.truncf %235 : vector<32x64xf32> to vector<32x64xbf16>
    %c0_133 = arith.constant 0 : index
    %c15 = arith.constant 15 : index
    %c0_134 = arith.constant 0 : index
    %c0_135 = arith.constant 0 : index
    %237 = vector.load %arg3[%c0_133, %c15, %c0_134, %c0_135] : memref<1x32x32x64xbf16, #tpu.memory_space<vmem>>, vector<1x1x32x64xbf16>
    %238 = vector.shape_cast %237 : vector<1x1x32x64xbf16> to vector<32x64xbf16>
    %239 = vector.shape_cast %236 : vector<32x64xbf16> to vector<1x1x32x64xbf16>
    tpu.vector_store %arg3[%c0_133, %c15, %c0_134, %c0_135], %239 {strides = array<i32>} : memref<1x32x32x64xbf16, #tpu.memory_space<vmem>>, vector<1x1x32x64xbf16>,
    %cst_136 = arith.constant dense<0.000000e+00> : vector<64xf32>
    %240 = vector.multi_reduction <add>, %235, %cst_136 [0] : vector<32x64xf32> to vector<64xf32>
    %241 = vector.shape_cast %240 : vector<64xf32> to vector<1x64xf32>
    %242 = arith.addf %230, %241 : vector<1x64xf32>
    %243 = arith.mulf %235, %235 : vector<32x64xf32>
    %cst_137 = arith.constant dense<0.000000e+00> : vector<64xf32>
    %244 = vector.multi_reduction <add>, %243, %cst_137 [0] : vector<32x64xf32> to vector<64xf32>
    %245 = vector.shape_cast %244 : vector<64xf32> to vector<1x64xf32>
    %246 = arith.addf %234, %245 : vector<1x64xf32>
    %247 = vector.extract_strided_slice %52 {offsets = [544, 0], sizes = [32, 64], strides = [1, 1]} : vector<1088x64xf32> to vector<32x64xf32>
    %248 = arith.truncf %247 : vector<32x64xf32> to vector<32x64xbf16>
    %c0_138 = arith.constant 0 : index
    %c16 = arith.constant 16 : index
    %c0_139 = arith.constant 0 : index
    %c0_140 = arith.constant 0 : index
    %249 = vector.load %arg3[%c0_138, %c16, %c0_139, %c0_140] : memref<1x32x32x64xbf16, #tpu.memory_space<vmem>>, vector<1x1x32x64xbf16>
    %250 = vector.shape_cast %249 : vector<1x1x32x64xbf16> to vector<32x64xbf16>
    %251 = vector.shape_cast %248 : vector<32x64xbf16> to vector<1x1x32x64xbf16>
    tpu.vector_store %arg3[%c0_138, %c16, %c0_139, %c0_140], %251 {strides = array<i32>} : memref<1x32x32x64xbf16, #tpu.memory_space<vmem>>, vector<1x1x32x64xbf16>,
    %cst_141 = arith.constant dense<0.000000e+00> : vector<64xf32>
    %252 = vector.multi_reduction <add>, %247, %cst_141 [0] : vector<32x64xf32> to vector<64xf32>
    %253 = vector.shape_cast %252 : vector<64xf32> to vector<1x64xf32>
    %254 = arith.addf %242, %253 : vector<1x64xf32>
    %255 = arith.mulf %247, %247 : vector<32x64xf32>
    %cst_142 = arith.constant dense<0.000000e+00> : vector<64xf32>
    %256 = vector.multi_reduction <add>, %255, %cst_142 [0] : vector<32x64xf32> to vector<64xf32>
    %257 = vector.shape_cast %256 : vector<64xf32> to vector<1x64xf32>
    %258 = arith.addf %246, %257 : vector<1x64xf32>
    %259 = vector.extract_strided_slice %52 {offsets = [578, 0], sizes = [32, 64], strides = [1, 1]} : vector<1088x64xf32> to vector<32x64xf32>
    %260 = arith.truncf %259 : vector<32x64xf32> to vector<32x64xbf16>
    %c0_143 = arith.constant 0 : index
    %c17 = arith.constant 17 : index
    %c0_144 = arith.constant 0 : index
    %c0_145 = arith.constant 0 : index
    %261 = vector.load %arg3[%c0_143, %c17, %c0_144, %c0_145] : memref<1x32x32x64xbf16, #tpu.memory_space<vmem>>, vector<1x1x32x64xbf16>
    %262 = vector.shape_cast %261 : vector<1x1x32x64xbf16> to vector<32x64xbf16>
    %263 = vector.shape_cast %260 : vector<32x64xbf16> to vector<1x1x32x64xbf16>
    tpu.vector_store %arg3[%c0_143, %c17, %c0_144, %c0_145], %263 {strides = array<i32>} : memref<1x32x32x64xbf16, #tpu.memory_space<vmem>>, vector<1x1x32x64xbf16>,
    %cst_146 = arith.constant dense<0.000000e+00> : vector<64xf32>
    %264 = vector.multi_reduction <add>, %259, %cst_146 [0] : vector<32x64xf32> to vector<64xf32>
    %265 = vector.shape_cast %264 : vector<64xf32> to vector<1x64xf32>
    %266 = arith.addf %254, %265 : vector<1x64xf32>
    %267 = arith.mulf %259, %259 : vector<32x64xf32>
    %cst_147 = arith.constant dense<0.000000e+00> : vector<64xf32>
    %268 = vector.multi_reduction <add>, %267, %cst_147 [0] : vector<32x64xf32> to vector<64xf32>
    %269 = vector.shape_cast %268 : vector<64xf32> to vector<1x64xf32>
    %270 = arith.addf %258, %269 : vector<1x64xf32>
    %271 = vector.extract_strided_slice %52 {offsets = [612, 0], sizes = [32, 64], strides = [1, 1]} : vector<1088x64xf32> to vector<32x64xf32>
    %272 = arith.truncf %271 : vector<32x64xf32> to vector<32x64xbf16>
    %c0_148 = arith.constant 0 : index
    %c18 = arith.constant 18 : index
    %c0_149 = arith.constant 0 : index
    %c0_150 = arith.constant 0 : index
    %273 = vector.load %arg3[%c0_148, %c18, %c0_149, %c0_150] : memref<1x32x32x64xbf16, #tpu.memory_space<vmem>>, vector<1x1x32x64xbf16>
    %274 = vector.shape_cast %273 : vector<1x1x32x64xbf16> to vector<32x64xbf16>
    %275 = vector.shape_cast %272 : vector<32x64xbf16> to vector<1x1x32x64xbf16>
    tpu.vector_store %arg3[%c0_148, %c18, %c0_149, %c0_150], %275 {strides = array<i32>} : memref<1x32x32x64xbf16, #tpu.memory_space<vmem>>, vector<1x1x32x64xbf16>,
    %cst_151 = arith.constant dense<0.000000e+00> : vector<64xf32>
    %276 = vector.multi_reduction <add>, %271, %cst_151 [0] : vector<32x64xf32> to vector<64xf32>
    %277 = vector.shape_cast %276 : vector<64xf32> to vector<1x64xf32>
    %278 = arith.addf %266, %277 : vector<1x64xf32>
    %279 = arith.mulf %271, %271 : vector<32x64xf32>
    %cst_152 = arith.constant dense<0.000000e+00> : vector<64xf32>
    %280 = vector.multi_reduction <add>, %279, %cst_152 [0] : vector<32x64xf32> to vector<64xf32>
    %281 = vector.shape_cast %280 : vector<64xf32> to vector<1x64xf32>
    %282 = arith.addf %270, %281 : vector<1x64xf32>
    %283 = vector.extract_strided_slice %52 {offsets = [646, 0], sizes = [32, 64], strides = [1, 1]} : vector<1088x64xf32> to vector<32x64xf32>
    %284 = arith.truncf %283 : vector<32x64xf32> to vector<32x64xbf16>
    %c0_153 = arith.constant 0 : index
    %c19 = arith.constant 19 : index
    %c0_154 = arith.constant 0 : index
    %c0_155 = arith.constant 0 : index
    %285 = vector.load %arg3[%c0_153, %c19, %c0_154, %c0_155] : memref<1x32x32x64xbf16, #tpu.memory_space<vmem>>, vector<1x1x32x64xbf16>
    %286 = vector.shape_cast %285 : vector<1x1x32x64xbf16> to vector<32x64xbf16>
    %287 = vector.shape_cast %284 : vector<32x64xbf16> to vector<1x1x32x64xbf16>
    tpu.vector_store %arg3[%c0_153, %c19, %c0_154, %c0_155], %287 {strides = array<i32>} : memref<1x32x32x64xbf16, #tpu.memory_space<vmem>>, vector<1x1x32x64xbf16>,
    %cst_156 = arith.constant dense<0.000000e+00> : vector<64xf32>
    %288 = vector.multi_reduction <add>, %283, %cst_156 [0] : vector<32x64xf32> to vector<64xf32>
    %289 = vector.shape_cast %288 : vector<64xf32> to vector<1x64xf32>
    %290 = arith.addf %278, %289 : vector<1x64xf32>
    %291 = arith.mulf %283, %283 : vector<32x64xf32>
    %cst_157 = arith.constant dense<0.000000e+00> : vector<64xf32>
    %292 = vector.multi_reduction <add>, %291, %cst_157 [0] : vector<32x64xf32> to vector<64xf32>
    %293 = vector.shape_cast %292 : vector<64xf32> to vector<1x64xf32>
    %294 = arith.addf %282, %293 : vector<1x64xf32>
    %295 = vector.extract_strided_slice %52 {offsets = [680, 0], sizes = [32, 64], strides = [1, 1]} : vector<1088x64xf32> to vector<32x64xf32>
    %296 = arith.truncf %295 : vector<32x64xf32> to vector<32x64xbf16>
    %c0_158 = arith.constant 0 : index
    %c20 = arith.constant 20 : index
    %c0_159 = arith.constant 0 : index
    %c0_160 = arith.constant 0 : index
    %297 = vector.load %arg3[%c0_158, %c20, %c0_159, %c0_160] : memref<1x32x32x64xbf16, #tpu.memory_space<vmem>>, vector<1x1x32x64xbf16>
    %298 = vector.shape_cast %297 : vector<1x1x32x64xbf16> to vector<32x64xbf16>
    %299 = vector.shape_cast %296 : vector<32x64xbf16> to vector<1x1x32x64xbf16>
    tpu.vector_store %arg3[%c0_158, %c20, %c0_159, %c0_160], %299 {strides = array<i32>} : memref<1x32x32x64xbf16, #tpu.memory_space<vmem>>, vector<1x1x32x64xbf16>,
    %cst_161 = arith.constant dense<0.000000e+00> : vector<64xf32>
    %300 = vector.multi_reduction <add>, %295, %cst_161 [0] : vector<32x64xf32> to vector<64xf32>
    %301 = vector.shape_cast %300 : vector<64xf32> to vector<1x64xf32>
    %302 = arith.addf %290, %301 : vector<1x64xf32>
    %303 = arith.mulf %295, %295 : vector<32x64xf32>
    %cst_162 = arith.constant dense<0.000000e+00> : vector<64xf32>
    %304 = vector.multi_reduction <add>, %303, %cst_162 [0] : vector<32x64xf32> to vector<64xf32>
    %305 = vector.shape_cast %304 : vector<64xf32> to vector<1x64xf32>
    %306 = arith.addf %294, %305 : vector<1x64xf32>
    %307 = vector.extract_strided_slice %52 {offsets = [714, 0], sizes = [32, 64], strides = [1, 1]} : vector<1088x64xf32> to vector<32x64xf32>
    %308 = arith.truncf %307 : vector<32x64xf32> to vector<32x64xbf16>
    %c0_163 = arith.constant 0 : index
    %c21 = arith.constant 21 : index
    %c0_164 = arith.constant 0 : index
    %c0_165 = arith.constant 0 : index
    %309 = vector.load %arg3[%c0_163, %c21, %c0_164, %c0_165] : memref<1x32x32x64xbf16, #tpu.memory_space<vmem>>, vector<1x1x32x64xbf16>
    %310 = vector.shape_cast %309 : vector<1x1x32x64xbf16> to vector<32x64xbf16>
    %311 = vector.shape_cast %308 : vector<32x64xbf16> to vector<1x1x32x64xbf16>
    tpu.vector_store %arg3[%c0_163, %c21, %c0_164, %c0_165], %311 {strides = array<i32>} : memref<1x32x32x64xbf16, #tpu.memory_space<vmem>>, vector<1x1x32x64xbf16>,
    %cst_166 = arith.constant dense<0.000000e+00> : vector<64xf32>
    %312 = vector.multi_reduction <add>, %307, %cst_166 [0] : vector<32x64xf32> to vector<64xf32>
    %313 = vector.shape_cast %312 : vector<64xf32> to vector<1x64xf32>
    %314 = arith.addf %302, %313 : vector<1x64xf32>
    %315 = arith.mulf %307, %307 : vector<32x64xf32>
    %cst_167 = arith.constant dense<0.000000e+00> : vector<64xf32>
    %316 = vector.multi_reduction <add>, %315, %cst_167 [0] : vector<32x64xf32> to vector<64xf32>
    %317 = vector.shape_cast %316 : vector<64xf32> to vector<1x64xf32>
    %318 = arith.addf %306, %317 : vector<1x64xf32>
    %319 = vector.extract_strided_slice %52 {offsets = [748, 0], sizes = [32, 64], strides = [1, 1]} : vector<1088x64xf32> to vector<32x64xf32>
    %320 = arith.truncf %319 : vector<32x64xf32> to vector<32x64xbf16>
    %c0_168 = arith.constant 0 : index
    %c22 = arith.constant 22 : index
    %c0_169 = arith.constant 0 : index
    %c0_170 = arith.constant 0 : index
    %321 = vector.load %arg3[%c0_168, %c22, %c0_169, %c0_170] : memref<1x32x32x64xbf16, #tpu.memory_space<vmem>>, vector<1x1x32x64xbf16>
    %322 = vector.shape_cast %321 : vector<1x1x32x64xbf16> to vector<32x64xbf16>
    %323 = vector.shape_cast %320 : vector<32x64xbf16> to vector<1x1x32x64xbf16>
    tpu.vector_store %arg3[%c0_168, %c22, %c0_169, %c0_170], %323 {strides = array<i32>} : memref<1x32x32x64xbf16, #tpu.memory_space<vmem>>, vector<1x1x32x64xbf16>,
    %cst_171 = arith.constant dense<0.000000e+00> : vector<64xf32>
    %324 = vector.multi_reduction <add>, %319, %cst_171 [0] : vector<32x64xf32> to vector<64xf32>
    %325 = vector.shape_cast %324 : vector<64xf32> to vector<1x64xf32>
    %326 = arith.addf %314, %325 : vector<1x64xf32>
    %327 = arith.mulf %319, %319 : vector<32x64xf32>
    %cst_172 = arith.constant dense<0.000000e+00> : vector<64xf32>
    %328 = vector.multi_reduction <add>, %327, %cst_172 [0] : vector<32x64xf32> to vector<64xf32>
    %329 = vector.shape_cast %328 : vector<64xf32> to vector<1x64xf32>
    %330 = arith.addf %318, %329 : vector<1x64xf32>
    %331 = vector.extract_strided_slice %52 {offsets = [782, 0], sizes = [32, 64], strides = [1, 1]} : vector<1088x64xf32> to vector<32x64xf32>
    %332 = arith.truncf %331 : vector<32x64xf32> to vector<32x64xbf16>
    %c0_173 = arith.constant 0 : index
    %c23 = arith.constant 23 : index
    %c0_174 = arith.constant 0 : index
    %c0_175 = arith.constant 0 : index
    %333 = vector.load %arg3[%c0_173, %c23, %c0_174, %c0_175] : memref<1x32x32x64xbf16, #tpu.memory_space<vmem>>, vector<1x1x32x64xbf16>
    %334 = vector.shape_cast %333 : vector<1x1x32x64xbf16> to vector<32x64xbf16>
    %335 = vector.shape_cast %332 : vector<32x64xbf16> to vector<1x1x32x64xbf16>
    tpu.vector_store %arg3[%c0_173, %c23, %c0_174, %c0_175], %335 {strides = array<i32>} : memref<1x32x32x64xbf16, #tpu.memory_space<vmem>>, vector<1x1x32x64xbf16>,
    %cst_176 = arith.constant dense<0.000000e+00> : vector<64xf32>
    %336 = vector.multi_reduction <add>, %331, %cst_176 [0] : vector<32x64xf32> to vector<64xf32>
    %337 = vector.shape_cast %336 : vector<64xf32> to vector<1x64xf32>
    %338 = arith.addf %326, %337 : vector<1x64xf32>
    %339 = arith.mulf %331, %331 : vector<32x64xf32>
    %cst_177 = arith.constant dense<0.000000e+00> : vector<64xf32>
    %340 = vector.multi_reduction <add>, %339, %cst_177 [0] : vector<32x64xf32> to vector<64xf32>
    %341 = vector.shape_cast %340 : vector<64xf32> to vector<1x64xf32>
    %342 = arith.addf %330, %341 : vector<1x64xf32>
    %343 = vector.extract_strided_slice %52 {offsets = [816, 0], sizes = [32, 64], strides = [1, 1]} : vector<1088x64xf32> to vector<32x64xf32>
    %344 = arith.truncf %343 : vector<32x64xf32> to vector<32x64xbf16>
    %c0_178 = arith.constant 0 : index
    %c24 = arith.constant 24 : index
    %c0_179 = arith.constant 0 : index
    %c0_180 = arith.constant 0 : index
    %345 = vector.load %arg3[%c0_178, %c24, %c0_179, %c0_180] : memref<1x32x32x64xbf16, #tpu.memory_space<vmem>>, vector<1x1x32x64xbf16>
    %346 = vector.shape_cast %345 : vector<1x1x32x64xbf16> to vector<32x64xbf16>
    %347 = vector.shape_cast %344 : vector<32x64xbf16> to vector<1x1x32x64xbf16>
    tpu.vector_store %arg3[%c0_178, %c24, %c0_179, %c0_180], %347 {strides = array<i32>} : memref<1x32x32x64xbf16, #tpu.memory_space<vmem>>, vector<1x1x32x64xbf16>,
    %cst_181 = arith.constant dense<0.000000e+00> : vector<64xf32>
    %348 = vector.multi_reduction <add>, %343, %cst_181 [0] : vector<32x64xf32> to vector<64xf32>
    %349 = vector.shape_cast %348 : vector<64xf32> to vector<1x64xf32>
    %350 = arith.addf %338, %349 : vector<1x64xf32>
    %351 = arith.mulf %343, %343 : vector<32x64xf32>
    %cst_182 = arith.constant dense<0.000000e+00> : vector<64xf32>
    %352 = vector.multi_reduction <add>, %351, %cst_182 [0] : vector<32x64xf32> to vector<64xf32>
    %353 = vector.shape_cast %352 : vector<64xf32> to vector<1x64xf32>
    %354 = arith.addf %342, %353 : vector<1x64xf32>
    %355 = vector.extract_strided_slice %52 {offsets = [850, 0], sizes = [32, 64], strides = [1, 1]} : vector<1088x64xf32> to vector<32x64xf32>
    %356 = arith.truncf %355 : vector<32x64xf32> to vector<32x64xbf16>
    %c0_183 = arith.constant 0 : index
    %c25 = arith.constant 25 : index
    %c0_184 = arith.constant 0 : index
    %c0_185 = arith.constant 0 : index
    %357 = vector.load %arg3[%c0_183, %c25, %c0_184, %c0_185] : memref<1x32x32x64xbf16, #tpu.memory_space<vmem>>, vector<1x1x32x64xbf16>
    %358 = vector.shape_cast %357 : vector<1x1x32x64xbf16> to vector<32x64xbf16>
    %359 = vector.shape_cast %356 : vector<32x64xbf16> to vector<1x1x32x64xbf16>
    tpu.vector_store %arg3[%c0_183, %c25, %c0_184, %c0_185], %359 {strides = array<i32>} : memref<1x32x32x64xbf16, #tpu.memory_space<vmem>>, vector<1x1x32x64xbf16>,
    %cst_186 = arith.constant dense<0.000000e+00> : vector<64xf32>
    %360 = vector.multi_reduction <add>, %355, %cst_186 [0] : vector<32x64xf32> to vector<64xf32>
    %361 = vector.shape_cast %360 : vector<64xf32> to vector<1x64xf32>
    %362 = arith.addf %350, %361 : vector<1x64xf32>
    %363 = arith.mulf %355, %355 : vector<32x64xf32>
    %cst_187 = arith.constant dense<0.000000e+00> : vector<64xf32>
    %364 = vector.multi_reduction <add>, %363, %cst_187 [0] : vector<32x64xf32> to vector<64xf32>
    %365 = vector.shape_cast %364 : vector<64xf32> to vector<1x64xf32>
    %366 = arith.addf %354, %365 : vector<1x64xf32>
    %367 = vector.extract_strided_slice %52 {offsets = [884, 0], sizes = [32, 64], strides = [1, 1]} : vector<1088x64xf32> to vector<32x64xf32>
    %368 = arith.truncf %367 : vector<32x64xf32> to vector<32x64xbf16>
    %c0_188 = arith.constant 0 : index
    %c26 = arith.constant 26 : index
    %c0_189 = arith.constant 0 : index
    %c0_190 = arith.constant 0 : index
    %369 = vector.load %arg3[%c0_188, %c26, %c0_189, %c0_190] : memref<1x32x32x64xbf16, #tpu.memory_space<vmem>>, vector<1x1x32x64xbf16>
    %370 = vector.shape_cast %369 : vector<1x1x32x64xbf16> to vector<32x64xbf16>
    %371 = vector.shape_cast %368 : vector<32x64xbf16> to vector<1x1x32x64xbf16>
    tpu.vector_store %arg3[%c0_188, %c26, %c0_189, %c0_190], %371 {strides = array<i32>} : memref<1x32x32x64xbf16, #tpu.memory_space<vmem>>, vector<1x1x32x64xbf16>,
    %cst_191 = arith.constant dense<0.000000e+00> : vector<64xf32>
    %372 = vector.multi_reduction <add>, %367, %cst_191 [0] : vector<32x64xf32> to vector<64xf32>
    %373 = vector.shape_cast %372 : vector<64xf32> to vector<1x64xf32>
    %374 = arith.addf %362, %373 : vector<1x64xf32>
    %375 = arith.mulf %367, %367 : vector<32x64xf32>
    %cst_192 = arith.constant dense<0.000000e+00> : vector<64xf32>
    %376 = vector.multi_reduction <add>, %375, %cst_192 [0] : vector<32x64xf32> to vector<64xf32>
    %377 = vector.shape_cast %376 : vector<64xf32> to vector<1x64xf32>
    %378 = arith.addf %366, %377 : vector<1x64xf32>
    %379 = vector.extract_strided_slice %52 {offsets = [918, 0], sizes = [32, 64], strides = [1, 1]} : vector<1088x64xf32> to vector<32x64xf32>
    %380 = arith.truncf %379 : vector<32x64xf32> to vector<32x64xbf16>
    %c0_193 = arith.constant 0 : index
    %c27 = arith.constant 27 : index
    %c0_194 = arith.constant 0 : index
    %c0_195 = arith.constant 0 : index
    %381 = vector.load %arg3[%c0_193, %c27, %c0_194, %c0_195] : memref<1x32x32x64xbf16, #tpu.memory_space<vmem>>, vector<1x1x32x64xbf16>
    %382 = vector.shape_cast %381 : vector<1x1x32x64xbf16> to vector<32x64xbf16>
    %383 = vector.shape_cast %380 : vector<32x64xbf16> to vector<1x1x32x64xbf16>
    tpu.vector_store %arg3[%c0_193, %c27, %c0_194, %c0_195], %383 {strides = array<i32>} : memref<1x32x32x64xbf16, #tpu.memory_space<vmem>>, vector<1x1x32x64xbf16>,
    %cst_196 = arith.constant dense<0.000000e+00> : vector<64xf32>
    %384 = vector.multi_reduction <add>, %379, %cst_196 [0] : vector<32x64xf32> to vector<64xf32>
    %385 = vector.shape_cast %384 : vector<64xf32> to vector<1x64xf32>
    %386 = arith.addf %374, %385 : vector<1x64xf32>
    %387 = arith.mulf %379, %379 : vector<32x64xf32>
    %cst_197 = arith.constant dense<0.000000e+00> : vector<64xf32>
    %388 = vector.multi_reduction <add>, %387, %cst_197 [0] : vector<32x64xf32> to vector<64xf32>
    %389 = vector.shape_cast %388 : vector<64xf32> to vector<1x64xf32>
    %390 = arith.addf %378, %389 : vector<1x64xf32>
    %391 = vector.extract_strided_slice %52 {offsets = [952, 0], sizes = [32, 64], strides = [1, 1]} : vector<1088x64xf32> to vector<32x64xf32>
    %392 = arith.truncf %391 : vector<32x64xf32> to vector<32x64xbf16>
    %c0_198 = arith.constant 0 : index
    %c28 = arith.constant 28 : index
    %c0_199 = arith.constant 0 : index
    %c0_200 = arith.constant 0 : index
    %393 = vector.load %arg3[%c0_198, %c28, %c0_199, %c0_200] : memref<1x32x32x64xbf16, #tpu.memory_space<vmem>>, vector<1x1x32x64xbf16>
    %394 = vector.shape_cast %393 : vector<1x1x32x64xbf16> to vector<32x64xbf16>
    %395 = vector.shape_cast %392 : vector<32x64xbf16> to vector<1x1x32x64xbf16>
    tpu.vector_store %arg3[%c0_198, %c28, %c0_199, %c0_200], %395 {strides = array<i32>} : memref<1x32x32x64xbf16, #tpu.memory_space<vmem>>, vector<1x1x32x64xbf16>,
    %cst_201 = arith.constant dense<0.000000e+00> : vector<64xf32>
    %396 = vector.multi_reduction <add>, %391, %cst_201 [0] : vector<32x64xf32> to vector<64xf32>
    %397 = vector.shape_cast %396 : vector<64xf32> to vector<1x64xf32>
    %398 = arith.addf %386, %397 : vector<1x64xf32>
    %399 = arith.mulf %391, %391 : vector<32x64xf32>
    %cst_202 = arith.constant dense<0.000000e+00> : vector<64xf32>
    %400 = vector.multi_reduction <add>, %399, %cst_202 [0] : vector<32x64xf32> to vector<64xf32>
    %401 = vector.shape_cast %400 : vector<64xf32> to vector<1x64xf32>
    %402 = arith.addf %390, %401 : vector<1x64xf32>
    %403 = vector.extract_strided_slice %52 {offsets = [986, 0], sizes = [32, 64], strides = [1, 1]} : vector<1088x64xf32> to vector<32x64xf32>
    %404 = arith.truncf %403 : vector<32x64xf32> to vector<32x64xbf16>
    %c0_203 = arith.constant 0 : index
    %c29 = arith.constant 29 : index
    %c0_204 = arith.constant 0 : index
    %c0_205 = arith.constant 0 : index
    %405 = vector.load %arg3[%c0_203, %c29, %c0_204, %c0_205] : memref<1x32x32x64xbf16, #tpu.memory_space<vmem>>, vector<1x1x32x64xbf16>
    %406 = vector.shape_cast %405 : vector<1x1x32x64xbf16> to vector<32x64xbf16>
    %407 = vector.shape_cast %404 : vector<32x64xbf16> to vector<1x1x32x64xbf16>
    tpu.vector_store %arg3[%c0_203, %c29, %c0_204, %c0_205], %407 {strides = array<i32>} : memref<1x32x32x64xbf16, #tpu.memory_space<vmem>>, vector<1x1x32x64xbf16>,
    %cst_206 = arith.constant dense<0.000000e+00> : vector<64xf32>
    %408 = vector.multi_reduction <add>, %403, %cst_206 [0] : vector<32x64xf32> to vector<64xf32>
    %409 = vector.shape_cast %408 : vector<64xf32> to vector<1x64xf32>
    %410 = arith.addf %398, %409 : vector<1x64xf32>
    %411 = arith.mulf %403, %403 : vector<32x64xf32>
    %cst_207 = arith.constant dense<0.000000e+00> : vector<64xf32>
    %412 = vector.multi_reduction <add>, %411, %cst_207 [0] : vector<32x64xf32> to vector<64xf32>
    %413 = vector.shape_cast %412 : vector<64xf32> to vector<1x64xf32>
    %414 = arith.addf %402, %413 : vector<1x64xf32>
    %415 = vector.extract_strided_slice %52 {offsets = [1020, 0], sizes = [32, 64], strides = [1, 1]} : vector<1088x64xf32> to vector<32x64xf32>
    %416 = arith.truncf %415 : vector<32x64xf32> to vector<32x64xbf16>
    %c0_208 = arith.constant 0 : index
    %c30 = arith.constant 30 : index
    %c0_209 = arith.constant 0 : index
    %c0_210 = arith.constant 0 : index
    %417 = vector.load %arg3[%c0_208, %c30, %c0_209, %c0_210] : memref<1x32x32x64xbf16, #tpu.memory_space<vmem>>, vector<1x1x32x64xbf16>
    %418 = vector.shape_cast %417 : vector<1x1x32x64xbf16> to vector<32x64xbf16>
    %419 = vector.shape_cast %416 : vector<32x64xbf16> to vector<1x1x32x64xbf16>
    tpu.vector_store %arg3[%c0_208, %c30, %c0_209, %c0_210], %419 {strides = array<i32>} : memref<1x32x32x64xbf16, #tpu.memory_space<vmem>>, vector<1x1x32x64xbf16>,
    %cst_211 = arith.constant dense<0.000000e+00> : vector<64xf32>
    %420 = vector.multi_reduction <add>, %415, %cst_211 [0] : vector<32x64xf32> to vector<64xf32>
    %421 = vector.shape_cast %420 : vector<64xf32> to vector<1x64xf32>
    %422 = arith.addf %410, %421 : vector<1x64xf32>
    %423 = arith.mulf %415, %415 : vector<32x64xf32>
    %cst_212 = arith.constant dense<0.000000e+00> : vector<64xf32>
    %424 = vector.multi_reduction <add>, %423, %cst_212 [0] : vector<32x64xf32> to vector<64xf32>
    %425 = vector.shape_cast %424 : vector<64xf32> to vector<1x64xf32>
    %426 = arith.addf %414, %425 : vector<1x64xf32>
    %427 = vector.extract_strided_slice %52 {offsets = [1054, 0], sizes = [32, 64], strides = [1, 1]} : vector<1088x64xf32> to vector<32x64xf32>
    %428 = arith.truncf %427 : vector<32x64xf32> to vector<32x64xbf16>
    %c0_213 = arith.constant 0 : index
    %c31 = arith.constant 31 : index
    %c0_214 = arith.constant 0 : index
    %c0_215 = arith.constant 0 : index
    %429 = vector.load %arg3[%c0_213, %c31, %c0_214, %c0_215] : memref<1x32x32x64xbf16, #tpu.memory_space<vmem>>, vector<1x1x32x64xbf16>
    %430 = vector.shape_cast %429 : vector<1x1x32x64xbf16> to vector<32x64xbf16>
    %431 = vector.shape_cast %428 : vector<32x64xbf16> to vector<1x1x32x64xbf16>
    tpu.vector_store %arg3[%c0_213, %c31, %c0_214, %c0_215], %431 {strides = array<i32>} : memref<1x32x32x64xbf16, #tpu.memory_space<vmem>>, vector<1x1x32x64xbf16>,
    %cst_216 = arith.constant dense<0.000000e+00> : vector<64xf32>
    %432 = vector.multi_reduction <add>, %427, %cst_216 [0] : vector<32x64xf32> to vector<64xf32>
    %433 = vector.shape_cast %432 : vector<64xf32> to vector<1x64xf32>
    %434 = arith.addf %422, %433 : vector<1x64xf32>
    %435 = arith.mulf %427, %427 : vector<32x64xf32>
    %cst_217 = arith.constant dense<0.000000e+00> : vector<64xf32>
    %436 = vector.multi_reduction <add>, %435, %cst_217 [0] : vector<32x64xf32> to vector<64xf32>
    %437 = vector.shape_cast %436 : vector<64xf32> to vector<1x64xf32>
    %438 = arith.addf %426, %437 : vector<1x64xf32>
    %c0_218 = arith.constant 0 : index
    %c0_219 = arith.constant 0 : index
    %c0_220 = arith.constant 0 : index
    %439 = vector.load %arg4[%c0_218, %c0_219, %c0_220] : memref<1x2x64xf32, #tpu.memory_space<vmem>>, vector<1x1x64xf32>
    %440 = vector.shape_cast %439 : vector<1x1x64xf32> to vector<1x64xf32>
    %441 = vector.shape_cast %434 : vector<1x64xf32> to vector<1x1x64xf32>
    tpu.vector_store %arg4[%c0_218, %c0_219, %c0_220], %441 {strides = array<i32>} : memref<1x2x64xf32, #tpu.memory_space<vmem>>, vector<1x1x64xf32>,
    %c0_221 = arith.constant 0 : index
    %c1_222 = arith.constant 1 : index
    %c0_223 = arith.constant 0 : index
    %442 = vector.load %arg4[%c0_221, %c1_222, %c0_223] : memref<1x2x64xf32, #tpu.memory_space<vmem>>, vector<1x1x64xf32>
    %443 = vector.shape_cast %442 : vector<1x1x64xf32> to vector<1x64xf32>
    %444 = vector.shape_cast %438 : vector<1x64xf32> to vector<1x1x64xf32>
    tpu.vector_store %arg4[%c0_221, %c1_222, %c0_223], %444 {strides = array<i32>} : memref<1x2x64xf32, #tpu.memory_space<vmem>>, vector<1x1x64xf32>,
    return
  }
  func.func @transform_0(%arg0: i32) -> (i32, i32, i32) {
    %c0_i32 = arith.constant 0 : i32
    %c0_i32_0 = arith.constant 0 : i32
    %c0_i32_1 = arith.constant 0 : i32
    return %arg0, %c0_i32, %c0_i32_0 : i32, i32, i32
  }
  func.func @transform_1(%arg0: i32) -> (i32, i32, i32) {
    %c0_i32 = arith.constant 0 : i32
    %c0_i32_0 = arith.constant 0 : i32
    %c0_i32_1 = arith.constant 0 : i32
    %c0_i32_2 = arith.constant 0 : i32
    return %c0_i32, %c0_i32_0, %c0_i32_1 : i32, i32, i32
  }
  func.func @transform_2(%arg0: i32) -> (i32, i32, i32, i32) {
    %c0_i32 = arith.constant 0 : i32
    %c0_i32_0 = arith.constant 0 : i32
    %c0_i32_1 = arith.constant 0 : i32
    %c0_i32_2 = arith.constant 0 : i32
    return %arg0, %c0_i32, %c0_i32_0, %c0_i32_1 : i32, i32, i32, i32
  }
  func.func @transform_3(%arg0: i32) -> (i32, i32, i32) {
    %c0_i32 = arith.constant 0 : i32
    %c0_i32_0 = arith.constant 0 : i32
    %c0_i32_1 = arith.constant 0 : i32
    return %arg0, %c0_i32, %c0_i32_0 : i32, i32, i32
  }
}

</mosaic_0001>

<bundles_post_ra>
// kernel: tpu_custom_call.1
= control target key start
LH: loop header
LB: loop body
LE: loop exit
PB: predicated region body
PF: predicated region fallthrough
CT: control target
= control target key end

     0   :  { %9 = vsyncpa [#allocation3], 0  ;;  %s25424_s0 = inlined_call_operand.vmem [shape: bf16[2,1190,3], index: 0, kind: input, shape index: {}]   ;;  %s25425_s1 = inlined_call_operand.vmem [shape: bf16[9,3,64], index: 1, kind: input, shape index: {}]   ;;  %s25426_s2 = inlined_call_operand.hbm [shape: bf16[2,32,32,64], index: 2, kind: output, shape index: {0}]   ;;  %s25427_s3 = inlined_call_operand.hbm [shape: f32[2,2,64], index: 3, kind: output, shape index: {1}]  }
   0x1   :  { %11 = vsyncpa [#allocation3 + $0x1], 0 }
   0x2   :  { %12 = vsyncpa [#allocation5], 0 }
   0x3   :  { %14 = vsyncpa [#allocation5 + $0x1], 0  ;;  %s20092_s12 = smov 0   ;;  %s20094_s13 = smov 0  }
   0x4   :  { %s20096_s14 = smov 0   ;;  %s20098_s15 = smov 0  }
   0x5 LB: > { %s20113_s16 = sadd.s32 4294967295, %s20065_s15   ;;  %s15167_s17 = sadd.s32 4294967294, %s20065_s15   ;;  %s20065_s15 = sphi %s20098_s15, %s25909_s15   ;;  %s20061_s14 = sphi %s20096_s14, %s25908_s14   ;;  %s20057_s13 = sphi %s20094_s13, %s25907_s13   ;;  %s20053_s12 = sphi %s20092_s12, %s25906_s12  }
   0x6   : > { %s20117_s18 = sadd.s32 1, %s20065_s15   ;;  %s74_s19 = sadd.s32 1, %s20061_s14 }
   0x7   : > { %s71_s20 = ssub.s32 %s20065_s15, %s20117_s18  ;;  %p84_p0 = scmp.ne.s32.totalorder %s20061_s14, %s20057_s13 }
   0x8   : > { %p72_p1 = scmp.eq.s32.totalorder %s71_s20, 0  ;;  %p85_p2 = scmp.eq.s32.totalorder %s20113_s16, 1 }
   0x9   : > { %p90_p3 = scmp.ne.s32.totalorder %s20057_s13, %s20053_s12  ;;  %p91_p4 = scmp.eq.s32.totalorder %s15167_s17, 1 }
   0xa   : > { %s20128_s21 = scalar_select %p72_p1, %s20061_s14, %s74_s19  }
   0xb   : > { %p20130_p5 = por %p85_p2, %p84_p0  ;;  %p20134_p6 = por %p91_p4, %p90_p3 }
   0xc   : > { %p15170_p7 = scmp.ge.s32.totalorder %s20065_s15, 1  ;;  %p146_p8 = scmp.lt.s32.totalorder %s20065_s15, 3 }
   0xe   : > { %p147_p9 = pnand %p15170_p7, %p146_p8 }
  0x10   : > { %150 = sbr.rel (%p147_p9) target bundleno = 1765 (0x6e5), region = 28 }
  0x17   : > { %v15174_v0 = vld [vmem:[%s25425_s1 + $0x2] sm:$0x3]  ;;  %vm1418_vm0 = vcmask 1040384   ;;  %vm1419_vm1 = vcmask 1041408   ;;  %v20067_v1 = vmov 65535   ;;  %p175_p10 = scmp.lt.s32.totalorder %s20113_s16, 1 }
  0x18   : > { %v1420_v2 = vsel %vm1418_vm0, 4294967295, %v20067_v1  ;;  %v15588_v3 = vld [vmem:[%s25425_s1 + $0x8] sm:$0x3]  ;;  %v317_v5 = vld [vmem:[%s25425_s1] sm:$0x3]  ;;  %vm1213_vm3 = vcmask 23552  }
  0x19   : > { %v20149_v4 = vsel %vm1419_vm1, %v1420_v2, 0  ;;  %s176_s30 = scalar_select %p175_p10, %s20113_s16, 1  ;;  %v15658_v9 = vld [vmem:[%s25425_s1 + $0xa] sm:$0x3]  ;;  %vm664_vm2 = vsmask.f32 7424 }
  0x1a   : > { %v1423_v6 = vand.u32 %v15174_v0, %v20149_v4  ;;  %v20156_v7 = vand.u32 %v15588_v3, %v20149_v4  ;;  %v20160_v8 = vand.u32 %v20149_v4, %v317_v5  ;;  %v20166_v10 = vand.u32 %v15658_v9, %v20149_v4  ;;  %s22539_s29 = sand.u32 1, %s20057_s13   ;;  %s16465_s5 = sshll.u32 %s20113_s16, 13 }
  0x1b   : > { %s19419_s6 = smul.u32 596, %s176_s30  ;;  %vm5327_vm4 = vsmask.f32 6400  ;;  %vm6874_vm5 = vcmask 1045504   ;;  %vm2724_vm6 = vcmask 1046528   ;;  %vm11024_vm8 = vcmask 1044480  }
  0x1c   : > { %17087 = vmatprep.subr.bf16.mxu1 %v1423_v6  ;;  %17639 = vmatprep.subr.bf16.mxu0 %v20156_v7  ;;  %vm9477_vm7 = vsmask.f32 5376  ;;  %vm12098_vm9 = vcmask 519168   ;;  %vm12103_vm10 = vcmask 523264   ;;  %s15171_s30 = sshll.u32 %s22539_s29, 9  ;;  %vm12152_vm11 = vcmask 1042432  }
  0x1d   : > { %17088 = vmatpush3.bf16.msra.mxu1 %v1423_v6  ;;  %17640 = vmatpush3.bf16.msra.mxu0 %v20156_v7  ;;  %s20173_s9 = scalar_lea.vmem %s25424_s0, %s19419_s6  ;;  %s22599_s4 = scalar_lea.vmem [#allocation2], %s15171_s30  ;;  %vm12153_vm12 = vcmask 1046532   ;;  %vm12264_vm14 = vcmask 1045508   ;;  %vm12292_vm15 = vcmask 1043456  }
  0x1e   : > { %17225 = vmatprep.subr.bf16.mxu1 %v20160_v8  ;;  %17777 = vmatprep.subr.bf16.mxu0 %v20166_v10  ;;  %v181_v11 = vld [vmem:[%s20173_s9] sm:$0xf]  ;;  %v182_v12 = vld [vmem:[%s20173_s9 + $0x4] sm:$0xf]  ;;  %v19468_v14 = vld [vmem:[%s20173_s9 + $0x8] sm:$0xff]   ;;  %s15060_s6 = sshll.u32 %s22599_s4, 4  ;;  %s25335_s6 = int_to_ptr.vmem [resolvable:$true] %s15060_s6 }
  0x1f   : > { %v20179_v13 = vcombine.low %v181_v11, %v182_v12  ;;  %v3782_v15 = vld [vmem:[%s20173_s9 + $0x10] sm:$0xe]  ;;  %v3783_v16 = vld [vmem:[%s20173_s9 + $0x14] sm:$0xf]  ;;  %v673_v19 = vshll.u32 %v19468_v14, 16  ;;  %v677_v20 = vshrl.u32 %v19468_v14, 16  ;;  %vm22665_vm13 = vmor %vm12152_vm11, %vm12153_vm12 }
  0x20   : > { %v19470_v21 = vld [vmem:[%s20173_s9 + $0x18] sm:$0xff]   ;;  %v19471_v22 = vld [vmem:[%s20173_s9 + $0x10] sm:$0xff]   ;;  %v20188_v23 = vcombine.low %v3782_v15, %v3783_v16  ;;  %v19472_v31 = vld [vmem:[%s20173_s9 + $0x20] sm:$0xff]   ;;  %s15042_s10 = scalar_lea.sflag [#allocation3], %s22539_s29  ;;  %s19971_s11 = scalar_lea.vmem %s25335_s6, 8192 }
  0x21   : > { %v666_v17 = vshrl.u32 %v20179_v13, 16  ;;  %v668_v18 = vshll.u32 %v20179_v13, 16  ;;  %v675_v25 = vrot.slane %v673_v19, 1  ;;  %v5337_v26 = vshrl.u32 %v19470_v21, 16  ;;  %v19473_v36 = vld [vmem:[%s20173_s9 + $0x18] sm:$0xff]   ;;  %v19474_v37 = vld [vmem:[%s20173_s9 + $0x28] sm:$0xff]   ;;  %p19972_p11 = scmp.ne.s32.totalorder %s25335_s6, %s19971_s11 }
  0x22   : > { %25502 = vst [vmem:[#allocation8_spill] sm:$0xff] %v20188_v23  ;;  %v5340_v27 = vshll.u32 %v19470_v21, 16  ;;  %v5329_v28 = vshrl.u32 %v20188_v23, 16  ;;  %v5332_v29 = vshll.u32 %v20188_v23, 16  ;;  %v681_v30 = vshll.u32 %v19471_v22, 16  ;;  %v19475_v50 = vld [vmem:[%s20173_s9 + $0x20] sm:$0xff]  }
  0x23   : > { %v670_v24 = vrot.slane %v668_v18, 1  ;;  %v679_v33 = vor.u32 %v677_v20, %v675_v25  ;;  %v5339_v34 = vrot.slane %v5337_v26, 1  ;;  %v5346_v41 = vshrl.u32 %v19472_v31, 16  ;;  %v19476_v51 = vld [vmem:[%s20173_s9 + $0x30] sm:$0xff]   ;;  %v19477_v56 = vld [vmem:[%s20173_s9 + $0x28] sm:$0xff]   ;;  %v19478_v61 = vld [vmem:[%s20173_s9 + $0x38] sm:$0xff]   ;;  %p19973_p12 = pnand %p19972_p11, %p20130_p5 }
  0x24   : > { %v5342_v35 = vrot.slane %v5340_v27, 2  ;;  %v5331_v38 = vrot.slane %v5329_v28, 1  ;;  %v5334_v39 = vrot.slane %v5332_v29, 2  ;;  %v683_v40 = vrot.slane %v681_v30, 1  ;;  %v19479_v2 = vld [vmem:[%s20173_s9 + $0x30] sm:$0xff]   ;;  %v19480_v19 = vld [vmem:[%s20173_s9 + $0x40] sm:$0xff]  }
  0x25   : > { %v671_v32 = vor.u32 %v670_v24, %v666_v17  ;;  %v5349_v44 = vshll.u32 %v19472_v31, 16  ;;  %v685_v45 = vshrl.u32 %v19471_v22, 16  ;;  %v5348_v48 = vrot.slane %v5346_v41, 1  ;;  %v19481_v29 = vld [vmem:[%s20173_s9 + $0x38] sm:$0xff]   ;;  %p19974_p13 = pneg %p19973_p12  ;;  %s20068_s17 = smov [#allocation2]  }
  0x26   : > { %v5343_v43 = vor.u32 %v5342_v35, %v5339_v34  ;;  %v5335_v46 = vor.u32 %v5334_v39, %v5331_v38  ;;  %v684_v47 = vsel %vm664_vm2, %v679_v33, %v683_v40  ;;  %v689_v49 = vshll.u32 %v19473_v36, 16  ;;  %v21006_v23 = vld [vmem:[%s20173_s9 + $0x58] sm:$0xff]   ;;  %s19975_s19 = sshll.u32 %s20068_s17, 4  ;;  %s19976_s19 = int_to_ptr.vmem [resolvable:$false] %s19975_s19 }
  0x27   : > { %v676_v42 = vsel %vm664_vm2, %v671_v32, %v675_v25  ;;  %v5351_v52 = vrot.slane %v5349_v44, 2  ;;  %v687_v53 = vor.u32 %v685_v45, %v683_v40  ;;  %v5355_v54 = vshrl.u32 %v19474_v37, 16  ;;  %25510 = vst [vmem:[#allocation16_spill] sm:$0xff] %v21006_v23  ;;  %s19977_s20 = scalar_lea.vmem %s19976_s19, 16384  ;;  %p19978_p0 = scmp.lt.s32.totalorder %s25335_s6, %s19976_s19 }
  0x28   : > { %17089 = vmatprep.mubr.msk.bf16.mxu1 %vm1213_vm3, %v676_v42  ;;  %v5358_v55 = vshll.u32 %v19474_v37, 16  ;;  %v5344_v57 = vsel %vm5327_vm4, %v5335_v46, %v5343_v43  ;;  %v691_v58 = vrot.slane %v689_v49, 1  ;;  %v693_v59 = vshrl.u32 %v19473_v36, 16  ;;  %v19482_v37 = vld [vmem:[%s20173_s9 + $0x48] sm:$0xff]   ;;  %v19483_v42 = vld [vmem:[%s20173_s9 + $0x40] sm:$0xff]   ;;  %p19979_p1 = scmp.lt.s32.totalorder %s19977_s20, %s19971_s11 }
  0x29   : > { %17090 = vmatmul.mubr.msk.bf16.vlgmr.msra.gmra.mrb[0].mxu1 %vm1213_vm3, %v684_v47  ;;  %v697_v60 = vshll.u32 %v19475_v50, 16  ;;  %17641 = vmatprep.mubr.msk.bf16.mxu0 %vm1213_vm3, %v5344_v57  ;;  %v5352_v62 = vor.u32 %v5351_v52, %v5348_v48  ;;  %v5357_v63 = vrot.slane %v5355_v54, 1  ;;  %v5364_v1 = vshrl.u32 %v19476_v51, 16 }
  0x2a   : > { %17226 = vmatpush3.bf16.msra.mxu1 %v20160_v8  ;;  %v5360_v0 = vrot.slane %v5358_v55, 2  ;;  %v692_v3 = vsel %vm664_vm2, %v687_v53, %v691_v58  ;;  %v695_v5 = vor.u32 %v693_v59, %v691_v58  ;;  %v5367_v9 = vshll.u32 %v19476_v51, 16  ;;  %v19485_v51 = vld [vmem:[%s20173_s9 + $0x48] sm:$0xff]   ;;  %v19486_v59 = vld [vmem:[%s20173_s9 + $0x58] sm:$0xff]   ;;  %p19980_p2 = por %p19979_p1, %p19978_p0 }
  0x2b   : > { %v699_v6 = vrot.slane %v697_v60, 1  ;;  %v5353_v11 = vsel %vm5327_vm4, %v5343_v43, %v5352_v62  ;;  %17093 = vmatprep.mubr.msk.bf16.mxu1 %vm1213_vm3, %v692_v3  ;;  %v5366_v12 = vrot.slane %v5364_v1, 1  ;;  %v701_v14 = vshrl.u32 %v19475_v50, 16  ;;  %v19484_v50 = vld [vmem:[%s20173_s9 + $0x50] sm:$0xff]  }
  0x2c   : > { %v5361_v8 = vor.u32 %v5360_v0, %v5357_v63  ;;  %17642 = vmatmul.mubr.msk.bf16.vlgmr.msra.gmra.mrb[0].mxu0 %vm1213_vm3, %v5353_v11  ;;  %v5369_v16 = vrot.slane %v5367_v9, 2  ;;  %v705_v17 = vshll.u32 %v19477_v56, 16  ;;  %v5373_v18 = vshrl.u32 %v19478_v61, 16  ;;  %v19487_v3 = vld [vmem:[%s20173_s9 + $0x50] sm:$0xff]   ;;  %v19488_v9 = vld [vmem:[%s20173_s9 + $0x60] sm:$0xff]   ;;  %p19981_p3 = pnand %p19980_p2, %p19974_p13 }
  0x2d   : > { %v700_v15 = vsel %vm664_vm2, %v695_v5, %v699_v6  ;;  %17778 = vmatpush3.bf16.msra.mxu0 %v20166_v10  ;;  %v703_v21 = vor.u32 %v701_v14, %v699_v6  ;;  %v5376_v22 = vshll.u32 %v19478_v61, 16  ;;  %v709_v24 = vshrl.u32 %v19477_v56, 16 }
  0x2e   : > { %v5362_v20 = vsel %vm5327_vm4, %v5352_v62, %v5361_v8  ;;  %v5370_v25 = vor.u32 %v5369_v16, %v5366_v12  ;;  %v707_v26 = vrot.slane %v705_v17, 1  ;;  %v5375_v27 = vrot.slane %v5373_v18, 1  ;;  %v19489_v18 = vld [vmem:[%s20173_s9 + $0x58] sm:$0xff]  }
  0x2f   : > { %17645 = vmatprep.mubr.msk.bf16.mxu0 %vm1213_vm3, %v5362_v20  ;;  %v713_v28 = vshll.u32 %v19479_v2, 16  ;;  %v5378_v30 = vrot.slane %v5376_v22, 2  ;;  %v5382_v31 = vshrl.u32 %v19480_v19, 16  ;;  %v5385_v32 = vshll.u32 %v19480_v19, 16 }
  0x30   : > { %v717_v10 = vshrl.u32 %v19479_v2, 16  ;;  %v5371_v33 = vsel %vm5327_vm4, %v5361_v8, %v5370_v25  ;;  %v708_v34 = vsel %vm664_vm2, %v703_v21, %v707_v26  ;;  %v711_v35 = vor.u32 %v709_v24, %v707_v26  ;;  %v19490_v24 = vld [vmem:[%s20173_s9 + $0x68] sm:$0xff]  }
  0x31   : > { %17094 = vmatmul.mubr.msk.bf16.gmra.mrb[4].mxu1 %vm1213_vm3, %v700_v15  ;;  %v715_v36 = vrot.slane %v713_v28, 1  ;;  %v5379_v38 = vor.u32 %v5378_v30, %v5375_v27  ;;  %v5384_v39 = vrot.slane %v5382_v31, 1  ;;  %v5387_v40 = vrot.slane %v5385_v32, 2 }
  0x32   : > { %17097 = vmatprep.mubr.msk.bf16.mxu1 %vm1213_vm3, %v708_v34  ;;  %v721_v41 = vshll.u32 %v19481_v29, 16  ;;  %v5391_v44 = vshrl.u32 %v19482_v37, 16  ;;  %v5394_v45 = vshll.u32 %v19482_v37, 16  ;;  %v725_v49 = vshrl.u32 %v19481_v29, 16 }
  0x33   : > { %v719_v43 = vor.u32 %v717_v10, %v715_v36  ;;  %v5380_v46 = vsel %vm5327_vm4, %v5370_v25, %v5379_v38  ;;  %v716_v47 = vsel %vm664_vm2, %v711_v35, %v715_v36  ;;  %v729_v54 = vshll.u32 %v19483_v42, 16  ;;  %v19491_v10 = vld [vmem:[%s20173_s9 + $0x60] sm:$0xff]   ;;  %v19493_v36 = vld [vmem:[%s20173_s9 + $0x68] sm:$0xff]  }
  0x34   : > { %v723_v48 = vrot.slane %v721_v41, 1  ;;  %17646 = vmatmul.mubr.msk.bf16.gmra.mrb[4].mxu0 %vm1213_vm3, %v5371_v33  ;;  %v5393_v52 = vrot.slane %v5391_v44, 1  ;;  %v5396_v53 = vrot.slane %v5394_v45, 2  ;;  %v733_v55 = vshrl.u32 %v19483_v42, 16  ;;  %v19492_v33 = vld [vmem:[%s20173_s9 + $0x70] sm:$0xff]   ;;  %v19494_v45 = vld [vmem:[%s20173_s9 + $0x78] sm:$0xff]  }
  0x35   : > { %17649 = vmatprep.mubr.msk.bf16.mxu0 %vm1213_vm3, %v5380_v46  ;;  %v5388_v56 = vor.u32 %v5387_v40, %v5384_v39  ;;  %v5400_v58 = vshrl.u32 %v19484_v50, 16  ;;  %v731_v61 = vrot.slane %v729_v54, 1  ;;  %v5403_v62 = vshll.u32 %v19484_v50, 16  ;;  %v19495_v54 = vld [vmem:[%s20173_s9 + $0x70] sm:$0xff]  }
  0x36   : > { %v724_v57 = vsel %vm664_vm2, %v719_v43, %v723_v48  ;;  %v5397_v60 = vor.u32 %v5396_v53, %v5393_v52  ;;  %v737_v63 = vshll.u32 %v19485_v51, 16  ;;  %v5409_v1 = vshrl.u32 %v19486_v59, 16 }
  0x37   : > { %v5402_v0 = vrot.slane %v5400_v58, 1  ;;  %v5412_v2 = vshll.u32 %v19486_v59, 16  ;;  %v727_v5 = vor.u32 %v725_v49, %v723_v48  ;;  %v5405_v6 = vrot.slane %v5403_v62, 2 }
  0x38   : > { %v5389_v11 = vsel %vm5327_vm4, %v5379_v38, %v5388_v56  ;;  %v735_v8 = vor.u32 %v733_v55, %v731_v61  ;;  %v739_v12 = vrot.slane %v737_v63, 1  ;;  %v5398_v14 = vsel %vm5327_vm4, %v5388_v56, %v5397_v60  ;;  %v19496_v55 = vld [vmem:[%s20173_s9 + $0x80] sm:$0xff]  }
  0x39   : > { %17098 = vmatmul.mubr.msk.bf16.gmra.mrb[8].mxu1 %vm1213_vm3, %v716_v47  ;;  %v5411_v15 = vrot.slane %v5409_v1, 1  ;;  %v5414_v16 = vrot.slane %v5412_v2, 2  ;;  %v745_v17 = vshll.u32 %v19487_v3, 16  ;;  %v732_v19 = vsel %vm664_vm2, %v727_v5, %v731_v61 }
  0x3a   : > { %17101 = vmatprep.mubr.msk.bf16.mxu1 %vm1213_vm3, %v724_v57  ;;  %v5406_v20 = vor.u32 %v5405_v6, %v5402_v0  ;;  %v741_v21 = vshrl.u32 %v19485_v51, 16  ;;  %v5418_v22 = vshrl.u32 %v19488_v9, 16  ;;  %v740_v25 = vsel %vm664_vm2, %v735_v8, %v739_v12  ;;  %v19498_v8 = vld [vmem:[%s20173_s9 + $0x88] sm:$0xff]  }
  0x3b   : > { %v5421_v26 = vshll.u32 %v19488_v9, 16  ;;  %v749_v27 = vshrl.u32 %v19487_v3, 16  ;;  %v753_v28 = vshll.u32 %v19489_v18, 16  ;;  %v5415_v29 = vor.u32 %v5414_v16, %v5411_v15  ;;  %v19497_v3 = vld [vmem:[%s20173_s9 + $0x78] sm:$0xff]  }
  0x3c   : > { %17650 = vmatmul.mubr.msk.bf16.gmra.mrb[8].mxu0 %vm1213_vm3, %v5389_v11  ;;  %v5427_v30 = vshrl.u32 %v19490_v24, 16  ;;  %v5430_v31 = vshll.u32 %v19490_v24, 16  ;;  %v747_v32 = vrot.slane %v745_v17, 1  ;;  %v743_v34 = vor.u32 %v741_v21, %v739_v12 }
  0x3d   : > { %17653 = vmatprep.mubr.msk.bf16.mxu0 %vm1213_vm3, %v5398_v14  ;;  %v5420_v35 = vrot.slane %v5418_v22, 1  ;;  %v5407_v37 = vsel %vm5327_vm4, %v5397_v60, %v5406_v20  ;;  %v5423_v38 = vrot.slane %v5421_v26, 2  ;;  %v755_v40 = vrot.slane %v753_v28, 1  ;;  %v19499_v28 = vld [vmem:[%s20173_s9 + $0x80] sm:$0xff]  }
  0x3e   : > { %v751_v39 = vor.u32 %v749_v27, %v747_v32  ;;  %v5416_v41 = vsel %vm5327_vm4, %v5406_v20, %v5415_v29  ;;  %v5429_v42 = vrot.slane %v5427_v30, 1  ;;  %v5432_v43 = vrot.slane %v5430_v31, 2  ;;  %v19501_v30 = vld [vmem:[%s20173_s9 + $0x88] sm:$0xff]  }
  0x3f   : > { %v757_v44 = vshrl.u32 %v19489_v18, 16  ;;  %v761_v46 = vshll.u32 %v19491_v10, 16  ;;  %v5436_v47 = vshrl.u32 %v19492_v33, 16  ;;  %v748_v48 = vsel %vm664_vm2, %v743_v34, %v747_v32 }
  0x40   : > { %v5439_v49 = vshll.u32 %v19492_v33, 16  ;;  %v769_v50 = vshll.u32 %v19493_v36, 16  ;;  %v5424_v51 = vor.u32 %v5423_v38, %v5420_v35  ;;  %v756_v52 = vsel %vm664_vm2, %v751_v39, %v755_v40  ;;  %v19502_v33 = vld [vmem:[%s20173_s9 + $0x98] sm:$0xff]  }
  0x41   : > { %17102 = vmatmul.mubr.msk.bf16.gmra.mrb[12].mxu1 %vm1213_vm3, %v732_v19  ;;  %v765_v53 = vshrl.u32 %v19491_v10, 16  ;;  %v5433_v56 = vor.u32 %v5432_v43, %v5429_v42  ;;  %v5445_v57 = vshrl.u32 %v19494_v45, 16  ;;  %v5448_v58 = vshll.u32 %v19494_v45, 16 }
  0x42   : > { %17105 = vmatprep.mubr.msk.bf16.mxu1 %vm1213_vm3, %v740_v25  ;;  %v763_v59 = vrot.slane %v761_v46, 1  ;;  %v5438_v60 = vrot.slane %v5436_v47, 1  ;;  %v759_v61 = vor.u32 %v757_v44, %v755_v40  ;;  %v5441_v62 = vrot.slane %v5439_v49, 2  ;;  %v19503_v49 = vld [vmem:[%s20173_s9 + $0x90] sm:$0xff]  }
  0x43   : > { %v771_v63 = vrot.slane %v769_v50, 1  ;;  %v5425_v0 = vsel %vm5327_vm4, %v5415_v29, %v5424_v51  ;;  %v777_v2 = vshll.u32 %v19495_v54, 16  ;;  %v5434_v5 = vsel %vm5327_vm4, %v5424_v51, %v5433_v56  ;;  %v19500_v29 = vld [vmem:[%s20173_s9 + $0x90] sm:$0xff]   ;;  %v19504_v51 = vld [vmem:[%s20173_s9 + $0xa0] sm:$0xff]  }
  0x44   : > { %17654 = vmatmul.mubr.msk.bf16.gmra.mrb[12].mxu0 %vm1213_vm3, %v5407_v37  ;;  %v767_v1 = vor.u32 %v765_v53, %v763_v59  ;;  %v5447_v6 = vrot.slane %v5445_v57, 1  ;;  %v5450_v9 = vrot.slane %v5448_v58, 2  ;;  %v5454_v11 = vshrl.u32 %v19496_v55, 16 }
  0x45   : > { %17657 = vmatprep.mubr.msk.bf16.mxu0 %vm1213_vm3, %v5416_v41  ;;  %v773_v12 = vshrl.u32 %v19493_v36, 16  ;;  %v5457_v14 = vshll.u32 %v19496_v55, 16  ;;  %v764_v15 = vsel %vm664_vm2, %v759_v61, %v763_v59  ;;  %v5442_v16 = vor.u32 %v5441_v62, %v5438_v60  ;;  %v19505_v59 = vld [vmem:[%s20173_s9 + $0x98] sm:$0xff]   ;;  %v19506_v62 = vld [vmem:[%s20173_s9 + $0xa8] sm:$0xff]  }
  0x46   : > { %v772_v17 = vsel %vm664_vm2, %v767_v1, %v771_v63  ;;  %v779_v18 = vrot.slane %v777_v2, 1  ;;  %v781_v19 = vshrl.u32 %v19495_v54, 16  ;;  %v785_v20 = vshll.u32 %v19497_v3, 16 }
  0x47   : > { %v5451_v21 = vor.u32 %v5450_v9, %v5447_v6  ;;  %v5456_v22 = vrot.slane %v5454_v11, 1  ;;  %v5463_v24 = vshrl.u32 %v19498_v8, 16  ;;  %v5466_v25 = vshll.u32 %v19498_v8, 16 }
  0x48   : > { %v775_v26 = vor.u32 %v773_v12, %v771_v63  ;;  %v5459_v27 = vrot.slane %v5457_v14, 2  ;;  %v5443_v31 = vsel %vm5327_vm4, %v5433_v56, %v5442_v16  ;;  %v783_v32 = vor.u32 %v781_v19, %v779_v18 }
  0x49   : > { %17106 = vmatmul.mubr.msk.bf16.gmra.mrb[16].mxu1 %vm1213_vm3, %v748_v48  ;;  %v787_v10 = vrot.slane %v785_v20, 1  ;;  %v5452_v34 = vsel %vm5327_vm4, %v5442_v16, %v5451_v21  ;;  %v5465_v35 = vrot.slane %v5463_v24, 1  ;;  %v5468_v36 = vrot.slane %v5466_v25, 2  ;;  %v19508_v20 = vld [vmem:[%s20173_s9 + $0xb0] sm:$0xff]   ;;  %v19509_v25 = vld [vmem:[%s20173_s9 + $0xa8] sm:$0xff]  }
  0x4a   : > { %17109 = vmatprep.mubr.msk.bf16.mxu1 %vm1213_vm3, %v756_v52  ;;  %v780_v37 = vsel %vm664_vm2, %v775_v26, %v779_v18  ;;  %v5460_v38 = vor.u32 %v5459_v27, %v5456_v22  ;;  %v793_v39 = vshll.u32 %v19499_v28, 16  ;;  %v789_v40 = vshrl.u32 %v19497_v3, 16  ;;  %v19507_v18 = vld [vmem:[%s20173_s9 + $0xa0] sm:$0xff]  }
  0x4b   : > { %v5472_v41 = vshrl.u32 %v19500_v29, 16  ;;  %v5475_v42 = vshll.u32 %v19500_v29, 16  ;;  %v797_v43 = vshrl.u32 %v19499_v28, 16  ;;  %v788_v44 = vsel %vm664_vm2, %v783_v32, %v787_v10  ;;  %v19510_v29 = vld [vmem:[%s20173_s9 + $0xb8] sm:$0xff]  }
  0x4c   : > { %17658 = vmatmul.mubr.msk.bf16.gmra.mrb[16].mxu0 %vm1213_vm3, %v5425_v0  ;;  %v801_v45 = vshll.u32 %v19501_v30, 16  ;;  %v5481_v46 = vshrl.u32 %v19502_v33, 16  ;;  %v5469_v47 = vor.u32 %v5468_v36, %v5465_v35  ;;  %v5484_v48 = vshll.u32 %v19502_v33, 16 }
  0x4d   : > { %17661 = vmatprep.mubr.msk.bf16.mxu0 %vm1213_vm3, %v5434_v5  ;;  %v795_v50 = vrot.slane %v793_v39, 1  ;;  %v5461_v52 = vsel %vm5327_vm4, %v5451_v21, %v5460_v38  ;;  %v791_v53 = vor.u32 %v789_v40, %v787_v10  ;;  %v5474_v54 = vrot.slane %v5472_v41, 1 }
  0x4e   : > { %v5477_v55 = vrot.slane %v5475_v42, 2  ;;  %v803_v57 = vrot.slane %v801_v45, 1  ;;  %v5483_v58 = vrot.slane %v5481_v46, 1  ;;  %v5470_v60 = vsel %vm5327_vm4, %v5460_v38, %v5469_v47  ;;  %v19511_v42 = vld [vmem:[%s20173_s9 + $0xb0] sm:$0xff]   ;;  %v19512_v45 = vld [vmem:[%s20173_s9 + $0xc0] sm:$0xff]  }
  0x4f   : > { %v799_v56 = vor.u32 %v797_v43, %v795_v50  ;;  %v5486_v61 = vrot.slane %v5484_v48, 2  ;;  %v805_v63 = vshrl.u32 %v19501_v30, 16  ;;  %v809_v0 = vshll.u32 %v19503_v49, 16 }
  0x50   : > { %v5490_v1 = vshrl.u32 %v19504_v51, 16  ;;  %v796_v2 = vsel %vm664_vm2, %v791_v53, %v795_v50  ;;  %v5493_v3 = vshll.u32 %v19504_v51, 16  ;;  %v5478_v5 = vor.u32 %v5477_v55, %v5474_v54  ;;  %v19513_v50 = vld [vmem:[%s20173_s9 + $0xb8] sm:$0xff]   ;;  %v19514_v54 = vld [vmem:[%s20173_s9 + $0xc8] sm:$0xff]  }
  0x51   : > { %17110 = vmatmul.mubr.msk.bf16.gmra.mrb[20].mxu1 %vm1213_vm3, %v764_v15  ;;  %v804_v6 = vsel %vm664_vm2, %v799_v56, %v803_v57  ;;  %v813_v9 = vshrl.u32 %v19503_v49, 16  ;;  %v817_v11 = vshll.u32 %v19505_v59, 16  ;;  %v5487_v8 = vor.u32 %v5486_v61, %v5483_v58 }
  0x52   : > { %17113 = vmatprep.mubr.msk.bf16.mxu1 %vm1213_vm3, %v772_v17  ;;  %v5499_v12 = vshrl.u32 %v19506_v62, 16  ;;  %v5502_v14 = vshll.u32 %v19506_v62, 16  ;;  %v807_v15 = vor.u32 %v805_v63, %v803_v57  ;;  %v811_v16 = vrot.slane %v809_v0, 1 }
  0x53   : > { %v5492_v17 = vrot.slane %v5490_v1, 1  ;;  %v5495_v19 = vrot.slane %v5493_v3, 2  ;;  %v5479_v21 = vsel %vm5327_vm4, %v5469_v47, %v5478_v5  ;;  %v819_v24 = vrot.slane %v817_v11, 1 }
  0x54   : > { %17662 = vmatmul.mubr.msk.bf16.gmra.mrb[20].mxu0 %vm1213_vm3, %v5443_v31  ;;  %v815_v22 = vor.u32 %v813_v9, %v811_v16  ;;  %v5488_v26 = vsel %vm5327_vm4, %v5478_v5, %v5487_v8  ;;  %v5501_v27 = vrot.slane %v5499_v12, 1  ;;  %v5504_v28 = vrot.slane %v5502_v14, 2  ;;  %v19515_v5 = vld [vmem:[%s20173_s9 + $0xc0] sm:$0xff]  }
  0x55   : > { %17665 = vmatprep.mubr.msk.bf16.mxu0 %vm1213_vm3, %v5452_v34  ;;  %v812_v30 = vsel %vm664_vm2, %v807_v15, %v811_v16  ;;  %v825_v31 = vshll.u32 %v19507_v18, 16  ;;  %v5496_v32 = vor.u32 %v5495_v19, %v5492_v17  ;;  %v821_v10 = vshrl.u32 %v19505_v59, 16  ;;  %v19517_v16 = vld [vmem:[%s20173_s9 + $0xc8] sm:$0xff]  }
  0x56   : > { %v5508_v33 = vshrl.u32 %v19508_v20, 16  ;;  %v5511_v34 = vshll.u32 %v19508_v20, 16  ;;  %v820_v35 = vsel %vm664_vm2, %v815_v22, %v819_v24  ;;  %v829_v36 = vshrl.u32 %v19507_v18, 16  ;;  %v19518_v20 = vld [vmem:[%s20173_s9 + $0xd8] sm:$0xff]  }
  0x57   : > { %v5505_v38 = vor.u32 %v5504_v28, %v5501_v27  ;;  %v5517_v39 = vshrl.u32 %v19510_v29, 16  ;;  %v5520_v40 = vshll.u32 %v19510_v29, 16  ;;  %v827_v41 = vrot.slane %v825_v31, 1 }
  0x58   : > { %v5497_v43 = vsel %vm5327_vm4, %v5487_v8, %v5496_v32  ;;  %v5510_v46 = vrot.slane %v5508_v33, 1  ;;  %v5513_v47 = vrot.slane %v5511_v34, 2  ;;  %v841_v55 = vshll.u32 %v19511_v42, 16 }
  0x59   : > { %17114 = vmatmul.mubr.msk.bf16.gmra.mrb[24].mxu1 %vm1213_vm3, %v780_v37  ;;  %v833_v37 = vshll.u32 %v19509_v25, 16  ;;  %v831_v48 = vor.u32 %v829_v36, %v827_v41  ;;  %v5506_v51 = vsel %vm5327_vm4, %v5496_v32, %v5505_v38  ;;  %v5522_v53 = vrot.slane %v5520_v40, 2  ;;  %v19520_v36 = vld [vmem:[%s20173_s9 + $0xe0] sm:$0xff]  }
  0x5a   : > { %17117 = vmatprep.mubr.msk.bf16.mxu1 %vm1213_vm3, %v788_v44  ;;  %v823_v44 = vor.u32 %v821_v10, %v819_v24  ;;  %v837_v57 = vshrl.u32 %v19509_v25, 16  ;;  %v5526_v58 = vshrl.u32 %v19512_v45, 16  ;;  %v5529_v59 = vshll.u32 %v19512_v45, 16 }
  0x5b   : > { %v835_v49 = vrot.slane %v833_v37, 1  ;;  %v845_v62 = vshrl.u32 %v19511_v42, 16  ;;  %v849_v63 = vshll.u32 %v19513_v50, 16  ;;  %v5535_v1 = vshrl.u32 %v19514_v54, 16 }
  0x5c   : > { %17666 = vmatmul.mubr.msk.bf16.gmra.mrb[24].mxu0 %vm1213_vm3, %v5461_v52  ;;  %v5519_v52 = vrot.slane %v5517_v39, 1  ;;  %v828_v56 = vsel %vm664_vm2, %v823_v44, %v827_v41  ;;  %v843_v3 = vrot.slane %v841_v55, 1  ;;  %v5528_v11 = vrot.slane %v5526_v58, 1  ;;  %v19521_v39 = vld [vmem:[%s20173_s9 + $0xd8] sm:$0xff]  }
  0x5d   : > { %17669 = vmatprep.mubr.msk.bf16.mxu0 %vm1213_vm3, %v5470_v60  ;;  %v5514_v60 = vor.u32 %v5513_v47, %v5510_v46  ;;  %v836_v61 = vsel %vm664_vm2, %v831_v48, %v835_v49  ;;  %v839_v9 = vor.u32 %v837_v57, %v835_v49  ;;  %v5531_v8 = vrot.slane %v5529_v59, 2 }
  0x5e   : > { %v5523_v0 = vor.u32 %v5522_v53, %v5519_v52  ;;  %v847_v14 = vor.u32 %v845_v62, %v843_v3  ;;  %v851_v15 = vrot.slane %v849_v63, 1  ;;  %v5537_v18 = vrot.slane %v5535_v1, 1  ;;  %v19524_v62 = vld [vmem:[%s20173_s9 + $0xf0] sm:$0xff]  }
  0x5f   : > { %v5515_v12 = vsel %vm5327_vm4, %v5505_v38, %v5514_v60  ;;  %v844_v24 = vsel %vm664_vm2, %v839_v9, %v843_v3  ;;  %v853_v25 = vshrl.u32 %v19513_v50, 16  ;;  %v5532_v27 = vor.u32 %v5531_v8, %v5528_v11  ;;  %v19525_v9 = vld [vmem:[%s20173_s9 + $0xe8] sm:$0xff]  }
  0x60   : > { %v5524_v17 = vsel %vm5327_vm4, %v5514_v60, %v5523_v0  ;;  %v852_v28 = vsel %vm664_vm2, %v847_v14, %v851_v15  ;;  %v861_v29 = vshrl.u32 %v19515_v5, 16  ;;  %v5553_v32 = vshrl.u32 %v19518_v20, 16 }
  0x61   : > { %17118 = vmatmul.mubr.msk.bf16.gmra.mrb[28].mxu1 %vm1213_vm3, %v796_v2  ;;  %v5538_v2 = vshll.u32 %v19514_v54, 16  ;;  %v5556_v10 = vshll.u32 %v19518_v20, 16  ;;  %v855_v37 = vor.u32 %v853_v25, %v851_v15  ;;  %v5533_v40 = vsel %vm5327_vm4, %v5523_v0, %v5532_v27 }
  0x62   : > { %17121 = vmatprep.mubr.msk.bf16.mxu1 %vm1213_vm3, %v804_v6  ;;  %v19516_v6 = vld [vmem:[%s20173_s9 + $0xd0] sm:$0xff]   ;;  %v5555_v45 = vrot.slane %v5553_v32, 1  ;;  %v869_v47 = vshrl.u32 %v19517_v16, 16  ;;  %v5562_v49 = vshrl.u32 %v19520_v36, 16  ;;  %v881_v52 = vshll.u32 %v19521_v39, 16 }
  0x63   : > { %v5540_v19 = vrot.slane %v5538_v2, 2  ;;  %v5544_v22 = vshrl.u32 %v19516_v6, 16  ;;  %v5558_v46 = vrot.slane %v5556_v10, 2  ;;  %v15728_v2 = vld [vmem:[%s25425_s1 + $0xc] sm:$0x3]  ;;  %v885_v14 = vshrl.u32 %v19521_v39, 16 }
  0x64   : > { %17670 = vmatmul.mubr.msk.bf16.gmra.mrb[28].mxu0 %vm1213_vm3, %v5479_v21  ;;  %v857_v21 = vshll.u32 %v19515_v5, 16  ;;  %v5564_v60 = vrot.slane %v5562_v49, 1  ;;  %v883_v1 = vrot.slane %v881_v52, 1  ;;  %v19528_v10 = vld [vmem:[%s20173_s9 + $0x100] sm:$0xff]  }
  0x65   : > { %17673 = vmatprep.mubr.msk.bf16.mxu0 %vm1213_vm3, %v5488_v26  ;;  %v5547_v26 = vshll.u32 %v19516_v6, 16  ;;  %v5541_v31 = vor.u32 %v5540_v19, %v5537_v18  ;;  %v5546_v34 = vrot.slane %v5544_v22, 1  ;;  %v5559_v57 = vor.u32 %v5558_v46, %v5555_v45 }
  0x66   : > { %v859_v33 = vrot.slane %v857_v21, 1  ;;  %v5583_v19 = vshll.u32 %v19524_v62, 16  ;;  %v5598_v45 = vshrl.u32 %v19528_v10, 16  ;;  %v5601_v46 = vshll.u32 %v19528_v10, 16 }
  0x67   : > { %v5549_v38 = vrot.slane %v5547_v26, 2  ;;  %v5542_v44 = vsel %vm5327_vm4, %v5532_v27, %v5541_v31 }
  0x68   : > { %v863_v41 = vor.u32 %v861_v29, %v859_v33  ;;  %v860_v50 = vsel %vm664_vm2, %v855_v37, %v859_v33  ;;  %v5585_v32 = vrot.slane %v5583_v19, 2 }
  0x69   : > { %17122 = vmatmul.mubr.msk.bf16.gmra.mrb[32].mxu1 %vm1213_vm3, %v812_v30  ;;  %v865_v30 = vshll.u32 %v19517_v16, 16  ;;  %v5550_v53 = vor.u32 %v5549_v38, %v5546_v34  ;;  %v5580_v16 = vshrl.u32 %v19524_v62, 16  ;;  %v19533_v62 = vld [vmem:[%s20173_s9 + $0x108] sm:$0xff]  }
  0x6a   : > { %17125 = vmatprep.mubr.msk.bf16.mxu1 %vm1213_vm3, %v820_v35  ;;  %v19519_v35 = vld [vmem:[%s20173_s9 + $0xd0] sm:$0xff]  }
  0x6b   : > { %v867_v42 = vrot.slane %v865_v30, 1  ;;  %v873_v48 = vshll.u32 %v19519_v35, 16  ;;  %v877_v55 = vshrl.u32 %v19519_v35, 16  ;;  %v5551_v3 = vsel %vm5327_vm4, %v5541_v31, %v5550_v53  ;;  %v19527_v31 = vld [vmem:[%s20173_s9 + $0xf0] sm:$0xff]  }
  0x6c   : > { %17674 = vmatmul.mubr.msk.bf16.gmra.mrb[32].mxu0 %vm1213_vm3, %v5497_v43  ;;  %v19522_v43 = vld [vmem:[%s20173_s9 + $0xe8] sm:$0xff]   ;;  %v5560_v11 = vsel %vm5327_vm4, %v5550_v53, %v5559_v57  ;;  %v5582_v30 = vrot.slane %v5580_v16, 1 }
  0x6d   : > { %17677 = vmatprep.mubr.msk.bf16.mxu0 %vm1213_vm3, %v5506_v51  ;;  %v5565_v51 = vshll.u32 %v19520_v36, 16  ;;  %v868_v54 = vsel %vm664_vm2, %v863_v41, %v867_v42  ;;  %v5574_v58 = vshll.u32 %v19522_v43, 16  ;;  %v875_v59 = vrot.slane %v873_v48, 1  ;;  %v19529_v36 = vld [vmem:[%s20173_s9 + $0xf8] sm:$0xff]  }
  0x6e   : > { %v871_v63 = vor.u32 %v869_v47, %v867_v42  ;;  %v905_v42 = vshll.u32 %v19527_v31, 16  ;;  %v909_v48 = vshrl.u32 %v19527_v31, 16  ;;  %v913_v49 = vshll.u32 %v19529_v36, 16 }
  0x6f   : > { %v5567_v0 = vrot.slane %v5565_v51, 2  ;;  %v879_v5 = vor.u32 %v877_v55, %v875_v59  ;;  %v5576_v8 = vrot.slane %v5574_v58, 2  ;;  %v5600_v58 = vrot.slane %v5598_v45, 1  ;;  %v19539_v45 = vld [vmem:[%s20173_s9 + $0x120] sm:$0xff]  }
  0x70   : > { %v876_v18 = vsel %vm664_vm2, %v871_v63, %v875_v59  ;;  %v907_v53 = vrot.slane %v905_v42, 1  ;;  %v5603_v59 = vrot.slane %v5601_v46, 2 }
  0x71   : > { %17126 = vmatmul.mubr.msk.bf16.gmra.mrb[36].mxu1 %vm1213_vm3, %v828_v56  ;;  %v5571_v56 = vshrl.u32 %v19522_v43, 16  ;;  %v5568_v20 = vor.u32 %v5567_v0, %v5564_v60  ;;  %v884_v21 = vsel %vm664_vm2, %v879_v5, %v883_v1  ;;  %v5586_v43 = vor.u32 %v5585_v32, %v5582_v30  ;;  %v19537_v30 = vld [vmem:[%s20173_s9 + $0x118] sm:$0xff]  }
  0x72   : > { %17129 = vmatprep.mubr.msk.bf16.mxu1 %vm1213_vm3, %v836_v61  ;;  %v19523_v61 = vld [vmem:[%s20173_s9 + $0xe0] sm:$0xff]   ;;  %v911_v60 = vor.u32 %v909_v48, %v907_v53 }
  0x73   : > { %v5573_v6 = vrot.slane %v5571_v56, 1  ;;  %v889_v15 = vshll.u32 %v19523_v61, 16  ;;  %v893_v22 = vshrl.u32 %v19523_v61, 16  ;;  %v5569_v33 = vsel %vm5327_vm4, %v5559_v57, %v5568_v20  ;;  %v19532_v57 = vld [vmem:[%s20173_s9 + $0x110] sm:$0xff]  }
  0x74   : > { %17678 = vmatmul.mubr.msk.bf16.gmra.mrb[36].mxu0 %vm1213_vm3, %v5515_v12  ;;  %v19526_v12 = vld [vmem:[%s20173_s9 + $0xf8] sm:$0xff]   ;;  %v915_v61 = vrot.slane %v913_v49, 1 }
  0x75   : > { %17681 = vmatprep.mubr.msk.bf16.mxu0 %vm1213_vm3, %v5524_v17  ;;  %v20351_v17 = vand.u32 %v15728_v2, %v20149_v4  ;;  %v5577_v25 = vor.u32 %v5576_v8, %v5573_v6  ;;  %v5589_v26 = vshrl.u32 %v19526_v12, 16  ;;  %v5592_v27 = vshll.u32 %v19526_v12, 16  ;;  %v19534_v2 = vld [vmem:[%s20173_s9 + $0x118] sm:$0xff]  }
  0x76   : > { %v891_v29 = vrot.slane %v889_v15, 1  ;;  %v5604_v8 = vor.u32 %v5603_v59, %v5600_v58  ;;  %v916_v12 = vsel %vm664_vm2, %v911_v60, %v915_v61  ;;  %v929_v15 = vshll.u32 %v19533_v62, 16 }
  0x77   : > { %17915 = vmatprep.subr.bf16.mxu0 %v20351_v17  ;;  %v5578_v37 = vsel %vm5327_vm4, %v5568_v20, %v5577_v25  ;;  %v5591_v38 = vrot.slane %v5589_v26, 1  ;;  %v5594_v39 = vrot.slane %v5592_v27, 2  ;;  %v5587_v55 = vsel %vm5327_vm4, %v5577_v25, %v5586_v43  ;;  %v19536_v26 = vld [vmem:[%s20173_s9 + $0x120] sm:$0xff]  }
  0x78   : > { %v895_v34 = vor.u32 %v893_v22, %v891_v29  ;;  %v5628_v19 = vshll.u32 %v19534_v2, 16  ;;  %v949_v58 = vshrl.u32 %v19537_v30, 16 }
  0x79   : > { %17130 = vmatmul.mubr.msk.bf16.gmra.mrb[40].mxu1 %vm1213_vm3, %v844_v24  ;;  %v897_v24 = vshll.u32 %v19525_v9, 16 }
  0x7a   : > { %17133 = vmatprep.mubr.msk.bf16.mxu1 %vm1213_vm3, %v852_v28  ;;  %v887_v28 = vor.u32 %v885_v14, %v883_v1  ;;  %v5630_v10 = vrot.slane %v5628_v19, 2 }
  0x7b   : > { %v899_v35 = vrot.slane %v897_v24, 1 }
  0x7c   : > { %17682 = vmatmul.mubr.msk.bf16.gmra.mrb[40].mxu0 %vm1213_vm3, %v5533_v40  ;;  %v19530_v40 = vld [vmem:[%s20173_s9 + $0x108] sm:$0xff]   ;;  %v892_v41 = vsel %vm664_vm2, %v887_v28, %v891_v29  ;;  %v931_v29 = vrot.slane %v929_v15, 1 }
  0x7d   : > { %17685 = vmatprep.mubr.msk.bf16.mxu0 %vm1213_vm3, %v5542_v44  ;;  %v901_v44 = vshrl.u32 %v19525_v9, 16  ;;  %v900_v47 = vsel %vm664_vm2, %v895_v34, %v899_v35  ;;  %v5607_v51 = vshrl.u32 %v19530_v40, 16  ;;  %v5610_v52 = vshll.u32 %v19530_v40, 16 }
  0x7e   : > { %v5616_v9 = vshrl.u32 %v19532_v57, 16 }
  0x7f   : > { %v903_v56 = vor.u32 %v901_v44, %v899_v35  ;;  %v5609_v0 = vrot.slane %v5607_v51, 1  ;;  %v5612_v1 = vrot.slane %v5610_v52, 2  ;;  %v6868_v44 = vld [vmem:[%s20173_s9 + $0x10] sm:$0xc]  ;;  %v19540_v52 = vld [vmem:[%s20173_s9 + $0x128] sm:$0xff]  }
  0x80   : > { %v5618_v24 = vrot.slane %v5616_v9, 1 }
  0x81   : > { %17134 = vmatmul.mubr.msk.bf16.gmra.mrb[44].mxu1 %vm1213_vm3, %v860_v50  ;;  %v5595_v50 = vor.u32 %v5594_v39, %v5591_v38  ;;  %v908_v6 = vsel %vm664_vm2, %v903_v56, %v907_v53  ;;  %v5613_v16 = vor.u32 %v5612_v1, %v5609_v0  ;;  %v5637_v38 = vshll.u32 %v19536_v26, 16  ;;  %v19680_v0 = vld [vmem:[%s20173_s9 + $0x18] sm:$0xff]  }
  0x82   : > { %17137 = vmatprep.mubr.msk.bf16.mxu1 %vm1213_vm3, %v868_v54  ;;  %v19531_v54 = vld [vmem:[%s20173_s9 + $0x100] sm:$0xff]   ;;  %v953_v56 = vshll.u32 %v19539_v45, 16  ;;  %v6876_v1 = vrot.slane %v19680_v0, 2 }
  0x83   : > { %v5596_v63 = vsel %vm5327_vm4, %v5586_v43, %v5595_v50  ;;  %v921_v5 = vshll.u32 %v19531_v54, 16  ;;  %v925_v14 = vshrl.u32 %v19531_v54, 16  ;;  %v5605_v27 = vsel %vm5327_vm4, %v5595_v50, %v5604_v8  ;;  %v19679_v54 = vld [vmem:[%s20173_s9 + $0x14] sm:$0xf] }
  0x84   : > { %17686 = vmatmul.mubr.msk.bf16.gmra.mrb[44].mxu0 %vm1213_vm3, %v5551_v3  ;;  %v917_v3 = vshrl.u32 %v19529_v36, 16  ;;  %v5614_v31 = vsel %vm5327_vm4, %v5604_v8, %v5613_v16  ;;  %v5639_v49 = vrot.slane %v5637_v38, 2  ;;  %v19542_v8 = vld [vmem:[%s20173_s9 + $0x138] sm:$0xff]  }
  0x85   : > { %17689 = vmatprep.mubr.msk.bf16.mxu0 %vm1213_vm3, %v5560_v11  ;;  %v5619_v11 = vshll.u32 %v19532_v57, 16  ;;  %v923_v20 = vrot.slane %v921_v5, 1 }
  0x86   : > { %v919_v22 = vor.u32 %v917_v3, %v915_v61  ;;  %v957_v61 = vshrl.u32 %v19539_v45, 16  ;;  %v19541_v3 = vld [vmem:[%s20173_s9 + $0x130] sm:$0xff]  }
  0x87   : > { %v5621_v25 = vrot.slane %v5619_v11, 2  ;;  %v927_v28 = vor.u32 %v925_v14, %v923_v20  ;;  %v969_v14 = vshll.u32 %v19541_v3, 16 }
  0x88   : > { %v924_v35 = vsel %vm664_vm2, %v919_v22, %v923_v20  ;;  %v977_v22 = vshll.u32 %v19542_v8, 16 }
  0x89   : > { %17138 = vmatmul.mubr.msk.bf16.gmra.mrb[48].mxu1 %vm1213_vm3, %v876_v18  ;;  %v5625_v18 = vshrl.u32 %v19534_v2, 16  ;;  %v5622_v36 = vor.u32 %v5621_v25, %v5618_v24  ;;  %v932_v39 = vsel %vm664_vm2, %v927_v28, %v931_v29  ;;  %v955_v2 = vrot.slane %v953_v56, 1  ;;  %v19682_v24 = vld [vmem:[%s20173_s9 + $0x28] sm:$0xff]  }
  0x8a   : > { %17141 = vmatprep.mubr.msk.bf16.mxu1 %vm1213_vm3, %v884_v21  ;;  %v19535_v21 = vld [vmem:[%s20173_s9 + $0x110] sm:$0xff]   ;;  %v6880_v25 = vrot.slane %v19682_v24, 2  ;;  %v19689_v24 = vld [vmem:[%s20173_s9 + $0x60] sm:$0xff]  }
  0x8b   : > { %v5627_v32 = vrot.slane %v5625_v18, 1  ;;  %v937_v34 = vshll.u32 %v19535_v21, 16  ;;  %v941_v40 = vshrl.u32 %v19535_v21, 16  ;;  %v5623_v46 = vsel %vm5327_vm4, %v5613_v16, %v5622_v36  ;;  %v19681_v18 = vld [vmem:[%s20173_s9 + $0x20] sm:$0xff]  }
  0x8c   : > { %17690 = vmatmul.mubr.msk.bf16.gmra.mrb[48].mxu0 %vm1213_vm3, %v5569_v33  ;;  %v933_v33 = vshrl.u32 %v19533_v62, 16  ;;  %v961_v62 = vshll.u32 %v19540_v52, 16  ;;  %v959_v9 = vor.u32 %v957_v61, %v955_v2  ;;  %v965_v16 = vshrl.u32 %v19540_v52, 16  ;;  %v19547_v52 = vld [vmem:[%s20173_s9 + $0x160] sm:$0xff]  }
  0x8d   : > { %17693 = vmatprep.mubr.msk.bf16.mxu0 %vm1213_vm3, %v5578_v37  ;;  %v5634_v37 = vshrl.u32 %v19536_v26, 16  ;;  %v5631_v42 = vor.u32 %v5630_v10, %v5627_v32  ;;  %v939_v43 = vrot.slane %v937_v34, 1  ;;  %v6878_v19 = vrot.slane %v19681_v18, 2  ;;  %v19544_v32 = vld [vmem:[%s20173_s9 + $0x148] sm:$0xff]  }
  0x8e   : > { %v963_v11 = vrot.slane %v961_v62, 1  ;;  %v973_v21 = vshrl.u32 %v19541_v3, 16  ;;  %v971_v26 = vrot.slane %v969_v14, 1  ;;  %v997_v56 = vshrl.u32 %v19544_v32, 16 }
  0x8f   : > { %v5636_v48 = vrot.slane %v5634_v37, 1  ;;  %v943_v50 = vor.u32 %v941_v40, %v939_v43  ;;  %v5632_v53 = vsel %vm5327_vm4, %v5622_v36, %v5631_v42  ;;  %v6881_v10 = vsel %vm6874_vm5, %v6878_v19, %v6880_v25 }
  0x90   : > { %v964_v20 = vsel %vm664_vm2, %v959_v9, %v963_v11  ;;  %v967_v28 = vor.u32 %v965_v16, %v963_v11  ;;  %v981_v37 = vshrl.u32 %v19542_v8, 16  ;;  %v993_v40 = vshll.u32 %v19544_v32, 16 }
  0x91   : > { %17142 = vmatmul.mubr.msk.bf16.gmra.mrb[52].mxu1 %vm1213_vm3, %v892_v41  ;;  %v945_v41 = vshll.u32 %v19537_v30, 16  ;;  %v20404_v59 = vor.u32 %v5639_v49, %v5636_v48  ;;  %v975_v30 = vor.u32 %v973_v21, %v971_v26  ;;  %v19546_v48 = vld [vmem:[%s20173_s9 + $0x158] sm:$0xff]  }
  0x92   : > { %17145 = vmatprep.mubr.msk.bf16.mxu1 %vm1213_vm3, %v900_v47  ;;  %v935_v47 = vor.u32 %v933_v33, %v931_v29  ;;  %v6879_v29 = vsel %vm6874_vm5, %v6876_v1, %v6878_v19  ;;  %v972_v34 = vsel %vm664_vm2, %v967_v28, %v971_v26  ;;  %v1009_v61 = vshll.u32 %v19546_v48, 16  ;;  %v19688_v21 = vld [vmem:[%s20173_s9 + $0x58] sm:$0xff]  }
  0x93   : > { %v947_v51 = vrot.slane %v945_v41, 1  ;;  %25503 = vst [vmem:[#allocation9_spill] sm:$0xff] %v20404_v59  ;;  %v19684_v41 = vld [vmem:[%s20173_s9 + $0x38] sm:$0xff]   ;;  %v1013_v18 = vshrl.u32 %v19546_v48, 16  ;;  %v1021_v19 = vshrl.u32 %v19547_v52, 16 }
  0x94   : > { %17694 = vmatmul.mubr.msk.bf16.gmra.mrb[52].mxu0 %vm1213_vm3, %v5587_v55  ;;  %v15659_v55 = vcombine.low %v6868_v44, %v19679_v54  ;;  %v940_v57 = vsel %vm664_vm2, %v935_v47, %v939_v43  ;;  %v19545_v44 = vld [vmem:[%s20173_s9 + $0x150] sm:$0xff]   ;;  %v995_v47 = vrot.slane %v993_v40, 1  ;;  %v19685_v54 = vld [vmem:[%s20173_s9 + $0x40] sm:$0xff]   ;;  %v1011_v8 = vrot.slane %v1009_v61, 1  ;;  %v19550_v26 = vld [vmem:[%s20173_s9 + $0x178] sm:$0xff]  }
  0x95   : > { %17697 = vmatprep.mubr.msk.bf16.mxu0 %vm1213_vm3, %v5596_v63  ;;  %v948_v60 = vsel %vm664_vm2, %v943_v50, %v947_v51  ;;  %v951_v5 = vor.u32 %v949_v58, %v947_v51  ;;  %v15380_v50 = vld [vmem:[%s25425_s1 + $0x4] sm:$0x3]  ;;  %v1001_v51 = vshll.u32 %v19545_v44, 16  ;;  %v19690_v40 = vld [vmem:[%s20173_s9 + $0x68] sm:$0xff]   ;;  %v19554_v61 = vld [vmem:[%s20173_s9 + $0x198] sm:$0xff]  }
  0x96   : > { %v6875_v63 = vrot.slane %v15659_v55, 2  ;;  %v6886_v55 = vrot.slane %v19685_v54, 2  ;;  %v20451_v62 = vand.u32 %v15380_v50, %v20149_v4 }
  0x97   : > { %v956_v15 = vsel %vm664_vm2, %v951_v5, %v955_v2  ;;  %v1003_v3 = vrot.slane %v1001_v51, 1  ;;  %v1017_v5 = vshll.u32 %v19547_v52, 16  ;;  %v19553_v51 = vld [vmem:[%s20173_s9 + $0x190] sm:$0xff]  }
  0x98   : > { %17363 = vmatprep.subr.bf16.mxu1 %v20451_v62 }
  0x99   : > { %17146 = vmatmul.mubr.msk.bf16.gmra.mrb[56].mxu1 %vm1213_vm3, %v908_v6  ;;  %v5641_v6 = vsel %vm5327_vm4, %v5631_v42, %v20404_v59  ;;  %v6884_v42 = vrot.slane %v19684_v41, 2  ;;  %v6896_v41 = vrot.slane %v19690_v40, 2  ;;  %v20990_v59 = vld [vmem:[%s20173_s9 + $0x128] sm:$0xff]  }
  0x9a   : > { %17149 = vmatprep.mubr.msk.bf16.mxu1 %vm1213_vm3, %v916_v12  ;;  %v6877_v12 = vsel %vm6874_vm5, %v6875_v63, %v6876_v1  ;;  %v19686_v63 = vld [vmem:[%s20173_s9 + $0x48] sm:$0xff]   ;;  %v19687_v1 = vld [vmem:[%s20173_s9 + $0x50] sm:$0xff]   ;;  %25507 = vst [vmem:[#allocation13_spill] sm:$0xff] %v20990_v59 }
  0x9b   : > { %v6888_v0 = vrot.slane %v19686_v63, 2  ;;  %v6890_v2 = vrot.slane %v19687_v1, 2  ;;  %v6887_v9 = vsel %vm6874_vm5, %v6884_v42, %v6886_v55 }
  0x9c   : > { %17698 = vmatmul.mubr.msk.bf16.gmra.mrb[56].mxu0 %vm1213_vm3, %v5605_v27  ;;  %v19543_v27 = vld [vmem:[%s20173_s9 + $0x140] sm:$0xff]  }
  0x9d   : > { %17701 = vmatprep.mubr.msk.bf16.mxu0 %vm1213_vm3, %v5614_v31  ;;  %v979_v31 = vrot.slane %v977_v22, 1  ;;  %v985_v33 = vshll.u32 %v19543_v27, 16  ;;  %v6889_v14 = vsel %vm6874_vm5, %v6886_v55, %v6888_v0  ;;  %v6892_v22 = vrot.slane %v19688_v21, 2 }
  0x9f   : > { %v980_v38 = vsel %vm664_vm2, %v975_v30, %v979_v31  ;;  %v987_v43 = vrot.slane %v985_v33, 1  ;;  %v983_v45 = vor.u32 %v981_v37, %v979_v31  ;;  %v6891_v30 = vsel %vm6874_vm5, %v6888_v0, %v6890_v2  ;;  %v19551_v33 = vld [vmem:[%s20173_s9 + $0x180] sm:$0xff]  }
  0xa0   : > { %v1053_v54 = vshrl.u32 %v19551_v33, 16 }
  0xa1   : > { %17150 = vmatmul.mubr.msk.bf16.gmra.mrb[60].mxu1 %vm1213_vm3, %v924_v35  ;;  %v19683_v35 = vld [vmem:[%s20173_s9 + $0x30] sm:$0xff]  }
  0xa2   : > { %17153 = vmatprep.mubr.msk.bf16.mxu1 %vm1213_vm3, %v932_v39  ;;  %v6882_v36 = vrot.slane %v19683_v35, 2  ;;  %v989_v39 = vshrl.u32 %v19543_v27, 16  ;;  %v1019_v27 = vrot.slane %v1017_v5, 1  ;;  %v19552_v35 = vld [vmem:[%s20173_s9 + $0x188] sm:$0xff]  }
  0xa3   : > { %v1061_v5 = vshrl.u32 %v19552_v35, 16 }
  0xa4   : > { %17702 = vmatmul.mubr.msk.bf16.gmra.mrb[60].mxu0 %vm1213_vm3, %v5623_v46  ;;  %v991_v46 = vor.u32 %v989_v39, %v987_v43  ;;  %v6885_v49 = vsel %vm6874_vm5, %v6882_v36, %v6884_v42  ;;  %v1023_v31 = vor.u32 %v1021_v19, %v1019_v27  ;;  %v19691_v42 = vld [vmem:[%s20173_s9 + $0x70] sm:$0xff]  }
  0xa5   : > { %17705 = vmatprep.mubr.msk.bf16.mxu0 %vm1213_vm3, %v5632_v53  ;;  %v988_v53 = vsel %vm664_vm2, %v983_v45, %v987_v43  ;;  %v6898_v43 = vrot.slane %v19691_v42, 2  ;;  %v1049_v45 = vshll.u32 %v19551_v33, 16 }
  0xa6   : > { %v996_v58 = vsel %vm664_vm2, %v991_v46, %v995_v47 }
  0xa7   : > { %v1051_v63 = vrot.slane %v1049_v45, 1 }
  0xa9   : > { %17154 = vmatmul.mubr.msk.bf16.gmra.mrb[64].mxu1 %vm1213_vm3, %v940_v57  ;;  %v19548_v57 = vld [vmem:[%s20173_s9 + $0x168] sm:$0xff]  }
  0xaa   : > { %17157 = vmatprep.mubr.msk.bf16.mxu1 %vm1213_vm3, %v948_v60  ;;  %v1005_v60 = vshrl.u32 %v19545_v44, 16  ;;  %v1029_v32 = vshrl.u32 %v19548_v57, 16 }
  0xac   : > { %17706 = vmatmul.mubr.msk.bf16.gmra.mrb[64].mxu0 %vm1213_vm3, %v5641_v6  ;;  %v999_v6 = vor.u32 %v997_v56, %v995_v47  ;;  %v1007_v11 = vor.u32 %v1005_v60, %v1003_v3  ;;  %v19692_v56 = vld [vmem:[%s20173_s9 + $0x78] sm:$0xff]  }
  0xad   : > { %17779 = vmatprep.mubr.msk.bf16.mxu0 %vm1213_vm3, %v6877_v12  ;;  %v1025_v12 = vshll.u32 %v19548_v57, 16  ;;  %v6900_v57 = vrot.slane %v19692_v56, 2 }
  0xae   : > { %v1004_v16 = vsel %vm664_vm2, %v999_v6, %v1003_v3  ;;  %v1055_v3 = vor.u32 %v1053_v54, %v1051_v63  ;;  %v1065_v6 = vshll.u32 %v19553_v51, 16 }
  0xaf   : > { %v1027_v28 = vrot.slane %v1025_v12, 1 }
  0xb1   : > { %17158 = vmatmul.mubr.msk.bf16.gmra.mrb[68].mxu1 %vm1213_vm3, %v956_v15  ;;  %v19549_v15 = vld [vmem:[%s20173_s9 + $0x170] sm:$0xff]   ;;  %v1028_v39 = vsel %vm664_vm2, %v1023_v31, %v1027_v28 }
  0xb2   : > { %17161 = vmatprep.mubr.msk.bf16.mxu1 %vm1213_vm3, %v964_v20  ;;  %v1012_v20 = vsel %vm664_vm2, %v1007_v11, %v1011_v8  ;;  %v1037_v37 = vshrl.u32 %v19549_v15, 16  ;;  %v6901_v11 = vsel %vm6874_vm5, %v6898_v43, %v6900_v57  ;;  %v19557_v31 = vld [vmem:[%s20173_s9 + $0x1b0] sm:$0xff]  }
  0xb4   : > { %17780 = vmatmul.mubr.msk.bf16.vlgmr.msra.gmra.mrb[0].mxu0 %vm1213_vm3, %v6879_v29  ;;  %v1015_v29 = vor.u32 %v1013_v18, %v1011_v8  ;;  %v19556_v8 = vld [vmem:[%s20173_s9 + $0x1a8] sm:$0xff]  }
  0xb5   : > { %17916 = vmatpush3.bf16.msra.mxu0 %v20351_v17  ;;  %17783 = vmatprep.mubr.msk.bf16.mxu0 %vm1213_vm3, %v6881_v10  ;;  %v6883_v17 = vsel %vm6874_vm5, %v6880_v25, %v6882_v36  ;;  %v6894_v25 = vrot.slane %v19689_v24, 2  ;;  %v1033_v10 = vshll.u32 %v19549_v15, 16  ;;  %v1073_v15 = vshll.u32 %v19554_v61, 16  ;;  %v19694_v18 = vld [vmem:[%s20173_s9 + $0x88] sm:$0xff]  }
  0xb6   : > { %v1020_v36 = vsel %vm664_vm2, %v1015_v29, %v1019_v27  ;;  %v6904_v19 = vrot.slane %v19694_v18, 2  ;;  %v1089_v29 = vshll.u32 %v19556_v8, 16  ;;  %v1093_v45 = vshrl.u32 %v19556_v8, 16  ;;  %v19700_v8 = vld [vmem:[%s20173_s9 + $0xb8] sm:$0xff]  }
  0xb7   : > { %v1035_v44 = vrot.slane %v1033_v10, 1  ;;  %v6895_v46 = vsel %vm6874_vm5, %v6892_v22, %v6894_v25  ;;  %v6897_v50 = vsel %vm6874_vm5, %v6894_v25, %v6896_v41  ;;  %v1077_v10 = vshrl.u32 %v19554_v61, 16 }
  0xb9   : > { %17162 = vmatmul.mubr.msk.bf16.gmra.mrb[72].mxu1 %vm1213_vm3, %v972_v34  ;;  %v6893_v34 = vsel %vm6874_vm5, %v6890_v2, %v6892_v22  ;;  %v1039_v47 = vor.u32 %v1037_v37, %v1035_v44  ;;  %v6899_v2 = vsel %vm6874_vm5, %v6896_v41, %v6898_v43  ;;  %v1067_v22 = vrot.slane %v1065_v6, 1  ;;  %v19697_v37 = vld [vmem:[%s20173_s9 + $0xa0] sm:$0xff]  }
  0xba   : > { %17165 = vmatprep.mubr.msk.bf16.mxu1 %vm1213_vm3, %v980_v38  ;;  %v1041_v38 = vshll.u32 %v19550_v26, 16  ;;  %v1091_v41 = vrot.slane %v1089_v29, 1 }
  0xbc   : > { %17784 = vmatmul.mubr.msk.bf16.gmra.mrb[4].mxu0 %vm1213_vm3, %v6883_v17  ;;  %v1031_v17 = vor.u32 %v1029_v32, %v1027_v28  ;;  %v1043_v48 = vrot.slane %v1041_v38, 1  ;;  %v1075_v28 = vrot.slane %v1073_v15, 1  ;;  %v6910_v38 = vrot.slane %v19697_v37, 2 }
  0xbd   : > { %17787 = vmatprep.mubr.msk.bf16.mxu0 %vm1213_vm3, %v6885_v49  ;;  %v1057_v49 = vshll.u32 %v19552_v35, 16  ;;  %v19696_v35 = vld [vmem:[%s20173_s9 + $0x98] sm:$0xff]  }
  0xbe   : > { %v1036_v52 = vsel %vm664_vm2, %v1031_v17, %v1035_v44  ;;  %v1044_v55 = vsel %vm664_vm2, %v1039_v47, %v1043_v48  ;;  %v1079_v42 = vor.u32 %v1077_v10, %v1075_v28  ;;  %v1097_v17 = vshll.u32 %v19557_v31, 16 }
  0xbf   : > { %v1059_v0 = vrot.slane %v1057_v49, 1 }
  0xc1   : > { %17166 = vmatmul.mubr.msk.bf16.gmra.mrb[76].mxu1 %vm1213_vm3, %v988_v53  ;;  %v1045_v53 = vshrl.u32 %v19550_v26, 16  ;;  %v1063_v25 = vor.u32 %v1061_v5, %v1059_v0 }
  0xc2   : > { %17169 = vmatprep.mubr.msk.bf16.mxu1 %vm1213_vm3, %v996_v58  ;;  %v19693_v58 = vld [vmem:[%s20173_s9 + $0x80] sm:$0xff]  }
  0xc3   : > { %v6902_v60 = vrot.slane %v19693_v58, 2  ;;  %v1047_v1 = vor.u32 %v1045_v53, %v1043_v48  ;;  %v1068_v32 = vsel %vm664_vm2, %v1063_v25, %v1067_v22  ;;  %v19560_v48 = vld [vmem:[%s20173_s9 + $0x1c8] sm:$0xff]  }
  0xc4   : > { %17788 = vmatmul.mubr.msk.bf16.gmra.mrb[8].mxu0 %vm1213_vm3, %v6887_v9  ;;  %v19555_v9 = vld [vmem:[%s20173_s9 + $0x1a0] sm:$0xff]   ;;  %v19698_v53 = vld [vmem:[%s20173_s9 + $0xa8] sm:$0xff]  }
  0xc5   : > { %17791 = vmatprep.mubr.msk.bf16.mxu0 %vm1213_vm3, %v6889_v14  ;;  %v1052_v12 = vsel %vm664_vm2, %v1047_v1, %v1051_v63  ;;  %v1069_v14 = vshrl.u32 %v19553_v51, 16  ;;  %v1081_v24 = vshll.u32 %v19555_v9, 16  ;;  %v6903_v26 = vsel %vm6874_vm5, %v6900_v57, %v6902_v60 }
  0xc6   : > { %v1085_v33 = vshrl.u32 %v19555_v9, 16  ;;  %v6912_v54 = vrot.slane %v19698_v53, 2  ;;  %v1099_v57 = vrot.slane %v1097_v17, 1  ;;  %v1121_v1 = vshll.u32 %v19560_v48, 16 }
  0xc7   : > { %v1071_v27 = vor.u32 %v1069_v14, %v1067_v22  ;;  %v1083_v40 = vrot.slane %v1081_v24, 1  ;;  %v19701_v14 = vld [vmem:[%s20173_s9 + $0xc0] sm:$0xff]   ;;  %v1125_v24 = vshrl.u32 %v19560_v48, 16 }
  0xc8   : > { %v6918_v15 = vrot.slane %v19701_v14, 2 }
  0xc9   : > { %17170 = vmatmul.mubr.msk.bf16.gmra.mrb[80].mxu1 %vm1213_vm3, %v1004_v16  ;;  %v1060_v16 = vsel %vm664_vm2, %v1055_v3, %v1059_v0  ;;  %v1087_v44 = vor.u32 %v1085_v33, %v1083_v40  ;;  %v1084_v49 = vsel %vm664_vm2, %v1079_v42, %v1083_v40  ;;  %v20533_v3 = vld [vmem:[%s20173_s9 + $0x1d0] sm:$0xff]  }
  0xca   : > { %17173 = vmatprep.mubr.msk.bf16.mxu1 %vm1213_vm3, %v1012_v20  ;;  %v19695_v20 = vld [vmem:[%s20173_s9 + $0x90] sm:$0xff]   ;;  %v1129_v25 = vshll.u32 %v20533_v3, 16  ;;  %v1133_v29 = vshrl.u32 %v20533_v3, 16 }
  0xcb   : > { %v6906_v21 = vrot.slane %v19695_v20, 2 }
  0xcc   : > { %17792 = vmatmul.mubr.msk.bf16.gmra.mrb[12].mxu0 %vm1213_vm3, %v6891_v30  ;;  %v6905_v30 = vsel %vm6874_vm5, %v6902_v60, %v6904_v19  ;;  %v1095_v60 = vor.u32 %v1093_v45, %v1091_v41  ;;  %v1131_v33 = vrot.slane %v1129_v25, 1 }
  0xcd   : > { %17795 = vmatprep.mubr.msk.bf16.mxu0 %vm1213_vm3, %v6893_v34  ;;  %v1076_v34 = vsel %vm664_vm2, %v1071_v27, %v1075_v28  ;;  %v6907_v43 = vsel %vm6874_vm5, %v6904_v19, %v6906_v21  ;;  %v1123_v19 = vrot.slane %v1121_v1, 1  ;;  %v20550_v27 = vld [vmem:[%s20173_s9 + $0x1e0] sm:$0xff]  }
  0xce   : > { %v1100_v5 = vsel %vm664_vm2, %v1095_v60, %v1099_v57  ;;  %v1135_v37 = vor.u32 %v1133_v29, %v1131_v33  ;;  %v1149_v17 = vshrl.u32 %v20550_v27, 16 }
  0xd1   : > { %17174 = vmatmul.mubr.msk.bf16.gmra.mrb[84].mxu1 %vm1213_vm3, %v1020_v36  ;;  %v6908_v36 = vrot.slane %v19696_v35, 2  ;;  %v1127_v35 = vor.u32 %v1125_v24, %v1123_v19  ;;  %v19707_v24 = vld [vmem:[%s20173_s9 + $0xf0] sm:$0xff]  }
  0xd2   : > { %17177 = vmatprep.mubr.msk.bf16.mxu1 %vm1213_vm3, %v1028_v39  ;;  %v19558_v39 = vld [vmem:[%s20173_s9 + $0x1b8] sm:$0xff]   ;;  %v6930_v25 = vrot.slane %v19707_v24, 2  ;;  %v19573_v24 = vld [vmem:[%s20173_s9 + $0x130] sm:$0xff]  }
  0xd3   : > { %v6909_v47 = vsel %vm6874_vm5, %v6906_v21, %v6908_v36  ;;  %v1105_v51 = vshll.u32 %v19558_v39, 16  ;;  %v6911_v61 = vsel %vm6874_vm5, %v6908_v36, %v6910_v38  ;;  %v1109_v6 = vshrl.u32 %v19558_v39, 16 }
  0xd4   : > { %17796 = vmatmul.mubr.msk.bf16.gmra.mrb[16].mxu0 %vm1213_vm3, %v6895_v46  ;;  %v19559_v46 = vld [vmem:[%s20173_s9 + $0x1c0] sm:$0xff]   ;;  %v1145_v39 = vshll.u32 %v20550_v27, 16 }
  0xd5   : > { %17799 = vmatprep.mubr.msk.bf16.mxu0 %vm1213_vm3, %v6897_v50  ;;  %v1101_v50 = vshrl.u32 %v19557_v31, 16  ;;  %v1113_v58 = vshll.u32 %v19559_v46, 16  ;;  %v1107_v0 = vrot.slane %v1105_v51, 1  ;;  %v1117_v9 = vshrl.u32 %v19559_v46, 16 }
  0xd7   : > { %v1103_v63 = vor.u32 %v1101_v50, %v1099_v57  ;;  %v1115_v18 = vrot.slane %v1113_v58, 1  ;;  %v1111_v20 = vor.u32 %v1109_v6, %v1107_v0  ;;  %v20578_v50 = vld [vmem:[%s20173_s9 + $0x1f0] sm:$0xff]  }
  0xd8   : > { %v1161_v57 = vshll.u32 %v20578_v50, 16  ;;  %v1165_v1 = vshrl.u32 %v20578_v50, 16 }
  0xd9   : > { %17178 = vmatmul.mubr.msk.bf16.gmra.mrb[88].mxu1 %vm1213_vm3, %v1036_v52  ;;  %v1092_v52 = vsel %vm664_vm2, %v1087_v44, %v1091_v41  ;;  %v1119_v22 = vor.u32 %v1117_v9, %v1115_v18  ;;  %v1116_v28 = vsel %vm664_vm2, %v1111_v20, %v1115_v18  ;;  %v1132_v41 = vsel %vm664_vm2, %v1127_v35, %v1131_v33  ;;  %v20603_v18 = vld [vmem:[%s20173_s9 + $0x208] sm:$0xff]  }
  0xda   : > { %17181 = vmatprep.mubr.msk.bf16.mxu1 %vm1213_vm3, %v1044_v55  ;;  %v19699_v55 = vld [vmem:[%s20173_s9 + $0xb0] sm:$0xff]   ;;  %v1163_v9 = vrot.slane %v1161_v57, 1  ;;  %v1185_v29 = vshll.u32 %v20603_v18, 16 }
  0xdb   : > { %v6914_v56 = vrot.slane %v19699_v55, 2  ;;  %v1124_v31 = vsel %vm664_vm2, %v1119_v22, %v1123_v19  ;;  %v20583_v55 = vld [vmem:[%s20173_s9 + $0x1f8] sm:$0xff]  }
  0xdc   : > { %17800 = vmatmul.mubr.msk.bf16.gmra.mrb[20].mxu0 %vm1213_vm3, %v6899_v2  ;;  %v6913_v2 = vsel %vm6874_vm5, %v6910_v38, %v6912_v54  ;;  %v1167_v14 = vor.u32 %v1165_v1, %v1163_v9  ;;  %v1173_v22 = vshrl.u32 %v20583_v55, 16 }
  0xdd   : > { %17803 = vmatprep.mubr.msk.bf16.mxu0 %vm1213_vm3, %v6901_v11  ;;  %v1108_v11 = vsel %vm664_vm2, %v1103_v63, %v1107_v0  ;;  %v6915_v21 = vsel %vm6874_vm5, %v6912_v54, %v6914_v56 }
  0xe1   : > { %17182 = vmatmul.mubr.msk.bf16.gmra.mrb[92].mxu1 %vm1213_vm3, %v1052_v12  ;;  %v6916_v12 = vrot.slane %v19700_v8, 2 }
  0xe2   : > { %17185 = vmatprep.mubr.msk.bf16.mxu1 %vm1213_vm3, %v1060_v16  ;;  %v20542_v16 = vld [vmem:[%s20173_s9 + $0x1d8] sm:$0xff]  }
  0xe3   : > { %v6919_v36 = vsel %vm6874_vm5, %v6916_v12, %v6918_v15  ;;  %v1141_v42 = vshrl.u32 %v20542_v16, 16 }
  0xe4   : > { %17804 = vmatmul.mubr.msk.bf16.gmra.mrb[24].mxu0 %vm1213_vm3, %v6903_v26  ;;  %v6917_v26 = vsel %vm6874_vm5, %v6914_v56, %v6916_v12 }
  0xe5   : > { %17807 = vmatprep.mubr.msk.bf16.mxu0 %vm1213_vm3, %v6905_v30  ;;  %v1137_v30 = vshll.u32 %v20542_v16, 16 }
  0xe7   : > { %v1139_v38 = vrot.slane %v1137_v30, 1  ;;  %v19708_v30 = vld [vmem:[%s20173_s9 + $0xf8] sm:$0xff]  }
  0xe9   : > { %17186 = vmatmul.mubr.msk.bf16.gmra.mrb[96].mxu1 %vm1213_vm3, %v1068_v32  ;;  %v19702_v32 = vld [vmem:[%s20173_s9 + $0xc8] sm:$0xff]   ;;  %v1140_v45 = vsel %vm664_vm2, %v1135_v37, %v1139_v38  ;;  %v1143_v51 = vor.u32 %v1141_v42, %v1139_v38  ;;  %v1187_v37 = vrot.slane %v1185_v29, 1  ;;  %v20623_v38 = vld [vmem:[%s20173_s9 + $0x218] sm:$0xff]   ;;  %v1189_v42 = vshrl.u32 %v20603_v18, 16 }
  0xea   : > { %17189 = vmatprep.mubr.msk.bf16.mxu1 %vm1213_vm3, %v1076_v34  ;;  %v6920_v10 = vrot.slane %v19702_v32, 2  ;;  %v20561_v34 = vld [vmem:[%s20173_s9 + $0x1e8] sm:$0xff]  }
  0xeb   : > { %v1153_v46 = vshll.u32 %v20561_v34, 16  ;;  %v1157_v60 = vshrl.u32 %v20561_v34, 16 }
  0xec   : > { %17808 = vmatmul.mubr.msk.bf16.gmra.mrb[28].mxu0 %vm1213_vm3, %v6907_v43  ;;  %v6921_v40 = vsel %vm6874_vm5, %v6918_v15, %v6920_v10  ;;  %v19703_v43 = vld [vmem:[%s20173_s9 + $0xd0] sm:$0xff]  }
  0xed   : > { %17811 = vmatprep.mubr.msk.bf16.mxu0 %vm1213_vm3, %v6909_v47  ;;  %v6922_v44 = vrot.slane %v19703_v43, 2  ;;  %v19704_v47 = vld [vmem:[%s20173_s9 + $0xd8] sm:$0xff]   ;;  %v1155_v54 = vrot.slane %v1153_v46, 1  ;;  %v19709_v43 = vld [vmem:[%s20173_s9 + $0x100] sm:$0xff]   ;;  %v1201_v46 = vshll.u32 %v20623_v38, 16 }
  0xee   : > { %v6924_v48 = vrot.slane %v19704_v47, 2  ;;  %v19710_v47 = vld [vmem:[%s20173_s9 + $0x108] sm:$0xff]  }
  0xef   : > { %v1159_v8 = vor.u32 %v1157_v60, %v1155_v54  ;;  %v1205_v60 = vshrl.u32 %v20623_v38, 16 }
  0xf0   : > { %v6925_v56 = vsel %vm6874_vm5, %v6922_v44, %v6924_v48 }
  0xf1   : > { %17190 = vmatmul.mubr.msk.bf16.gmra.mrb[100].mxu1 %vm1213_vm3, %v1084_v49  ;;  %v1147_v49 = vrot.slane %v1145_v39, 1 }
  0xf2   : > { %17193 = vmatprep.mubr.msk.bf16.mxu1 %vm1213_vm3, %v1092_v52  ;;  %v6923_v52 = vsel %vm6874_vm5, %v6920_v10, %v6922_v44  ;;  %v20618_v10 = vld [vmem:[%s20173_s9 + $0x210] sm:$0xff]   ;;  %v6934_v44 = vrot.slane %v19709_v43, 2 }
  0xf3   : > { %v1151_v53 = vor.u32 %v1149_v17, %v1147_v49  ;;  %v1148_v58 = vsel %vm664_vm2, %v1143_v51, %v1147_v49  ;;  %v1197_v17 = vshrl.u32 %v20618_v10, 16  ;;  %v1191_v51 = vor.u32 %v1189_v42, %v1187_v37  ;;  %v19577_v43 = vld [vmem:[%s20173_s9 + $0x150] sm:$0xff]  }
  0xf4   : > { %17812 = vmatmul.mubr.msk.bf16.gmra.mrb[32].mxu0 %vm1213_vm3, %v6911_v61  ;;  %v19705_v61 = vld [vmem:[%s20173_s9 + $0xe0] sm:$0xff]  }
  0xf5   : > { %17815 = vmatprep.mubr.msk.bf16.mxu0 %vm1213_vm3, %v6913_v2  ;;  %v6926_v63 = vrot.slane %v19705_v61, 2  ;;  %v1156_v0 = vsel %vm664_vm2, %v1151_v53, %v1155_v54  ;;  %v1169_v2 = vshll.u32 %v20583_v55, 16 }
  0xf7   : > { %v6927_v12 = vsel %vm6874_vm5, %v6924_v48, %v6926_v63  ;;  %v1171_v15 = vrot.slane %v1169_v2, 1  ;;  %v6936_v48 = vrot.slane %v19710_v47, 2  ;;  %v19712_v2 = vld [vmem:[%s20173_s9 + $0x118] sm:$0xff]   ;;  %v20707_v47 = vld [vmem:[%s20173_s9 + $0x28] sm:$0xff]  }
  0xf9   : > { %17194 = vmatmul.mubr.msk.bf16.gmra.mrb[104].mxu1 %vm1213_vm3, %v1100_v5  ;;  %v19706_v5 = vld [vmem:[%s20173_s9 + $0xe8] sm:$0xff]   ;;  %v1175_v33 = vor.u32 %v1173_v22, %v1171_v15  ;;  %v6937_v57 = vsel %vm6874_vm5, %v6934_v44, %v6936_v48 }
  0xfa   : > { %17197 = vmatprep.mubr.msk.bf16.mxu1 %vm1213_vm3, %v1108_v11  ;;  %v6928_v6 = vrot.slane %v19706_v5, 2  ;;  %v20598_v11 = vld [vmem:[%s20173_s9 + $0x200] sm:$0xff]   ;;  %v6940_v5 = vrot.slane %v19712_v2, 2 }
  0xfb   : > { %v1177_v20 = vshll.u32 %v20598_v11, 16 }
  0xfc   : > { %17816 = vmatmul.mubr.msk.bf16.gmra.mrb[36].mxu0 %vm1213_vm3, %v6915_v21  ;;  %v6929_v19 = vsel %vm6874_vm5, %v6926_v63, %v6928_v6  ;;  %v1164_v21 = vsel %vm664_vm2, %v1159_v8, %v1163_v9  ;;  %v6931_v35 = vsel %vm6874_vm5, %v6928_v6, %v6930_v25  ;;  %v19711_v63 = vld [vmem:[%s20173_s9 + $0x110] sm:$0xff]  }
  0xfd   : > { %17819 = vmatprep.mubr.msk.bf16.mxu0 %vm1213_vm3, %v6917_v26  ;;  %v1172_v26 = vsel %vm664_vm2, %v1167_v14, %v1171_v15  ;;  %v1179_v32 = vrot.slane %v1177_v20, 1  ;;  %v19572_v14 = vld [vmem:[%s20173_s9 + $0x128] sm:$0xff]  }
 0x101   : > { %17198 = vmatmul.mubr.msk.bf16.gmra.mrb[108].mxu1 %vm1213_vm3, %v1116_v28  ;;  %v1181_v28 = vshrl.u32 %v20598_v11, 16 }
 0x102   : > { %17201 = vmatprep.mubr.msk.bf16.mxu1 %vm1213_vm3, %v1124_v31  ;;  %v6932_v31 = vrot.slane %v19708_v30, 2  ;;  %v20667_v30 = vld [vmem:[%s20173_s9 + $0x8] sm:$0xff]  }
 0x104   : > { %17820 = vmatmul.mubr.msk.bf16.gmra.mrb[40].mxu0 %vm1213_vm3, %v6919_v36  ;;  %v1183_v36 = vor.u32 %v1181_v28, %v1179_v32  ;;  %v6933_v39 = vsel %vm6874_vm5, %v6930_v25, %v6932_v31  ;;  %v6935_v53 = vsel %vm6874_vm5, %v6932_v31, %v6934_v44  ;;  %v6946_v28 = vrot.slane %v19573_v24, 2  ;;  %v19585_v24 = vld [vmem:[%s20173_s9 + $0x190] sm:$0xff]  }
 0x105   : > { %17823 = vmatprep.mubr.msk.bf16.mxu0 %vm1213_vm3, %v6921_v40  ;;  %v1193_v40 = vshll.u32 %v20618_v10, 16 }
 0x107   : > { %v1195_v49 = vrot.slane %v1193_v40, 1  ;;  %v20690_v40 = vld [vmem:[%s20173_s9 + $0x18] sm:$0xff]  }
 0x109   : > { %17202 = vmatmul.mubr.msk.bf16.gmra.mrb[112].mxu1 %vm1213_vm3, %v1132_v41  ;;  %v1180_v41 = vsel %vm664_vm2, %v1175_v33, %v1179_v32  ;;  %v1199_v54 = vor.u32 %v1197_v17, %v1195_v49  ;;  %v19575_v32 = vld [vmem:[%s20173_s9 + $0x140] sm:$0xff]   ;;  %v6954_v17 = vrot.slane %v19577_v43, 2  ;;  %v20787_v43 = vld [vmem:[%s20173_s9 + $0x78] sm:$0xff]  }
 0x10a   : > { %17205 = vmatprep.mubr.msk.bf16.mxu1 %vm1213_vm3, %v1140_v45  ;;  %v1188_v45 = vsel %vm664_vm2, %v1183_v36, %v1187_v37  ;;  %v6950_v36 = vrot.slane %v19575_v32, 2  ;;  %v20776_v32 = vld [vmem:[%s20173_s9 + $0x70] sm:$0xff]  }
 0x10c   : > { %17824 = vmatmul.mubr.msk.bf16.gmra.mrb[44].mxu0 %vm1213_vm3, %v6923_v52  ;;  %v19571_v52 = vld [vmem:[%s20173_s9 + $0x220] ss:$0 sps:$4 sm:$0x11]  }
 0x10d   : > { %17827 = vmatprep.mubr.msk.bf16.mxu0 %vm1213_vm3, %v6925_v56  ;;  %v1203_v56 = vrot.slane %v1201_v46, 1  ;;  %v1209_v61 = vshll.u32 %v19571_v52, 16 }
 0x10f   : > { %v1204_v1 = vsel %vm664_vm2, %v1199_v54, %v1203_v56  ;;  %v1207_v6 = vor.u32 %v1205_v60, %v1203_v56  ;;  %v1211_v9 = vrot.slane %v1209_v61, 1  ;;  %v19581_v61 = vld [vmem:[%s20173_s9 + $0x170] sm:$0xff]  }
 0x111   : > { %17206 = vmatmul.mubr.msk.bf16.gmra.mrb[116].mxu1 %vm1213_vm3, %v1148_v58  ;;  %v1196_v58 = vsel %vm664_vm2, %v1191_v51, %v1195_v49  ;;  %v1212_v15 = vsel %vm664_vm2, %v1207_v6, %v1211_v9  ;;  %v19579_v51 = vld [vmem:[%s20173_s9 + $0x160] sm:$0xff]   ;;  %v20744_v6 = vld [vmem:[%s20173_s9 + $0x50] sm:$0xff]   ;;  %vm22767_vm2 = vmor %vm1419_vm1, %vm12264_vm14 }
 0x112   : > { %17209 = vmatprep.mubr.msk.bf16.mxu1 %vm1213_vm3, %v1156_v0  ;;  %v6938_v0 = vrot.slane %v19711_v63, 2  ;;  %v6958_v54 = vrot.slane %v19579_v51, 2 }
 0x114   : > { %17828 = vmatmul.mubr.msk.bf16.gmra.mrb[48].mxu0 %vm1213_vm3, %v6927_v12  ;;  %v6939_v8 = vsel %vm6874_vm5, %v6936_v48, %v6938_v0  ;;  %v6941_v12 = vsel %vm6874_vm5, %v6938_v0, %v6940_v5  ;;  %v20712_v48 = vld [vmem:[%s20173_s9 + $0x30] sm:$0xff]   ;;  %v19582_v0 = vld [vmem:[%s20173_s9 + $0x178] sm:$0xff]  }
 0x115   : > { %17831 = vmatprep.mubr.msk.bf16.mxu0 %vm1213_vm3, %v6929_v19  ;;  %v19713_v19 = vld [vmem:[%s20173_s9 + $0x120] sm:$0xff]   ;;  %v6964_v2 = vrot.slane %v19582_v0, 2 }
 0x116   : > { %v6942_v20 = vrot.slane %v19713_v19, 2 }
 0x118   : > { %v6943_v22 = vsel %vm6874_vm5, %v6940_v5, %v6942_v20  ;;  %v20739_v5 = vld [vmem:[%s20173_s9 + $0x48] sm:$0xff]  }
 0x119   : > { %17210 = vmatmul.mubr.msk.bf16.gmra.mrb[120].mxu1 %vm1213_vm3, %v1164_v21  ;;  %v6944_v21 = vrot.slane %v19572_v14, 2  ;;  %v19584_v14 = vld [vmem:[%s20173_s9 + $0x188] sm:$0xff]  }
 0x11a   : > { %17213 = vmatprep.mubr.msk.bf16.mxu1 %vm1213_vm3, %v1172_v26  ;;  %v19574_v26 = vld [vmem:[%s20173_s9 + $0x138] sm:$0xff]   ;;  %v6968_v19 = vrot.slane %v19584_v14, 2 }
 0x11b   : > { %v6945_v25 = vsel %vm6874_vm5, %v6942_v20, %v6944_v21  ;;  %v6948_v29 = vrot.slane %v19574_v26, 2  ;;  %v6947_v31 = vsel %vm6874_vm5, %v6944_v21, %v6946_v28  ;;  %v20755_v20 = vld [vmem:[%s20173_s9 + $0x58] sm:$0xff]   ;;  %v20760_v21 = vld [vmem:[%s20173_s9 + $0x60] sm:$0xff]  }
 0x11c   : > { %17832 = vmatmul.mubr.msk.bf16.gmra.mrb[52].mxu0 %vm1213_vm3, %v6931_v35  ;;  %v19576_v35 = vld [vmem:[%s20173_s9 + $0x148] sm:$0xff]   ;;  %v19586_v26 = vld [vmem:[%s20173_s9 + $0x198] sm:$0xff]  }
 0x11d   : > { %17835 = vmatprep.mubr.msk.bf16.mxu0 %vm1213_vm3, %v6933_v39  ;;  %v6949_v33 = vsel %vm6874_vm5, %v6946_v28, %v6948_v29  ;;  %v6952_v37 = vrot.slane %v19576_v35, 2  ;;  %v6951_v42 = vsel %vm6874_vm5, %v6948_v29, %v6950_v36  ;;  %v6970_v28 = vrot.slane %v19585_v24, 2  ;;  %v19587_v35 = vld [vmem:[%s20173_s9 + $0x1a0] sm:$0xff]   ;;  %v20835_v24 = vld [vmem:[%s20173_s9 + $0xa8] sm:$0xff]  }
 0x11e   : > { %v6972_v29 = vrot.slane %v19586_v26, 2 }
 0x11f   : > { %v6953_v44 = vsel %vm6874_vm5, %v6950_v36, %v6952_v37  ;;  %v6955_v49 = vsel %vm6874_vm5, %v6952_v37, %v6954_v17  ;;  %v6974_v37 = vrot.slane %v19587_v35, 2 }
 0x120   : > { %v6973_v36 = vsel %vm6874_vm5, %v6970_v28, %v6972_v29 }
 0x121   : > { %17214 = vmatmul.mubr.msk.bf16.gmra.mrb[124].mxu1 %vm1213_vm3, %v1180_v41  ;;  %v20695_v41 = vld [vmem:[%s20173_s9 + $0x20] sm:$0xff]  }
 0x122   : > { %17217 = vmatprep.mubr.msk.bf16.mxu1 %vm1213_vm3, %v1188_v45  ;;  %v19578_v45 = vld [vmem:[%s20173_s9 + $0x158] sm:$0xff]  }
 0x123   : > { %v6956_v46 = vrot.slane %v19578_v45, 2  ;;  %v6975_v45 = vsel %vm6874_vm5, %v6972_v29, %v6974_v37 }
 0x124   : > { %17836 = vmatmul.mubr.msk.bf16.gmra.mrb[56].mxu0 %vm1213_vm3, %v6935_v53  ;;  %v19580_v53 = vld [vmem:[%s20173_s9 + $0x168] sm:$0xff]  }
 0x125   : > { %17839 = vmatprep.mubr.msk.bf16.mxu0 %vm1213_vm3, %v6937_v57  ;;  %v6957_v52 = vsel %vm6874_vm5, %v6954_v17, %v6956_v46  ;;  %v6960_v56 = vrot.slane %v19580_v53, 2  ;;  %v20723_v57 = vld [vmem:[%s20173_s9 + $0x38] sm:$0xff]   ;;  %v6959_v60 = vsel %vm6874_vm5, %v6956_v46, %v6958_v54  ;;  %v19589_v17 = vld [vmem:[%s20173_s9 + $0x1b0] sm:$0xff]   ;;  %v20803_v53 = vld [vmem:[%s20173_s9 + $0x88] sm:$0xff]  }
 0x126   : > { %v6978_v51 = vrot.slane %v19589_v17, 2 }
 0x127   : > { %v6961_v63 = vsel %vm6874_vm5, %v6958_v54, %v6960_v56  ;;  %v20808_v54 = vld [vmem:[%s20173_s9 + $0x90] sm:$0xff]  }
 0x129   : > { %17218 = vmatmul.mubr.msk.bf16.gmra.mrb[128].mxu1 %vm1213_vm3, %v1196_v58  ;;  %v20728_v58 = vld [vmem:[%s20173_s9 + $0x40] sm:$0xff]  }
 0x12a   : > { %17221 = vmatprep.mubr.msk.bf16.mxu1 %vm1213_vm3, %v1204_v1  ;;  %v6962_v1 = vrot.slane %v19581_v61, 2 }
 0x12c   : > { %17840 = vmatmul.mubr.msk.bf16.gmra.mrb[60].mxu0 %vm1213_vm3, %v6939_v8  ;;  %v6963_v9 = vsel %vm6874_vm5, %v6960_v56, %v6962_v1  ;;  %v19583_v8 = vld [vmem:[%s20173_s9 + $0x180] sm:$0xff]  }
 0x12d   : > { %17843 = vmatprep.mubr.msk.bf16.mxu0 %vm1213_vm3, %v6941_v12  ;;  %v6965_v12 = vsel %vm6874_vm5, %v6962_v1, %v6964_v2 }
 0x131   : > { %17222 = vmatmul.mubr.msk.bf16.gmra.mrb[132].mxu1 %vm1213_vm3, %v1212_v15  ;;  %v6966_v15 = vrot.slane %v19583_v8, 2 }
 0x132   : > { %17227 = vmatprep.mubr.msk.bf16.mxu1 %vm1213_vm3, %v20179_v13  ;;  %v20673_v13 = vld [vmem:[%s20173_s9 + $0x10] sm:$0xff]  }
 0x134   : > { %17844 = vmatmul.mubr.msk.bf16.gmra.mrb[64].mxu0 %vm1213_vm3, %v6943_v22  ;;  %v6967_v22 = vsel %vm6874_vm5, %v6964_v2, %v6966_v15  ;;  %v20819_v2 = vld [vmem:[%s20173_s9 + $0x98] sm:$0xff]  }
 0x135   : > { %17847 = vmatprep.mubr.msk.bf16.mxu0 %vm1213_vm3, %v6945_v25  ;;  %v6969_v25 = vsel %vm6874_vm5, %v6966_v15, %v6968_v19  ;;  %v19594_v15 = vld [vmem:[%s20173_s9 + $0x1d8] sm:$0xff]  }
 0x139   : > { %17228 = vmatmul.mubr.msk.bf16.vlgmr.msra.gmra.mrb[0].mxu1 %vm1213_vm3, %v20667_v30 }
 0x13a   : > { %17364 = vmatpush3.bf16.msra.mxu1 %v20451_v62  ;;  %17231 = vmatprep.mubr.msk.bf16.mxu1 %vm1213_vm3, %v20673_v13  ;;  %v15866_v62 = vld [vmem:[%s25425_s1 + $0xe] sm:$0x3] }
 0x13b   : > { %v20687_v39 = vand.u32 %v15866_v62, %v20149_v4  ;;  %v19588_v62 = vld [vmem:[%s20173_s9 + $0x1a8] sm:$0xff]  }
 0x13c   : > { %17848 = vmatmul.mubr.msk.bf16.gmra.mrb[68].mxu0 %vm1213_vm3, %v6947_v31  ;;  %v20771_v31 = vld [vmem:[%s20173_s9 + $0x68] sm:$0xff]  }
 0x13d   : > { %17851 = vmatprep.mubr.msk.bf16.mxu0 %vm1213_vm3, %v6949_v33  ;;  %18053 = vmatprep.subr.bf16.mxu0 %v20687_v39  ;;  %v6971_v33 = vsel %vm6874_vm5, %v6968_v19, %v6970_v28  ;;  %v19595_v28 = vld [vmem:[%s20173_s9 + $0x1e0] sm:$0xff]  }
 0x13e   : > { %v6990_v35 = vrot.slane %v19595_v28, 2 }
 0x141   : > { %17232 = vmatmul.mubr.msk.bf16.gmra.mrb[4].mxu1 %vm1213_vm3, %v20690_v40 }
 0x142   : > { %17235 = vmatprep.mubr.msk.bf16.mxu1 %vm1213_vm3, %v20695_v41 }
 0x144   : > { %17852 = vmatmul.mubr.msk.bf16.gmra.mrb[72].mxu0 %vm1213_vm3, %v6951_v42  ;;  %v6976_v42 = vrot.slane %v19588_v62, 2  ;;  %v20851_v62 = vld [vmem:[%s20173_s9 + $0xb8] sm:$0xff]  }
 0x145   : > { %17855 = vmatprep.mubr.msk.bf16.mxu0 %vm1213_vm3, %v6953_v44  ;;  %v20792_v44 = vld [vmem:[%s20173_s9 + $0x80] sm:$0xff]  }
 0x146   : > { %v6977_v46 = vsel %vm6874_vm5, %v6974_v37, %v6976_v42  ;;  %v6979_v56 = vsel %vm6874_vm5, %v6976_v42, %v6978_v51  ;;  %v20856_v37 = vld [vmem:[%s20173_s9 + $0xc0] sm:$0xff]  }
 0x149   : > { %17236 = vmatmul.mubr.msk.bf16.gmra.mrb[8].mxu1 %vm1213_vm3, %v20707_v47 }
 0x14a   : > { %17239 = vmatprep.mubr.msk.bf16.mxu1 %vm1213_vm3, %v20712_v48 }
 0x14c   : > { %17856 = vmatmul.mubr.msk.bf16.gmra.mrb[76].mxu0 %vm1213_vm3, %v6955_v49  ;;  %v19590_v49 = vld [vmem:[%s20173_s9 + $0x1b8] sm:$0xff]  }
 0x14d   : > { %17859 = vmatprep.mubr.msk.bf16.mxu0 %vm1213_vm3, %v6957_v52  ;;  %v6980_v52 = vrot.slane %v19590_v49, 2 }
 0x14f   : > { %v6981_v61 = vsel %vm6874_vm5, %v6978_v51, %v6980_v52 }
 0x151   : > { %17240 = vmatmul.mubr.msk.bf16.gmra.mrb[12].mxu1 %vm1213_vm3, %v20723_v57 }
 0x152   : > { %17243 = vmatprep.mubr.msk.bf16.mxu1 %vm1213_vm3, %v20728_v58 }
 0x154   : > { %17860 = vmatmul.mubr.msk.bf16.gmra.mrb[80].mxu0 %vm1213_vm3, %v6959_v60  ;;  %v19591_v60 = vld [vmem:[%s20173_s9 + $0x1c0] sm:$0xff]  }
 0x155   : > { %17863 = vmatprep.mubr.msk.bf16.mxu0 %vm1213_vm3, %v6961_v63  ;;  %v19592_v63 = vld [vmem:[%s20173_s9 + $0x1c8] sm:$0xff]   ;;  %v6982_v0 = vrot.slane %v19591_v60, 2 }
 0x156   : > { %v6984_v1 = vrot.slane %v19592_v63, 2 }
 0x157   : > { %v6983_v8 = vsel %vm6874_vm5, %v6980_v52, %v6982_v0  ;;  %v20867_v52 = vld [vmem:[%s20173_s9 + $0xc8] sm:$0xff]  }
 0x158   : > { %v6985_v14 = vsel %vm6874_vm5, %v6982_v0, %v6984_v1  ;;  %v19600_v0 = vld [vmem:[%s20173_s9 + $0x208] sm:$0xff]  }
 0x159   : > { %17244 = vmatmul.mubr.msk.bf16.gmra.mrb[16].mxu1 %vm1213_vm3, %v20739_v5 }
 0x15a   : > { %17247 = vmatprep.mubr.msk.bf16.mxu1 %vm1213_vm3, %v20744_v6 }
 0x15c   : > { %17864 = vmatmul.mubr.msk.bf16.gmra.mrb[84].mxu0 %vm1213_vm3, %v6963_v9  ;;  %v20824_v9 = vld [vmem:[%s20173_s9 + $0xa0] sm:$0xff]  }
 0x15d   : > { %17867 = vmatprep.mubr.msk.bf16.mxu0 %vm1213_vm3, %v6965_v12  ;;  %v19593_v12 = vld [vmem:[%s20173_s9 + $0x1d0] sm:$0xff]  }
 0x15e   : > { %v6986_v19 = vrot.slane %v19593_v12, 2  ;;  %v20883_v12 = vld [vmem:[%s20173_s9 + $0xd8] sm:$0xff]  }
 0x160   : > { %v6987_v26 = vsel %vm6874_vm5, %v6984_v1, %v6986_v19 }
 0x161   : > { %17248 = vmatmul.mubr.msk.bf16.gmra.mrb[20].mxu1 %vm1213_vm3, %v20755_v20 }
 0x162   : > { %17251 = vmatprep.mubr.msk.bf16.mxu1 %vm1213_vm3, %v20760_v21 }
 0x164   : > { %17868 = vmatmul.mubr.msk.bf16.gmra.mrb[88].mxu0 %vm1213_vm3, %v6967_v22  ;;  %v6988_v22 = vrot.slane %v19594_v15, 2 }
 0x165   : > { %17871 = vmatprep.mubr.msk.bf16.mxu0 %vm1213_vm3, %v6969_v25  ;;  %v20840_v25 = vld [vmem:[%s20173_s9 + $0xb0] sm:$0xff]  }
 0x166   : > { %v6989_v29 = vsel %vm6874_vm5, %v6986_v19, %v6988_v22  ;;  %v6991_v42 = vsel %vm6874_vm5, %v6988_v22, %v6990_v35  ;;  %v19601_v19 = vld [vmem:[%s20173_s9 + $0x210] sm:$0xff]  }
 0x167   : > { %v7002_v28 = vrot.slane %v19601_v19, 2  ;;  %v20932_v19 = vld [vmem:[%s20173_s9 + $0x28] sm:$0xff]  }
 0x169   : > { %17252 = vmatmul.mubr.msk.bf16.gmra.mrb[24].mxu1 %vm1213_vm3, %v20771_v31 }
 0x16a   : > { %17255 = vmatprep.mubr.msk.bf16.mxu1 %vm1213_vm3, %v20776_v32 }
 0x16c   : > { %17872 = vmatmul.mubr.msk.bf16.gmra.mrb[92].mxu0 %vm1213_vm3, %v6971_v33  ;;  %v19596_v33 = vld [vmem:[%s20173_s9 + $0x1e8] sm:$0xff]  }
 0x16d   : > { %17875 = vmatprep.mubr.msk.bf16.mxu0 %vm1213_vm3, %v6973_v36  ;;  %v6992_v36 = vrot.slane %v19596_v33, 2  ;;  %v20899_v33 = vld [vmem:[%s20173_s9 + $0xe8] sm:$0xff]  }
 0x16f   : > { %v6993_v17 = vsel %vm6874_vm5, %v6990_v35, %v6992_v36  ;;  %v20904_v35 = vld [vmem:[%s20173_s9 + $0xf0] sm:$0xff]  }
 0x171   : > { %17256 = vmatmul.mubr.msk.bf16.gmra.mrb[28].mxu1 %vm1213_vm3, %v20787_v43 }
 0x172   : > { %17259 = vmatprep.mubr.msk.bf16.mxu1 %vm1213_vm3, %v20792_v44 }
 0x174   : > { %17876 = vmatmul.mubr.msk.bf16.gmra.mrb[96].mxu0 %vm1213_vm3, %v6975_v45  ;;  %v19597_v45 = vld [vmem:[%s20173_s9 + $0x1f0] sm:$0xff]  }
 0x175   : > { %17879 = vmatprep.mubr.msk.bf16.mxu0 %vm1213_vm3, %v6977_v46  ;;  %v19598_v46 = vld [vmem:[%s20173_s9 + $0x1f8] sm:$0xff]   ;;  %v6994_v49 = vrot.slane %v19597_v45, 2 }
 0x176   : > { %v6996_v51 = vrot.slane %v19598_v46, 2 }
 0x177   : > { %v6995_v60 = vsel %vm6874_vm5, %v6992_v36, %v6994_v49 }
 0x178   : > { %v6997_v63 = vsel %vm6874_vm5, %v6994_v49, %v6996_v51 }
 0x179   : > { %17260 = vmatmul.mubr.msk.bf16.gmra.mrb[32].mxu1 %vm1213_vm3, %v20803_v53 }
 0x17a   : > { %17263 = vmatprep.mubr.msk.bf16.mxu1 %vm1213_vm3, %v20808_v54 }
 0x17c   : > { %17880 = vmatmul.mubr.msk.bf16.gmra.mrb[100].mxu0 %vm1213_vm3, %v6979_v56  ;;  %v20872_v56 = vld [vmem:[%s20173_s9 + $0xd0] sm:$0xff]  }
 0x17d   : > { %17883 = vmatprep.mubr.msk.bf16.mxu0 %vm1213_vm3, %v6981_v61  ;;  %v19599_v61 = vld [vmem:[%s20173_s9 + $0x200] sm:$0xff]  }
 0x17e   : > { %v6998_v1 = vrot.slane %v19599_v61, 2  ;;  %v7933_v61 = vld [vmem:[%s20173_s9 + $0x24] sm:$0xf] }
 0x180   : > { %v6999_v15 = vsel %vm6874_vm5, %v6996_v51, %v6998_v1  ;;  %v20915_v51 = vld [vmem:[%s20173_s9 + $0xf8] sm:$0xff]  }
 0x181   : > { %17264 = vmatmul.mubr.msk.bf16.gmra.mrb[36].mxu1 %vm1213_vm3, %v20819_v2 }
 0x182   : > { %17267 = vmatprep.mubr.msk.bf16.mxu1 %vm1213_vm3, %v20824_v9 }
 0x184   : > { %17884 = vmatmul.mubr.msk.bf16.gmra.mrb[104].mxu0 %vm1213_vm3, %v6983_v8  ;;  %v7000_v8 = vrot.slane %v19600_v0, 2 }
 0x185   : > { %17887 = vmatprep.mubr.msk.bf16.mxu0 %vm1213_vm3, %v6985_v14  ;;  %v20888_v14 = vld [vmem:[%s20173_s9 + $0xe0] sm:$0xff]  }
 0x186   : > { %v7001_v22 = vsel %vm6874_vm5, %v6998_v1, %v7000_v8  ;;  %v7003_v36 = vsel %vm6874_vm5, %v7000_v8, %v7002_v28  ;;  %v19605_v1 = vld [vmem:[%s20173_s9 + $0x230] ss:$0 sps:$4 sm:$0x33]  }
 0x189   : > { %17268 = vmatmul.mubr.msk.bf16.gmra.mrb[40].mxu1 %vm1213_vm3, %v20835_v24 }
 0x18a   : > { %17271 = vmatprep.mubr.msk.bf16.mxu1 %vm1213_vm3, %v20840_v25 }
 0x18c   : > { %17888 = vmatmul.mubr.msk.bf16.gmra.mrb[108].mxu0 %vm1213_vm3, %v6987_v26  ;;  %v19602_v26 = vld [vmem:[%s20173_s9 + $0x218] sm:$0xff]  }
 0x18d   : > { %17891 = vmatprep.mubr.msk.bf16.mxu0 %vm1213_vm3, %v6989_v29  ;;  %v7004_v29 = vrot.slane %v19602_v26, 2 }
 0x18f   : > { %v7005_v45 = vsel %vm6874_vm5, %v7002_v28, %v7004_v29  ;;  %v8415_v28 = vrot.slane %v20932_v19, 2 }
 0x191   : > { %17272 = vmatmul.mubr.msk.bf16.gmra.mrb[44].mxu1 %vm1213_vm3, %v20851_v62 }
 0x192   : > { %17275 = vmatprep.mubr.msk.bf16.mxu1 %vm1213_vm3, %v20856_v37 }
 0x194   : > { %17892 = vmatmul.mubr.msk.bf16.gmra.mrb[112].mxu0 %vm1213_vm3, %v6991_v42  ;;  %v19603_v42 = vld [vmem:[%s20173_s9 + $0x220] sm:$0xff]  }
 0x195   : > { %17895 = vmatprep.mubr.msk.bf16.mxu0 %vm1213_vm3, %v6993_v17  ;;  %v19604_v17 = vld [vmem:[%s20173_s9 + $0x228] sm:$0xff]   ;;  %v7006_v46 = vrot.slane %v19603_v42, 2 }
 0x196   : > { %v7008_v49 = vrot.slane %v19604_v17, 2 }
 0x197   : > { %v7007_v0 = vsel %vm6874_vm5, %v7004_v29, %v7006_v46  ;;  %v20939_v29 = vld [vmem:[%s20173_s9 + $0x108] sm:$0xff]  }
 0x198   : > { %v7009_v8 = vsel %vm6874_vm5, %v7006_v46, %v7008_v49  ;;  %v20954_v46 = vld [vmem:[%s20173_s9 + $0x38] sm:$0xff]  }
 0x199   : > { %17276 = vmatmul.mubr.msk.bf16.gmra.mrb[48].mxu1 %vm1213_vm3, %v20867_v52 }
 0x19a   : > { %17279 = vmatprep.mubr.msk.bf16.mxu1 %vm1213_vm3, %v20872_v56 }
 0x19c   : > { %17896 = vmatmul.mubr.msk.bf16.gmra.mrb[116].mxu0 %vm1213_vm3, %v6995_v60  ;;  %v7932_v60 = vld [vmem:[%s20173_s9 + $0x20] sm:$0xc] }
 0x19d   : > { %17899 = vmatprep.mubr.msk.bf16.mxu0 %vm1213_vm3, %v6997_v63  ;;  %v20922_v63 = vld [vmem:[%s20173_s9 + $0x100] sm:$0xff]  }
 0x1a1   : > { %17280 = vmatmul.mubr.msk.bf16.gmra.mrb[52].mxu1 %vm1213_vm3, %v20883_v12 }
 0x1a2   : > { %17283 = vmatprep.mubr.msk.bf16.mxu1 %vm1213_vm3, %v20888_v14 }
 0x1a4   : > { %17900 = vmatmul.mubr.msk.bf16.gmra.mrb[120].mxu0 %vm1213_vm3, %v6999_v15  ;;  %v20929_v15 = vcombine.low %v7932_v60, %v7933_v61  ;;  %v8419_v61 = vrot.slane %v20954_v46, 2 }
 0x1a5   : > { %17903 = vmatprep.mubr.msk.bf16.mxu0 %vm1213_vm3, %v7001_v22  ;;  %v7010_v22 = vrot.slane %v19605_v1, 2 }
 0x1a6   : > { %v8414_v26 = vrot.slane %v20929_v15, 2 }
 0x1a7   : > { %v7011_v42 = vsel %vm6874_vm5, %v7008_v49, %v7010_v22  ;;  %v20966_v49 = vld [vmem:[%s20173_s9 + $0x120] sm:$0xff]  }
 0x1a8   : > { %v8416_v17 = vsel %vm6874_vm5, %v8414_v26, %v8415_v28  ;;  %25504 = vst [vmem:[#allocation10_spill] sm:$0xff] %v20966_v49  ;;  %v20976_v26 = vld [vmem:[%s20173_s9 + $0x48] sm:$0xff]  }
 0x1a9   : > { %17284 = vmatmul.mubr.msk.bf16.gmra.mrb[56].mxu1 %vm1213_vm3, %v20899_v33  ;;  %25506 = vst [vmem:[#allocation12_spill] sm:$0xff] %v20976_v26 }
 0x1aa   : > { %17287 = vmatprep.mubr.msk.bf16.mxu1 %vm1213_vm3, %v20904_v35 }
 0x1ac   : > { %17904 = vmatmul.mubr.msk.bf16.gmra.mrb[124].mxu0 %vm1213_vm3, %v7003_v36  ;;  %v20944_v36 = vld [vmem:[%s20173_s9 + $0x110] sm:$0xff]  }
 0x1ad   : > { %17907 = vmatprep.mubr.msk.bf16.mxu0 %vm1213_vm3, %v7005_v45  ;;  %v20950_v45 = vld [vmem:[%s20173_s9 + $0x30] sm:$0xff]  }
 0x1ae   : > { %v8417_v60 = vrot.slane %v20950_v45, 2 }
 0x1b0   : > { %v8418_v1 = vsel %vm6874_vm5, %v8415_v28, %v8417_v60  ;;  %v8420_v22 = vsel %vm6874_vm5, %v8417_v60, %v8419_v61  ;;  %v8423_v60 = vrot.slane %v20976_v26, 2 }
 0x1b1   : > { %17288 = vmatmul.mubr.msk.bf16.gmra.mrb[60].mxu1 %vm1213_vm3, %v20915_v51 }
 0x1b2   : > { %17291 = vmatprep.mubr.msk.bf16.mxu1 %vm1213_vm3, %v20922_v63 }
 0x1b4   : > { %17908 = vmatmul.mubr.msk.bf16.gmra.mrb[128].mxu0 %vm1213_vm3, %v7007_v0  ;;  %v20961_v0 = vld [vmem:[%s20173_s9 + $0x118] sm:$0xff]  }
 0x1b5   : > { %17911 = vmatprep.mubr.msk.bf16.mxu0 %vm1213_vm3, %v7009_v8  ;;  %v20972_v8 = vld [vmem:[%s20173_s9 + $0x40] sm:$0xff]  }
 0x1b6   : > { %25505 = vst [vmem:[#allocation11_spill] sm:$0xff] %v20972_v8  ;;  %v8421_v28 = vrot.slane %v20972_v8, 2  ;;  %v8427_v8 = vrot.slane %v21006_v23, 2 }
 0x1b9   : > { %17292 = vmatmul.mubr.msk.bf16.gmra.mrb[64].mxu1 %vm1213_vm3, %v20939_v29 }
 0x1ba   : > { %17295 = vmatprep.mubr.msk.bf16.mxu1 %vm1213_vm3, %v20944_v36 }
 0x1bc   : > { %17912 = vmatmul.mubr.msk.bf16.gmra.mrb[132].mxu0 %vm1213_vm3, %v7011_v42  ;;  %v15450_v42 = vld [vmem:[%s25425_s1 + $0x6] sm:$0x3] }
 0x1bd   : > { %17917 = vmatprep.mubr.msk.bf16.mxu0 %vm1213_vm3, %v8416_v17  ;;  %v20986_v17 = vand.u32 %v15450_v42, %v20149_v4  ;;  %v8424_v42 = vsel %vm6874_vm5, %v8421_v28, %v8423_v60 }
 0x1bf   : > { %17501 = vmatprep.subr.bf16.mxu1 %v20986_v17 }
 0x1c1   : > { %17296 = vmatmul.mubr.msk.bf16.gmra.mrb[68].mxu1 %vm1213_vm3, %v20961_v0 }
 0x1c2   : > { %17299 = vmatprep.mubr.msk.bf16.mxu1 %vm1213_vm3, %v20966_v49  ;;  %v19629_v49 = vld [vmem:[%s20173_s9 + $0xd8] sm:$0xff]  }
 0x1c4   : > { %17918 = vmatmul.mubr.msk.bf16.vlgmr.msra.gmra.mrb[0].mxu0 %vm1213_vm3, %v8418_v1  ;;  %v8422_v1 = vsel %vm6874_vm5, %v8419_v61, %v8421_v28  ;;  %v21018_v61 = vld [vmem:[%s20173_s9 + $0x140] sm:$0xff]  }
 0x1c5   : > { %18054 = vmatpush3.bf16.msra.mxu0 %v20687_v39  ;;  %17921 = vmatprep.mubr.msk.bf16.mxu0 %vm1213_vm3, %v8420_v22  ;;  %v20996_v39 = vld [vmem:[%s20173_s9 + $0x130] sm:$0xff]   ;;  %25512 = vst [vmem:[#allocation18_spill] sm:$0xff] %v21018_v61 }
 0x1c6   : > { %25508 = vst [vmem:[#allocation14_spill] sm:$0xff] %v20996_v39  ;;  %v21002_v22 = vld [vmem:[%s20173_s9 + $0x50] sm:$0xff]  }
 0x1c7   : > { %25509 = vst [vmem:[#allocation15_spill] sm:$0xff] %v21002_v22  ;;  %v8425_v26 = vrot.slane %v21002_v22, 2  ;;  %v21028_v22 = vld [vmem:[%s20173_s9 + $0x68] sm:$0xff]  }
 0x1c8   : > { %25514 = vst [vmem:[#allocation20_spill] sm:$0xff] %v21028_v22 }
 0x1c9   : > { %17300 = vmatmul.mubr.msk.bf16.gmra.mrb[72].mxu1 %vm1213_vm3, %v20990_v59  ;;  %v8426_v28 = vsel %vm6874_vm5, %v8423_v60, %v8425_v26  ;;  %v21040_v60 = vld [vmem:[%s20173_s9 + $0x150] sm:$0xff]   ;;  %v21161_v59 = vld [vmem:[%s20173_s9 + $0x1a8] sm:$0xff]  }
 0x1ca   : > { %17303 = vmatprep.mubr.msk.bf16.mxu1 %vm1213_vm3, %v20996_v39  ;;  %v21013_v39 = vld [vmem:[%s20173_s9 + $0x138] sm:$0xff]   ;;  %25516 = vst [vmem:[#allocation22_spill] sm:$0xff] %v21040_v60  ;;  %25537 = vst [vmem:[#allocation43_spill] sm:$0xff] %v21161_v59 }
 0x1cb   : > { %25511 = vst [vmem:[#allocation17_spill] sm:$0xff] %v21013_v39 }
 0x1cc   : > { %17922 = vmatmul.mubr.msk.bf16.gmra.mrb[4].mxu0 %vm1213_vm3, %v8422_v1  ;;  %v21024_v1 = vld [vmem:[%s20173_s9 + $0x60] sm:$0xff]  }
 0x1cd   : > { %17925 = vmatprep.mubr.msk.bf16.mxu0 %vm1213_vm3, %v8424_v42  ;;  %25513 = vst [vmem:[#allocation19_spill] sm:$0xff] %v21024_v1  ;;  %v8428_v42 = vsel %vm6874_vm5, %v8425_v26, %v8427_v8  ;;  %v8429_v23 = vrot.slane %v21024_v1, 2  ;;  %v21050_v1 = vld [vmem:[%s20173_s9 + $0x78] sm:$0xff]  }
 0x1ce   : > { %25518 = vst [vmem:[#allocation24_spill] sm:$0xff] %v21050_v1 }
 0x1cf   : > { %v8430_v26 = vsel %vm6874_vm5, %v8427_v8, %v8429_v23  ;;  %v21062_v8 = vld [vmem:[%s20173_s9 + $0x160] sm:$0xff]  }
 0x1d0   : > { %25520 = vst [vmem:[#allocation26_spill] sm:$0xff] %v21062_v8 }
 0x1d1   : > { %17304 = vmatmul.mubr.msk.bf16.gmra.mrb[76].mxu1 %vm1213_vm3, %v21013_v39  ;;  %v8431_v39 = vrot.slane %v21028_v22, 2 }
 0x1d2   : > { %17307 = vmatprep.mubr.msk.bf16.mxu1 %vm1213_vm3, %v21018_v61  ;;  %v21035_v61 = vld [vmem:[%s20173_s9 + $0x148] sm:$0xff]  }
 0x1d3   : > { %25515 = vst [vmem:[#allocation21_spill] sm:$0xff] %v21035_v61 }
 0x1d4   : > { %17926 = vmatmul.mubr.msk.bf16.gmra.mrb[8].mxu0 %vm1213_vm3, %v8426_v28  ;;  %v21046_v28 = vld [vmem:[%s20173_s9 + $0x70] sm:$0xff]  }
 0x1d5   : > { %17929 = vmatprep.mubr.msk.bf16.mxu0 %vm1213_vm3, %v8428_v42  ;;  %25517 = vst [vmem:[#allocation23_spill] sm:$0xff] %v21046_v28  ;;  %v8432_v42 = vsel %vm6874_vm5, %v8429_v23, %v8431_v39  ;;  %v8433_v22 = vrot.slane %v21046_v28, 2  ;;  %v21072_v28 = vld [vmem:[%s20173_s9 + $0x88] sm:$0xff]  }
 0x1d6   : > { %25522 = vst [vmem:[#allocation28_spill] sm:$0xff] %v21072_v28 }
 0x1d7   : > { %v8434_v23 = vsel %vm6874_vm5, %v8431_v39, %v8433_v22  ;;  %v21084_v39 = vld [vmem:[%s20173_s9 + $0x170] sm:$0xff]  }
 0x1d8   : > { %25524 = vst [vmem:[#allocation30_spill] sm:$0xff] %v21084_v39 }
 0x1d9   : > { %17308 = vmatmul.mubr.msk.bf16.gmra.mrb[80].mxu1 %vm1213_vm3, %v21035_v61  ;;  %v8435_v61 = vrot.slane %v21050_v1, 2 }
 0x1da   : > { %17311 = vmatprep.mubr.msk.bf16.mxu1 %vm1213_vm3, %v21040_v60  ;;  %v21057_v60 = vld [vmem:[%s20173_s9 + $0x158] sm:$0xff]  }
 0x1db   : > { %25519 = vst [vmem:[#allocation25_spill] sm:$0xff] %v21057_v60 }
 0x1dc   : > { %17930 = vmatmul.mubr.msk.bf16.gmra.mrb[12].mxu0 %vm1213_vm3, %v8430_v26  ;;  %v21068_v26 = vld [vmem:[%s20173_s9 + $0x80] sm:$0xff]  }
 0x1dd   : > { %17933 = vmatprep.mubr.msk.bf16.mxu0 %vm1213_vm3, %v8432_v42  ;;  %25521 = vst [vmem:[#allocation27_spill] sm:$0xff] %v21068_v26  ;;  %v8436_v42 = vsel %vm6874_vm5, %v8433_v22, %v8435_v61  ;;  %v8437_v1 = vrot.slane %v21068_v26, 2  ;;  %v21094_v26 = vld [vmem:[%s20173_s9 + $0x98] sm:$0xff]  }
 0x1de   : > { %25526 = vst [vmem:[#allocation32_spill] sm:$0xff] %v21094_v26 }
 0x1df   : > { %v8438_v22 = vsel %vm6874_vm5, %v8435_v61, %v8437_v1  ;;  %v21106_v61 = vld [vmem:[%s20173_s9 + $0x180] sm:$0xff]  }
 0x1e0   : > { %25528 = vst [vmem:[#allocation34_spill] sm:$0xff] %v21106_v61 }
 0x1e1   : > { %17312 = vmatmul.mubr.msk.bf16.gmra.mrb[84].mxu1 %vm1213_vm3, %v21057_v60  ;;  %v8439_v60 = vrot.slane %v21072_v28, 2 }
 0x1e2   : > { %17315 = vmatprep.mubr.msk.bf16.mxu1 %vm1213_vm3, %v21062_v8  ;;  %v21079_v8 = vld [vmem:[%s20173_s9 + $0x168] sm:$0xff]  }
 0x1e3   : > { %25523 = vst [vmem:[#allocation29_spill] sm:$0xff] %v21079_v8 }
 0x1e4   : > { %17934 = vmatmul.mubr.msk.bf16.gmra.mrb[16].mxu0 %vm1213_vm3, %v8434_v23  ;;  %v21090_v23 = vld [vmem:[%s20173_s9 + $0x90] sm:$0xff]  }
 0x1e5   : > { %17937 = vmatprep.mubr.msk.bf16.mxu0 %vm1213_vm3, %v8436_v42  ;;  %25525 = vst [vmem:[#allocation31_spill] sm:$0xff] %v21090_v23  ;;  %v8440_v42 = vsel %vm6874_vm5, %v8437_v1, %v8439_v60  ;;  %v8441_v28 = vrot.slane %v21090_v23, 2  ;;  %v21116_v23 = vld [vmem:[%s20173_s9 + $0xa8] sm:$0xff]  }
 0x1e6   : > { %25530 = vst [vmem:[#allocation36_spill] sm:$0xff] %v21116_v23 }
 0x1e7   : > { %v8442_v1 = vsel %vm6874_vm5, %v8439_v60, %v8441_v28  ;;  %v21128_v60 = vld [vmem:[%s20173_s9 + $0x190] sm:$0xff]  }
 0x1e8   : > { %25532 = vst [vmem:[#allocation38_spill] sm:$0xff] %v21128_v60 }
 0x1e9   : > { %17316 = vmatmul.mubr.msk.bf16.gmra.mrb[88].mxu1 %vm1213_vm3, %v21079_v8  ;;  %v8443_v8 = vrot.slane %v21094_v26, 2 }
 0x1ea   : > { %17319 = vmatprep.mubr.msk.bf16.mxu1 %vm1213_vm3, %v21084_v39  ;;  %v21101_v39 = vld [vmem:[%s20173_s9 + $0x178] sm:$0xff]  }
 0x1eb   : > { %25527 = vst [vmem:[#allocation33_spill] sm:$0xff] %v21101_v39 }
 0x1ec   : > { %17938 = vmatmul.mubr.msk.bf16.gmra.mrb[20].mxu0 %vm1213_vm3, %v8438_v22  ;;  %v21112_v22 = vld [vmem:[%s20173_s9 + $0xa0] sm:$0xff]  }
 0x1ed   : > { %17941 = vmatprep.mubr.msk.bf16.mxu0 %vm1213_vm3, %v8440_v42  ;;  %25529 = vst [vmem:[#allocation35_spill] sm:$0xff] %v21112_v22  ;;  %v8444_v42 = vsel %vm6874_vm5, %v8441_v28, %v8443_v8  ;;  %v8445_v26 = vrot.slane %v21112_v22, 2  ;;  %v21138_v22 = vld [vmem:[%s20173_s9 + $0xb8] sm:$0xff]  }
 0x1ee   : > { %25534 = vst [vmem:[#allocation40_spill] sm:$0xff] %v21138_v22 }
 0x1ef   : > { %v8446_v28 = vsel %vm6874_vm5, %v8443_v8, %v8445_v26  ;;  %v21150_v8 = vld [vmem:[%s20173_s9 + $0x1a0] sm:$0xff]  }
 0x1f0   : > { %25536 = vst [vmem:[#allocation42_spill] sm:$0xff] %v21150_v8 }
 0x1f1   : > { %17320 = vmatmul.mubr.msk.bf16.gmra.mrb[92].mxu1 %vm1213_vm3, %v21101_v39  ;;  %v8447_v39 = vrot.slane %v21116_v23, 2 }
 0x1f2   : > { %17323 = vmatprep.mubr.msk.bf16.mxu1 %vm1213_vm3, %v21106_v61  ;;  %v21123_v61 = vld [vmem:[%s20173_s9 + $0x188] sm:$0xff]  }
 0x1f3   : > { %25531 = vst [vmem:[#allocation37_spill] sm:$0xff] %v21123_v61 }
 0x1f4   : > { %17942 = vmatmul.mubr.msk.bf16.gmra.mrb[24].mxu0 %vm1213_vm3, %v8442_v1  ;;  %v21134_v1 = vld [vmem:[%s20173_s9 + $0xb0] sm:$0xff]  }
 0x1f5   : > { %17945 = vmatprep.mubr.msk.bf16.mxu0 %vm1213_vm3, %v8444_v42  ;;  %25533 = vst [vmem:[#allocation39_spill] sm:$0xff] %v21134_v1  ;;  %v8448_v42 = vsel %vm6874_vm5, %v8445_v26, %v8447_v39  ;;  %v8449_v23 = vrot.slane %v21134_v1, 2  ;;  %v19627_v1 = vld [vmem:[%s20173_s9 + $0xc8] sm:$0xff]  }
 0x1f7   : > { %v8450_v26 = vsel %vm6874_vm5, %v8447_v39, %v8449_v23 }
 0x1f9   : > { %17324 = vmatmul.mubr.msk.bf16.gmra.mrb[96].mxu1 %vm1213_vm3, %v21123_v61  ;;  %v8451_v61 = vrot.slane %v21138_v22, 2 }
 0x1fa   : > { %17327 = vmatprep.mubr.msk.bf16.mxu1 %vm1213_vm3, %v21128_v60  ;;  %v21145_v60 = vld [vmem:[%s20173_s9 + $0x198] sm:$0xff]  }
 0x1fb   : > { %25535 = vst [vmem:[#allocation41_spill] sm:$0xff] %v21145_v60 }
 0x1fc   : > { %17946 = vmatmul.mubr.msk.bf16.gmra.mrb[28].mxu0 %vm1213_vm3, %v8446_v28  ;;  %v19626_v28 = vld [vmem:[%s20173_s9 + $0xc0] sm:$0xff]  }
 0x1fd   : > { %17949 = vmatprep.mubr.msk.bf16.mxu0 %vm1213_vm3, %v8448_v42  ;;  %v8452_v42 = vsel %vm6874_vm5, %v8449_v23, %v8451_v61  ;;  %v8453_v22 = vrot.slane %v19626_v28, 2  ;;  %v19628_v23 = vld [vmem:[%s20173_s9 + $0xd0] sm:$0xff]   ;;  %v8459_v28 = vrot.slane %v19629_v49, 2 }
 0x1ff   : > { %v8454_v39 = vsel %vm6874_vm5, %v8451_v61, %v8453_v22 }
 0x201   : > { %17328 = vmatmul.mubr.msk.bf16.gmra.mrb[100].mxu1 %vm1213_vm3, %v21145_v60  ;;  %v8455_v60 = vrot.slane %v19627_v1, 2  ;;  %v8457_v1 = vrot.slane %v19628_v23, 2 }
 0x202   : > { %17331 = vmatprep.mubr.msk.bf16.mxu1 %vm1213_vm3, %v21150_v8  ;;  %v19767_v8 = vld [vmem:[%s20173_s9 + $0x1b0] sm:$0xff]  }
 0x203   : > { %v8458_v61 = vsel %vm6874_vm5, %v8455_v60, %v8457_v1 }
 0x204   : > { %17950 = vmatmul.mubr.msk.bf16.gmra.mrb[32].mxu0 %vm1213_vm3, %v8450_v26  ;;  %v8456_v26 = vsel %vm6874_vm5, %v8453_v22, %v8455_v60  ;;  %v19630_v22 = vld [vmem:[%s20173_s9 + $0xe0] sm:$0xff]  }
 0x205   : > { %17953 = vmatprep.mubr.msk.bf16.mxu0 %vm1213_vm3, %v8452_v42  ;;  %v21174_v42 = vld [vmem:[%s20173_s9 + $0x1b8] sm:$0xff]   ;;  %v8461_v49 = vrot.slane %v19630_v22, 2 }
 0x206   : > { %25538 = vst [vmem:[#allocation44_spill] sm:$0xff] %v21174_v42 }
 0x207   : > { %v8462_v60 = vsel %vm6874_vm5, %v8459_v28, %v8461_v49 }
 0x209   : > { %17332 = vmatmul.mubr.msk.bf16.gmra.mrb[104].mxu1 %vm1213_vm3, %v21161_v59  ;;  %v19631_v59 = vld [vmem:[%s20173_s9 + $0xe8] sm:$0xff]  }
 0x20a   : > { %17335 = vmatprep.mubr.msk.bf16.mxu1 %vm1213_vm3, %v19767_v8  ;;  %v19769_v8 = vld [vmem:[%s20173_s9 + $0x1c0] sm:$0xff]   ;;  %v8463_v23 = vrot.slane %v19631_v59, 2 }
 0x20c   : > { %17954 = vmatmul.mubr.msk.bf16.gmra.mrb[36].mxu0 %vm1213_vm3, %v8454_v39  ;;  %v8460_v39 = vsel %vm6874_vm5, %v8457_v1, %v8459_v28  ;;  %v8464_v1 = vsel %vm6874_vm5, %v8461_v49, %v8463_v23  ;;  %v19634_v28 = vld [vmem:[%s20173_s9 + $0x100] sm:$0xff]  }
 0x20d   : > { %17957 = vmatprep.mubr.msk.bf16.mxu0 %vm1213_vm3, %v8456_v26  ;;  %v19770_v26 = vld [vmem:[%s20173_s9 + $0x1c8] sm:$0xff]   ;;  %v8469_v49 = vrot.slane %v19634_v28, 2  ;;  %v19771_v28 = vld [vmem:[%s20173_s9 + $0x4] sm:$0xf] }
 0x211   : > { %17336 = vmatmul.mubr.msk.bf16.gmra.mrb[108].mxu1 %vm1213_vm3, %v21174_v42  ;;  %v19633_v42 = vld [vmem:[%s20173_s9 + $0xf8] sm:$0xff]  }
 0x212   : > { %17339 = vmatprep.mubr.msk.bf16.mxu1 %vm1213_vm3, %v19769_v8  ;;  %v19632_v8 = vld [vmem:[%s20173_s9 + $0xf0] sm:$0xff]   ;;  %v8467_v59 = vrot.slane %v19633_v42, 2 }
 0x214   : > { %17958 = vmatmul.mubr.msk.bf16.gmra.mrb[40].mxu0 %vm1213_vm3, %v8458_v61  ;;  %v8465_v61 = vrot.slane %v19632_v8, 2 }
 0x215   : > { %17961 = vmatprep.mubr.msk.bf16.mxu0 %vm1213_vm3, %v8460_v39  ;;  %v19635_v39 = vld [vmem:[%s20173_s9 + $0x108] sm:$0xff]  }
 0x216   : > { %v8468_v22 = vsel %vm6874_vm5, %v8465_v61, %v8467_v59  ;;  %v8471_v42 = vrot.slane %v19635_v39, 2  ;;  %v19640_v39 = vld [vmem:[%s20173_s9 + $0x130] sm:$0xff]  }
 0x219   : > { %17340 = vmatmul.mubr.msk.bf16.gmra.mrb[112].mxu1 %vm1213_vm3, %v19770_v26  ;;  %v19637_v26 = vld [vmem:[%s20173_s9 + $0x118] sm:$0xff]  }
 0x21a   : > { %17343 = vmatprep.mubr.msk.bf16.mxu1 %vm1213_vm3, %v20533_v3  ;;  %v8466_v3 = vsel %vm6874_vm5, %v8463_v23, %v8465_v61  ;;  %v8472_v23 = vsel %vm6874_vm5, %v8469_v49, %v8471_v42  ;;  %v8475_v8 = vrot.slane %v19637_v26, 2  ;;  %v19639_v61 = vld [vmem:[%s20173_s9 + $0x128] sm:$0xff]  }
 0x21c   : > { %17962 = vmatmul.mubr.msk.bf16.gmra.mrb[44].mxu0 %vm1213_vm3, %v8462_v60 }
 0x21d   : > { %17965 = vmatprep.mubr.msk.bf16.mxu0 %vm1213_vm3, %v8464_v1 }
 0x221   : > { %17344 = vmatmul.mubr.msk.bf16.gmra.mrb[116].mxu1 %vm1213_vm3, %v20542_v16  ;;  %v8470_v16 = vsel %vm6874_vm5, %v8467_v59, %v8469_v49  ;;  %v2718_v59 = vld [vmem:[%s20173_s9] sm:$0xe] }
 0x222   : > { %17347 = vmatprep.mubr.msk.bf16.mxu1 %vm1213_vm3, %v20550_v27  ;;  %v19636_v27 = vld [vmem:[%s20173_s9 + $0x110] sm:$0xff]  }
 0x223   : > { %v8473_v60 = vrot.slane %v19636_v27, 2  ;;  %v19642_v27 = vld [vmem:[%s20173_s9 + $0x138] sm:$0xff]  }
 0x224   : > { %17966 = vmatmul.mubr.msk.bf16.gmra.mrb[48].mxu0 %vm1213_vm3, %v8466_v3 }
 0x225   : > { %17969 = vmatprep.mubr.msk.bf16.mxu0 %vm1213_vm3, %v8468_v22  ;;  %v8476_v1 = vsel %vm6874_vm5, %v8473_v60, %v8475_v8  ;;  %v15381_v22 = vcombine.low %v2718_v59, %v19771_v28  ;;  %v2734_v28 = vrot.slane %v20707_v47, 1  ;;  %v15936_v47 = vld [vmem:[%s25425_s1 + $0x10] sm:$0x3] }
 0x227   : > { %v2725_v49 = vrot.slane %v15381_v22, 1 }
 0x229   : > { %17348 = vmatmul.mubr.msk.bf16.gmra.mrb[120].mxu1 %vm1213_vm3, %v20561_v34  ;;  %v8474_v34 = vsel %vm6874_vm5, %v8471_v42, %v8473_v60  ;;  %v2726_v42 = vrot.slane %v20667_v30, 1  ;;  %v2728_v30 = vrot.slane %v20673_v13, 1  ;;  %v19643_v60 = vld [vmem:[%s20173_s9 + $0x140] sm:$0xff]  }
 0x22a   : > { %17351 = vmatprep.mubr.msk.bf16.mxu1 %vm1213_vm3, %v20578_v50  ;;  %v19638_v50 = vld [vmem:[%s20173_s9 + $0x120] sm:$0xff]  }
 0x22b   : > { %v8477_v3 = vrot.slane %v19638_v50, 2  ;;  %v19644_v50 = vld [vmem:[%s20173_s9 + $0x148] sm:$0xff]  }
 0x22c   : > { %17970 = vmatmul.mubr.msk.bf16.gmra.mrb[52].mxu0 %vm1213_vm3, %v8470_v16  ;;  %v8487_v13 = vrot.slane %v19644_v50, 2 }
 0x22d   : > { %17973 = vmatprep.mubr.msk.bf16.mxu0 %vm1213_vm3, %v8472_v23  ;;  %v2727_v23 = vsel %vm2724_vm6, %v2725_v49, %v2726_v42  ;;  %v21271_v49 = vand.u32 %v15936_v47, %v20149_v4  ;;  %v19653_v47 = vld [vmem:[%s20173_s9 + $0x190] sm:$0xff]  }
 0x22f   : > { %18191 = vmatprep.subr.bf16.mxu0 %v21271_v49 }
 0x231   : > { %17352 = vmatmul.mubr.msk.bf16.gmra.mrb[124].mxu1 %vm1213_vm3, %v20583_v55  ;;  %v8479_v55 = vrot.slane %v19639_v61, 2 }
 0x232   : > { %17355 = vmatprep.mubr.msk.bf16.mxu1 %vm1213_vm3, %v20598_v11  ;;  %v8478_v11 = vsel %vm6874_vm5, %v8475_v8, %v8477_v3  ;;  %v2730_v8 = vrot.slane %v20690_v40, 1  ;;  %v2732_v40 = vrot.slane %v20695_v41, 1 }
 0x233   : > { %v8480_v16 = vsel %vm6874_vm5, %v8477_v3, %v8479_v55  ;;  %v19645_v3 = vld [vmem:[%s20173_s9 + $0x150] sm:$0xff]  }
 0x234   : > { %17974 = vmatmul.mubr.msk.bf16.gmra.mrb[56].mxu0 %vm1213_vm3, %v8474_v34  ;;  %v2731_v61 = vsel %vm2724_vm6, %v2728_v30, %v2730_v8  ;;  %v2735_v41 = vsel %vm2724_vm6, %v2732_v40, %v2734_v28 }
 0x235   : > { %17977 = vmatprep.mubr.msk.bf16.mxu0 %vm1213_vm3, %v8476_v1  ;;  %v2729_v1 = vsel %vm2724_vm6, %v2726_v42, %v2728_v30  ;;  %v2736_v42 = vrot.slane %v20712_v48, 1 }
 0x237   : > { %v2737_v4 = vsel %vm2724_vm6, %v2734_v28, %v2736_v42 }
 0x239   : > { %17356 = vmatmul.mubr.msk.bf16.gmra.mrb[128].mxu1 %vm1213_vm3, %v20603_v18  ;;  %v8481_v18 = vrot.slane %v19640_v39, 2 }
 0x23a   : > { %17359 = vmatprep.mubr.msk.bf16.mxu1 %vm1213_vm3, %v20618_v10  ;;  %v8483_v10 = vrot.slane %v19642_v27, 2  ;;  %v19647_v27 = vld [vmem:[%s20173_s9 + $0x160] sm:$0xff]  }
 0x23b   : > { %v8482_v26 = vsel %vm6874_vm5, %v8479_v55, %v8481_v18  ;;  %v19646_v55 = vld [vmem:[%s20173_s9 + $0x158] sm:$0xff]   ;;  %v8493_v30 = vrot.slane %v19647_v27, 2 }
 0x23c   : > { %17978 = vmatmul.mubr.msk.bf16.gmra.mrb[60].mxu0 %vm1213_vm3, %v8478_v11  ;;  %v8484_v34 = vsel %vm6874_vm5, %v8481_v18, %v8483_v10  ;;  %v8489_v11 = vrot.slane %v19645_v3, 2  ;;  %v8491_v39 = vrot.slane %v19646_v55, 2  ;;  %v2738_v18 = vrot.slane %v20723_v57, 1 }
 0x23d   : > { %17981 = vmatprep.mubr.msk.bf16.mxu0 %vm1213_vm3, %v8480_v16  ;;  %v2740_v57 = vrot.slane %v20728_v58, 1  ;;  %v2746_v3 = vrot.slane %v20755_v20, 1  ;;  %v2748_v20 = vrot.slane %v20760_v21, 1 }
 0x23e   : > { %v8490_v16 = vsel %vm6874_vm5, %v8487_v13, %v8489_v11  ;;  %v2739_v48 = vsel %vm2724_vm6, %v2736_v42, %v2738_v18 }
 0x23f   : > { %v2749_v27 = vsel %vm2724_vm6, %v2746_v3, %v2748_v20 }
 0x241   : > { %17360 = vmatmul.mubr.msk.bf16.gmra.mrb[132].mxu1 %vm1213_vm3, %v20623_v38  ;;  %v8485_v38 = vrot.slane %v19643_v60, 2  ;;  %v8494_v60 = vsel %vm6874_vm5, %v8491_v39, %v8493_v30 }
 0x242   : > { %17365 = vmatprep.mubr.msk.bf16.mxu1 %vm1213_vm3, %v2727_v23  ;;  %v8492_v23 = vsel %vm6874_vm5, %v8489_v11, %v8491_v39  ;;  %v2750_v39 = vrot.slane %v20771_v31, 1  ;;  %v2752_v31 = vrot.slane %v20776_v32, 1 }
 0x243   : > { %v8486_v59 = vsel %vm6874_vm5, %v8483_v10, %v8485_v38  ;;  %v8488_v22 = vsel %vm6874_vm5, %v8485_v38, %v8487_v13  ;;  %v19648_v10 = vld [vmem:[%s20173_s9 + $0x168] sm:$0xff]   ;;  %v2741_v38 = vsel %vm2724_vm6, %v2738_v18, %v2740_v57  ;;  %v8505_v18 = vrot.slane %v19653_v47, 2 }
 0x244   : > { %17982 = vmatmul.mubr.msk.bf16.gmra.mrb[64].mxu0 %vm1213_vm3, %v8482_v26  ;;  %v8495_v26 = vrot.slane %v19648_v10, 2 }
 0x245   : > { %17985 = vmatprep.mubr.msk.bf16.mxu0 %vm1213_vm3, %v8484_v34  ;;  %v2742_v34 = vrot.slane %v20739_v5, 1  ;;  %v2744_v5 = vrot.slane %v20744_v6, 1 }
 0x246   : > { %v8496_v50 = vsel %vm6874_vm5, %v8493_v30, %v8495_v26  ;;  %v2754_v30 = vrot.slane %v20787_v43, 1  ;;  %v2756_v43 = vrot.slane %v20792_v44, 1 }
 0x247   : > { %v2743_v13 = vsel %vm2724_vm6, %v2740_v57, %v2742_v34  ;;  %v2745_v55 = vsel %vm2724_vm6, %v2742_v34, %v2744_v5  ;;  %v2747_v11 = vsel %vm2724_vm6, %v2744_v5, %v2746_v3  ;;  %v2753_v57 = vsel %vm2724_vm6, %v2750_v39, %v2752_v31 }
 0x248   : > { %v2762_v3 = vrot.slane %v20819_v2, 1  ;;  %v2764_v2 = vrot.slane %v20824_v9, 1 }
 0x249   : > { %17366 = vmatmul.mubr.msk.bf16.vlgmr.msra.gmra.mrb[0].mxu1 %vm1213_vm3, %v2729_v1  ;;  %v19650_v1 = vld [vmem:[%s20173_s9 + $0x178] sm:$0xff]  }
 0x24a   : > { %17502 = vmatpush3.bf16.msra.mxu1 %v20986_v17  ;;  %17369 = vmatprep.mubr.msk.bf16.mxu1 %vm1213_vm3, %v2731_v61  ;;  %v2733_v17 = vsel %vm2724_vm6, %v2730_v8, %v2732_v40  ;;  %v19649_v8 = vld [vmem:[%s20173_s9 + $0x170] sm:$0xff]   ;;  %v8499_v58 = vrot.slane %v19650_v1, 2  ;;  %v2758_v1 = vrot.slane %v20803_v53, 1  ;;  %v2760_v53 = vrot.slane %v20808_v54, 1 }
 0x24b   : > { %18329 = vmatprep.subr.bf16.mxu1 %v20156_v7  ;;  %v8497_v61 = vrot.slane %v19649_v8, 2  ;;  %v2755_v8 = vsel %vm2724_vm6, %v2752_v31, %v2754_v30 }
 0x24c   : > { %17986 = vmatmul.mubr.msk.bf16.gmra.mrb[68].mxu0 %vm1213_vm3, %v8486_v59  ;;  %v19651_v59 = vld [vmem:[%s20173_s9 + $0x180] sm:$0xff]   ;;  %v2759_v5 = vsel %vm2724_vm6, %v2756_v43, %v2758_v1 }
 0x24d   : > { %17989 = vmatprep.mubr.msk.bf16.mxu0 %vm1213_vm3, %v8488_v22  ;;  %v8498_v40 = vsel %vm6874_vm5, %v8495_v26, %v8497_v61  ;;  %v8500_v28 = vsel %vm6874_vm5, %v8497_v61, %v8499_v58  ;;  %v19652_v22 = vld [vmem:[%s20173_s9 + $0x188] sm:$0xff]   ;;  %v19658_v61 = vld [vmem:[%s20173_s9 + $0x1b8] sm:$0xff]  }
 0x24e   : > { %v8503_v6 = vrot.slane %v19652_v22, 2  ;;  %v19656_v26 = vld [vmem:[%s20173_s9 + $0x1a8] sm:$0xff]   ;;  %v8515_v44 = vrot.slane %v19658_v61, 2  ;;  %v2778_v61 = vrot.slane %v20883_v12, 1  ;;  %v2780_v12 = vrot.slane %v20888_v14, 1 }
 0x24f   : > { %v8511_v32 = vrot.slane %v19656_v26, 2  ;;  %v19660_v22 = vld [vmem:[%s20173_s9 + $0x1c8] sm:$0xff]  }
 0x250   : > { %v8506_v10 = vsel %vm6874_vm5, %v8503_v6, %v8505_v18  ;;  %v8519_v54 = vrot.slane %v19660_v22, 2  ;;  %v19670_v22 = vld [vmem:[%s20173_s9 + $0x218] sm:$0xff]  }
 0x251   : > { %17370 = vmatmul.mubr.msk.bf16.gmra.mrb[4].mxu1 %vm1213_vm3, %v2733_v17  ;;  %v8501_v17 = vrot.slane %v19651_v59, 2  ;;  %v19659_v59 = vld [vmem:[%s20173_s9 + $0x1c0] sm:$0xff]   ;;  %v8539_v14 = vrot.slane %v19670_v22, 2 }
 0x252   : > { %17373 = vmatprep.mubr.msk.bf16.mxu1 %vm1213_vm3, %v2735_v41 }
 0x253   : > { %v8502_v41 = vsel %vm6874_vm5, %v8499_v58, %v8501_v17  ;;  %v8504_v42 = vsel %vm6874_vm5, %v8501_v17, %v8503_v6  ;;  %v8517_v17 = vrot.slane %v19659_v59, 2  ;;  %v19669_v59 = vld [vmem:[%s20173_s9 + $0x210] sm:$0xff]  }
 0x254   : > { %17990 = vmatmul.mubr.msk.bf16.gmra.mrb[72].mxu0 %vm1213_vm3, %v8490_v16  ;;  %v19654_v16 = vld [vmem:[%s20173_s9 + $0x198] sm:$0xff]  }
 0x255   : > { %17993 = vmatprep.mubr.msk.bf16.mxu0 %vm1213_vm3, %v8492_v23  ;;  %v2751_v23 = vsel %vm2724_vm6, %v2748_v20, %v2750_v39  ;;  %v8507_v21 = vrot.slane %v19654_v16, 2  ;;  %v8518_v6 = vsel %vm6874_vm5, %v8515_v44, %v8517_v17  ;;  %v19661_v20 = vld [vmem:[%s20173_s9 + $0x1d0] sm:$0xff]   ;;  %v8520_v47 = vsel %vm6874_vm5, %v8517_v17, %v8519_v54  ;;  %v19662_v39 = vld [vmem:[%s20173_s9 + $0x1d8] sm:$0xff]  }
 0x256   : > { %v8521_v16 = vrot.slane %v19661_v20, 2  ;;  %v8523_v9 = vrot.slane %v19662_v39, 2  ;;  %v8537_v17 = vrot.slane %v19669_v59, 2 }
 0x258   : > { %v8524_v31 = vsel %vm6874_vm5, %v8521_v16, %v8523_v9  ;;  %v8540_v20 = vsel %vm6874_vm5, %v8537_v17, %v8539_v14 }
 0x259   : > { %17374 = vmatmul.mubr.msk.bf16.gmra.mrb[8].mxu1 %vm1213_vm3, %v2737_v4  ;;  %v19655_v4 = vld [vmem:[%s20173_s9 + $0x1a0] sm:$0xff]  }
 0x25a   : > { %17377 = vmatprep.mubr.msk.bf16.mxu1 %vm1213_vm3, %v2739_v48  ;;  %v8508_v48 = vsel %vm6874_vm5, %v8505_v18, %v8507_v21  ;;  %v8522_v18 = vsel %vm6874_vm5, %v8519_v54, %v8521_v16  ;;  %v2788_v16 = vrot.slane %v20922_v63, 1  ;;  %v9479_v63 = vshrl.u32 %v20929_v15, 16 }
 0x25c   : > { %17994 = vmatmul.mubr.msk.bf16.gmra.mrb[76].mxu0 %vm1213_vm3, %v8494_v60  ;;  %v8509_v60 = vrot.slane %v19655_v4, 2 }
 0x25d   : > { %17997 = vmatprep.mubr.msk.bf16.mxu0 %vm1213_vm3, %v8496_v50  ;;  %v19657_v50 = vld [vmem:[%s20173_s9 + $0x1b0] sm:$0xff]  }
 0x25e   : > { %v8510_v34 = vsel %vm6874_vm5, %v8507_v21, %v8509_v60  ;;  %v8513_v58 = vrot.slane %v19657_v50, 2  ;;  %v2770_v21 = vrot.slane %v20851_v62, 1  ;;  %v2772_v62 = vrot.slane %v20856_v37, 1 }
 0x261   : > { %17378 = vmatmul.mubr.msk.bf16.gmra.mrb[12].mxu1 %vm1213_vm3, %v2741_v38  ;;  %v8512_v38 = vsel %vm6874_vm5, %v8509_v60, %v8511_v32  ;;  %v2774_v60 = vrot.slane %v20867_v52, 1  ;;  %v2776_v52 = vrot.slane %v20872_v56, 1 }
 0x262   : > { %17381 = vmatprep.mubr.msk.bf16.mxu1 %vm1213_vm3, %v2743_v13  ;;  %v2757_v13 = vsel %vm2724_vm6, %v2754_v30, %v2756_v43  ;;  %v2773_v43 = vsel %vm2724_vm6, %v2770_v21, %v2772_v62 }
 0x263   : > { %v2775_v50 = vsel %vm2724_vm6, %v2772_v62, %v2774_v60 }
 0x264   : > { %17998 = vmatmul.mubr.msk.bf16.gmra.mrb[80].mxu0 %vm1213_vm3, %v8498_v40  ;;  %v8514_v40 = vsel %vm6874_vm5, %v8511_v32, %v8513_v58  ;;  %v19666_v32 = vld [vmem:[%s20173_s9 + $0x1f8] sm:$0xff]  }
 0x265   : > { %18001 = vmatprep.mubr.msk.bf16.mxu0 %vm1213_vm3, %v8500_v28  ;;  %v8516_v28 = vsel %vm6874_vm5, %v8513_v58, %v8515_v44  ;;  %v8531_v37 = vrot.slane %v19666_v32, 2  ;;  %v19668_v58 = vld [vmem:[%s20173_s9 + $0x208] sm:$0xff]  }
 0x266   : > { %v8535_v56 = vrot.slane %v19668_v58, 2 }
 0x268   : > { %v8538_v54 = vsel %vm6874_vm5, %v8535_v56, %v8537_v17  ;;  %v25542_v17 = vld [vmem:[#allocation12_spill] sm:$0xff] }
 0x269   : > { %17382 = vmatmul.mubr.msk.bf16.gmra.mrb[16].mxu1 %vm1213_vm3, %v2745_v55  ;;  %v2761_v55 = vsel %vm2724_vm6, %v2758_v1, %v2760_v53 }
 0x26a   : > { %17385 = vmatprep.mubr.msk.bf16.mxu1 %vm1213_vm3, %v2747_v11  ;;  %v2763_v11 = vsel %vm2724_vm6, %v2760_v53, %v2762_v3  ;;  %v2779_v53 = vsel %vm2724_vm6, %v2776_v52, %v2778_v61 }
 0x26c   : > { %18002 = vmatmul.mubr.msk.bf16.gmra.mrb[84].mxu0 %vm1213_vm3, %v8502_v41  ;;  %v2766_v41 = vrot.slane %v20835_v24, 1  ;;  %v2768_v24 = vrot.slane %v20840_v25, 1 }
 0x26d   : > { %18005 = vmatprep.mubr.msk.bf16.mxu0 %vm1213_vm3, %v8504_v42  ;;  %v2765_v42 = vsel %vm2724_vm6, %v2762_v3, %v2764_v2  ;;  %v2782_v3 = vrot.slane %v20899_v33, 1  ;;  %v2784_v33 = vrot.slane %v20904_v35, 1 }
 0x26e   : > { %v2769_v4 = vsel %vm2724_vm6, %v2766_v41, %v2768_v24 }
 0x271   : > { %17386 = vmatmul.mubr.msk.bf16.gmra.mrb[20].mxu1 %vm1213_vm3, %v2749_v27  ;;  %v2767_v27 = vsel %vm2724_vm6, %v2764_v2, %v2766_v41  ;;  %v19671_v2 = vld [vmem:[%s20173_s9 + $0x220] sm:$0xff]   ;;  %v19672_v41 = vld [vmem:[%s20173_s9 + $0x228] sm:$0xff]  }
 0x272   : > { %17389 = vmatprep.mubr.msk.bf16.mxu1 %vm1213_vm3, %v2751_v23  ;;  %v19663_v23 = vld [vmem:[%s20173_s9 + $0x1e0] sm:$0xff]   ;;  %v8541_v39 = vrot.slane %v19671_v2, 2  ;;  %v8543_v35 = vrot.slane %v19672_v41, 2  ;;  %v25544_v41 = vld [vmem:[#allocation17_spill] sm:$0xff] }
 0x273   : > { %v8525_v30 = vrot.slane %v19663_v23, 2 }
 0x274   : > { %18006 = vmatmul.mubr.msk.bf16.gmra.mrb[88].mxu0 %vm1213_vm3, %v8506_v10  ;;  %v19664_v10 = vld [vmem:[%s20173_s9 + $0x1e8] sm:$0xff]  }
 0x275   : > { %18009 = vmatprep.mubr.msk.bf16.mxu0 %vm1213_vm3, %v8508_v48  ;;  %v2771_v48 = vsel %vm2724_vm6, %v2768_v24, %v2770_v21  ;;  %v8527_v25 = vrot.slane %v19664_v10, 2  ;;  %v8526_v26 = vsel %vm6874_vm5, %v8523_v9, %v8525_v30  ;;  %v2790_v9 = vrot.slane %v20939_v29, 1  ;;  %v19674_v24 = vld [vmem:[%s20173_s9 + $0x238] sm:$0xff]  }
 0x276   : > { %v8547_v10 = vrot.slane %v19674_v24, 2  ;;  %v9487_v29 = vshrl.u32 %v20932_v19, 16 }
 0x279   : > { %17390 = vmatmul.mubr.msk.bf16.gmra.mrb[24].mxu1 %vm1213_vm3, %v2753_v57  ;;  %v19665_v57 = vld [vmem:[%s20173_s9 + $0x1f0] sm:$0xff]  }
 0x27a   : > { %17393 = vmatprep.mubr.msk.bf16.mxu1 %vm1213_vm3, %v2755_v8  ;;  %v8528_v8 = vsel %vm6874_vm5, %v8525_v30, %v8527_v25  ;;  %v9490_v30 = vshll.u32 %v20932_v19, 16 }
 0x27c   : > { %18010 = vmatmul.mubr.msk.bf16.gmra.mrb[92].mxu0 %vm1213_vm3, %v8510_v34  ;;  %v8529_v34 = vrot.slane %v19665_v57, 2  ;;  %v2794_v57 = vrot.slane %v20961_v0, 1  ;;  %v9492_v32 = vrot.slane %v9490_v30, 3  ;;  %v9505_v0 = vshrl.u32 %v20954_v46, 16 }
 0x27d   : > { %18013 = vmatprep.mubr.msk.bf16.mxu0 %vm1213_vm3, %v8512_v38  ;;  %v19667_v38 = vld [vmem:[%s20173_s9 + $0x200] sm:$0xff]  }
 0x27e   : > { %v8530_v1 = vsel %vm6874_vm5, %v8527_v25, %v8529_v34  ;;  %v8533_v44 = vrot.slane %v19667_v38, 2  ;;  %v25539_v38 = vld [vmem:[#allocation10_spill] sm:$0xff] }
 0x281   : > { %17394 = vmatmul.mubr.msk.bf16.gmra.mrb[28].mxu1 %vm1213_vm3, %v2757_v13  ;;  %v8532_v13 = vsel %vm6874_vm5, %v8529_v34, %v8531_v37  ;;  %v9496_v34 = vshrl.u32 %v20950_v45, 16 }
 0x282   : > { %17397 = vmatprep.mubr.msk.bf16.mxu1 %vm1213_vm3, %v2759_v5  ;;  %v2777_v5 = vsel %vm2724_vm6, %v2774_v60, %v2776_v52  ;;  %v9481_v60 = vrot.slane %v9479_v63, 2  ;;  %v25547_v63 = vld [vmem:[#allocation18_spill] sm:$0xff] }
 0x283   : > { %v9498_v58 = vrot.slane %v9496_v34, 2  ;;  %v25550_v34 = vld [vmem:[#allocation20_spill] sm:$0xff] }
 0x284   : > { %18014 = vmatmul.mubr.msk.bf16.gmra.mrb[96].mxu0 %vm1213_vm3, %v8514_v40  ;;  %v8534_v40 = vsel %vm6874_vm5, %v8531_v37, %v8533_v44 }
 0x285   : > { %18017 = vmatprep.mubr.msk.bf16.mxu0 %vm1213_vm3, %v8516_v28  ;;  %v8536_v28 = vsel %vm6874_vm5, %v8533_v44, %v8535_v56  ;;  %v25540_v44 = vld [vmem:[#allocation13_spill] sm:$0xff]  ;;  %v9507_v56 = vrot.slane %v9505_v0, 2 }
 0x289   : > { %17398 = vmatmul.mubr.msk.bf16.gmra.mrb[32].mxu1 %vm1213_vm3, %v2761_v55  ;;  %v2781_v55 = vsel %vm2724_vm6, %v2778_v61, %v2780_v12  ;;  %v2796_v61 = vrot.slane %v25539_v38, 1 }
 0x28a   : > { %17401 = vmatprep.mubr.msk.bf16.mxu1 %vm1213_vm3, %v2763_v11  ;;  %v2783_v11 = vsel %vm2724_vm6, %v2780_v12, %v2782_v3 }
 0x28c   : > { %18018 = vmatmul.mubr.msk.bf16.gmra.mrb[100].mxu0 %vm1213_vm3, %v8518_v6  ;;  %v2786_v6 = vrot.slane %v20915_v51, 1  ;;  %v8542_v51 = vsel %vm6874_vm5, %v8539_v14, %v8541_v39  ;;  %v9526_v14 = vshll.u32 %v25542_v17, 16 }
 0x28d   : > { %18021 = vmatprep.mubr.msk.bf16.mxu0 %vm1213_vm3, %v8520_v47  ;;  %v2785_v47 = vsel %vm2724_vm6, %v2782_v3, %v2784_v33  ;;  %v25541_v3 = vld [vmem:[#allocation11_spill] sm:$0xff] }
 0x28e   : > { %v2789_v23 = vsel %vm2724_vm6, %v2786_v6, %v2788_v16  ;;  %v9517_v22 = vshll.u32 %v25541_v3, 16 }
 0x291   : > { %17402 = vmatmul.mubr.msk.bf16.gmra.mrb[36].mxu1 %vm1213_vm3, %v2765_v42  ;;  %v2787_v42 = vsel %vm2724_vm6, %v2784_v33, %v2786_v6  ;;  %v25543_v33 = vld [vmem:[#allocation14_spill] sm:$0xff] }
 0x292   : > { %17405 = vmatprep.mubr.msk.bf16.mxu1 %vm1213_vm3, %v2767_v27  ;;  %v19673_v27 = vld [vmem:[%s20173_s9 + $0x230] sm:$0xff]  }
 0x293   : > { %v8545_v21 = vrot.slane %v19673_v27, 2 }
 0x294   : > { %18022 = vmatmul.mubr.msk.bf16.gmra.mrb[104].mxu0 %vm1213_vm3, %v8522_v18  ;;  %v8544_v18 = vsel %vm6874_vm5, %v8541_v39, %v8543_v35 }
 0x295   : > { %18025 = vmatprep.mubr.msk.bf16.mxu0 %vm1213_vm3, %v8524_v31  ;;  %v2791_v31 = vsel %vm2724_vm6, %v2788_v16, %v2790_v9  ;;  %v8546_v25 = vsel %vm6874_vm5, %v8543_v35, %v8545_v21  ;;  %v8548_v62 = vsel %vm6874_vm5, %v8545_v21, %v8547_v10  ;;  %v9528_v35 = vrot.slane %v9526_v14, 3  ;;  %v25546_v21 = vld [vmem:[#allocation16_spill] sm:$0xff] }
 0x299   : > { %17406 = vmatmul.mubr.msk.bf16.gmra.mrb[40].mxu1 %vm1213_vm3, %v2769_v4  ;;  %v9482_v4 = vshll.u32 %v20929_v15, 16  ;;  %v9489_v15 = vrot.slane %v9487_v29, 2 }
 0x29a   : > { %17409 = vmatprep.mubr.msk.bf16.mxu1 %vm1213_vm3, %v2771_v48  ;;  %v2792_v48 = vrot.slane %v20944_v36, 1 }
 0x29b   : > { %v9493_v52 = vor.u32 %v9492_v32, %v9489_v15  ;;  %v25549_v32 = vld [vmem:[#allocation19_spill] sm:$0xff] }
 0x29c   : > { %18026 = vmatmul.mubr.msk.bf16.gmra.mrb[108].mxu0 %vm1213_vm3, %v8526_v26  ;;  %v19675_v26 = vld [vmem:[%s20173_s9 + $0x240] ss:$0 sps:$4 sm:$0x33]   ;;  %v2793_v19 = vsel %vm2724_vm6, %v2790_v9, %v2792_v48  ;;  %v2795_v36 = vsel %vm2724_vm6, %v2792_v48, %v2794_v57  ;;  %v25548_v48 = vld [vmem:[#allocation21_spill] sm:$0xff] }
 0x29d   : > { %18029 = vmatprep.mubr.msk.bf16.mxu0 %vm1213_vm3, %v8528_v8  ;;  %v9484_v8 = vrot.slane %v9482_v4, 3  ;;  %v25545_v9 = vld [vmem:[#allocation15_spill] sm:$0xff] }
 0x29e   : > { %v9532_v24 = vshrl.u32 %v25545_v9, 16 }
 0x29f   : > { %v9485_v37 = vor.u32 %v9484_v8, %v9481_v60 }
 0x2a0   : > { %v9534_v29 = vrot.slane %v9532_v24, 2  ;;  %v25558_v24 = vld [vmem:[#allocation28_spill] sm:$0xff] }
 0x2a1   : > { %17410 = vmatmul.mubr.msk.bf16.gmra.mrb[44].mxu1 %vm1213_vm3, %v2773_v43  ;;  %v8549_v43 = vrot.slane %v19675_v26, 2 }
 0x2a2   : > { %17413 = vmatprep.mubr.msk.bf16.mxu1 %vm1213_vm3, %v2775_v50  ;;  %v9499_v50 = vshll.u32 %v20950_v45, 16  ;;  %v9494_v45 = vsel %vm9477_vm7, %v9485_v37, %v9493_v52  ;;  %v9562_v37 = vshll.u32 %v25550_v34, 16 }
 0x2a4   : > { %18030 = vmatmul.mubr.msk.bf16.gmra.mrb[112].mxu0 %vm1213_vm3, %v8530_v1  ;;  %v9508_v1 = vshll.u32 %v20954_v46, 16  ;;  %v2797_v46 = vsel %vm2724_vm6, %v2794_v57, %v2796_v61 }
 0x2a5   : > { %18033 = vmatprep.mubr.msk.bf16.mxu0 %vm1213_vm3, %v8532_v13  ;;  %v8550_v13 = vsel %vm6874_vm5, %v8547_v10, %v8549_v43  ;;  %v9544_v10 = vshll.u32 %v25546_v21, 16  ;;  %v9553_v43 = vshll.u32 %v25549_v32, 16 }
 0x2a6   : > { %v9510_v12 = vrot.slane %v9508_v1, 3 }
 0x2a7   : > { %v9546_v57 = vrot.slane %v9544_v10, 3 }
 0x2a9   : > { %17414 = vmatmul.mubr.msk.bf16.gmra.mrb[48].mxu1 %vm1213_vm3, %v2777_v5  ;;  %v9501_v5 = vrot.slane %v9499_v50, 3  ;;  %v9559_v50 = vshrl.u32 %v25550_v34, 16  ;;  %v25563_v34 = vld [vmem:[#allocation34_spill] sm:$0xff] }
 0x2aa   : > { %17417 = vmatprep.mubr.msk.bf16.mxu1 %vm1213_vm3, %v2779_v53  ;;  %v2798_v53 = vrot.slane %v25540_v44, 1 }
 0x2ab   : > { %v9561_v44 = vrot.slane %v9559_v50, 2  ;;  %v2820_v50 = vrot.slane %v25563_v34, 1 }
 0x2ac   : > { %18034 = vmatmul.mubr.msk.bf16.gmra.mrb[116].mxu0 %vm1213_vm3, %v8534_v40  ;;  %v9502_v40 = vor.u32 %v9501_v5, %v9498_v58  ;;  %v2799_v59 = vsel %vm2724_vm6, %v2796_v61, %v2798_v53  ;;  %v9555_v61 = vrot.slane %v9553_v43, 3 }
 0x2ad   : > { %18037 = vmatprep.mubr.msk.bf16.mxu0 %vm1213_vm3, %v8536_v28  ;;  %v9514_v28 = vshrl.u32 %v25541_v3, 16 }
 0x2ae   : > { %v9503_v2 = vsel %vm9477_vm7, %v9493_v52, %v9502_v40  ;;  %v25551_v52 = vld [vmem:[#allocation22_spill] sm:$0xff] }
 0x2af   : > { %v9516_v6 = vrot.slane %v9514_v28, 2  ;;  %v2808_v0 = vrot.slane %v25551_v52, 1  ;;  %v25554_v28 = vld [vmem:[#allocation24_spill] sm:$0xff] }
 0x2b1   : > { %17418 = vmatmul.mubr.msk.bf16.gmra.mrb[52].mxu1 %vm1213_vm3, %v2781_v55  ;;  %v9511_v55 = vor.u32 %v9510_v12, %v9507_v56 }
 0x2b2   : > { %17421 = vmatprep.mubr.msk.bf16.mxu1 %vm1213_vm3, %v2783_v11  ;;  %v9523_v11 = vshrl.u32 %v25542_v17, 16  ;;  %v25555_v17 = vld [vmem:[#allocation26_spill] sm:$0xff] }
 0x2b3   : > { %v9512_v39 = vsel %vm9477_vm7, %v9502_v40, %v9511_v55 }
 0x2b4   : > { %18038 = vmatmul.mubr.msk.bf16.gmra.mrb[120].mxu0 %vm1213_vm3, %v8538_v54  ;;  %v2800_v54 = vrot.slane %v25543_v33, 1 }
 0x2b5   : > { %18041 = vmatprep.mubr.msk.bf16.mxu0 %vm1213_vm3, %v8540_v20  ;;  %v9519_v20 = vrot.slane %v9517_v22, 3  ;;  %v9577_v22 = vshrl.u32 %v25554_v28, 16 }
 0x2b6   : > { %v2801_v16 = vsel %vm2724_vm6, %v2798_v53, %v2800_v54  ;;  %v9564_v53 = vrot.slane %v9562_v37, 3 }
 0x2b8   : > { %v9565_v3 = vor.u32 %v9564_v53, %v9561_v44 }
 0x2b9   : > { %17422 = vmatmul.mubr.msk.bf16.gmra.mrb[56].mxu1 %vm1213_vm3, %v2785_v47  ;;  %v2802_v47 = vrot.slane %v25544_v41, 1  ;;  %v9579_v41 = vrot.slane %v9577_v22, 2 }
 0x2ba   : > { %17425 = vmatprep.mubr.msk.bf16.mxu1 %vm1213_vm3, %v2787_v42  ;;  %v9525_v42 = vrot.slane %v9523_v11, 2  ;;  %v2812_v11 = vrot.slane %v25555_v17, 1 }
 0x2bb   : > { %v2803_v27 = vsel %vm2724_vm6, %v2800_v54, %v2802_v47 }
 0x2bc   : > { %18042 = vmatmul.mubr.msk.bf16.gmra.mrb[124].mxu0 %vm1213_vm3, %v8542_v51  ;;  %v9520_v51 = vor.u32 %v9519_v20, %v9516_v6 }
 0x2bd   : > { %18045 = vmatprep.mubr.msk.bf16.mxu0 %vm1213_vm3, %v8544_v18  ;;  %v9535_v18 = vshll.u32 %v25545_v9, 16 }
 0x2be   : > { %v9521_v4 = vsel %vm9477_vm7, %v9511_v55, %v9520_v51  ;;  %v9580_v55 = vshll.u32 %v25554_v28, 16  ;;  %v25567_v28 = vld [vmem:[#allocation38_spill] sm:$0xff] }
 0x2bf   : > { %v9537_v30 = vrot.slane %v9535_v18, 3  ;;  %v9595_v18 = vshrl.u32 %v25558_v24, 16  ;;  %v2824_v22 = vrot.slane %v25567_v28, 1 }
 0x2c1   : > { %17426 = vmatmul.mubr.msk.bf16.gmra.mrb[60].mxu1 %vm1213_vm3, %v2789_v23  ;;  %v9529_v23 = vor.u32 %v9528_v35, %v9525_v42  ;;  %v9538_v8 = vor.u32 %v9537_v30, %v9534_v29 }
 0x2c2   : > { %17429 = vmatprep.mubr.msk.bf16.mxu1 %vm1213_vm3, %v2791_v31  ;;  %v9541_v31 = vshrl.u32 %v25546_v21, 16  ;;  %v25559_v21 = vld [vmem:[#allocation30_spill] sm:$0xff] }
 0x2c3   : > { %v9539_v1 = vsel %vm9477_vm7, %v9529_v23, %v9538_v8 }
 0x2c4   : > { %18046 = vmatmul.mubr.msk.bf16.gmra.mrb[128].mxu0 %vm1213_vm3, %v8546_v25  ;;  %v2806_v25 = vrot.slane %v25548_v48, 1  ;;  %v9543_v26 = vrot.slane %v9541_v31, 2  ;;  %v2816_v31 = vrot.slane %v25559_v21, 1  ;;  %v9597_v48 = vrot.slane %v9595_v18, 2 }
 0x2c5   : > { %18049 = vmatprep.mubr.msk.bf16.mxu0 %vm1213_vm3, %v8548_v62  ;;  %v9530_v62 = vsel %vm9477_vm7, %v9520_v51, %v9529_v23  ;;  %v9598_v23 = vshll.u32 %v25558_v24, 16  ;;  %v25571_v24 = vld [vmem:[#allocation42_spill] sm:$0xff] }
 0x2c6   : > { %v2828_v18 = vrot.slane %v25571_v24, 1 }
 0x2c9   : > { %17430 = vmatmul.mubr.msk.bf16.gmra.mrb[64].mxu1 %vm1213_vm3, %v2793_v19  ;;  %v9550_v19 = vshrl.u32 %v25549_v32, 16 }
 0x2ca   : > { %17433 = vmatprep.mubr.msk.bf16.mxu1 %vm1213_vm3, %v2795_v36  ;;  %v9547_v36 = vor.u32 %v9546_v57, %v9543_v26 }
 0x2cb   : > { %v9552_v38 = vrot.slane %v9550_v19, 2  ;;  %v25562_v19 = vld [vmem:[#allocation32_spill] sm:$0xff] }
 0x2cc   : > { %18050 = vmatmul.mubr.msk.bf16.gmra.mrb[132].mxu0 %vm1213_vm3, %v8550_v13  ;;  %v25552_v13 = vld [vmem:[#allocation25_spill] sm:$0xff]  ;;  %v9548_v5 = vsel %vm9477_vm7, %v9538_v8, %v9547_v36  ;;  %v9613_v43 = vshrl.u32 %v25562_v19, 16 }
 0x2cd   : > { %18055 = vmatprep.mubr.msk.bf16.mxu0 %vm1213_vm3, %v9494_v45  ;;  %v2810_v58 = vrot.slane %v25552_v13, 1  ;;  %v2809_v45 = vsel %vm2724_vm6, %v2806_v25, %v2808_v0  ;;  %v9556_v56 = vor.u32 %v9555_v61, %v9552_v38 }
 0x2ce   : > { %v9615_v13 = vrot.slane %v9613_v43, 2 }
 0x2cf   : > { %v2811_v12 = vsel %vm2724_vm6, %v2808_v0, %v2810_v58  ;;  %v9557_v14 = vsel %vm9477_vm7, %v9547_v36, %v9556_v56  ;;  %v9566_v20 = vsel %vm9477_vm7, %v9556_v56, %v9565_v3  ;;  %v9616_v36 = vshll.u32 %v25562_v19, 16  ;;  %v19774_v19 = vld [vmem:[%s20173_s9 + $0x1b0] sm:$0xff]  }
 0x2d0   : > { %v2832_v43 = vrot.slane %v19774_v19, 1 }
 0x2d1   : > { %17434 = vmatmul.mubr.msk.bf16.gmra.mrb[68].mxu1 %vm1213_vm3, %v2797_v46  ;;  %v25553_v46 = vld [vmem:[#allocation23_spill] sm:$0xff] }
 0x2d2   : > { %17437 = vmatprep.mubr.msk.bf16.mxu1 %vm1213_vm3, %v2799_v59  ;;  %v9568_v40 = vshrl.u32 %v25553_v46, 16  ;;  %v9571_v59 = vshll.u32 %v25553_v46, 16 }
 0x2d4   : > { %18056 = vmatmul.mubr.msk.bf16.vlgmr.msra.gmra.mrb[0].mxu0 %vm1213_vm3, %v9503_v2  ;;  %v9570_v33 = vrot.slane %v9568_v40, 2  ;;  %v9573_v54 = vrot.slane %v9571_v59, 3  ;;  %v25556_v2 = vld [vmem:[#allocation29_spill] sm:$0xff]  ;;  %v25566_v40 = vld [vmem:[#allocation36_spill] sm:$0xff] }
 0x2d5   : > { %18192 = vmatpush3.bf16.msra.mxu0 %v21271_v49  ;;  %18059 = vmatprep.mubr.msk.bf16.mxu0 %vm1213_vm3, %v9512_v39  ;;  %v2804_v49 = vrot.slane %v25547_v63, 1  ;;  %v2814_v6 = vrot.slane %v25556_v2, 1  ;;  %v2813_v39 = vsel %vm2724_vm6, %v2810_v58, %v2812_v11  ;;  %v9618_v58 = vrot.slane %v9616_v36, 3 }
 0x2d6   : > { %v9574_v42 = vor.u32 %v9573_v54, %v9570_v33  ;;  %v9631_v59 = vshrl.u32 %v25566_v40, 16 }
 0x2d7   : > { %v2805_v60 = vsel %vm2724_vm6, %v2802_v47, %v2804_v49  ;;  %v2807_v15 = vsel %vm2724_vm6, %v2804_v49, %v2806_v25  ;;  %v9582_v47 = vrot.slane %v9580_v55, 3  ;;  %v2815_v35 = vsel %vm2724_vm6, %v2812_v11, %v2814_v6 }
 0x2d8   : > { %v9575_v10 = vsel %vm9477_vm7, %v9565_v3, %v9574_v42  ;;  %v9600_v25 = vrot.slane %v9598_v23, 3  ;;  %v9619_v46 = vor.u32 %v9618_v58, %v9615_v13  ;;  %v9634_v3 = vshll.u32 %v25566_v40, 16  ;;  %v19777_v40 = vld [vmem:[%s20173_s9 + $0x1c0] sm:$0xff]  }
 0x2d9   : > { %17438 = vmatmul.mubr.msk.bf16.gmra.mrb[72].mxu1 %vm1213_vm3, %v2801_v16  ;;  %v25557_v16 = vld [vmem:[#allocation27_spill] sm:$0xff]  ;;  %v9583_v9 = vor.u32 %v9582_v47, %v9579_v41  ;;  %v9633_v2 = vrot.slane %v9631_v59, 2  ;;  %v2836_v59 = vrot.slane %v19777_v40, 1 }
 0x2da   : > { %17441 = vmatprep.mubr.msk.bf16.mxu1 %vm1213_vm3, %v2803_v27  ;;  %v9586_v51 = vshrl.u32 %v25557_v16, 16  ;;  %v9589_v27 = vshll.u32 %v25557_v16, 16  ;;  %v9601_v32 = vor.u32 %v9600_v25, %v9597_v48 }
 0x2db   : > { %v9584_v30 = vsel %vm9477_vm7, %v9574_v42, %v9583_v9 }
 0x2dc   : > { %18060 = vmatmul.mubr.msk.bf16.gmra.mrb[4].mxu0 %vm1213_vm3, %v9521_v4  ;;  %v9588_v63 = vrot.slane %v9586_v51, 2  ;;  %v9591_v49 = vrot.slane %v9589_v27, 3  ;;  %v25560_v4 = vld [vmem:[#allocation33_spill] sm:$0xff]  ;;  %v25570_v51 = vld [vmem:[#allocation40_spill] sm:$0xff] }
 0x2dd   : > { %18063 = vmatprep.mubr.msk.bf16.mxu0 %vm1213_vm3, %v9530_v62  ;;  %v2818_v29 = vrot.slane %v25560_v4, 1  ;;  %v2817_v62 = vsel %vm2724_vm6, %v2814_v6, %v2816_v31  ;;  %v9636_v6 = vrot.slane %v9634_v3, 3  ;;  %v9649_v27 = vshrl.u32 %v25570_v51, 16 }
 0x2de   : > { %v9592_v26 = vor.u32 %v9591_v49, %v9588_v63 }
 0x2df   : > { %v2819_v57 = vsel %vm2724_vm6, %v2816_v31, %v2818_v29  ;;  %v9637_v16 = vor.u32 %v9636_v6, %v9633_v2  ;;  %v9651_v4 = vrot.slane %v9649_v27, 2 }
 0x2e0   : > { %v9593_v37 = vsel %vm9477_vm7, %v9583_v9, %v9592_v26  ;;  %v9602_v61 = vsel %vm9477_vm7, %v9592_v26, %v9601_v32  ;;  %v9652_v9 = vshll.u32 %v25570_v51, 16  ;;  %v19781_v51 = vld [vmem:[%s20173_s9 + $0x1d0] sm:$0xff]  }
 0x2e1   : > { %17442 = vmatmul.mubr.msk.bf16.gmra.mrb[76].mxu1 %vm1213_vm3, %v2805_v60  ;;  %v25561_v60 = vld [vmem:[#allocation31_spill] sm:$0xff]  ;;  %v2840_v27 = vrot.slane %v19781_v51, 1 }
 0x2e2   : > { %17445 = vmatprep.mubr.msk.bf16.mxu1 %vm1213_vm3, %v2807_v15  ;;  %v9604_v8 = vshrl.u32 %v25561_v60, 16  ;;  %v9607_v15 = vshll.u32 %v25561_v60, 16 }
 0x2e4   : > { %18064 = vmatmul.mubr.msk.bf16.gmra.mrb[8].mxu0 %vm1213_vm3, %v9539_v1  ;;  %v9606_v52 = vrot.slane %v9604_v8, 2  ;;  %v9609_v0 = vrot.slane %v9607_v15, 3  ;;  %v25564_v1 = vld [vmem:[#allocation37_spill] sm:$0xff] }
 0x2e5   : > { %18067 = vmatprep.mubr.msk.bf16.mxu0 %vm1213_vm3, %v9548_v5  ;;  %v2822_v38 = vrot.slane %v25564_v1, 1  ;;  %v2821_v5 = vsel %vm2724_vm6, %v2818_v29, %v2820_v50  ;;  %v9654_v29 = vrot.slane %v9652_v9, 3  ;;  %v19773_v8 = vld [vmem:[%s20173_s9 + $0xc8] sm:$0xff]  }
 0x2e6   : > { %v9610_v44 = vor.u32 %v9609_v0, %v9606_v52  ;;  %v9667_v15 = vshrl.u32 %v19773_v8, 16 }
 0x2e7   : > { %v2823_v53 = vsel %vm2724_vm6, %v2820_v50, %v2822_v38  ;;  %v9655_v60 = vor.u32 %v9654_v29, %v9651_v4 }
 0x2e8   : > { %v9611_v55 = vsel %vm9477_vm7, %v9601_v32, %v9610_v44  ;;  %v9620_v54 = vsel %vm9477_vm7, %v9610_v44, %v9619_v46  ;;  %v9670_v32 = vshll.u32 %v19773_v8, 16  ;;  %v9669_v1 = vrot.slane %v9667_v15, 2  ;;  %v19785_v8 = vld [vmem:[%s20173_s9 + $0x1e0] sm:$0xff]  }
 0x2e9   : > { %17446 = vmatmul.mubr.msk.bf16.gmra.mrb[80].mxu1 %vm1213_vm3, %v2809_v45  ;;  %v25565_v45 = vld [vmem:[#allocation35_spill] sm:$0xff]  ;;  %v2844_v15 = vrot.slane %v19785_v8, 1 }
 0x2ea   : > { %17449 = vmatprep.mubr.msk.bf16.mxu1 %vm1213_vm3, %v2811_v12  ;;  %v9622_v56 = vshrl.u32 %v25565_v45, 16  ;;  %v9625_v12 = vshll.u32 %v25565_v45, 16 }
 0x2ec   : > { %18068 = vmatmul.mubr.msk.bf16.gmra.mrb[12].mxu0 %vm1213_vm3, %v9557_v14  ;;  %v9624_v17 = vrot.slane %v9622_v56, 2  ;;  %v9627_v11 = vrot.slane %v9625_v12, 3  ;;  %v25568_v14 = vld [vmem:[#allocation41_spill] sm:$0xff]  ;;  %v19776_v56 = vld [vmem:[%s20173_s9 + $0xd8] sm:$0xff]  }
 0x2ed   : > { %18071 = vmatprep.mubr.msk.bf16.mxu0 %vm1213_vm3, %v9566_v20  ;;  %v2826_v33 = vrot.slane %v25568_v14, 1  ;;  %v2825_v20 = vsel %vm2724_vm6, %v2822_v38, %v2824_v22  ;;  %v9672_v38 = vrot.slane %v9670_v32, 3  ;;  %v9685_v12 = vshrl.u32 %v19776_v56, 16 }
 0x2ee   : > { %v9628_v41 = vor.u32 %v9627_v11, %v9624_v17 }
 0x2ef   : > { %v2827_v47 = vsel %vm2724_vm6, %v2824_v22, %v2826_v33  ;;  %v9673_v45 = vor.u32 %v9672_v38, %v9669_v1  ;;  %v9687_v14 = vrot.slane %v9685_v12, 2 }
 0x2f0   : > { %v9629_v23 = vsel %vm9477_vm7, %v9619_v46, %v9628_v41  ;;  %v9638_v49 = vsel %vm9477_vm7, %v9628_v41, %v9637_v16  ;;  %v9688_v46 = vshll.u32 %v19776_v56, 16  ;;  %v19789_v56 = vld [vmem:[%s20173_s9 + $0x1f0] sm:$0xff]  }
 0x2f1   : > { %17450 = vmatmul.mubr.msk.bf16.gmra.mrb[84].mxu1 %vm1213_vm3, %v2813_v39  ;;  %v25569_v39 = vld [vmem:[#allocation39_spill] sm:$0xff]  ;;  %v2848_v12 = vrot.slane %v19789_v56, 1 }
 0x2f2   : > { %17453 = vmatprep.mubr.msk.bf16.mxu1 %vm1213_vm3, %v2815_v35  ;;  %v9640_v42 = vshrl.u32 %v25569_v39, 16  ;;  %v9643_v35 = vshll.u32 %v25569_v39, 16 }
 0x2f4   : > { %18072 = vmatmul.mubr.msk.bf16.gmra.mrb[16].mxu0 %vm1213_vm3, %v9575_v10  ;;  %v9642_v21 = vrot.slane %v9640_v42, 2  ;;  %v9645_v31 = vrot.slane %v9643_v35, 3  ;;  %v25572_v10 = vld [vmem:[#allocation43_spill] sm:$0xff]  ;;  %v19780_v42 = vld [vmem:[%s20173_s9 + $0xe8] sm:$0xff]  }
 0x2f5   : > { %18075 = vmatprep.mubr.msk.bf16.mxu0 %vm1213_vm3, %v9584_v30  ;;  %v2830_v63 = vrot.slane %v25572_v10, 1  ;;  %v2829_v30 = vsel %vm2724_vm6, %v2826_v33, %v2828_v18  ;;  %v9690_v33 = vrot.slane %v9688_v46, 3  ;;  %v9703_v35 = vshrl.u32 %v19780_v42, 16 }
 0x2f6   : > { %v9646_v48 = vor.u32 %v9645_v31, %v9642_v21 }
 0x2f7   : > { %v2831_v25 = vsel %vm2724_vm6, %v2828_v18, %v2830_v63  ;;  %v9691_v39 = vor.u32 %v9690_v33, %v9687_v14  ;;  %v9705_v10 = vrot.slane %v9703_v35, 2 }
 0x2f8   : > { %v9647_v36 = vsel %vm9477_vm7, %v9637_v16, %v9646_v48  ;;  %v9656_v0 = vsel %vm9477_vm7, %v9646_v48, %v9655_v60  ;;  %v9706_v16 = vshll.u32 %v19780_v42, 16  ;;  %v19793_v42 = vld [vmem:[%s20173_s9 + $0x200] sm:$0xff]  }
 0x2f9   : > { %17454 = vmatmul.mubr.msk.bf16.gmra.mrb[88].mxu1 %vm1213_vm3, %v2817_v62  ;;  %v19772_v62 = vld [vmem:[%s20173_s9 + $0xc0] sm:$0xff]   ;;  %v2852_v35 = vrot.slane %v19793_v42, 1 }
 0x2fa   : > { %17457 = vmatprep.mubr.msk.bf16.mxu1 %vm1213_vm3, %v2819_v57  ;;  %v9658_v26 = vshrl.u32 %v19772_v62, 16  ;;  %v9661_v57 = vshll.u32 %v19772_v62, 16 }
 0x2fc   : > { %18076 = vmatmul.mubr.msk.bf16.gmra.mrb[20].mxu0 %vm1213_vm3, %v9593_v37  ;;  %v9660_v34 = vrot.slane %v9658_v26, 2  ;;  %v9663_v50 = vrot.slane %v9661_v57, 3  ;;  %v25573_v37 = vld [vmem:[#allocation44_spill] sm:$0xff]  ;;  %v19784_v26 = vld [vmem:[%s20173_s9 + $0xf8] sm:$0xff]  }
 0x2fd   : > { %18079 = vmatprep.mubr.msk.bf16.mxu0 %vm1213_vm3, %v9602_v61  ;;  %v2834_v52 = vrot.slane %v25573_v37, 1  ;;  %v2833_v61 = vsel %vm2724_vm6, %v2830_v63, %v2832_v43  ;;  %v9708_v63 = vrot.slane %v9706_v16, 3  ;;  %v9721_v57 = vshrl.u32 %v19784_v26, 16 }
 0x2fe   : > { %v9664_v13 = vor.u32 %v9663_v50, %v9660_v34 }
 0x2ff   : > { %v2835_v58 = vsel %vm2724_vm6, %v2832_v43, %v2834_v52  ;;  %v9709_v62 = vor.u32 %v9708_v63, %v9705_v10  ;;  %v9723_v37 = vrot.slane %v9721_v57, 2  ;;  %v19795_v10 = vld [vmem:[%s20173_s9 + $0x120] sm:$0xff]  }
 0x300   : > { %v9665_v3 = vsel %vm9477_vm7, %v9655_v60, %v9664_v13  ;;  %v9674_v11 = vsel %vm9477_vm7, %v9664_v13, %v9673_v45  ;;  %v9724_v60 = vshll.u32 %v19784_v26, 16  ;;  %v9766_v63 = vshrl.u32 %v19795_v10, 16  ;;  %v19797_v26 = vld [vmem:[%s20173_s9 + $0x210] sm:$0xff]  }
 0x301   : > { %17458 = vmatmul.mubr.msk.bf16.gmra.mrb[92].mxu1 %vm1213_vm3, %v2821_v5  ;;  %v19775_v5 = vld [vmem:[%s20173_s9 + $0xd0] sm:$0xff]   ;;  %v2856_v57 = vrot.slane %v19797_v26, 1 }
 0x302   : > { %17461 = vmatprep.mubr.msk.bf16.mxu1 %vm1213_vm3, %v2823_v53  ;;  %v9676_v44 = vshrl.u32 %v19775_v5, 16  ;;  %v9679_v53 = vshll.u32 %v19775_v5, 16 }
 0x304   : > { %18080 = vmatmul.mubr.msk.bf16.gmra.mrb[24].mxu0 %vm1213_vm3, %v9611_v55  ;;  %v9678_v28 = vrot.slane %v9676_v44, 2  ;;  %v9681_v22 = vrot.slane %v9679_v53, 3  ;;  %v19778_v55 = vld [vmem:[%s20173_s9 + $0x1c8] sm:$0xff]  }
 0x305   : > { %18083 = vmatprep.mubr.msk.bf16.mxu0 %vm1213_vm3, %v9620_v54  ;;  %v2838_v17 = vrot.slane %v19778_v55, 1  ;;  %v2837_v54 = vsel %vm2724_vm6, %v2834_v52, %v2836_v59  ;;  %v9726_v52 = vrot.slane %v9724_v60, 3  ;;  %v19788_v44 = vld [vmem:[%s20173_s9 + $0x108] sm:$0xff]   ;;  %v9768_v60 = vrot.slane %v9766_v63, 2  ;;  %v19807_v63 = vld [vmem:[%s20173_s9 + $0x150] sm:$0xff]  }
 0x306   : > { %v9682_v2 = vor.u32 %v9681_v22, %v9678_v28  ;;  %v9739_v53 = vshrl.u32 %v19788_v44, 16 }
 0x307   : > { %v2839_v6 = vsel %vm2724_vm6, %v2836_v59, %v2838_v17  ;;  %v9727_v5 = vor.u32 %v9726_v52, %v9723_v37 }
 0x308   : > { %v9683_v9 = vsel %vm9477_vm7, %v9673_v45, %v9682_v2  ;;  %v9692_v31 = vsel %vm9477_vm7, %v9682_v2, %v9691_v39  ;;  %v9742_v45 = vshll.u32 %v19788_v44, 16  ;;  %v9741_v55 = vrot.slane %v9739_v53, 2  ;;  %v19801_v53 = vld [vmem:[%s20173_s9 + $0x220] ss:$0 sps:$4 sm:$0x11]  }
 0x309   : > { %17462 = vmatmul.mubr.msk.bf16.gmra.mrb[96].mxu1 %vm1213_vm3, %v2825_v20  ;;  %v19779_v20 = vld [vmem:[%s20173_s9 + $0xe0] sm:$0xff]  }
 0x30a   : > { %17465 = vmatprep.mubr.msk.bf16.mxu1 %vm1213_vm3, %v2827_v47  ;;  %v9694_v41 = vshrl.u32 %v19779_v20, 16  ;;  %v9697_v47 = vshll.u32 %v19779_v20, 16 }
 0x30c   : > { %18084 = vmatmul.mubr.msk.bf16.gmra.mrb[28].mxu0 %vm1213_vm3, %v9629_v23  ;;  %v9696_v24 = vrot.slane %v9694_v41, 2  ;;  %v9699_v18 = vrot.slane %v9697_v47, 3  ;;  %v19782_v23 = vld [vmem:[%s20173_s9 + $0x1d8] sm:$0xff]  }
 0x30d   : > { %18087 = vmatprep.mubr.msk.bf16.mxu0 %vm1213_vm3, %v9638_v49  ;;  %v2842_v21 = vrot.slane %v19782_v23, 1  ;;  %v2841_v49 = vsel %vm2724_vm6, %v2838_v17, %v2840_v27  ;;  %v9744_v17 = vrot.slane %v9742_v45, 3  ;;  %v19792_v41 = vld [vmem:[%s20173_s9 + $0x118] sm:$0xff]   ;;  %v2860_v45 = vrot.slane %v19801_v53, 1 }
 0x30e   : > { %v9700_v4 = vor.u32 %v9699_v18, %v9696_v24  ;;  %v9757_v47 = vshrl.u32 %v19792_v41, 16 }
 0x30f   : > { %v2843_v29 = vsel %vm2724_vm6, %v2840_v27, %v2842_v21  ;;  %v9745_v20 = vor.u32 %v9744_v17, %v9741_v55 }
 0x310   : > { %v9701_v32 = vsel %vm9477_vm7, %v9691_v39, %v9700_v4  ;;  %v9710_v50 = vsel %vm9477_vm7, %v9700_v4, %v9709_v62  ;;  %v9760_v39 = vshll.u32 %v19792_v41, 16  ;;  %v9759_v23 = vrot.slane %v9757_v47, 2 }
 0x311   : > { %17466 = vmatmul.mubr.msk.bf16.gmra.mrb[100].mxu1 %vm1213_vm3, %v2829_v30  ;;  %v19783_v30 = vld [vmem:[%s20173_s9 + $0xf0] sm:$0xff]  }
 0x312   : > { %17469 = vmatprep.mubr.msk.bf16.mxu1 %vm1213_vm3, %v2831_v25  ;;  %v9712_v48 = vshrl.u32 %v19783_v30, 16  ;;  %v9715_v25 = vshll.u32 %v19783_v30, 16 }
 0x314   : > { %18088 = vmatmul.mubr.msk.bf16.gmra.mrb[32].mxu0 %vm1213_vm3, %v9647_v36  ;;  %v9714_v19 = vrot.slane %v9712_v48, 2  ;;  %v9717_v43 = vrot.slane %v9715_v25, 3  ;;  %v19786_v36 = vld [vmem:[%s20173_s9 + $0x1e8] sm:$0xff]  }
 0x315   : > { %18091 = vmatprep.mubr.msk.bf16.mxu0 %vm1213_vm3, %v9656_v0  ;;  %v2846_v34 = vrot.slane %v19786_v36, 1  ;;  %v2845_v0 = vsel %vm2724_vm6, %v2842_v21, %v2844_v15  ;;  %v9762_v21 = vrot.slane %v9760_v39, 3  ;;  %v19796_v48 = vld [vmem:[%s20173_s9 + $0x128] sm:$0xff]   ;;  %v19805_v39 = vld [vmem:[%s20173_s9 + $0x20] sm:$0xff]  }
 0x316   : > { %v9718_v1 = vor.u32 %v9717_v43, %v9714_v19  ;;  %v9775_v25 = vshrl.u32 %v19796_v48, 16  ;;  %v4267_v42 = vrot.slane %v19805_v39, 1 }
 0x317   : > { %v2847_v38 = vsel %vm2724_vm6, %v2844_v15, %v2846_v34  ;;  %v9763_v30 = vor.u32 %v9762_v21, %v9759_v23 }
 0x318   : > { %v9719_v46 = vsel %vm9477_vm7, %v9709_v62, %v9718_v1  ;;  %v9728_v22 = vsel %vm9477_vm7, %v9718_v1, %v9727_v5  ;;  %v9778_v62 = vshll.u32 %v19796_v48, 16  ;;  %v9777_v36 = vrot.slane %v9775_v25, 2 }
 0x319   : > { %17470 = vmatmul.mubr.msk.bf16.gmra.mrb[104].mxu1 %vm1213_vm3, %v2833_v61  ;;  %v19787_v61 = vld [vmem:[%s20173_s9 + $0x100] sm:$0xff]  }
 0x31a   : > { %17473 = vmatprep.mubr.msk.bf16.mxu1 %vm1213_vm3, %v2835_v58  ;;  %v9730_v13 = vshrl.u32 %v19787_v61, 16  ;;  %v9733_v58 = vshll.u32 %v19787_v61, 16 }
 0x31c   : > { %18092 = vmatmul.mubr.msk.bf16.gmra.mrb[36].mxu0 %vm1213_vm3, %v9665_v3  ;;  %v9732_v40 = vrot.slane %v9730_v13, 2  ;;  %v9735_v59 = vrot.slane %v9733_v58, 3  ;;  %v19790_v3 = vld [vmem:[%s20173_s9 + $0x1f8] sm:$0xff]  }
 0x31d   : > { %18095 = vmatprep.mubr.msk.bf16.mxu0 %vm1213_vm3, %v9674_v11  ;;  %v2850_v28 = vrot.slane %v19790_v3, 1  ;;  %v2849_v11 = vsel %vm2724_vm6, %v2846_v34, %v2848_v12  ;;  %v9780_v34 = vrot.slane %v9778_v62, 3  ;;  %v19800_v13 = vld [vmem:[%s20173_s9 + $0x138] sm:$0xff]   ;;  %v19809_v62 = vld [vmem:[%s20173_s9 + $0x30] sm:$0xff]  }
 0x31e   : > { %v9736_v14 = vor.u32 %v9735_v59, %v9732_v40  ;;  %v9793_v58 = vshrl.u32 %v19800_v13, 16  ;;  %v19802_v59 = vld [vmem:[%s20173_s9 + $0x18] sm:$0xff]   ;;  %v4271_v26 = vrot.slane %v19809_v62, 1 }
 0x31f   : > { %v2851_v33 = vsel %vm2724_vm6, %v2848_v12, %v2850_v28  ;;  %v9781_v61 = vor.u32 %v9780_v34, %v9777_v36  ;;  %v4265_v3 = vrot.slane %v19802_v59, 1 }
 0x320   : > { %v9737_v16 = vsel %vm9477_vm7, %v9727_v5, %v9736_v14  ;;  %v9746_v18 = vsel %vm9477_vm7, %v9736_v14, %v9745_v20  ;;  %v9796_v5 = vshll.u32 %v19800_v13, 16 }
 0x321   : > { %17474 = vmatmul.mubr.msk.bf16.gmra.mrb[108].mxu1 %vm1213_vm3, %v2837_v54  ;;  %v19791_v54 = vld [vmem:[%s20173_s9 + $0x110] sm:$0xff]   ;;  %v4268_v21 = vsel %vm2724_vm6, %v4265_v3, %v4267_v42 }
 0x322   : > { %17477 = vmatprep.mubr.msk.bf16.mxu1 %vm1213_vm3, %v2839_v6  ;;  %v9748_v2 = vshrl.u32 %v19791_v54, 16  ;;  %v9751_v6 = vshll.u32 %v19791_v54, 16  ;;  %v9798_v55 = vrot.slane %v9796_v5, 3 }
 0x324   : > { %18096 = vmatmul.mubr.msk.bf16.gmra.mrb[40].mxu0 %vm1213_vm3, %v9683_v9  ;;  %v9750_v51 = vrot.slane %v9748_v2, 2  ;;  %v9753_v27 = vrot.slane %v9751_v6, 3  ;;  %v19794_v9 = vld [vmem:[%s20173_s9 + $0x208] sm:$0xff]  }
 0x325   : > { %18099 = vmatprep.mubr.msk.bf16.mxu0 %vm1213_vm3, %v9692_v31  ;;  %v2854_v24 = vrot.slane %v19794_v9, 1  ;;  %v2853_v31 = vsel %vm2724_vm6, %v2850_v28, %v2852_v35 }
 0x326   : > { %v9754_v4 = vor.u32 %v9753_v27, %v9750_v51  ;;  %v19806_v27 = vld [vmem:[%s20173_s9 + $0x28] sm:$0xff]  }
 0x327   : > { %v4269_v9 = vrot.slane %v19806_v27, 1 }
 0x328   : > { %v9755_v15 = vsel %vm9477_vm7, %v9745_v20, %v9754_v4  ;;  %v9764_v43 = vsel %vm9477_vm7, %v9754_v4, %v9763_v30  ;;  %v19804_v20 = vld [vmem:[%s20173_s9 + $0x148] sm:$0xff]   ;;  %v9823_v4 = vshll.u32 %v19807_v63, 16 }
 0x329   : > { %17478 = vmatmul.mubr.msk.bf16.gmra.mrb[112].mxu1 %vm1213_vm3, %v2841_v49  ;;  %v9769_v49 = vshll.u32 %v19795_v10, 16  ;;  %v9811_v41 = vshrl.u32 %v19804_v20, 16  ;;  %v9814_v47 = vshll.u32 %v19804_v20, 16  ;;  %v4270_v10 = vsel %vm2724_vm6, %v4267_v42, %v4269_v9  ;;  %v19818_v42 = vld [vmem:[%s20173_s9 + $0x58] sm:$0xff]  }
 0x32a   : > { %17481 = vmatprep.mubr.msk.bf16.mxu1 %vm1213_vm3, %v2843_v29  ;;  %v2855_v29 = vsel %vm2724_vm6, %v2852_v35, %v2854_v24 }
 0x32b   : > { %v9771_v8 = vrot.slane %v9769_v49, 3  ;;  %v9816_v23 = vrot.slane %v9814_v47, 3  ;;  %v9820_v49 = vshrl.u32 %v19807_v63, 16  ;;  %v19820_v63 = vld [vmem:[%s20173_s9 + $0x188] sm:$0xff]  }
 0x32c   : > { %18100 = vmatmul.mubr.msk.bf16.gmra.mrb[44].mxu0 %vm1213_vm3, %v9701_v32  ;;  %v19798_v32 = vld [vmem:[%s20173_s9 + $0x218] sm:$0xff]  }
 0x32d   : > { %18103 = vmatprep.mubr.msk.bf16.mxu0 %vm1213_vm3, %v9710_v50  ;;  %v2858_v19 = vrot.slane %v19798_v32, 1  ;;  %v2857_v50 = vsel %vm2724_vm6, %v2854_v24, %v2856_v57  ;;  %v9772_v37 = vor.u32 %v9771_v8, %v9768_v60  ;;  %v9822_v60 = vrot.slane %v9820_v49, 2 }
 0x32e   : > { %v9825_v8 = vrot.slane %v9823_v4, 3  ;;  %v9883_v49 = vshrl.u32 %v19820_v63, 16  ;;  %v9886_v4 = vshll.u32 %v19820_v63, 16 }
 0x32f   : > { %v2859_v52 = vsel %vm2724_vm6, %v2856_v57, %v2858_v19  ;;  %v9773_v44 = vsel %vm9477_vm7, %v9763_v30, %v9772_v37  ;;  %v9782_v28 = vsel %vm9477_vm7, %v9772_v37, %v9781_v61  ;;  %v2861_v17 = vsel %vm2724_vm6, %v2858_v19, %v2860_v45  ;;  %v19808_v30 = vld [vmem:[%s20173_s9 + $0x158] sm:$0xff]   ;;  %v19811_v37 = vld [vmem:[%s20173_s9 + $0x160] sm:$0xff]  }
 0x330   : > { %v9829_v48 = vshrl.u32 %v19808_v30, 16  ;;  %v9832_v25 = vshll.u32 %v19808_v30, 16  ;;  %v9826_v34 = vor.u32 %v9825_v8, %v9822_v60  ;;  %v9885_v8 = vrot.slane %v9883_v49, 2 }
 0x331   : > { %17482 = vmatmul.mubr.msk.bf16.gmra.mrb[116].mxu1 %vm1213_vm3, %v2845_v0  ;;  %v19799_v0 = vld [vmem:[%s20173_s9 + $0x130] sm:$0xff]  }
 0x332   : > { %17485 = vmatprep.mubr.msk.bf16.mxu1 %vm1213_vm3, %v2847_v38  ;;  %v9784_v1 = vshrl.u32 %v19799_v0, 16  ;;  %v9787_v38 = vshll.u32 %v19799_v0, 16  ;;  %v9834_v36 = vrot.slane %v9832_v25, 3  ;;  %v9841_v0 = vshll.u32 %v19811_v37, 16 }
 0x334   : > { %18104 = vmatmul.mubr.msk.bf16.gmra.mrb[48].mxu0 %vm1213_vm3, %v9719_v46  ;;  %v9786_v56 = vrot.slane %v9784_v1, 2  ;;  %v9789_v12 = vrot.slane %v9787_v38, 3  ;;  %v25574_v46 = vld [vmem:[#allocation8_spill] sm:$0xff]  ;;  %v9843_v45 = vrot.slane %v9841_v0, 3 }
 0x335   : > { %18107 = vmatprep.mubr.msk.bf16.mxu0 %vm1213_vm3, %v9728_v22  ;;  %v4264_v40 = vrot.slane %v25574_v46, 1  ;;  %v9795_v22 = vrot.slane %v9793_v58, 2  ;;  %v19812_v38 = vld [vmem:[%s20173_s9 + $0x168] sm:$0xff]   ;;  %v19813_v58 = vld [vmem:[%s20173_s9 + $0x40] sm:$0xff]  }
 0x336   : > { %v9850_v13 = vshll.u32 %v19812_v38, 16  ;;  %v4275_v5 = vrot.slane %v19813_v58, 1 }
 0x337   : > { %v4266_v14 = vsel %vm2724_vm6, %v4264_v40, %v4265_v3  ;;  %v9799_v6 = vor.u32 %v9798_v55, %v9795_v22  ;;  %v19815_v55 = vld [vmem:[%s20173_s9 + $0x170] sm:$0xff]  }
 0x338   : > { %v9852_v59 = vrot.slane %v9850_v13, 3 }
 0x339   : > { %17486 = vmatmul.mubr.msk.bf16.gmra.mrb[120].mxu1 %vm1213_vm3, %v2849_v11  ;;  %v9790_v11 = vor.u32 %v9789_v12, %v9786_v56  ;;  %v19814_v56 = vld [vmem:[%s20173_s9 + $0x48] sm:$0xff]  }
 0x33a   : > { %17489 = vmatprep.mubr.msk.bf16.mxu1 %vm1213_vm3, %v2851_v33  ;;  %v19803_v33 = vld [vmem:[%s20173_s9 + $0x140] sm:$0xff]   ;;  %v4277_v12 = vrot.slane %v19814_v56, 1 }
 0x33b   : > { %v9802_v54 = vshrl.u32 %v19803_v33, 16  ;;  %v9805_v2 = vshll.u32 %v19803_v33, 16  ;;  %v9791_v35 = vsel %vm9477_vm7, %v9781_v61, %v9790_v11  ;;  %v9800_v24 = vsel %vm9477_vm7, %v9790_v11, %v9799_v6  ;;  %v19816_v33 = vld [vmem:[%s20173_s9 + $0x178] sm:$0xff]  }
 0x33c   : > { %18108 = vmatmul.mubr.msk.bf16.gmra.mrb[52].mxu0 %vm1213_vm3, %v9737_v16  ;;  %v9847_v61 = vshrl.u32 %v19812_v38, 16  ;;  %v4278_v22 = vsel %vm2724_vm6, %v4275_v5, %v4277_v12  ;;  %v9859_v11 = vshll.u32 %v19815_v55, 16 }
 0x33d   : > { %18111 = vmatprep.mubr.msk.bf16.mxu0 %vm1213_vm3, %v9746_v18  ;;  %v9804_v16 = vrot.slane %v9802_v54, 2  ;;  %v9807_v51 = vrot.slane %v9805_v2, 3  ;;  %v9813_v18 = vrot.slane %v9811_v41, 2  ;;  %v9865_v54 = vshrl.u32 %v19816_v33, 16 }
 0x33e   : > { %v9849_v40 = vrot.slane %v9847_v61, 2  ;;  %v9868_v2 = vshll.u32 %v19816_v33, 16  ;;  %v9861_v39 = vrot.slane %v9859_v11, 3 }
 0x340   : > { %v9870_v27 = vrot.slane %v9868_v2, 3 }
 0x341   : > { %17490 = vmatmul.mubr.msk.bf16.gmra.mrb[124].mxu1 %vm1213_vm3, %v2853_v31  ;;  %v9808_v31 = vor.u32 %v9807_v51, %v9804_v16  ;;  %v9867_v51 = vrot.slane %v9865_v54, 2 }
 0x342   : > { %17493 = vmatprep.mubr.msk.bf16.mxu1 %vm1213_vm3, %v2855_v29  ;;  %v9817_v29 = vor.u32 %v9816_v23, %v9813_v18  ;;  %v19819_v23 = vld [vmem:[%s20173_s9 + $0x180] sm:$0xff]  }
 0x343   : > { %v9809_v57 = vsel %vm9477_vm7, %v9799_v6, %v9808_v31  ;;  %v19817_v6 = vld [vmem:[%s20173_s9 + $0x50] sm:$0xff]  }
 0x344   : > { %18112 = vmatmul.mubr.msk.bf16.gmra.mrb[56].mxu0 %vm1213_vm3, %v9755_v15  ;;  %v19810_v15 = vld [vmem:[%s20173_s9 + $0x38] sm:$0xff]   ;;  %v9818_v19 = vsel %vm9477_vm7, %v9808_v31, %v9817_v29  ;;  %v4279_v20 = vrot.slane %v19817_v6, 1  ;;  %v9877_v31 = vshll.u32 %v19819_v23, 16 }
 0x345   : > { %18115 = vmatprep.mubr.msk.bf16.mxu0 %vm1213_vm3, %v9764_v43  ;;  %v4273_v32 = vrot.slane %v19810_v15, 1  ;;  %v9831_v43 = vrot.slane %v9829_v48, 2  ;;  %v9888_v15 = vrot.slane %v9886_v4, 3 }
 0x346   : > { %v9879_v62 = vrot.slane %v9877_v31, 3 }
 0x347   : > { %v9835_v1 = vor.u32 %v9834_v36, %v9831_v43  ;;  %v4276_v3 = vsel %vm2724_vm6, %v4273_v32, %v4275_v5  ;;  %v19823_v36 = vld [vmem:[%s20173_s9 + $0x190] sm:$0xff]   ;;  %v19826_v5 = vld [vmem:[%s20173_s9 + $0x78] sm:$0xff]  }
 0x349   : > { %17494 = vmatmul.mubr.msk.bf16.gmra.mrb[128].mxu1 %vm1213_vm3, %v2857_v50  ;;  %v4274_v50 = vsel %vm2724_vm6, %v4271_v26, %v4273_v32  ;;  %v9836_v46 = vsel %vm9477_vm7, %v9826_v34, %v9835_v1 }
 0x34a   : > { %17497 = vmatprep.mubr.msk.bf16.mxu1 %vm1213_vm3, %v2859_v52  ;;  %v9838_v52 = vshrl.u32 %v19811_v37, 16  ;;  %v19824_v37 = vld [vmem:[%s20173_s9 + $0x198] sm:$0xff]  }
 0x34b   : > { %v9904_v0 = vshll.u32 %v19824_v37, 16 }
 0x34c   : > { %18116 = vmatmul.mubr.msk.bf16.gmra.mrb[60].mxu0 %vm1213_vm3, %v9773_v44  ;;  %v9827_v44 = vsel %vm9477_vm7, %v9817_v29, %v9826_v34  ;;  %v9840_v53 = vrot.slane %v9838_v52, 2  ;;  %v19821_v29 = vld [vmem:[%s20173_s9 + $0x60] sm:$0xff]   ;;  %v9895_v34 = vshll.u32 %v19823_v36, 16  ;;  %v9901_v52 = vshrl.u32 %v19824_v37, 16 }
 0x34d   : > { %18119 = vmatprep.mubr.msk.bf16.mxu0 %vm1213_vm3, %v9782_v28  ;;  %v4283_v30 = vrot.slane %v19821_v29, 1  ;;  %v9906_v56 = vrot.slane %v9904_v0, 3 }
 0x34e   : > { %v9844_v28 = vor.u32 %v9843_v45, %v9840_v53  ;;  %v9897_v58 = vrot.slane %v9895_v34, 3  ;;  %v9903_v45 = vrot.slane %v9901_v52, 2 }
 0x350   : > { %v9845_v41 = vsel %vm9477_vm7, %v9835_v1, %v9844_v28  ;;  %v19825_v1 = vld [vmem:[%s20173_s9 + $0x70] sm:$0xff]  }
 0x351   : > { %17498 = vmatmul.mubr.msk.bf16.gmra.mrb[132].mxu1 %vm1213_vm3, %v2861_v17  ;;  %v9856_v17 = vshrl.u32 %v19815_v55, 16  ;;  %v4287_v38 = vrot.slane %v19825_v1, 1  ;;  %v19828_v55 = vld [vmem:[%s20173_s9 + $0x1a8] sm:$0xff]  }
 0x352   : > { %17503 = vmatprep.mubr.msk.bf16.mxu1 %vm1213_vm3, %v4266_v14  ;;  %v9853_v14 = vor.u32 %v9852_v59, %v9849_v40  ;;  %v19827_v59 = vld [vmem:[%s20173_s9 + $0x1a0] sm:$0xff]   ;;  %v9922_v11 = vshll.u32 %v19828_v55, 16 }
 0x353   : > { %v9858_v47 = vrot.slane %v9856_v17, 2  ;;  %v9919_v17 = vshrl.u32 %v19828_v55, 16 }
 0x354   : > { %18120 = vmatmul.mubr.msk.bf16.gmra.mrb[64].mxu0 %vm1213_vm3, %v9791_v35  ;;  %v4281_v35 = vrot.slane %v19818_v42, 1  ;;  %v9854_v16 = vsel %vm9477_vm7, %v9844_v28, %v9853_v14  ;;  %v9913_v28 = vshll.u32 %v19827_v59, 16  ;;  %v9924_v42 = vrot.slane %v9922_v11, 3 }
 0x355   : > { %18123 = vmatprep.mubr.msk.bf16.mxu0 %vm1213_vm3, %v9800_v24  ;;  %v9862_v24 = vor.u32 %v9861_v39, %v9858_v47  ;;  %v9921_v39 = vrot.slane %v9919_v17, 2 }
 0x356   : > { %v4282_v18 = vsel %vm2724_vm6, %v4279_v20, %v4281_v35  ;;  %v4284_v32 = vsel %vm2724_vm6, %v4281_v35, %v4283_v30  ;;  %v9915_v6 = vrot.slane %v9913_v28, 3 }
 0x357   : > { %v9863_v48 = vsel %vm9477_vm7, %v9853_v14, %v9862_v24  ;;  %v19829_v14 = vld [vmem:[%s20173_s9 + $0x80] sm:$0xff]  }
 0x358   : > { %v4291_v33 = vrot.slane %v19829_v14, 1 }
 0x359   : > { %17504 = vmatmul.mubr.msk.bf16.vlgmr.msra.gmra.mrb[0].mxu1 %vm1213_vm3, %v4268_v21  ;;  %v9874_v21 = vshrl.u32 %v19819_v23, 16  ;;  %v19832_v23 = vld [vmem:[%s20173_s9 + $0x1b8] sm:$0xff]  }
 0x35a   : > { %18330 = vmatpush3.bf16.msra.mxu1 %v20156_v7  ;;  %17507 = vmatprep.mubr.msk.bf16.mxu1 %vm1213_vm3, %v4270_v10  ;;  %v4272_v7 = vsel %vm2724_vm6, %v4269_v9, %v4271_v26  ;;  %v4280_v9 = vsel %vm2724_vm6, %v4277_v12, %v4279_v20  ;;  %v9871_v10 = vor.u32 %v9870_v27, %v9867_v51  ;;  %v19822_v26 = vld [vmem:[%s20173_s9 + $0x68] sm:$0xff]   ;;  %v19831_v27 = vld [vmem:[%s20173_s9 + $0x1b0] sm:$0xff]   ;;  %v9940_v31 = vshll.u32 %v19832_v23, 16 }
 0x35b   : > { %v9876_v25 = vrot.slane %v9874_v21, 2  ;;  %v19830_v20 = vld [vmem:[%s20173_s9 + $0x88] sm:$0xff]   ;;  %v9937_v21 = vshrl.u32 %v19832_v23, 16 }
 0x35c   : > { %18124 = vmatmul.mubr.msk.bf16.gmra.mrb[68].mxu0 %vm1213_vm3, %v9809_v57  ;;  %v4285_v57 = vrot.slane %v19822_v26, 1  ;;  %v9872_v60 = vsel %vm9477_vm7, %v9862_v24, %v9871_v10  ;;  %v9931_v24 = vshll.u32 %v19831_v27, 16  ;;  %v9942_v26 = vrot.slane %v9940_v31, 3 }
 0x35d   : > { %18127 = vmatprep.mubr.msk.bf16.mxu0 %vm1213_vm3, %v9818_v19  ;;  %v9880_v19 = vor.u32 %v9879_v62, %v9876_v25  ;;  %v9939_v62 = vrot.slane %v9937_v21, 2 }
 0x35e   : > { %v4286_v43 = vsel %vm2724_vm6, %v4283_v30, %v4285_v57  ;;  %v4288_v12 = vsel %vm2724_vm6, %v4285_v57, %v4287_v38  ;;  %v9933_v29 = vrot.slane %v9931_v24, 3  ;;  %v19834_v30 = vld [vmem:[%s20173_s9 + $0x98] sm:$0xff]  }
 0x35f   : > { %v9881_v61 = vsel %vm9477_vm7, %v9871_v10, %v9880_v19  ;;  %v19833_v10 = vld [vmem:[%s20173_s9 + $0x90] sm:$0xff]  }
 0x360   : > { %v4295_v63 = vrot.slane %v19833_v10, 1 }
 0x361   : > { %17508 = vmatmul.mubr.msk.bf16.gmra.mrb[4].mxu1 %vm1213_vm3, %v4272_v7  ;;  %v9892_v7 = vshrl.u32 %v19823_v36, 16  ;;  %v19836_v36 = vld [vmem:[%s20173_s9 + $0x1c8] sm:$0xff]  }
 0x362   : > { %17511 = vmatprep.mubr.msk.bf16.mxu1 %vm1213_vm3, %v4274_v50  ;;  %v9889_v50 = vor.u32 %v9888_v15, %v9885_v8  ;;  %v19835_v15 = vld [vmem:[%s20173_s9 + $0x1c0] sm:$0xff]   ;;  %v9958_v34 = vshll.u32 %v19836_v36, 16 }
 0x363   : > { %v9894_v13 = vrot.slane %v9892_v7, 2  ;;  %v9955_v7 = vshrl.u32 %v19836_v36, 16 }
 0x364   : > { %18128 = vmatmul.mubr.msk.bf16.gmra.mrb[72].mxu0 %vm1213_vm3, %v9827_v44  ;;  %v4289_v44 = vrot.slane %v19826_v5, 1  ;;  %v9890_v53 = vsel %vm9477_vm7, %v9880_v19, %v9889_v50  ;;  %v9949_v19 = vshll.u32 %v19835_v15, 16  ;;  %v9960_v5 = vrot.slane %v9958_v34, 3 }
 0x365   : > { %18131 = vmatprep.mubr.msk.bf16.mxu0 %vm1213_vm3, %v9836_v46  ;;  %v9898_v46 = vor.u32 %v9897_v58, %v9894_v13  ;;  %v9957_v58 = vrot.slane %v9955_v7, 2 }
 0x366   : > { %v4290_v40 = vsel %vm2724_vm6, %v4287_v38, %v4289_v44  ;;  %v4292_v35 = vsel %vm2724_vm6, %v4289_v44, %v4291_v33  ;;  %v9951_v1 = vrot.slane %v9949_v19, 3  ;;  %v19838_v38 = vld [vmem:[%s20173_s9 + $0xa8] sm:$0xff]  }
 0x367   : > { %v9899_v54 = vsel %vm9477_vm7, %v9889_v50, %v9898_v46  ;;  %v19837_v50 = vld [vmem:[%s20173_s9 + $0xa0] sm:$0xff]  }
 0x368   : > { %v4299_v37 = vrot.slane %v19837_v50, 1 }
 0x369   : > { %17512 = vmatmul.mubr.msk.bf16.gmra.mrb[8].mxu1 %vm1213_vm3, %v4276_v3  ;;  %v9910_v3 = vshrl.u32 %v19827_v59, 16  ;;  %v19840_v59 = vld [vmem:[%s20173_s9 + $0x1d8] sm:$0xff]  }
 0x36a   : > { %17515 = vmatprep.mubr.msk.bf16.mxu1 %vm1213_vm3, %v4278_v22  ;;  %v9907_v22 = vor.u32 %v9906_v56, %v9903_v45  ;;  %v19839_v56 = vld [vmem:[%s20173_s9 + $0x1d0] sm:$0xff]   ;;  %v9976_v28 = vshll.u32 %v19840_v59, 16 }
 0x36b   : > { %v9912_v2 = vrot.slane %v9910_v3, 2  ;;  %v9973_v3 = vshrl.u32 %v19840_v59, 16 }
 0x36c   : > { %18132 = vmatmul.mubr.msk.bf16.gmra.mrb[76].mxu0 %vm1213_vm3, %v9845_v41  ;;  %v4293_v41 = vrot.slane %v19830_v20, 1  ;;  %v9908_v47 = vsel %vm9477_vm7, %v9898_v46, %v9907_v22  ;;  %v9967_v46 = vshll.u32 %v19839_v56, 16  ;;  %v9978_v20 = vrot.slane %v9976_v28, 3 }
 0x36d   : > { %18135 = vmatprep.mubr.msk.bf16.mxu0 %vm1213_vm3, %v9854_v16  ;;  %v9916_v16 = vor.u32 %v9915_v6, %v9912_v2  ;;  %v9975_v6 = vrot.slane %v9973_v3, 2 }
 0x36e   : > { %v4294_v51 = vsel %vm2724_vm6, %v4291_v33, %v4293_v41  ;;  %v4296_v57 = vsel %vm2724_vm6, %v4293_v41, %v4295_v63  ;;  %v9969_v14 = vrot.slane %v9967_v46, 3  ;;  %v19842_v33 = vld [vmem:[%s20173_s9 + $0xb8] sm:$0xff]  }
 0x36f   : > { %v9917_v49 = vsel %vm9477_vm7, %v9907_v22, %v9916_v16  ;;  %v19841_v22 = vld [vmem:[%s20173_s9 + $0xb0] sm:$0xff]  }
 0x370   : > { %v4303_v55 = vrot.slane %v19841_v22, 1 }
 0x371   : > { %17516 = vmatmul.mubr.msk.bf16.gmra.mrb[12].mxu1 %vm1213_vm3, %v4280_v9  ;;  %v9928_v9 = vshrl.u32 %v19831_v27, 16  ;;  %v19844_v27 = vld [vmem:[%s20173_s9 + $0x1e8] sm:$0xff]  }
 0x372   : > { %17519 = vmatprep.mubr.msk.bf16.mxu1 %vm1213_vm3, %v4282_v18  ;;  %v9925_v18 = vor.u32 %v9924_v42, %v9921_v39  ;;  %v19843_v42 = vld [vmem:[%s20173_s9 + $0x1e0] sm:$0xff]   ;;  %v9994_v24 = vshll.u32 %v19844_v27, 16 }
 0x373   : > { %v9930_v4 = vrot.slane %v9928_v9, 2  ;;  %v9991_v9 = vshrl.u32 %v19844_v27, 16 }
 0x374   : > { %18136 = vmatmul.mubr.msk.bf16.gmra.mrb[80].mxu0 %vm1213_vm3, %v9863_v48  ;;  %v4297_v48 = vrot.slane %v19834_v30, 1  ;;  %v9926_v25 = vsel %vm9477_vm7, %v9916_v16, %v9925_v18  ;;  %v9985_v16 = vshll.u32 %v19843_v42, 16  ;;  %v9996_v30 = vrot.slane %v9994_v24, 3 }
 0x375   : > { %18139 = vmatprep.mubr.msk.bf16.mxu0 %vm1213_vm3, %v9872_v60  ;;  %v9934_v60 = vor.u32 %v9933_v29, %v9930_v4  ;;  %v9993_v29 = vrot.slane %v9991_v9, 2 }
 0x376   : > { %v4298_v8 = vsel %vm2724_vm6, %v4295_v63, %v4297_v48  ;;  %v4300_v44 = vsel %vm2724_vm6, %v4297_v48, %v4299_v37  ;;  %v9987_v10 = vrot.slane %v9985_v16, 3  ;;  %v19846_v63 = vld [vmem:[%s20173_s9 + $0xc8] sm:$0xff]  }
 0x377   : > { %v9935_v52 = vsel %vm9477_vm7, %v9925_v18, %v9934_v60  ;;  %v19845_v18 = vld [vmem:[%s20173_s9 + $0xc0] sm:$0xff]  }
 0x378   : > { %v4307_v23 = vrot.slane %v19845_v18, 1 }
 0x379   : > { %17520 = vmatmul.mubr.msk.bf16.gmra.mrb[16].mxu1 %vm1213_vm3, %v4284_v32  ;;  %v9946_v32 = vshrl.u32 %v19835_v15, 16  ;;  %v19848_v15 = vld [vmem:[%s20173_s9 + $0x1f8] sm:$0xff]  }
 0x37a   : > { %17523 = vmatprep.mubr.msk.bf16.mxu1 %vm1213_vm3, %v4286_v43  ;;  %v9943_v43 = vor.u32 %v9942_v26, %v9939_v62  ;;  %v19847_v26 = vld [vmem:[%s20173_s9 + $0x1f0] sm:$0xff]   ;;  %v10012_v19 = vshll.u32 %v19848_v15, 16 }
 0x37b   : > { %v9948_v0 = vrot.slane %v9946_v32, 2  ;;  %v10009_v32 = vshrl.u32 %v19848_v15, 16 }
 0x37c   : > { %18140 = vmatmul.mubr.msk.bf16.gmra.mrb[84].mxu0 %vm1213_vm3, %v9881_v61  ;;  %v4301_v61 = vrot.slane %v19838_v38, 1  ;;  %v9944_v13 = vsel %vm9477_vm7, %v9934_v60, %v9943_v43  ;;  %v10003_v60 = vshll.u32 %v19847_v26, 16  ;;  %v10014_v38 = vrot.slane %v10012_v19, 3 }
 0x37d   : > { %18143 = vmatprep.mubr.msk.bf16.mxu0 %vm1213_vm3, %v9890_v53  ;;  %v9952_v53 = vor.u32 %v9951_v1, %v9948_v0  ;;  %v10011_v1 = vrot.slane %v10009_v32, 2 }
 0x37e   : > { %v4302_v45 = vsel %vm2724_vm6, %v4299_v37, %v4301_v61  ;;  %v4304_v41 = vsel %vm2724_vm6, %v4301_v61, %v4303_v55  ;;  %v10005_v50 = vrot.slane %v10003_v60, 3  ;;  %v19850_v37 = vld [vmem:[%s20173_s9 + $0xd8] sm:$0xff]  }
 0x37f   : > { %v9953_v17 = vsel %vm9477_vm7, %v9943_v43, %v9952_v53  ;;  %v19849_v43 = vld [vmem:[%s20173_s9 + $0xd0] sm:$0xff]  }
 0x380   : > { %v4311_v36 = vrot.slane %v19849_v43, 1 }
 0x381   : > { %17524 = vmatmul.mubr.msk.bf16.gmra.mrb[20].mxu1 %vm1213_vm3, %v4288_v12  ;;  %v9964_v12 = vshrl.u32 %v19839_v56, 16  ;;  %v19852_v56 = vld [vmem:[%s20173_s9 + $0x208] sm:$0xff]  }
 0x382   : > { %17527 = vmatprep.mubr.msk.bf16.mxu1 %vm1213_vm3, %v4290_v40  ;;  %v9961_v40 = vor.u32 %v9960_v5, %v9957_v58  ;;  %v19851_v5 = vld [vmem:[%s20173_s9 + $0x200] sm:$0xff]   ;;  %v10030_v46 = vshll.u32 %v19852_v56, 16 }
 0x383   : > { %v9966_v11 = vrot.slane %v9964_v12, 2  ;;  %v10027_v12 = vshrl.u32 %v19852_v56, 16 }
 0x384   : > { %18144 = vmatmul.mubr.msk.bf16.gmra.mrb[88].mxu0 %vm1213_vm3, %v9899_v54  ;;  %v4305_v54 = vrot.slane %v19842_v33, 1  ;;  %v9962_v2 = vsel %vm9477_vm7, %v9952_v53, %v9961_v40  ;;  %v10021_v53 = vshll.u32 %v19851_v5, 16  ;;  %v10032_v33 = vrot.slane %v10030_v46, 3 }
 0x385   : > { %18147 = vmatprep.mubr.msk.bf16.mxu0 %vm1213_vm3, %v9908_v47  ;;  %v9970_v47 = vor.u32 %v9969_v14, %v9966_v11  ;;  %v10029_v14 = vrot.slane %v10027_v12, 2 }
 0x386   : > { %v4306_v39 = vsel %vm2724_vm6, %v4303_v55, %v4305_v54  ;;  %v4308_v48 = vsel %vm2724_vm6, %v4305_v54, %v4307_v23  ;;  %v10023_v22 = vrot.slane %v10021_v53, 3  ;;  %v19854_v55 = vld [vmem:[%s20173_s9 + $0xe8] sm:$0xff]  }
 0x387   : > { %v9971_v21 = vsel %vm9477_vm7, %v9961_v40, %v9970_v47  ;;  %v19853_v40 = vld [vmem:[%s20173_s9 + $0xe0] sm:$0xff]  }
 0x388   : > { %v4315_v59 = vrot.slane %v19853_v40, 1 }
 0x389   : > { %17528 = vmatmul.mubr.msk.bf16.gmra.mrb[24].mxu1 %vm1213_vm3, %v4292_v35  ;;  %v9982_v35 = vshrl.u32 %v19843_v42, 16  ;;  %v19856_v42 = vld [vmem:[%s20173_s9 + $0x218] sm:$0xff]  }
 0x38a   : > { %17531 = vmatprep.mubr.msk.bf16.mxu1 %vm1213_vm3, %v4294_v51  ;;  %v9979_v51 = vor.u32 %v9978_v20, %v9975_v6  ;;  %v19855_v20 = vld [vmem:[%s20173_s9 + $0x210] sm:$0xff]   ;;  %v10048_v16 = vshll.u32 %v19856_v42, 16 }
 0x38b   : > { %v9984_v31 = vrot.slane %v9982_v35, 2  ;;  %v10045_v35 = vshrl.u32 %v19856_v42, 16 }
 0x38c   : > { %18148 = vmatmul.mubr.msk.bf16.gmra.mrb[92].mxu0 %vm1213_vm3, %v9917_v49  ;;  %v4309_v49 = vrot.slane %v19846_v63, 1  ;;  %v9980_v4 = vsel %vm9477_vm7, %v9970_v47, %v9979_v51  ;;  %v10039_v47 = vshll.u32 %v19855_v20, 16  ;;  %v10050_v63 = vrot.slane %v10048_v16, 3  ;;  %v21881_v16 = vld [vmem:[%s20173_s9 + $0x128] sm:$0xff]  }
 0x38d   : > { %18151 = vmatprep.mubr.msk.bf16.mxu0 %vm1213_vm3, %v9926_v25  ;;  %v9988_v25 = vor.u32 %v9987_v10, %v9984_v31  ;;  %v10047_v10 = vrot.slane %v10045_v35, 2 }
 0x38e   : > { %v4310_v62 = vsel %vm2724_vm6, %v4307_v23, %v4309_v49  ;;  %v4312_v61 = vsel %vm2724_vm6, %v4309_v49, %v4311_v36  ;;  %v10041_v18 = vrot.slane %v10039_v47, 3  ;;  %v19858_v23 = vld [vmem:[%s20173_s9 + $0xf8] sm:$0xff]  }
 0x38f   : > { %v9989_v7 = vsel %vm9477_vm7, %v9979_v51, %v9988_v25  ;;  %v19857_v51 = vld [vmem:[%s20173_s9 + $0xf0] sm:$0xff]  }
 0x390   : > { %v4319_v27 = vrot.slane %v19857_v51, 1  ;;  %v4333_v51 = vrot.slane %v21881_v16, 1 }
 0x391   : > { %17532 = vmatmul.mubr.msk.bf16.gmra.mrb[28].mxu1 %vm1213_vm3, %v4296_v57  ;;  %v10000_v57 = vshrl.u32 %v19847_v26, 16  ;;  %v19860_v26 = vld [vmem:[%s20173_s9 + $0x228] sm:$0xff]  }
 0x392   : > { %17535 = vmatprep.mubr.msk.bf16.mxu1 %vm1213_vm3, %v4298_v8  ;;  %v9997_v8 = vor.u32 %v9996_v30, %v9993_v29  ;;  %v19859_v30 = vld [vmem:[%s20173_s9 + $0x220] sm:$0xff]   ;;  %v10066_v60 = vshll.u32 %v19860_v26, 16 }
 0x393   : > { %v10002_v34 = vrot.slane %v10000_v57, 2  ;;  %v10063_v57 = vshrl.u32 %v19860_v26, 16  ;;  %v19873_v26 = vld [vmem:[%s20173_s9 + $0x30] sm:$0xff]  }
 0x394   : > { %18152 = vmatmul.mubr.msk.bf16.gmra.mrb[96].mxu0 %vm1213_vm3, %v9935_v52  ;;  %v4313_v52 = vrot.slane %v19850_v37, 1  ;;  %v9998_v0 = vsel %vm9477_vm7, %v9988_v25, %v9997_v8  ;;  %v10057_v25 = vshll.u32 %v19859_v30, 16  ;;  %v10068_v37 = vrot.slane %v10066_v60, 3 }
 0x395   : > { %18155 = vmatprep.mubr.msk.bf16.mxu0 %vm1213_vm3, %v9944_v13  ;;  %v10006_v13 = vor.u32 %v10005_v50, %v10002_v34  ;;  %v10065_v50 = vrot.slane %v10063_v57, 2  ;;  %v11028_v57 = vrot.slane %v19873_v26, 3 }
 0x396   : > { %v4314_v58 = vsel %vm2724_vm6, %v4311_v36, %v4313_v52  ;;  %v4316_v54 = vsel %vm2724_vm6, %v4313_v52, %v4315_v59  ;;  %v10059_v43 = vrot.slane %v10057_v25, 3  ;;  %v19862_v36 = vld [vmem:[%s20173_s9 + $0x108] sm:$0xff]  }
 0x397   : > { %v10007_v3 = vsel %vm9477_vm7, %v9997_v8, %v10006_v13  ;;  %v19861_v8 = vld [vmem:[%s20173_s9 + $0x100] sm:$0xff]  }
 0x398   : > { %v4323_v15 = vrot.slane %v19861_v8, 1  ;;  %v19874_v8 = vld [vmem:[%s20173_s9 + $0x38] sm:$0xff]  }
 0x399   : > { %17536 = vmatmul.mubr.msk.bf16.gmra.mrb[32].mxu1 %vm1213_vm3, %v4300_v44  ;;  %v10018_v44 = vshrl.u32 %v19851_v5, 16  ;;  %v19864_v5 = vld [vmem:[%s20173_s9 + $0x238] sm:$0xff]  }
 0x39a   : > { %17539 = vmatprep.mubr.msk.bf16.mxu1 %vm1213_vm3, %v4302_v45  ;;  %v10015_v45 = vor.u32 %v10014_v38, %v10011_v1  ;;  %v19863_v38 = vld [vmem:[%s20173_s9 + $0x230] sm:$0xff]   ;;  %v10084_v53 = vshll.u32 %v19864_v5, 16 }
 0x39b   : > { %v10020_v28 = vrot.slane %v10018_v44, 2  ;;  %v10081_v44 = vshrl.u32 %v19864_v5, 16  ;;  %v21935_v5 = vld [vmem:[%s20173_s9 + $0x158] sm:$0xff]  }
 0x39c   : > { %18156 = vmatmul.mubr.msk.bf16.gmra.mrb[100].mxu0 %vm1213_vm3, %v9953_v17  ;;  %v4317_v17 = vrot.slane %v19854_v55, 1  ;;  %v10016_v11 = vsel %vm9477_vm7, %v10006_v13, %v10015_v45  ;;  %v10075_v13 = vshll.u32 %v19863_v38, 16 }
 0x39d   : > { %18159 = vmatprep.mubr.msk.bf16.mxu0 %vm1213_vm3, %v9962_v2  ;;  %v10024_v2 = vor.u32 %v10023_v22, %v10020_v28  ;;  %v19676_v28 = vld [vmem:[%s20173_s9 + $0x240] ss:$0 sps:$4 sm:$0x77]   ;;  %v10083_v55 = vrot.slane %v10081_v44, 2  ;;  %v4345_v44 = vrot.slane %v21935_v5, 1 }
 0x39e   : > { %v4318_v6 = vsel %vm2724_vm6, %v4315_v59, %v4317_v17  ;;  %v4320_v49 = vsel %vm2724_vm6, %v4317_v17, %v4319_v27  ;;  %v10077_v40 = vrot.slane %v10075_v13, 3  ;;  %v19866_v59 = vld [vmem:[%s20173_s9 + $0x118] sm:$0xff]   ;;  %v10086_v17 = vrot.slane %v10084_v53, 3 }
 0x39f   : > { %v10025_v9 = vsel %vm9477_vm7, %v10015_v45, %v10024_v2  ;;  %v19865_v45 = vld [vmem:[%s20173_s9 + $0x110] sm:$0xff]  }
 0x3a0   : > { %v4327_v56 = vrot.slane %v19865_v45, 1 }
 0x3a1   : > { %17540 = vmatmul.mubr.msk.bf16.gmra.mrb[36].mxu1 %vm1213_vm3, %v4304_v41  ;;  %v10036_v41 = vshrl.u32 %v19855_v20, 16  ;;  %v11018_v20 = vld [vmem:[%s20173_s9 + $0x20] sm:$0x8] }
 0x3a2   : > { %17543 = vmatprep.mubr.msk.bf16.mxu1 %vm1213_vm3, %v4306_v39  ;;  %v10033_v39 = vor.u32 %v10032_v33, %v10029_v14 }
 0x3a3   : > { %v10038_v24 = vrot.slane %v10036_v41, 2  ;;  %v19867_v41 = vld [vmem:[%s20173_s9 + $0x120] sm:$0xff]  }
 0x3a4   : > { %18160 = vmatmul.mubr.msk.bf16.gmra.mrb[104].mxu0 %vm1213_vm3, %v9971_v21  ;;  %v4321_v21 = vrot.slane %v19858_v23, 1  ;;  %v10034_v31 = vsel %vm9477_vm7, %v10024_v2, %v10033_v39  ;;  %v10093_v2 = vshll.u32 %v19676_v28, 16  ;;  %v4331_v47 = vrot.slane %v19867_v41, 1  ;;  %v21966_v41 = vld [vmem:[%s20173_s9 + $0x170] sm:$0xff]  }
 0x3a5   : > { %18163 = vmatprep.mubr.msk.bf16.mxu0 %vm1213_vm3, %v9980_v4  ;;  %v10042_v4 = vor.u32 %v10041_v18, %v10038_v24 }
 0x3a6   : > { %v4322_v29 = vsel %vm2724_vm6, %v4319_v27, %v4321_v21  ;;  %v4324_v52 = vsel %vm2724_vm6, %v4321_v21, %v4323_v15  ;;  %v10095_v35 = vrot.slane %v10093_v2, 3  ;;  %v4334_v21 = vsel %vm2724_vm6, %v4331_v47, %v4333_v51 }
 0x3a7   : > { %v10043_v32 = vsel %vm9477_vm7, %v10033_v39, %v10042_v4 }
 0x3a9   : > { %17544 = vmatmul.mubr.msk.bf16.gmra.mrb[40].mxu1 %vm1213_vm3, %v4308_v48  ;;  %v10054_v48 = vshrl.u32 %v19859_v30, 16  ;;  %v21899_v30 = vld [vmem:[%s20173_s9 + $0x138] sm:$0xff]  }
 0x3aa   : > { %17547 = vmatprep.mubr.msk.bf16.mxu1 %vm1213_vm3, %v4310_v62  ;;  %v10051_v62 = vor.u32 %v10050_v63, %v10047_v10  ;;  %v19870_v10 = vld [vmem:[%s20173_s9 + $0x28] sm:$0xff]  }
 0x3ab   : > { %v10056_v19 = vrot.slane %v10054_v48, 2  ;;  %v11026_v63 = vrot.slane %v19870_v10, 3  ;;  %v4337_v48 = vrot.slane %v21899_v30, 1 }
 0x3ac   : > { %18164 = vmatmul.mubr.msk.bf16.gmra.mrb[108].mxu0 %vm1213_vm3, %v9989_v7  ;;  %v4325_v7 = vrot.slane %v19862_v36, 1  ;;  %v10052_v34 = vsel %vm9477_vm7, %v10042_v4, %v10051_v62  ;;  %v21917_v36 = vld [vmem:[%s20173_s9 + $0x148] sm:$0xff]  }
 0x3ad   : > { %18167 = vmatprep.mubr.msk.bf16.mxu0 %vm1213_vm3, %v9998_v0  ;;  %v10060_v0 = vor.u32 %v10059_v43, %v10056_v19  ;;  %v11029_v43 = vsel %vm11024_vm8, %v11026_v63, %v11028_v57 }
 0x3ae   : > { %v4326_v1 = vsel %vm2724_vm6, %v4323_v15, %v4325_v7  ;;  %v11030_v15 = vrot.slane %v19874_v8, 3 }
 0x3af   : > { %v10061_v12 = vsel %vm9477_vm7, %v10051_v62, %v10060_v0 }
 0x3b1   : > { %17548 = vmatmul.mubr.msk.bf16.gmra.mrb[44].mxu1 %vm1213_vm3, %v4312_v61  ;;  %v10072_v61 = vshrl.u32 %v19863_v38, 16 }
 0x3b2   : > { %17551 = vmatprep.mubr.msk.bf16.mxu1 %vm1213_vm3, %v4314_v58  ;;  %v10069_v58 = vor.u32 %v10068_v37, %v10065_v50  ;;  %v19877_v37 = vld [vmem:[%s20173_s9 + $0x40] sm:$0xff]  }
 0x3b3   : > { %v10074_v46 = vrot.slane %v10072_v61, 2  ;;  %v21930_v61 = vld [vmem:[%s20173_s9 + $0x150] sm:$0xff]  }
 0x3b4   : > { %18168 = vmatmul.mubr.msk.bf16.gmra.mrb[112].mxu0 %vm1213_vm3, %v10007_v3  ;;  %v4329_v3 = vrot.slane %v19866_v59, 1  ;;  %v10070_v22 = vsel %vm9477_vm7, %v10060_v0, %v10069_v58  ;;  %v4343_v13 = vrot.slane %v21930_v61, 1 }
 0x3b5   : > { %18171 = vmatprep.mubr.msk.bf16.mxu0 %vm1213_vm3, %v10016_v11  ;;  %v4328_v11 = vsel %vm2724_vm6, %v4325_v7, %v4327_v56  ;;  %v10078_v14 = vor.u32 %v10077_v40, %v10074_v46  ;;  %v4341_v7 = vrot.slane %v21917_v36, 1  ;;  %v19882_v40 = vld [vmem:[%s20173_s9 + $0x58] sm:$0xff]  }
 0x3b6   : > { %v4330_v33 = vsel %vm2724_vm6, %v4327_v56, %v4329_v3  ;;  %v4332_v18 = vsel %vm2724_vm6, %v4329_v3, %v4331_v47  ;;  %v19881_v56 = vld [vmem:[%s20173_s9 + $0x50] sm:$0xff]   ;;  %v4346_v46 = vsel %vm2724_vm6, %v4343_v13, %v4345_v44  ;;  %v11038_v59 = vrot.slane %v19882_v40, 3  ;;  %v21948_v3 = vld [vmem:[%s20173_s9 + $0x160] sm:$0xff]  }
 0x3b7   : > { %v10079_v39 = vsel %vm9477_vm7, %v10069_v58, %v10078_v14  ;;  %v4344_v45 = vsel %vm2724_vm6, %v4341_v7, %v4343_v13  ;;  %v4351_v47 = vrot.slane %v21966_v41, 1  ;;  %v19901_v40 = vld [vmem:[%s20173_s9 + $0xa0] sm:$0xff]  }
 0x3b9   : > { %17552 = vmatmul.mubr.msk.bf16.gmra.mrb[48].mxu1 %vm1213_vm3, %v4316_v54  ;;  %v10090_v54 = vshrl.u32 %v19676_v28, 16  ;;  %v4347_v28 = vrot.slane %v21948_v3, 1 }
 0x3ba   : > { %17555 = vmatprep.mubr.msk.bf16.mxu1 %vm1213_vm3, %v4318_v6  ;;  %v10087_v6 = vor.u32 %v10086_v17, %v10083_v55  ;;  %v21953_v55 = vld [vmem:[%s20173_s9 + $0x168] sm:$0xff]  }
 0x3bb   : > { %v10092_v42 = vrot.slane %v10090_v54, 2  ;;  %v4349_v17 = vrot.slane %v21953_v55, 1 }
 0x3bc   : > { %18172 = vmatmul.mubr.msk.bf16.gmra.mrb[116].mxu0 %vm1213_vm3, %v10025_v9  ;;  %v10088_v27 = vsel %vm9477_vm7, %v10078_v14, %v10087_v6  ;;  %v19869_v9 = vld [vmem:[%s20173_s9 + $0x24] sm:$0xf]  ;;  %v4348_v14 = vsel %vm2724_vm6, %v4345_v44, %v4347_v28 }
 0x3bd   : > { %18175 = vmatprep.mubr.msk.bf16.mxu0 %vm1213_vm3, %v10034_v31  ;;  %v15937_v24 = vcombine.low %v11018_v20, %v19869_v9  ;;  %v10096_v23 = vor.u32 %v10095_v35, %v10092_v42  ;;  %v4350_v2 = vsel %vm2724_vm6, %v4347_v28, %v4349_v17  ;;  %v21971_v42 = vld [vmem:[%s20173_s9 + $0x178] sm:$0xff]   ;;  %v19889_v9 = vld [vmem:[%s20173_s9 + $0x70] sm:$0xff]  }
 0x3be   : > { %v4353_v35 = vrot.slane %v21971_v42, 1 }
 0x3bf   : > { %v11025_v31 = vrot.slane %v15937_v24, 3  ;;  %v11044_v24 = vrot.slane %v19889_v9, 3  ;;  %v22056_v9 = vld [vmem:[%s20173_s9 + $0x1c0] sm:$0xff]  }
 0x3c1   : > { %17556 = vmatmul.mubr.msk.bf16.gmra.mrb[52].mxu1 %vm1213_vm3, %v4320_v49  ;;  %v21894_v49 = vld [vmem:[%s20173_s9 + $0x130] sm:$0xff]   ;;  %v11027_v25 = vsel %vm11024_vm8, %v11025_v31, %v11026_v63  ;;  %v21984_v31 = vld [vmem:[%s20173_s9 + $0x180] sm:$0xff]  }
 0x3c2   : > { %17559 = vmatprep.mubr.msk.bf16.mxu1 %vm1213_vm3, %v4322_v29  ;;  %v4335_v4 = vrot.slane %v21894_v49, 1  ;;  %v10097_v29 = vsel %vm9477_vm7, %v10087_v6, %v10096_v23  ;;  %v19886_v6 = vld [vmem:[%s20173_s9 + $0x68] sm:$0xff]   ;;  %v19890_v23 = vld [vmem:[%s20173_s9 + $0x78] sm:$0xff]   ;;  %v4355_v10 = vrot.slane %v21984_v31, 1 }
 0x3c3   : > { %v11042_v20 = vrot.slane %v19886_v6, 3 }
 0x3c4   : > { %18176 = vmatmul.mubr.msk.bf16.gmra.mrb[120].mxu0 %vm1213_vm3, %v10043_v32  ;;  %v4336_v62 = vsel %vm2724_vm6, %v4333_v51, %v4335_v4  ;;  %v4338_v60 = vsel %vm2724_vm6, %v4335_v4, %v4337_v48  ;;  %v21912_v32 = vld [vmem:[%s20173_s9 + $0x140] sm:$0xff]   ;;  %v21989_v4 = vld [vmem:[%s20173_s9 + $0x188] sm:$0xff]  }
 0x3c5   : > { %18179 = vmatprep.mubr.msk.bf16.mxu0 %vm1213_vm3, %v10052_v34  ;;  %v4339_v19 = vrot.slane %v21912_v32, 1  ;;  %v11031_v34 = vsel %vm11024_vm8, %v11028_v57, %v11030_v15  ;;  %v11045_v63 = vsel %vm11024_vm8, %v11042_v20, %v11044_v24 }
 0x3c7   : > { %v4340_v50 = vsel %vm2724_vm6, %v4337_v48, %v4339_v19  ;;  %v4342_v0 = vsel %vm2724_vm6, %v4339_v19, %v4341_v7  ;;  %v22007_v7 = vld [vmem:[%s20173_s9 + $0x198] sm:$0xff]  }
 0x3c9   : > { %17560 = vmatmul.mubr.msk.bf16.gmra.mrb[56].mxu1 %vm1213_vm3, %v4324_v52  ;;  %v11032_v52 = vrot.slane %v19877_v37, 3 }
 0x3ca   : > { %17563 = vmatprep.mubr.msk.bf16.mxu1 %vm1213_vm3, %v4326_v1  ;;  %v19878_v1 = vld [vmem:[%s20173_s9 + $0x48] sm:$0xff]  }
 0x3cb   : > { %v11034_v38 = vrot.slane %v19878_v1, 3  ;;  %v11033_v58 = vsel %vm11024_vm8, %v11030_v15, %v11032_v52  ;;  %v22002_v15 = vld [vmem:[%s20173_s9 + $0x190] sm:$0xff]  }
 0x3cc   : > { %18180 = vmatmul.mubr.msk.bf16.gmra.mrb[124].mxu0 %vm1213_vm3, %v10061_v12  ;;  %v11036_v12 = vrot.slane %v19881_v56, 3  ;;  %v4359_v19 = vrot.slane %v22002_v15, 1 }
 0x3cd   : > { %18183 = vmatprep.mubr.msk.bf16.mxu0 %vm1213_vm3, %v10070_v22  ;;  %v11035_v53 = vsel %vm11024_vm8, %v11032_v52, %v11034_v38  ;;  %v19897_v52 = vld [vmem:[%s20173_s9 + $0x90] sm:$0xff]  }
 0x3ce   : > { %v11037_v22 = vsel %vm11024_vm8, %v11034_v38, %v11036_v12  ;;  %v19898_v38 = vld [vmem:[%s20173_s9 + $0x98] sm:$0xff]  }
 0x3cf   : > { %v11054_v13 = vrot.slane %v19898_v38, 3  ;;  %v19913_v38 = vld [vmem:[%s20173_s9 + $0xd0] sm:$0xff]  }
 0x3d1   : > { %17564 = vmatmul.mubr.msk.bf16.gmra.mrb[60].mxu1 %vm1213_vm3, %v4328_v11  ;;  %v11039_v11 = vsel %vm11024_vm8, %v11036_v12, %v11038_v59 }
 0x3d2   : > { %17567 = vmatprep.mubr.msk.bf16.mxu1 %vm1213_vm3, %v4330_v33  ;;  %v19885_v33 = vld [vmem:[%s20173_s9 + $0x60] sm:$0xff]  }
 0x3d3   : > { %v11040_v54 = vrot.slane %v19885_v33, 3 }
 0x3d4   : > { %18184 = vmatmul.mubr.msk.bf16.gmra.mrb[128].mxu0 %vm1213_vm3, %v10079_v39 }
 0x3d5   : > { %18187 = vmatprep.mubr.msk.bf16.mxu0 %vm1213_vm3, %v10088_v27  ;;  %v11041_v39 = vsel %vm11024_vm8, %v11038_v59, %v11040_v54  ;;  %v11043_v51 = vsel %vm11024_vm8, %v11040_v54, %v11042_v20  ;;  %v4352_v27 = vsel %vm2724_vm6, %v4349_v17, %v4351_v47  ;;  %v11056_v59 = vrot.slane %v19901_v40, 3  ;;  %v22043_v54 = vld [vmem:[%s20173_s9 + $0x1b8] sm:$0xff]  }
 0x3d7   : > { %v11057_v33 = vsel %vm11024_vm8, %v11054_v13, %v11056_v59 }
 0x3d9   : > { %17568 = vmatmul.mubr.msk.bf16.gmra.mrb[64].mxu1 %vm1213_vm3, %v4332_v18  ;;  %v4354_v18 = vsel %vm2724_vm6, %v4351_v47, %v4353_v35  ;;  %v19905_v47 = vld [vmem:[%s20173_s9 + $0xb0] sm:$0xff]  }
 0x3da   : > { %17571 = vmatprep.mubr.msk.bf16.mxu1 %vm1213_vm3, %v4334_v21  ;;  %v11046_v21 = vrot.slane %v19890_v23, 3  ;;  %v22061_v23 = vld [vmem:[%s20173_s9 + $0x1c8] sm:$0xff]  }
 0x3dc   : > { %18188 = vmatmul.mubr.msk.bf16.gmra.mrb[132].mxu0 %vm1213_vm3, %v10097_v29  ;;  %v4357_v29 = vrot.slane %v21989_v4, 1  ;;  %v11047_v48 = vsel %vm11024_vm8, %v11044_v24, %v11046_v21  ;;  %v4371_v24 = vrot.slane %v22056_v9, 1 }
 0x3dd   : > { %18193 = vmatprep.mubr.msk.bf16.mxu0 %vm1213_vm3, %v11027_v25  ;;  %v4356_v25 = vsel %vm2724_vm6, %v4353_v35, %v4355_v10 }
 0x3de   : > { %v4358_v57 = vsel %vm2724_vm6, %v4355_v10, %v4357_v29  ;;  %v4360_v37 = vsel %vm2724_vm6, %v4357_v29, %v4359_v19  ;;  %v19909_v29 = vld [vmem:[%s20173_s9 + $0xc0] sm:$0xff]  }
 0x3e1   : > { %17572 = vmatmul.mubr.msk.bf16.gmra.mrb[68].mxu1 %vm1213_vm3, %v4336_v62  ;;  %v19893_v62 = vld [vmem:[%s20173_s9 + $0x80] sm:$0xff]  }
 0x3e2   : > { %17575 = vmatprep.mubr.msk.bf16.mxu1 %vm1213_vm3, %v4338_v60  ;;  %v11048_v26 = vrot.slane %v19893_v62, 3  ;;  %v19894_v60 = vld [vmem:[%s20173_s9 + $0x88] sm:$0xff]  }
 0x3e3   : > { %v11050_v8 = vrot.slane %v19894_v60, 3  ;;  %v19910_v62 = vld [vmem:[%s20173_s9 + $0xc8] sm:$0xff]  }
 0x3e4   : > { %18194 = vmatmul.mubr.msk.bf16.vlgmr.msra.gmra.mrb[0].mxu0 %vm1213_vm3, %v11029_v43  ;;  %v11049_v43 = vsel %vm11024_vm8, %v11046_v21, %v11048_v26  ;;  %v4373_v21 = vrot.slane %v22061_v23, 1 }
 0x3e5   : > { %18197 = vmatprep.mubr.msk.bf16.mxu0 %vm1213_vm3, %v11031_v34  ;;  %v4361_v34 = vrot.slane %v22007_v7, 1 }
 0x3e7   : > { %v4362_v1 = vsel %vm2724_vm6, %v4359_v19, %v4361_v34  ;;  %v22079_v19 = vld [vmem:[%s20173_s9 + $0x1d8] sm:$0xff]  }
 0x3e9   : > { %17576 = vmatmul.mubr.msk.bf16.gmra.mrb[72].mxu1 %vm1213_vm3, %v4340_v50  ;;  %v11051_v50 = vsel %vm11024_vm8, %v11048_v26, %v11050_v8  ;;  %v11066_v26 = vrot.slane %v19910_v62, 3 }
 0x3ea   : > { %17579 = vmatprep.mubr.msk.bf16.mxu1 %vm1213_vm3, %v4342_v0  ;;  %v11052_v0 = vrot.slane %v19897_v52, 3 }
 0x3ec   : > { %18198 = vmatmul.mubr.msk.bf16.gmra.mrb[4].mxu0 %vm1213_vm3, %v11033_v58  ;;  %v22020_v58 = vld [vmem:[%s20173_s9 + $0x1a0] sm:$0xff]   ;;  %v11055_v12 = vsel %vm11024_vm8, %v11052_v0, %v11054_v13  ;;  %v11068_v13 = vrot.slane %v19913_v38, 3 }
 0x3ed   : > { %18201 = vmatprep.mubr.msk.bf16.mxu0 %vm1213_vm3, %v11035_v53  ;;  %v4363_v44 = vrot.slane %v22020_v58, 1  ;;  %v11053_v53 = vsel %vm11024_vm8, %v11050_v8, %v11052_v0  ;;  %v22152_v38 = vld [vmem:[%s20173_s9 + $0x200] sm:$0xff]  }
 0x3ee   : > { %v11069_v40 = vsel %vm11024_vm8, %v11066_v26, %v11068_v13 }
 0x3f1   : > { %17580 = vmatmul.mubr.msk.bf16.gmra.mrb[76].mxu1 %vm1213_vm3, %v4344_v45  ;;  %v22025_v45 = vld [vmem:[%s20173_s9 + $0x1a8] sm:$0xff]  }
 0x3f2   : > { %17583 = vmatprep.mubr.msk.bf16.mxu1 %vm1213_vm3, %v4346_v46  ;;  %v4365_v56 = vrot.slane %v22025_v45, 1  ;;  %v4364_v46 = vsel %vm2724_vm6, %v4361_v34, %v4363_v44 }
 0x3f4   : > { %18202 = vmatmul.mubr.msk.bf16.gmra.mrb[8].mxu0 %vm1213_vm3, %v11037_v22  ;;  %v4366_v28 = vsel %vm2724_vm6, %v4363_v44, %v4365_v56  ;;  %v19902_v22 = vld [vmem:[%s20173_s9 + $0xa8] sm:$0xff]  }
 0x3f5   : > { %18205 = vmatprep.mubr.msk.bf16.mxu0 %vm1213_vm3, %v11039_v11  ;;  %v11058_v17 = vrot.slane %v19902_v22, 3  ;;  %v22038_v11 = vld [vmem:[%s20173_s9 + $0x1b0] sm:$0xff]  }
 0x3f7   : > { %v11059_v6 = vsel %vm11024_vm8, %v11056_v59, %v11058_v17  ;;  %v22105_v59 = vld [vmem:[%s20173_s9 + $0x1e8] sm:$0xff]  }
 0x3f9   : > { %17584 = vmatmul.mubr.msk.bf16.gmra.mrb[80].mxu1 %vm1213_vm3, %v4348_v14  ;;  %v4367_v14 = vrot.slane %v22038_v11, 1 }
 0x3fa   : > { %17587 = vmatprep.mubr.msk.bf16.mxu1 %vm1213_vm3, %v4350_v2  ;;  %v4369_v2 = vrot.slane %v22043_v54, 1 }
 0x3fb   : > { %v4368_v20 = vsel %vm2724_vm6, %v4365_v56, %v4367_v14 }
 0x3fc   : > { %18206 = vmatmul.mubr.msk.bf16.gmra.mrb[12].mxu0 %vm1213_vm3, %v11041_v39  ;;  %v11060_v39 = vrot.slane %v19905_v47, 3  ;;  %v4370_v35 = vsel %vm2724_vm6, %v4367_v14, %v4369_v2 }
 0x3fd   : > { %18209 = vmatprep.mubr.msk.bf16.mxu0 %vm1213_vm3, %v11043_v51  ;;  %v19906_v51 = vld [vmem:[%s20173_s9 + $0xb8] sm:$0xff]  }
 0x401   : > { %17588 = vmatmul.mubr.msk.bf16.gmra.mrb[84].mxu1 %vm1213_vm3, %v4352_v27  ;;  %v11062_v27 = vrot.slane %v19906_v51, 3 }
 0x402   : > { %17591 = vmatprep.mubr.msk.bf16.mxu1 %vm1213_vm3, %v4354_v18  ;;  %v11061_v18 = vsel %vm11024_vm8, %v11058_v17, %v11060_v39 }
 0x403   : > { %v11063_v10 = vsel %vm11024_vm8, %v11060_v39, %v11062_v27 }
 0x404   : > { %18210 = vmatmul.mubr.msk.bf16.gmra.mrb[16].mxu0 %vm1213_vm3, %v11045_v63  ;;  %v4372_v63 = vsel %vm2724_vm6, %v4369_v2, %v4371_v24 }
 0x405   : > { %18213 = vmatprep.mubr.msk.bf16.mxu0 %vm1213_vm3, %v11047_v48  ;;  %v11064_v48 = vrot.slane %v19909_v29, 3 }
 0x407   : > { %v11065_v8 = vsel %vm11024_vm8, %v11062_v27, %v11064_v48  ;;  %v22126_v27 = vld [vmem:[%s20173_s9 + $0x1f0] sm:$0xff]  }
 0x409   : > { %17592 = vmatmul.mubr.msk.bf16.gmra.mrb[88].mxu1 %vm1213_vm3, %v4356_v25  ;;  %v4374_v25 = vsel %vm2724_vm6, %v4371_v24, %v4373_v21  ;;  %v4383_v24 = vrot.slane %v22126_v27, 1 }
 0x40a   : > { %17595 = vmatprep.mubr.msk.bf16.mxu1 %vm1213_vm3, %v4358_v57  ;;  %v22074_v57 = vld [vmem:[%s20173_s9 + $0x1d0] sm:$0xff]  }
 0x40b   : > { %v4375_v60 = vrot.slane %v22074_v57, 1 }
 0x40c   : > { %18214 = vmatmul.mubr.msk.bf16.gmra.mrb[20].mxu0 %vm1213_vm3, %v11049_v43  ;;  %v4377_v43 = vrot.slane %v22079_v19, 1 }
 0x40d   : > { %18217 = vmatprep.mubr.msk.bf16.mxu0 %vm1213_vm3, %v11051_v50  ;;  %v11067_v50 = vsel %vm11024_vm8, %v11064_v48, %v11066_v26  ;;  %v4376_v0 = vsel %vm2724_vm6, %v4373_v21, %v4375_v60  ;;  %v22131_v21 = vld [vmem:[%s20173_s9 + $0x1f8] sm:$0xff]  }
 0x40e   : > { %v4378_v44 = vsel %vm2724_vm6, %v4375_v60, %v4377_v43  ;;  %v19921_v60 = vld [vmem:[%s20173_s9 + $0xf0] sm:$0xff]  }
 0x411   : > { %17596 = vmatmul.mubr.msk.bf16.gmra.mrb[92].mxu1 %vm1213_vm3, %v4360_v37 }
 0x412   : > { %17599 = vmatprep.mubr.msk.bf16.mxu1 %vm1213_vm3, %v4362_v1 }
 0x414   : > { %18218 = vmatmul.mubr.msk.bf16.gmra.mrb[24].mxu0 %vm1213_vm3, %v11053_v53  ;;  %v19914_v53 = vld [vmem:[%s20173_s9 + $0xd8] sm:$0xff]  }
 0x415   : > { %18221 = vmatprep.mubr.msk.bf16.mxu0 %vm1213_vm3, %v11055_v12  ;;  %v11070_v56 = vrot.slane %v19914_v53, 3  ;;  %v22100_v12 = vld [vmem:[%s20173_s9 + $0x1e0] sm:$0xff]   ;;  %v22157_v53 = vld [vmem:[%s20173_s9 + $0x208] sm:$0xff]  }
 0x417   : > { %v11071_v17 = vsel %vm11024_vm8, %v11068_v13, %v11070_v56  ;;  %v4387_v13 = vrot.slane %v22152_v38, 1 }
 0x419   : > { %17600 = vmatmul.mubr.msk.bf16.gmra.mrb[96].mxu1 %vm1213_vm3, %v4364_v46  ;;  %v4379_v46 = vrot.slane %v22100_v12, 1 }
 0x41a   : > { %17603 = vmatprep.mubr.msk.bf16.mxu1 %vm1213_vm3, %v4366_v28  ;;  %v4381_v28 = vrot.slane %v22105_v59, 1 }
 0x41b   : > { %v4380_v2 = vsel %vm2724_vm6, %v4377_v43, %v4379_v46 }
 0x41c   : > { %18222 = vmatmul.mubr.msk.bf16.gmra.mrb[28].mxu0 %vm1213_vm3, %v11057_v33  ;;  %v4382_v39 = vsel %vm2724_vm6, %v4379_v46, %v4381_v28  ;;  %v4384_v62 = vsel %vm2724_vm6, %v4381_v28, %v4383_v24 }
 0x41d   : > { %18225 = vmatprep.mubr.msk.bf16.mxu0 %vm1213_vm3, %v11059_v6 }
 0x421   : > { %17604 = vmatmul.mubr.msk.bf16.gmra.mrb[100].mxu1 %vm1213_vm3, %v4368_v20  ;;  %v19917_v20 = vld [vmem:[%s20173_s9 + $0xe0] sm:$0xff]  }
 0x422   : > { %17607 = vmatprep.mubr.msk.bf16.mxu1 %vm1213_vm3, %v4370_v35  ;;  %v11072_v47 = vrot.slane %v19917_v20, 3  ;;  %v19918_v35 = vld [vmem:[%s20173_s9 + $0xe8] sm:$0xff]  }
 0x423   : > { %v11074_v51 = vrot.slane %v19918_v35, 3 }
 0x424   : > { %18226 = vmatmul.mubr.msk.bf16.gmra.mrb[32].mxu0 %vm1213_vm3, %v11061_v18  ;;  %v11073_v18 = vsel %vm11024_vm8, %v11070_v56, %v11072_v47  ;;  %v4389_v56 = vrot.slane %v22157_v53, 1 }
 0x425   : > { %18229 = vmatprep.mubr.msk.bf16.mxu0 %vm1213_vm3, %v11063_v10  ;;  %v4385_v10 = vrot.slane %v22131_v21, 1  ;;  %v11075_v29 = vsel %vm11024_vm8, %v11072_v47, %v11074_v51  ;;  %v19925_v47 = vld [vmem:[%s20173_s9 + $0x100] sm:$0xff]  }
 0x426   : > { %v4390_v35 = vsel %vm2724_vm6, %v4387_v13, %v4389_v56 }
 0x427   : > { %v4386_v43 = vsel %vm2724_vm6, %v4383_v24, %v4385_v10 }
 0x429   : > { %17608 = vmatmul.mubr.msk.bf16.gmra.mrb[104].mxu1 %vm1213_vm3, %v4372_v63 }
 0x42a   : > { %17611 = vmatprep.mubr.msk.bf16.mxu1 %vm1213_vm3, %v4374_v25 }
 0x42c   : > { %v22082_v34 = vpop.f32.mrb[0].mxu1  ;;  %18230 = vmatmul.mubr.msk.bf16.gmra.mrb[36].mxu0 %vm1213_vm3, %v11065_v8  ;;  %v11076_v8 = vrot.slane %v19921_v60, 3 }
 0x42d   : > { %v22085_v37 = vpop.f32.mrb[1].mxu1  ;;  %18233 = vmatprep.mubr.msk.bf16.mxu0 %vm1213_vm3, %v11067_v50  ;;  %v19922_v50 = vld [vmem:[%s20173_s9 + $0xf8] sm:$0xff]  }
 0x42e   : > { %v22088_v52 = vpop.f32.mrb[2].mxu1 }
 0x42f   : > { %v22091_v1 = vpop.f32.mrb[3].mxu1 }
 0x431   : > { %17612 = vmatmul.mubr.msk.bf16.gmra.mrb[108].mxu1 %vm1213_vm3, %v4376_v0  ;;  %v11078_v0 = vrot.slane %v19922_v50, 3 }
 0x432   : > { %17615 = vmatprep.mubr.msk.bf16.mxu1 %vm1213_vm3, %v4378_v44  ;;  %v11077_v44 = vsel %vm11024_vm8, %v11074_v51, %v11076_v8  ;;  %v19926_v51 = vld [vmem:[%s20173_s9 + $0x108] sm:$0xff]  }
 0x433   : > { %v11082_v24 = vrot.slane %v19926_v51, 3 }
 0x434   : > { %v22108_v22 = vpop.f32.mrb[4].mxu1  ;;  %18234 = vmatmul.mubr.msk.bf16.gmra.mrb[40].mxu0 %vm1213_vm3, %v11069_v40  ;;  %v11079_v40 = vsel %vm11024_vm8, %v11076_v8, %v11078_v0 }
 0x435   : > { %v22111_v14 = vpop.f32.mrb[5].mxu1  ;;  %18237 = vmatprep.mubr.msk.bf16.mxu0 %vm1213_vm3, %v11071_v17 }
 0x436   : > { %v22114_v33 = vpop.f32.mrb[6].mxu1 }
 0x437   : > { %v22117_v6 = vpop.f32.mrb[7].mxu1 }
 0x439   : > { %17616 = vmatmul.mubr.msk.bf16.gmra.mrb[112].mxu1 %vm1213_vm3, %v4380_v2  ;;  %v4388_v2 = vsel %vm2724_vm6, %v4385_v10, %v4387_v13 }
 0x43a   : > { %17619 = vmatprep.mubr.msk.bf16.mxu1 %vm1213_vm3, %v4382_v39  ;;  %v11080_v39 = vrot.slane %v19925_v47, 3 }
 0x43c   : > { %v22134_v63 = vpop.f32.mrb[8].mxu1  ;;  %18238 = vmatmul.mubr.msk.bf16.gmra.mrb[44].mxu0 %vm1213_vm3, %v11073_v18  ;;  %v22178_v18 = vld [vmem:[%s20173_s9 + $0x210] sm:$0xff]  }
 0x43d   : > { %v22137_v48 = vpop.f32.mrb[9].mxu1  ;;  %18241 = vmatprep.mubr.msk.bf16.mxu0 %vm1213_vm3, %v11075_v29  ;;  %v4391_v10 = vrot.slane %v22178_v18, 1  ;;  %v11081_v29 = vsel %vm11024_vm8, %v11078_v0, %v11080_v39  ;;  %v19929_v0 = vld [vmem:[%s20173_s9 + $0x110] sm:$0xff]  }
 0x43e   : > { %v22140_v25 = vpop.f32.mrb[10].mxu1 }
 0x43f   : > { %v22143_v26 = vpop.f32.mrb[11].mxu1 }
 0x440   : > { %25575 = vst [vmem:[#allocation10_spill] sm:$0xff] %v22143_v26 }
 0x441   : > { %17620 = vmatmul.mubr.msk.bf16.gmra.mrb[116].mxu1 %vm1213_vm3, %v4384_v62  ;;  %v22183_v62 = vld [vmem:[%s20173_s9 + $0x218] sm:$0xff]  }
 0x442   : > { %17623 = vmatprep.mubr.msk.bf16.mxu1 %vm1213_vm3, %v4386_v43  ;;  %v4393_v60 = vrot.slane %v22183_v62, 1  ;;  %v11083_v43 = vsel %vm11024_vm8, %v11080_v39, %v11082_v24  ;;  %v22204_v39 = vld [vmem:[%s20173_s9 + $0x220] sm:$0xff]  }
 0x444   : > { %v22160_v46 = vpop.f32.mrb[12].mxu1  ;;  %18242 = vmatmul.mubr.msk.bf16.gmra.mrb[48].mxu0 %vm1213_vm3, %v11077_v44  ;;  %v4392_v44 = vsel %vm2724_vm6, %v4389_v56, %v4391_v10  ;;  %v4394_v47 = vsel %vm2724_vm6, %v4391_v10, %v4393_v60  ;;  %v4395_v56 = vrot.slane %v22204_v39, 1  ;;  %v5643_v10 = vshrl.u32 %v21881_v16, 16 }
 0x445   : > { %25576 = vst [vmem:[#allocation13_spill] sm:$0xff] %v22160_v46  ;;  %v22163_v28 = vpop.f32.mrb[13].mxu1  ;;  %18245 = vmatprep.mubr.msk.bf16.mxu0 %vm1213_vm3, %v11079_v40 }
 0x446   : > { %25577 = vst [vmem:[#allocation11_spill] sm:$0xff] %v22163_v28  ;;  %v22166_v17 = vpop.f32.mrb[14].mxu1 }
 0x447   : > { %25578 = vst [vmem:[#allocation12_spill] sm:$0xff] %v22166_v17  ;;  %v22169_v20 = vpop.f32.mrb[15].mxu1 }
 0x448   : > { %25579 = vst [vmem:[#allocation14_spill] sm:$0xff] %v22169_v20  ;;  %v19933_v20 = vld [vmem:[%s20173_s9 + $0x120] sm:$0xff]  }
 0x449   : > { %17624 = vmatmul.mubr.msk.bf16.gmra.mrb[120].mxu1 %vm1213_vm3, %v4388_v2  ;;  %v11084_v2 = vrot.slane %v19929_v0, 3  ;;  %v5646_v0 = vshll.u32 %v21881_v16, 16  ;;  %v11088_v17 = vrot.slane %v19933_v20, 3  ;;  %v5661_v20 = vshrl.u32 %v21899_v30, 16 }
 0x44a   : > { %17627 = vmatprep.mubr.msk.bf16.mxu1 %vm1213_vm3, %v4390_v35  ;;  %v19930_v35 = vld [vmem:[%s20173_s9 + $0x118] sm:$0xff]  }
 0x44b   : > { %v11086_v51 = vrot.slane %v19930_v35, 3  ;;  %v5648_v28 = vrot.slane %v5646_v0, 2 }
 0x44c   : > { %v22186_v8 = vpop.f32.mrb[16].mxu1  ;;  %18246 = vmatmul.mubr.msk.bf16.gmra.mrb[52].mxu0 %vm1213_vm3, %v11081_v29  ;;  %v11085_v29 = vsel %vm11024_vm8, %v11082_v24, %v11084_v2  ;;  %v4396_v24 = vsel %vm2724_vm6, %v4393_v60, %v4395_v56  ;;  %v5652_v60 = vshrl.u32 %v21894_v49, 16 }
 0x44d   : > { %25580 = vst [vmem:[#allocation17_spill] sm:$0xff] %v22186_v8  ;;  %v22189_v50 = vpop.f32.mrb[17].mxu1  ;;  %18249 = vmatprep.mubr.msk.bf16.mxu0 %vm1213_vm3, %v11083_v43 }
 0x44e   : > { %25581 = vst [vmem:[#allocation15_spill] sm:$0xff] %v22189_v50  ;;  %v22192_v13 = vpop.f32.mrb[18].mxu1  ;;  %v19678_v50 = vld [vmem:[%s20173_s9 + $0x230] ss:$0 sps:$4 sm:$0x11]  }
 0x44f   : > { %25582 = vst [vmem:[#allocation16_spill] sm:$0xff] %v22192_v13  ;;  %v22195_v40 = vpop.f32.mrb[19].mxu1 }
 0x450   : > { %25583 = vst [vmem:[#allocation18_spill] sm:$0xff] %v22195_v40  ;;  %v22209_v40 = vld [vmem:[%s20173_s9 + $0x228] sm:$0xff]  }
 0x451   : > { %17628 = vmatmul.mubr.msk.bf16.gmra.mrb[124].mxu1 %vm1213_vm3, %v4392_v44  ;;  %v4397_v43 = vrot.slane %v22209_v40, 1  ;;  %v11087_v44 = vsel %vm11024_vm8, %v11084_v2, %v11086_v51  ;;  %v19934_v2 = vld [vmem:[%s20173_s9 + $0x128] sm:$0xff]  }
 0x452   : > { %17631 = vmatprep.mubr.msk.bf16.mxu1 %vm1213_vm3, %v4394_v47  ;;  %v11090_v46 = vrot.slane %v19934_v2, 3  ;;  %v25590_v2 = vld [vmem:[#allocation9_spill] sm:$0xff] }
 0x453   : > { %v4398_v16 = vsel %vm2724_vm6, %v4395_v56, %v4397_v43  ;;  %v5664_v56 = vshll.u32 %v21899_v30, 16  ;;  %v19935_v30 = vld [vmem:[%s20173_s9 + $0x130] sm:$0xff]  }
 0x454   : > { %v22214_v35 = vpop.f32.mrb[20].mxu1  ;;  %18250 = vmatmul.mubr.msk.bf16.gmra.mrb[56].mxu0 %vm1213_vm3, %v11085_v29  ;;  %v4399_v29 = vrot.slane %v19678_v50, 1  ;;  %v11091_v0 = vsel %vm11024_vm8, %v11088_v17, %v11090_v46 }
 0x455   : > { %25584 = vst [vmem:[#allocation21_spill] sm:$0xff] %v22214_v35  ;;  %v22217_v47 = vpop.f32.mrb[21].mxu1  ;;  %18253 = vmatprep.mubr.msk.bf16.mxu0 %vm1213_vm3, %v11087_v44  ;;  %v5645_v35 = vrot.slane %v5643_v10, 1  ;;  %v11089_v44 = vsel %vm11024_vm8, %v11086_v51, %v11088_v17  ;;  %v5663_v17 = vrot.slane %v5661_v20, 1  ;;  %v5682_v20 = vshll.u32 %v21917_v36, 16 }
 0x456   : > { %25585 = vst [vmem:[#allocation19_spill] sm:$0xff] %v22217_v47  ;;  %v22220_v13 = vpop.f32.mrb[22].mxu1  ;;  %v5666_v47 = vrot.slane %v5664_v56, 2 }
 0x457   : > { %25586 = vst [vmem:[#allocation20_spill] sm:$0xff] %v22220_v13  ;;  %v22224_v8 = vpop.f32.mrb[23].mxu1  ;;  %v5649_v13 = vor.u32 %v5648_v28, %v5645_v35  ;;  %v11092_v35 = vrot.slane %v19935_v30, 3 }
 0x458   : > { %25587 = vst [vmem:[#allocation22_spill] sm:$0xff] %v22224_v8  ;;  %v5655_v8 = vshll.u32 %v21894_v49, 16  ;;  %v4400_v49 = vsel %vm2724_vm6, %v4397_v43, %v4399_v29  ;;  %v5673_v29 = vshll.u32 %v21912_v32, 16 }
 0x459   : > { %17632 = vmatmul.mubr.msk.bf16.gmra.mrb[128].mxu1 %vm1213_vm3, %v4396_v24 }
 0x45a   : > { %17635 = vmatprep.mubr.msk.bf16.mxu1 %vm1213_vm3, %v4398_v16  ;;  %v5654_v16 = vrot.slane %v5652_v60, 1  ;;  %v5657_v51 = vrot.slane %v5655_v8, 2  ;;  %v5670_v8 = vshrl.u32 %v21912_v32, 16  ;;  %v11093_v60 = vsel %vm11024_vm8, %v11090_v46, %v11092_v35 }
 0x45b   : > { %v5675_v46 = vrot.slane %v5673_v29, 2 }
 0x45c   : > { %v22237_v10 = vpop.f32.mrb[24].mxu1  ;;  %18254 = vmatmul.mubr.msk.bf16.gmra.mrb[60].mxu0 %vm1213_vm3, %v11089_v44  ;;  %v5658_v43 = vor.u32 %v5657_v51, %v5654_v16  ;;  %v5667_v44 = vor.u32 %v5666_v47, %v5663_v17  ;;  %v5672_v16 = vrot.slane %v5670_v8, 1  ;;  %v19938_v17 = vld [vmem:[%s20173_s9 + $0x148] sm:$0xff]   ;;  %v5691_v8 = vshll.u32 %v21930_v61, 16 }
 0x45d   : > { %25588 = vst [vmem:[#allocation25_spill] sm:$0xff] %v22237_v10  ;;  %v22240_v24 = vpop.f32.mrb[25].mxu1  ;;  %18257 = vmatprep.mubr.msk.bf16.mxu0 %vm1213_vm3, %v11091_v0  ;;  %v5650_v10 = vsel %vm5327_vm4, %v25590_v2, %v5649_v13  ;;  %v5679_v0 = vshrl.u32 %v21917_v36, 16  ;;  %v19937_v36 = vld [vmem:[%s20173_s9 + $0x140] sm:$0xff]  }
 0x45e   : > { %25589 = vst [vmem:[#allocation23_spill] sm:$0xff] %v22240_v24  ;;  %v22243_v50 = vpop.f32.mrb[26].mxu1  ;;  %v19936_v24 = vld [vmem:[%s20173_s9 + $0x138] sm:$0xff]   ;;  %v5659_v32 = vsel %vm5327_vm4, %v5649_v13, %v5658_v43  ;;  %v11096_v51 = vrot.slane %v19937_v36, 3  ;;  %v5668_v30 = vsel %vm5327_vm4, %v5658_v43, %v5667_v44  ;;  %v5688_v13 = vshrl.u32 %v21930_v61, 16 }
 0x45f   : > { %v22246_v28 = vpop.f32.mrb[27].mxu1  ;;  %v11094_v26 = vrot.slane %v19936_v24, 3  ;;  %v5681_v2 = vrot.slane %v5679_v0, 1  ;;  %v5697_v36 = vshrl.u32 %v21935_v5, 16  ;;  %v5700_v43 = vshll.u32 %v21935_v5, 16  ;;  %v19939_v5 = vld [vmem:[%s20173_s9 + $0x150] sm:$0xff]  }
 0x461   : > { %17636 = vmatmul.mubr.msk.bf16.gmra.mrb[132].mxu1 %vm1213_vm3, %v4400_v49  ;;  %v11095_v24 = vsel %vm11024_vm8, %v11092_v35, %v11094_v26  ;;  %v5684_v35 = vrot.slane %v5682_v20, 2  ;;  %v11097_v29 = vsel %vm11024_vm8, %v11094_v26, %v11096_v51  ;;  %v5693_v26 = vrot.slane %v5691_v8, 2 }
 0x462   : > { %17709 = vmatprep.mubr.msk.bf16.mxu1 %vm1213_vm3, %v5650_v10 }
 0x464   : > { %v22260_v56 = vpop.f32.mrb[28].mxu1  ;;  %18258 = vmatmul.mubr.msk.bf16.gmra.mrb[64].mxu0 %vm1213_vm3, %v11093_v60  ;;  %v5676_v60 = vor.u32 %v5675_v46, %v5672_v16  ;;  %v5690_v46 = vrot.slane %v5688_v13, 1  ;;  %v5709_v13 = vshll.u32 %v21948_v3, 16 }
 0x465   : > { %v22263_v49 = vpop.f32.mrb[29].mxu1  ;;  %18261 = vmatprep.mubr.msk.bf16.mxu0 %vm1213_vm3, %v11095_v24  ;;  %v5685_v24 = vor.u32 %v5684_v35, %v5681_v2  ;;  %v11100_v2 = vrot.slane %v19939_v5, 3  ;;  %v5715_v5 = vshrl.u32 %v21953_v55, 16 }
 0x466   : > { %25591 = vst [vmem:[#allocation24_spill] sm:$0xff] %v22263_v49  ;;  %v22266_v10 = vpop.f32.mrb[30].mxu1  ;;  %v11098_v49 = vrot.slane %v19938_v17, 3  ;;  %v5677_v61 = vsel %vm5327_vm4, %v5667_v44, %v5676_v60  ;;  %v5699_v17 = vrot.slane %v5697_v36, 1  ;;  %v5706_v44 = vshrl.u32 %v21948_v3, 16 }
 0x467   : > { %v22269_v47 = vpop.f32.mrb[31].mxu1  ;;  %v5686_v35 = vsel %vm5327_vm4, %v5676_v60, %v5685_v24  ;;  %v5718_v60 = vshll.u32 %v21953_v55, 16  ;;  %v19941_v55 = vld [vmem:[%s20173_s9 + $0x160] sm:$0xff]  }
 0x468   : > { %v11099_v20 = vsel %vm11024_vm8, %v11096_v51, %v11098_v49  ;;  %v5702_v51 = vrot.slane %v5700_v43, 2  ;;  %v11101_v8 = vsel %vm11024_vm8, %v11098_v49, %v11100_v2  ;;  %v5711_v49 = vrot.slane %v5709_v13, 2 }
 0x469   : > { %17710 = vmatmul.mubr.msk.bf16.vlgmr.msra.gmra.mrb[68].mxu1 %vm1213_vm3, %v5659_v32 }
 0x46a   : > { %17713 = vmatprep.mubr.msk.bf16.mxu1 %vm1213_vm3, %v5668_v30 }
 0x46c   : > { %v22282_v0 = vpop.f32.mrb[32].mxu1  ;;  %18262 = vmatmul.mubr.msk.bf16.gmra.mrb[68].mxu0 %vm1213_vm3, %v11097_v29  ;;  %v5694_v29 = vor.u32 %v5693_v26, %v5690_v46  ;;  %v5708_v46 = vrot.slane %v5706_v44, 1  ;;  %v5727_v44 = vshll.u32 %v21966_v41, 16 }
 0x46d   : > { %25592 = vst [vmem:[#allocation26_spill] sm:$0xff] %v22282_v0  ;;  %v22285_v32 = vpop.f32.mrb[33].mxu1  ;;  %18265 = vmatprep.mubr.msk.bf16.mxu0 %vm1213_vm3, %v11099_v20  ;;  %v19940_v0 = vld [vmem:[%s20173_s9 + $0x158] sm:$0xff]   ;;  %v5703_v20 = vor.u32 %v5702_v51, %v5699_v17  ;;  %v5717_v51 = vrot.slane %v5715_v5, 1 }
 0x46e   : > { %25593 = vst [vmem:[#allocation29_spill] sm:$0xff] %v22285_v32  ;;  %v22288_v16 = vpop.f32.mrb[34].mxu1  ;;  %v11102_v32 = vrot.slane %v19940_v0, 3  ;;  %v5695_v3 = vsel %vm5327_vm4, %v5685_v24, %v5694_v29  ;;  %v5724_v24 = vshrl.u32 %v21966_v41, 16 }
 0x46f   : > { %v22291_v30 = vpop.f32.mrb[35].mxu1  ;;  %v5704_v17 = vsel %vm5327_vm4, %v5694_v29, %v5703_v20  ;;  %v5736_v29 = vshll.u32 %v21971_v42, 16 }
 0x470   : > { %v11103_v43 = vsel %vm11024_vm8, %v11100_v2, %v11102_v32  ;;  %v5720_v2 = vrot.slane %v5718_v60, 2 }
 0x471   : > { %17714 = vmatmul.mubr.msk.bf16.gmra.mrb[72].mxu1 %vm1213_vm3, %v5677_v61 }
 0x472   : > { %17717 = vmatprep.mubr.msk.bf16.mxu1 %vm1213_vm3, %v5686_v35  ;;  %v11104_v35 = vrot.slane %v19941_v55, 3  ;;  %v5733_v55 = vshrl.u32 %v21971_v42, 16  ;;  %v19943_v42 = vld [vmem:[%s20173_s9 + $0x170] sm:$0xff]  }
 0x474   : > { %v22304_v36 = vpop.f32.mrb[36].mxu1  ;;  %18266 = vmatmul.mubr.msk.bf16.gmra.mrb[72].mxu0 %vm1213_vm3, %v11101_v8  ;;  %v5712_v8 = vor.u32 %v5711_v49, %v5708_v46  ;;  %v11105_v13 = vsel %vm11024_vm8, %v11102_v32, %v11104_v35  ;;  %v5726_v46 = vrot.slane %v5724_v24, 1  ;;  %v5729_v32 = vrot.slane %v5727_v44, 2 }
 0x475   : > { %25594 = vst [vmem:[#allocation27_spill] sm:$0xff] %v22304_v36  ;;  %v22307_v0 = vpop.f32.mrb[37].mxu1  ;;  %18269 = vmatprep.mubr.msk.bf16.mxu0 %vm1213_vm3, %v11103_v43  ;;  %v19942_v36 = vld [vmem:[%s20173_s9 + $0x168] sm:$0xff]   ;;  %v5721_v43 = vor.u32 %v5720_v2, %v5717_v51  ;;  %v5735_v2 = vrot.slane %v5733_v55, 1  ;;  %v5745_v24 = vshll.u32 %v21984_v31, 16 }
 0x476   : > { %25595 = vst [vmem:[#allocation28_spill] sm:$0xff] %v22307_v0  ;;  %v22310_v61 = vpop.f32.mrb[38].mxu1  ;;  %v11106_v0 = vrot.slane %v19942_v36, 3  ;;  %v5713_v41 = vsel %vm5327_vm4, %v5703_v20, %v5712_v8  ;;  %v5742_v20 = vshrl.u32 %v21984_v31, 16 }
 0x477   : > { %v22313_v26 = vpop.f32.mrb[39].mxu1  ;;  %v5722_v51 = vsel %vm5327_vm4, %v5712_v8, %v5721_v43  ;;  %v5754_v8 = vshll.u32 %v21989_v4, 16 }
 0x478   : > { %v11107_v60 = vsel %vm11024_vm8, %v11104_v35, %v11106_v0  ;;  %v5738_v35 = vrot.slane %v5736_v29, 2 }
 0x479   : > { %17718 = vmatmul.mubr.msk.bf16.gmra.mrb[76].mxu1 %vm1213_vm3, %v5695_v3 }
 0x47a   : > { %17721 = vmatprep.mubr.msk.bf16.mxu1 %vm1213_vm3, %v5704_v17  ;;  %v11108_v17 = vrot.slane %v19943_v42, 3  ;;  %v5751_v42 = vshrl.u32 %v21989_v4, 16  ;;  %v19945_v4 = vld [vmem:[%s20173_s9 + $0x180] sm:$0xff]  }
 0x47c   : > { %v22326_v5 = vpop.f32.mrb[40].mxu1  ;;  %18270 = vmatmul.mubr.msk.bf16.gmra.mrb[76].mxu0 %vm1213_vm3, %v11105_v13  ;;  %v5730_v13 = vor.u32 %v5729_v32, %v5726_v46  ;;  %v11109_v44 = vsel %vm11024_vm8, %v11106_v0, %v11108_v17  ;;  %v5744_v46 = vrot.slane %v5742_v20, 1  ;;  %v5747_v0 = vrot.slane %v5745_v24, 2 }
 0x47d   : > { %25596 = vst [vmem:[#allocation30_spill] sm:$0xff] %v22326_v5  ;;  %v22329_v36 = vpop.f32.mrb[41].mxu1  ;;  %18273 = vmatprep.mubr.msk.bf16.mxu0 %vm1213_vm3, %v11107_v60  ;;  %v19944_v5 = vld [vmem:[%s20173_s9 + $0x178] sm:$0xff]   ;;  %v5739_v60 = vor.u32 %v5738_v35, %v5735_v2  ;;  %v5753_v35 = vrot.slane %v5751_v42, 1  ;;  %v5763_v20 = vshll.u32 %v22002_v15, 16 }
 0x47e   : > { %25597 = vst [vmem:[#allocation33_spill] sm:$0xff] %v22329_v36  ;;  %v22332_v3 = vpop.f32.mrb[42].mxu1  ;;  %v11110_v36 = vrot.slane %v19944_v5, 3  ;;  %v5731_v31 = vsel %vm5327_vm4, %v5721_v43, %v5730_v13  ;;  %v5760_v43 = vshrl.u32 %v22002_v15, 16 }
 0x47f   : > { %25598 = vst [vmem:[#allocation31_spill] sm:$0xff] %v22332_v3  ;;  %v22335_v49 = vpop.f32.mrb[43].mxu1  ;;  %v5740_v2 = vsel %vm5327_vm4, %v5730_v13, %v5739_v60  ;;  %v5772_v13 = vshll.u32 %v22007_v7, 16 }
 0x480   : > { %25599 = vst [vmem:[#allocation32_spill] sm:$0xff] %v22335_v49  ;;  %v11111_v29 = vsel %vm11024_vm8, %v11108_v17, %v11110_v36  ;;  %v5756_v17 = vrot.slane %v5754_v8, 2 }
 0x481   : > { %17722 = vmatmul.mubr.msk.bf16.gmra.mrb[80].mxu1 %vm1213_vm3, %v5713_v41 }
 0x482   : > { %17725 = vmatprep.mubr.msk.bf16.mxu1 %vm1213_vm3, %v5722_v51  ;;  %v11112_v51 = vrot.slane %v19945_v4, 3  ;;  %v5769_v4 = vshrl.u32 %v22007_v7, 16  ;;  %v19947_v7 = vld [vmem:[%s20173_s9 + $0x190] sm:$0xff]  }
 0x484   : > { %v22348_v55 = vpop.f32.mrb[44].mxu1  ;;  %18274 = vmatmul.mubr.msk.bf16.gmra.mrb[80].mxu0 %vm1213_vm3, %v11109_v44  ;;  %v5748_v44 = vor.u32 %v5747_v0, %v5744_v46  ;;  %v11113_v24 = vsel %vm11024_vm8, %v11110_v36, %v11112_v51  ;;  %v5762_v46 = vrot.slane %v5760_v43, 1  ;;  %v5765_v36 = vrot.slane %v5763_v20, 2 }
 0x485   : > { %25600 = vst [vmem:[#allocation34_spill] sm:$0xff] %v22348_v55  ;;  %v22351_v5 = vpop.f32.mrb[45].mxu1  ;;  %18277 = vmatprep.mubr.msk.bf16.mxu0 %vm1213_vm3, %v11111_v29  ;;  %v19946_v55 = vld [vmem:[%s20173_s9 + $0x188] sm:$0xff]   ;;  %v5757_v29 = vor.u32 %v5756_v17, %v5753_v35  ;;  %v5771_v17 = vrot.slane %v5769_v4, 1  ;;  %v5787_v43 = vshrl.u32 %v22025_v45, 16  ;;  %v5790_v20 = vshll.u32 %v22025_v45, 16 }
 0x486   : > { %25601 = vst [vmem:[#allocation37_spill] sm:$0xff] %v22351_v5  ;;  %v22354_v41 = vpop.f32.mrb[46].mxu1  ;;  %v11114_v5 = vrot.slane %v19946_v55, 3  ;;  %v5749_v15 = vsel %vm5327_vm4, %v5739_v60, %v5748_v44  ;;  %v5766_v60 = vor.u32 %v5765_v36, %v5762_v46  ;;  %v19949_v45 = vld [vmem:[%s20173_s9 + $0x1a0] sm:$0xff]  }
 0x487   : > { %25602 = vst [vmem:[#allocation35_spill] sm:$0xff] %v22354_v41  ;;  %v22357_v32 = vpop.f32.mrb[47].mxu1  ;;  %v5758_v35 = vsel %vm5327_vm4, %v5748_v44, %v5757_v29  ;;  %v11120_v36 = vrot.slane %v19949_v45, 3  ;;  %v19955_v41 = vld [vmem:[%s20173_s9 + $0x1d0] sm:$0xff]  }
 0x488   : > { %25603 = vst [vmem:[#allocation36_spill] sm:$0xff] %v22357_v32  ;;  %v11115_v8 = vsel %vm11024_vm8, %v11112_v51, %v11114_v5  ;;  %v5774_v51 = vrot.slane %v5772_v13, 2  ;;  %v5767_v46 = vsel %vm5327_vm4, %v5757_v29, %v5766_v60  ;;  %v11132_v49 = vrot.slane %v19955_v41, 3 }
 0x489   : > { %17726 = vmatmul.mubr.msk.bf16.gmra.mrb[84].mxu1 %vm1213_vm3, %v5731_v31 }
 0x48a   : > { %17729 = vmatprep.mubr.msk.bf16.mxu1 %vm1213_vm3, %v5740_v2  ;;  %v11116_v2 = vrot.slane %v19947_v7, 3  ;;  %v5775_v4 = vor.u32 %v5774_v51, %v5771_v17  ;;  %v19950_v51 = vld [vmem:[%s20173_s9 + $0x1a8] sm:$0xff]  }
 0x48c   : > { %v22370_v42 = vpop.f32.mrb[48].mxu1  ;;  %18278 = vmatmul.mubr.msk.bf16.gmra.mrb[84].mxu0 %vm1213_vm3, %v11113_v24  ;;  %v5778_v24 = vshrl.u32 %v22020_v58, 16  ;;  %v11117_v44 = vsel %vm11024_vm8, %v11114_v5, %v11116_v2  ;;  %v5789_v5 = vrot.slane %v5787_v43, 1 }
 0x48d   : > { %25604 = vst [vmem:[#allocation38_spill] sm:$0xff] %v22370_v42  ;;  %v22373_v55 = vpop.f32.mrb[49].mxu1  ;;  %18281 = vmatprep.mubr.msk.bf16.mxu0 %vm1213_vm3, %v11115_v8  ;;  %v19948_v42 = vld [vmem:[%s20173_s9 + $0x198] sm:$0xff]  }
 0x48e   : > { %25605 = vst [vmem:[#allocation41_spill] sm:$0xff] %v22373_v55  ;;  %v22376_v31 = vpop.f32.mrb[50].mxu1  ;;  %v11118_v55 = vrot.slane %v19948_v42, 3 }
 0x48f   : > { %25606 = vst [vmem:[#allocation39_spill] sm:$0xff] %v22376_v31  ;;  %v22379_v0 = vpop.f32.mrb[51].mxu1  ;;  %v5781_v31 = vshll.u32 %v22020_v58, 16  ;;  %v5780_v58 = vrot.slane %v5778_v24, 1  ;;  %v19951_v24 = vld [vmem:[%s20173_s9 + $0x1b0] sm:$0xff]  }
 0x490   : > { %25607 = vst [vmem:[#allocation40_spill] sm:$0xff] %v22379_v0  ;;  %v11119_v42 = vsel %vm11024_vm8, %v11116_v2, %v11118_v55  ;;  %v5776_v2 = vsel %vm5327_vm4, %v5766_v60, %v5775_v4  ;;  %v11121_v29 = vsel %vm11024_vm8, %v11118_v55, %v11120_v36 }
 0x491   : > { %17730 = vmatmul.mubr.msk.bf16.gmra.mrb[88].mxu1 %vm1213_vm3, %v5749_v15  ;;  %v5783_v8 = vrot.slane %v5781_v31, 2  ;;  %v11122_v31 = vrot.slane %v19950_v51, 3  ;;  %v5805_v51 = vshrl.u32 %v22043_v54, 16 }
 0x492   : > { %17733 = vmatprep.mubr.msk.bf16.mxu1 %vm1213_vm3, %v5758_v35  ;;  %v5792_v35 = vrot.slane %v5790_v20, 2  ;;  %v5796_v20 = vshrl.u32 %v22038_v11, 16 }
 0x493   : > { %v11123_v60 = vsel %vm11024_vm8, %v11120_v36, %v11122_v31  ;;  %v5823_v36 = vshrl.u32 %v22061_v23, 16 }
 0x494   : > { %v22392_v13 = vpop.f32.mrb[52].mxu1  ;;  %18282 = vmatmul.mubr.msk.bf16.gmra.mrb[88].mxu0 %vm1213_vm3, %v11117_v44  ;;  %v5784_v44 = vor.u32 %v5783_v8, %v5780_v58  ;;  %v22411_v43 = vor.u32 %v5792_v35, %v5789_v5  ;;  %v5808_v58 = vshll.u32 %v22043_v54, 16  ;;  %v5814_v35 = vshrl.u32 %v22056_v9, 16 }
 0x495   : > { %25608 = vst [vmem:[#allocation42_spill] sm:$0xff] %v22392_v13  ;;  %v22395_v7 = vpop.f32.mrb[53].mxu1  ;;  %18285 = vmatprep.mubr.msk.bf16.mxu0 %vm1213_vm3, %v11119_v42  ;;  %v5799_v42 = vshll.u32 %v22038_v11, 16  ;;  %v5835_v54 = vshll.u32 %v22074_v57, 16 }
 0x496   : > { %25609 = vst [vmem:[#allocation43_spill] sm:$0xff] %v22395_v7  ;;  %v22398_v15 = vpop.f32.mrb[54].mxu1  ;;  %v11124_v7 = vrot.slane %v19951_v24, 3  ;;  %v5785_v55 = vsel %vm5327_vm4, %v5775_v4, %v5784_v44  ;;  %v5832_v24 = vshrl.u32 %v22074_v57, 16  ;;  %v5794_v4 = vsel %vm5327_vm4, %v5784_v44, %v22411_v43 }
 0x497   : > { %25610 = vst [vmem:[#allocation44_spill] sm:$0xff] %v22398_v15  ;;  %v22402_v17 = vpop.f32.mrb[55].mxu1  ;;  %v5810_v13 = vrot.slane %v5808_v58, 2  ;;  %v5841_v57 = vshrl.u32 %v22079_v19, 16  ;;  %v5816_v0 = vrot.slane %v5814_v35, 1  ;;  %v5850_v44 = vshrl.u32 %v22100_v12, 16 }
 0x498   : > { %25611 = vst [vmem:[#allocation8_spill] sm:$0xff] %v22402_v17  ;;  %v11125_v45 = vsel %vm11024_vm8, %v11122_v31, %v11124_v7  ;;  %v5826_v31 = vshll.u32 %v22061_v23, 16  ;;  %v5801_v17 = vrot.slane %v5799_v42, 2  ;;  %v5807_v23 = vrot.slane %v5805_v51, 1  ;;  %v19954_v35 = vld [vmem:[%s20173_s9 + $0x1c8] sm:$0xff]  }
 0x499   : > { %17734 = vmatmul.mubr.msk.bf16.gmra.mrb[92].mxu1 %vm1213_vm3, %v5767_v46  ;;  %v19952_v46 = vld [vmem:[%s20173_s9 + $0x1b8] sm:$0xff]   ;;  %v5825_v42 = vrot.slane %v5823_v36, 1  ;;  %v5852_v36 = vrot.slane %v5850_v44, 1 }
 0x49a   : > { %17737 = vmatprep.mubr.msk.bf16.mxu1 %vm1213_vm3, %v5776_v2  ;;  %v11126_v5 = vrot.slane %v19952_v46, 3  ;;  %v5817_v2 = vshll.u32 %v22056_v9, 16  ;;  %v5798_v46 = vrot.slane %v5796_v20, 1  ;;  %v19953_v9 = vld [vmem:[%s20173_s9 + $0x1c0] sm:$0xff]   ;;  %v5853_v20 = vshll.u32 %v22100_v12, 16 }
 0x49b   : > { %v11128_v15 = vrot.slane %v19953_v9, 3  ;;  %v5828_v9 = vrot.slane %v5826_v31, 2  ;;  %v5811_v32 = vor.u32 %v5810_v13, %v5807_v23  ;;  %v5843_v12 = vrot.slane %v5841_v57, 1 }
 0x49c   : > { %v22419_v8 = vpop.f32.mrb[56].mxu1  ;;  %18286 = vmatmul.mubr.msk.bf16.gmra.mrb[92].mxu0 %vm1213_vm3, %v11121_v29  ;;  %v5844_v29 = vshll.u32 %v22079_v19, 16  ;;  %v11127_v51 = vsel %vm11024_vm8, %v11124_v7, %v11126_v5  ;;  %v5802_v58 = vor.u32 %v5801_v17, %v5798_v46  ;;  %v5855_v31 = vrot.slane %v5853_v20, 2 }
 0x49d   : > { %25612 = vst [vmem:[#allocation9_spill] sm:$0xff] %v22419_v8  ;;  %v22425_v11 = vpop.f32.mrb[57].mxu1  ;;  %18289 = vmatprep.mubr.msk.bf16.mxu0 %vm1213_vm3, %v11123_v60  ;;  %v5837_v60 = vrot.slane %v5835_v54, 2  ;;  %v11129_v19 = vsel %vm11024_vm8, %v11126_v5, %v11128_v15  ;;  %v5862_v54 = vshll.u32 %v22105_v59, 16  ;;  %v5829_v5 = vor.u32 %v5828_v9, %v5825_v42  ;;  %v19958_v42 = vld [vmem:[%s20173_s9 + $0x1e8] sm:$0xff]  }
 0x49e   : > { %25613 = vst [vmem:[#allocation45_spill] sm:$0xff] %v22425_v11  ;;  %v22432_v8 = vpop.f32.mrb[58].mxu1  ;;  %v5846_v3 = vrot.slane %v5844_v29, 2  ;;  %v5803_v23 = vsel %vm5327_vm4, %v22411_v43, %v5802_v58  ;;  %v5871_v29 = vshll.u32 %v22126_v27, 16  ;;  %v11138_v43 = vrot.slane %v19958_v42, 3 }
 0x49f   : > { %25614 = vst [vmem:[#allocation46_spill] sm:$0xff] %v22432_v8  ;;  %v22437_v11 = vpop.f32.mrb[59].mxu1  ;;  %v5819_v8 = vrot.slane %v5817_v2, 2  ;;  %v11130_v2 = vrot.slane %v19954_v35, 3 }
 0x4a0   : > { %25615 = vst [vmem:[#allocation47_spill] sm:$0xff] %v22437_v11  ;;  %v5834_v11 = vrot.slane %v5832_v24, 1  ;;  %v5859_v24 = vshrl.u32 %v22105_v59, 16  ;;  %v5868_v59 = vshrl.u32 %v22126_v27, 16  ;;  %v5847_v20 = vor.u32 %v5846_v3, %v5843_v12 }
 0x4a1   : > { %17738 = vmatmul.mubr.msk.bf16.gmra.mrb[96].mxu1 %vm1213_vm3, %v5785_v55  ;;  %v5820_v17 = vor.u32 %v5819_v8, %v5816_v0  ;;  %v11131_v57 = vsel %vm11024_vm8, %v11128_v15, %v11130_v2  ;;  %v5812_v0 = vsel %vm5327_vm4, %v5802_v58, %v5811_v32  ;;  %v22470_v8 = vsel %vm11024_vm8, %v11130_v2, %v11132_v49 }
 0x4a2   : > { %17741 = vmatprep.mubr.msk.bf16.mxu1 %vm1213_vm3, %v5794_v4  ;;  %v19956_v4 = vld [vmem:[%s20173_s9 + $0x1d8] sm:$0xff]   ;;  %v5838_v46 = vor.u32 %v5837_v60, %v5834_v11  ;;  %v5856_v15 = vor.u32 %v5855_v31, %v5852_v36  ;;  %v5861_v9 = vrot.slane %v5859_v24, 1  ;;  %v5864_v60 = vrot.slane %v5862_v54, 2 }
 0x4a3   : > { %v11134_v13 = vrot.slane %v19956_v4, 3  ;;  %v5821_v27 = vsel %vm5327_vm4, %v5811_v32, %v5820_v17  ;;  %v5870_v3 = vrot.slane %v5868_v59, 1  ;;  %v5873_v2 = vrot.slane %v5871_v29, 2  ;;  %v19959_v32 = vld [vmem:[%s20173_s9 + $0x1f0] sm:$0xff]  }
 0x4a4   : > { %v22450_v55 = vpop.f32.mrb[60].mxu1  ;;  %18290 = vmatmul.mubr.msk.bf16.gmra.mrb[96].mxu0 %vm1213_vm3, %v11125_v45  ;;  %v19957_v45 = vld [vmem:[%s20173_s9 + $0x1e0] sm:$0xff]   ;;  %v22481_v35 = vsel %vm5327_vm4, %v5829_v5, %v5838_v46  ;;  %v5877_v12 = vshrl.u32 %v22131_v21, 16  ;;  %v5880_v36 = vshll.u32 %v22131_v21, 16  ;;  %v11140_v24 = vrot.slane %v19959_v32, 3 }
 0x4a5   : > { %25616 = vst [vmem:[#allocation48_spill] sm:$0xff] %v22450_v55  ;;  %v22454_v7 = vpop.f32.mrb[61].mxu1  ;;  %18293 = vmatprep.mubr.msk.bf16.mxu0 %vm1213_vm3, %v11127_v51  ;;  %v11136_v11 = vrot.slane %v19957_v45, 3  ;;  %v5830_v51 = vsel %vm5327_vm4, %v5820_v17, %v5829_v5  ;;  %v22478_v58 = vsel %vm11024_vm8, %v11132_v49, %v11134_v13  ;;  %v5886_v49 = vshrl.u32 %v22152_v38, 16  ;;  %v19960_v45 = vld [vmem:[%s20173_s9 + $0x1f8] sm:$0xff]  }
 0x4a6   : > { %25617 = vst [vmem:[#allocation49_spill] sm:$0xff] %v22454_v7  ;;  %v22458_v41 = vpop.f32.mrb[62].mxu1  ;;  %v5889_v54 = vshll.u32 %v22152_v38, 16  ;;  %v22495_v5 = vsel %vm5327_vm4, %v5838_v46, %v5847_v20  ;;  %v22501_v21 = vsel %vm5327_vm4, %v5847_v20, %v5856_v15  ;;  %v5895_v59 = vshrl.u32 %v22157_v53, 16 }
 0x4a7   : > { %25618 = vst [vmem:[#allocation50_spill] sm:$0xff] %v22458_v41  ;;  %v22465_v44 = vpop.f32.mrb[63].mxu1  ;;  %v22487_v31 = vsel %vm11024_vm8, %v11134_v13, %v11136_v11  ;;  %v22498_v4 = vsel %vm11024_vm8, %v11136_v11, %v11138_v43  ;;  %v5865_v13 = vor.u32 %v5864_v60, %v5861_v9  ;;  %v5898_v29 = vshll.u32 %v22157_v53, 16 }
 0x4a8   : > { %25619 = vst [vmem:[#allocation51_spill] sm:$0xff] %v22465_v44  ;;  %v5904_v38 = vshrl.u32 %v22178_v18, 16  ;;  %v11142_v11 = vrot.slane %v19960_v45, 3  ;;  %v5874_v20 = vor.u32 %v5873_v2, %v5870_v3  ;;  %v5879_v42 = vrot.slane %v5877_v12, 1 }
 0x4a9   : > { %17742 = vmatmul.mubr.msk.bf16.gmra.mrb[100].mxu1 %vm1213_vm3, %v5803_v23  ;;  %v5882_v9 = vrot.slane %v5880_v36, 2  ;;  %v5888_v32 = vrot.slane %v5886_v49, 1  ;;  %v5891_v53 = vrot.slane %v5889_v54, 2  ;;  %v5922_v3 = vshrl.u32 %v22204_v39, 16 }
 0x4aa   : > { %17745 = vmatprep.mubr.msk.bf16.mxu1 %vm1213_vm3, %v5812_v0  ;;  %v5907_v0 = vshll.u32 %v22178_v18, 16  ;;  %v22519_v18 = vsel %vm11024_vm8, %v11138_v43, %v11140_v24  ;;  %v5925_v2 = vshll.u32 %v22204_v39, 16  ;;  %v5897_v12 = vrot.slane %v5895_v59, 1 }
 0x4ab   : > { %v5906_v36 = vrot.slane %v5904_v38, 1  ;;  %v22530_v43 = vsel %vm11024_vm8, %v11140_v24, %v11142_v11  ;;  %v22533_v54 = vsel %vm5327_vm4, %v5865_v13, %v5874_v20  ;;  %v5883_v39 = vor.u32 %v5882_v9, %v5879_v42 }
 0x4ac   : > { %v22492_v17 = vpop.f32.mrb[64].mxu1  ;;  %18294 = vmatmul.mubr.msk.bf16.gmra.mrb[100].mxu0 %vm1213_vm3, %v11129_v19  ;;  %v19961_v19 = vld [vmem:[%s20173_s9 + $0x200] sm:$0xff]   ;;  %v5909_v49 = vrot.slane %v5907_v0, 2  ;;  %v5927_v0 = vrot.slane %v5925_v2, 2  ;;  %v5931_v45 = vshrl.u32 %v22209_v40, 16  ;;  %v5934_v24 = vshll.u32 %v22209_v40, 16 }
 0x4ad   : > { %25620 = vst [vmem:[#allocation52_spill] sm:$0xff] %v22492_v17  ;;  %v22503_v23 = vpop.f32.mrb[65].mxu1  ;;  %18297 = vmatprep.mubr.msk.bf16.mxu0 %vm1213_vm3, %v11131_v57  ;;  %v5916_v17 = vshll.u32 %v22183_v62, 16  ;;  %v5900_v57 = vrot.slane %v5898_v29, 2  ;;  %v5892_v29 = vor.u32 %v5891_v53, %v5888_v32  ;;  %v19965_v53 = vld [vmem:[%s20173_s9 + $0x220] sm:$0xff]  }
 0x4ae   : > { %25621 = vst [vmem:[#allocation53_spill] sm:$0xff] %v22503_v23  ;;  %v22510_v46 = vpop.f32.mrb[66].mxu1  ;;  %v5913_v23 = vshrl.u32 %v22183_v62, 16  ;;  %v22527_v62 = vsel %vm5327_vm4, %v5856_v15, %v5865_v13  ;;  %v5924_v15 = vrot.slane %v5922_v3, 1  ;;  %v19963_v13 = vld [vmem:[%s20173_s9 + $0x210] sm:$0xff]   ;;  %v11152_v3 = vrot.slane %v19965_v53, 3 }
 0x4af   : > { %25622 = vst [vmem:[#allocation54_spill] sm:$0xff] %v22510_v46  ;;  %v22513_v60 = vpop.f32.mrb[67].mxu1  ;;  %v11144_v46 = vrot.slane %v19961_v19, 3  ;;  %v11148_v42 = vrot.slane %v19963_v13, 3  ;;  %v5901_v9 = vor.u32 %v5900_v57, %v5897_v12  ;;  %v19964_v19 = vld [vmem:[%s20173_s9 + $0x218] sm:$0xff]   ;;  %v22553_v12 = vsel %vm5327_vm4, %v5874_v20, %v5883_v39 }
 0x4b0   : > { %25623 = vst [vmem:[#allocation55_spill] sm:$0xff] %v22513_v60  ;;  %v5915_v38 = vrot.slane %v5913_v23, 1  ;;  %v11150_v32 = vrot.slane %v19964_v19, 3  ;;  %v5910_v23 = vor.u32 %v5909_v49, %v5906_v36  ;;  %v19966_v2 = vld [vmem:[%s20173_s9 + $0x230] ss:$0 sps:$4 sm:$0x33]   ;;  %v5928_v13 = vor.u32 %v5927_v0, %v5924_v15 }
 0x4b1   : > { %17746 = vmatmul.mubr.msk.bf16.gmra.mrb[104].mxu1 %vm1213_vm3, %v5821_v27  ;;  %v19962_v27 = vld [vmem:[%s20173_s9 + $0x208] sm:$0xff]   ;;  %v5940_v40 = vshrl.u32 %v19966_v2, 16  ;;  %v5933_v19 = vrot.slane %v5931_v45, 1  ;;  %v5936_v53 = vrot.slane %v5934_v24, 2 }
 0x4b2   : > { %17749 = vmatprep.mubr.msk.bf16.mxu1 %vm1213_vm3, %v5830_v51  ;;  %v11146_v59 = vrot.slane %v19962_v27, 3  ;;  %v5918_v51 = vrot.slane %v5916_v17, 2  ;;  %v22546_v17 = vsel %vm11024_vm8, %v11142_v11, %v11144_v46  ;;  %v5943_v27 = vshll.u32 %v19966_v2, 16  ;;  %v19967_v49 = vld [vmem:[%s20173_s9 + $0x228] sm:$0xff]  }
 0x4b3   : > { %v22561_v11 = vsel %vm5327_vm4, %v5883_v39, %v5892_v29  ;;  %v22572_v20 = vsel %vm11024_vm8, %v11148_v42, %v11150_v32  ;;  %v22575_v39 = vsel %vm5327_vm4, %v5901_v9, %v5910_v23 }
 0x4b4   : > { %18298 = vmatmul.mubr.msk.bf16.gmra.mrb[104].mxu0 %vm1213_vm3, %v22470_v8  ;;  %v22556_v57 = vsel %vm11024_vm8, %v11144_v46, %v11146_v59  ;;  %v5919_v36 = vor.u32 %v5918_v51, %v5915_v38  ;;  %v11154_v8 = vrot.slane %v19967_v49, 3  ;;  %v22569_v46 = vsel %vm5327_vm4, %v5892_v29, %v5901_v9 }
 0x4b5   : > { %18301 = vmatprep.mubr.msk.bf16.mxu0 %vm1213_vm3, %v22478_v58  ;;  %v22566_v58 = vsel %vm11024_vm8, %v11146_v59, %v11148_v42  ;;  %v5942_v59 = vrot.slane %v5940_v40, 1  ;;  %v5945_v15 = vrot.slane %v5943_v27, 2  ;;  %v5937_v27 = vor.u32 %v5936_v53, %v5933_v19 }
 0x4b6   : > { %v22585_v45 = vsel %vm5327_vm4, %v5910_v23, %v5919_v36  ;;  %v22588_v24 = vsel %vm11024_vm8, %v11152_v3, %v11154_v8  ;;  %v22593_v40 = vsel %vm5327_vm4, %v5919_v36, %v5928_v13  ;;  %v19969_v23 = vld [vmem:[%s20173_s9 + $0x238] sm:$0xff]  }
 0x4b7   : > { %v18195_v2 = vpop.f32.mrb[0].mxu0  ;;  %v5946_v36 = vor.u32 %v5945_v15, %v5942_v59  ;;  %v22618_v15 = vsel %vm5327_vm4, %v5928_v13, %v5937_v27 }
 0x4b8   : > { %v18331_v38 = vadd.f32 %v18195_v2, %v22082_v34  ;;  %v11403_v51 = vpop.f32.mrb[1].mxu0  ;;  %v19968_v34 = vld [vmem:[%s20173_s9 + $0x230] sm:$0xff]  }
 0x4b9   : > { %17750 = vmatmul.mubr.msk.bf16.gmra.mrb[108].mxu1 %vm1213_vm3, %v22481_v35  ;;  %v22581_v35 = vsel %vm11024_vm8, %v11150_v32, %v11152_v3  ;;  %v18332_v29 = vadd.f32 %v11403_v51, %v22085_v37  ;;  %v18196_v0 = vpop.f32.mrb[2].mxu0  ;;  %v11156_v42 = vrot.slane %v19968_v34, 3  ;;  %v11158_v51 = vrot.slane %v19969_v23, 3 }
 0x4ba   : > { %17753 = vmatprep.mubr.msk.bf16.mxu1 %vm1213_vm3, %v22495_v5  ;;  %v16315_v9 = vpack.c.bf16 %v18331_v38, %v18331_v38  ;;  %v18333_v5 = vadd.f32 %v18196_v0, %v22088_v52  ;;  %v11406_v32 = vpop.f32.mrb[3].mxu0  ;;  %v12120_v52 = vmul.f32 %v18331_v38, %v18331_v38 }
 0x4bb   : > { %v16313_v37 = vpack.c.bf16 %v18332_v29, %v18332_v29  ;;  %v12118_v49 = vmul.f32 %v18332_v29, %v18332_v29  ;;  %v18334_v2 = vadd.f32 %v11406_v32, %v22091_v1  ;;  %v19970_v1 = vld [vmem:[%s20173_s9 + $0x240] ss:$0 sps:$4 sm:$0x77]   ;;  %v12104_v53 = vsel %vm12103_vm10, %v18332_v29, 0.0  ;;  %s25333_s9 = scalar_lea.hbm %s25426_s2, %s16465_s5 }
 0x4bc   : > { %12101 = vst.msk [vmem:[%s22599_s4 + $0x8] sm:$0xf] %vm12098_vm9, %v16315_v9  ;;  %v16316_v3 = vpack.c.bf16 %v18333_v5, %v18333_v5  ;;  %18302 = vmatmul.mubr.msk.bf16.gmra.mrb[108].mxu0 %vm1213_vm3, %v22487_v31  ;;  %v11160_v19 = vrot.slane %v19970_v1, 3  ;;  %v12121_v31 = vmul.f32 %v18333_v5, %v18333_v5  ;;  %v22615_v59 = vsel %vm11024_vm8, %v11154_v8, %v11156_v42 }
 0x4bd   : > { %12099 = vst.msk [vmem:[%s22599_s4] sm:$0xf] %vm12098_vm9, %v16313_v37  ;;  %v16314_v0 = vpack.c.bf16 %v18334_v2, %v18334_v2  ;;  %v12105_v34 = vsel %vm12103_vm10, %v18334_v2, 0.0  ;;  %v12119_v32 = vmul.f32 %v18334_v2, %v18334_v2  ;;  %18305 = vmatprep.mubr.msk.bf16.mxu0 %vm1213_vm3, %v22498_v4  ;;  %v12107_v37 = vsel %vm12103_vm10, %v18331_v38, 0.0 }
 0x4be   : > { %12102 = vst.msk [vmem:[%s22599_s4 + $0xc] sm:$0xf] %vm12098_vm9, %v16316_v3  ;;  %v12106_v9 = vadd.f32 %v12105_v34, %v12104_v53  ;;  %v12122_v29 = vsel %vm12103_vm10, %v12118_v49, 0.0  ;;  %v22628_v4 = vsel %vm11024_vm8, %v11156_v42, %v11158_v51  ;;  %v22636_v38 = vsel %vm5327_vm4, %v5937_v27, %v5946_v36 }
 0x4bf   : > { %12100 = vst.msk [vmem:[%s22599_s4 + $0x4] sm:$0xf] %vm12098_vm9, %v16314_v0  ;;  %v12123_v2 = vsel %vm12103_vm10, %v12119_v32, 0.0  ;;  %v18199_v23 = vpop.f32.mrb[4].mxu0  ;;  %v12125_v49 = vsel %vm12103_vm10, %v12120_v52, 0.0  ;;  %v12109_v53 = vsel %vm12103_vm10, %v18333_v5, 0.0  ;;  %v22642_v0 = vsel %vm11024_vm8, %v11158_v51, %v11160_v19 }
 0x4c0   : > { %v12108_v8 = vadd.f32 %v12107_v37, %v12106_v9  ;;  %v12124_v3 = vadd.f32 %v12123_v2, %v12122_v29  ;;  %v22631_v13 = vadd.f32 %v18199_v23, %v22108_v22  ;;  %v11419_v1 = vpop.f32.mrb[5].mxu0  ;;  %v12127_v22 = vsel %vm12103_vm10, %v12121_v31, 0.0 }
 0x4c1   : > { %17754 = vmatmul.mubr.msk.bf16.gmra.mrb[112].mxu1 %vm1213_vm3, %v22501_v21  ;;  %v18336_v21 = vadd.f32 %v11419_v1, %v22111_v14  ;;  %v18200_v42 = vpop.f32.mrb[6].mxu0  ;;  %vm12372_vm4 = vcmask 1044484  }
 0x4c2   : > { %17757 = vmatprep.mubr.msk.bf16.mxu1 %vm1213_vm3, %v22527_v62  ;;  %v12110_v34 = vadd.f32 %v12109_v53, %v12108_v8  ;;  %v12126_v32 = vadd.f32 %v12125_v49, %v12124_v3  ;;  %v16319_v62 = vpack.c.bf16 %v22631_v13, %v22631_v13  ;;  %v11422_v9 = vpop.f32.mrb[7].mxu0  ;;  %v12186_v27 = vrot.slane %v22631_v13, 2  ;;  %vm22907_vm6 = vmor %vm1418_vm0, %vm12372_vm4 }
 0x4c3   : > { %v22650_v52 = vmul.f32 %v22631_v13, %v22631_v13  ;;  %v16317_v5 = vpack.c.bf16 %v18336_v21, %v18336_v21  ;;  %v12183_v14 = vrot.slane %v18336_v21, 2  ;;  %v22653_v19 = vadd.f32 %v18200_v42, %v22114_v33 }
 0x4c4   : > { %v12111_v36 = vrot.slane %v12110_v34, 4  ;;  %v12128_v37 = vadd.f32 %v12127_v22, %v12126_v32  ;;  %v12160_v51 = vrot.slane %v16319_v62, 5  ;;  %18306 = vmatmul.mubr.msk.bf16.gmra.mrb[112].mxu0 %vm1213_vm3, %v22519_v18  ;;  %v12210_v2 = vmul.f32 %v18336_v21, %v18336_v21 }
 0x4c5   : > { %v12223_v31 = vrot.slane %v22650_v52, 2  ;;  %v16015_v29 = vrot.slane %v16317_v5, 9  ;;  %v18338_v23 = vadd.f32 %v11422_v9, %v22117_v6  ;;  %18309 = vmatprep.mubr.msk.bf16.mxu0 %vm1213_vm3, %v22530_v43  ;;  %v16320_v1 = vpack.c.bf16 %v22653_v19, %v22653_v19 }
 0x4c6   : > { %v12112_v8 = vadd.f32 %v12111_v36, %v12110_v34  ;;  %v12129_v3 = vrot.slane %v12128_v37, 4  ;;  %v12162_v13 = vrot.slane %v12160_v51, 4  ;;  %v25481_v18 = vrot.slane %v22653_v19, 2 }
 0x4c7   : > { %v22672_v6 = vmul.f32 %v22653_v19, %v22653_v19  ;;  %v16318_v49 = vpack.c.bf16 %v18338_v23, %v18338_v23  ;;  %v12184_v43 = vrot.slane %v18338_v23, 2  ;;  %v18203_v53 = vpop.f32.mrb[8].mxu0  ;;  %v22676_v22 = vrot.slane %v16320_v1, 5 }
 0x4c8   : > { %v12113_v21 = vrot.slane %v12112_v8, 2  ;;  %v12130_v42 = vadd.f32 %v12129_v3, %v12128_v37  ;;  %v12211_v34 = vmul.f32 %v18338_v23, %v18338_v23  ;;  %v11435_v32 = vpop.f32.mrb[9].mxu0  ;;  %v12189_v62 = vsel %vm6874_vm5, %v12186_v27, %v25481_v18 }
 0x4c9   : > { %17758 = vmatmul.mubr.msk.bf16.gmra.mrb[116].mxu1 %vm1213_vm3, %v22533_v54  ;;  %v25482_v9 = vrot.slane %v22672_v6, 2  ;;  %v12157_v52 = vrot.slane %v16318_v49, 5  ;;  %v12185_v5 = vsel %vm6874_vm5, %v12183_v14, %v12184_v43  ;;  %v18204_v54 = vpop.f32.mrb[10].mxu0  ;;  %v12220_v3 = vrot.slane %v12210_v2, 2 }
 0x4ca   : > { %17761 = vmatprep.mubr.msk.bf16.mxu1 %vm1213_vm3, %v22553_v12  ;;  %v12114_v36 = vadd.f32 %v12113_v21, %v12112_v8  ;;  %v12131_v37 = vrot.slane %v12130_v42, 2  ;;  %v12164_v23 = vsel %vm22665_vm13, %v12162_v13, %v22676_v22  ;;  %v22688_v12 = vpop.f32.mrb[11].mxu0  ;;  %v12165_v1 = vrot.slane %v22676_v22, 4 }
 0x4cb   : > { %16018 = vst.msk [vmem:[%s22599_s4 + $0x18] sm:$0xf] %vm12098_vm9, %v12164_v23  ;;  %v12226_v14 = vsel %vm6874_vm5, %v12223_v31, %v25482_v9  ;;  %v12158_v49 = vsel %vm22665_vm13, %v16015_v29, %v12157_v52  ;;  %v12159_v8 = vrot.slane %v12157_v52, 4  ;;  %v12199_v18 = vsel %vm12103_vm10, %v12189_v62, 0.0 }
 0x4cc   : > { %v12115_v2 = vrot.slane %v12114_v36, 1  ;;  %v12132_v21 = vadd.f32 %v12131_v37, %v12130_v42  ;;  %16016 = vst.msk [vmem:[%s22599_s4 + $0x10] sm:$0xf] %vm12098_vm9, %v12158_v49  ;;  %v12187_v13 = vsel %vm6874_vm5, %v12184_v43, %v12186_v27  ;;  %18310 = vmatmul.mubr.msk.bf16.gmra.mrb[116].mxu0 %vm1213_vm3, %v22546_v17  ;;  %v12196_v23 = vsel %vm12103_vm10, %v12185_v5, 0.0 }
 0x4cd   : > { %v12161_v22 = vsel %vm22665_vm13, %v12159_v8, %v12160_v51  ;;  %v12197_v29 = vsel %vm12103_vm10, %v12187_v13, 0.0  ;;  %v12221_v9 = vrot.slane %v12211_v34, 2  ;;  %18313 = vmatprep.mubr.msk.bf16.mxu0 %vm1213_vm3, %v22556_v57  ;;  %v12236_v62 = vsel %vm12103_vm10, %v12226_v14, 0.0 }
 0x4ce   : > { %v12133_v42 = vrot.slane %v12132_v21, 1  ;;  %16017 = vst.msk [vmem:[%s22599_s4 + $0x14] sm:$0xf] %vm12098_vm9, %v12161_v22  ;;  %v12198_v27 = vadd.f32 %v12197_v29, %v12196_v23  ;;  %v22714_v17 = vadd.f32 %v18203_v53, %v22134_v63  ;;  %v22719_v52 = vadd.f32 %v11435_v32, %v22137_v48 }
 0x4cf   : > { %v12222_v51 = vsel %vm6874_vm5, %v12220_v3, %v12221_v9  ;;  %v12224_v43 = vsel %vm6874_vm5, %v12221_v9, %v12223_v31  ;;  %v22722_v34 = vadd.f32 %v18204_v54, %v22140_v25  ;;  %v18207_v57 = vpop.f32.mrb[12].mxu0  ;;  %v22726_v5 = vadd.f32 %v12115_v2, %v12114_v36 }
 0x4d0   : > { %v12200_v37 = vadd.f32 %v12199_v18, %v12198_v27  ;;  %v12233_v63 = vsel %vm12103_vm10, %v12222_v51, 0.0  ;;  %v12234_v53 = vsel %vm12103_vm10, %v12224_v43, 0.0  ;;  %v11451_v3 = vpop.f32.mrb[13].mxu0  ;;  %v22732_v48 = vadd.f32 %v12133_v42, %v12132_v21 }
 0x4d1   : > { %17762 = vmatmul.mubr.msk.bf16.gmra.mrb[120].mxu1 %vm1213_vm3, %v22561_v11  ;;  %v12235_v31 = vadd.f32 %v12234_v53, %v12233_v63  ;;  %v16324_v25 = vpack.c.bf16 %v22714_v17, %v22714_v17  ;;  %v22738_v11 = vmul.f32 %v22714_v17, %v22714_v17  ;;  %v22740_v32 = vpop.f32.mrb[14].mxu0  ;;  %v12296_v18 = vrot.slane %v22714_v17, 4 }
 0x4d2   : > { %17765 = vmatprep.mubr.msk.bf16.mxu1 %vm1213_vm3, %v22569_v46  ;;  %v22745_v9 = vpack.c.bf16 %v22719_v52, %v22719_v52  ;;  %v12190_v46 = vrot.slane %v22719_v52, 2  ;;  %v22750_v54 = vmul.f32 %v22719_v52, %v22719_v52  ;;  %v22752_v36 = vpop.f32.mrb[15].mxu0  ;;  %v12293_v8 = vrot.slane %v22719_v52, 4 }
 0x4d3   : > { %v12237_v14 = vadd.f32 %v12236_v62, %v12235_v31  ;;  %v22754_v49 = vrot.slane %v16324_v25, 6  ;;  %v16325_v2 = vpack.c.bf16 %v22722_v34, %v22722_v34  ;;  %v12331_v21 = vrot.slane %v22738_v11, 4 }
 0x4d4   : > { %v12166_v13 = vrot.slane %v22745_v9, 5  ;;  %v25626_v22 = vrot.slane %v22653_v19, 2  ;;  %v12227_v29 = vrot.slane %v22750_v54, 2  ;;  %18314 = vmatmul.mubr.msk.bf16.gmra.mrb[120].mxu0 %vm1213_vm3, %v22566_v58  ;;  %v16025_v17 = vrot.slane %v22745_v9, 10 }
 0x4d5   : > { %v12273_v62 = vrot.slane %v22754_v49, 4  ;;  %v22776_v19 = vrot.slane %v16325_v2, 6  ;;  %18317 = vmatprep.mubr.msk.bf16.mxu0 %vm1213_vm3, %v22572_v20  ;;  %v25629_v52 = vrot.slane %v22672_v6, 2  ;;  %v12298_v63 = vrot.slane %v22722_v34, 4 }
 0x4d6   : > { %v12191_v23 = vsel %vm6874_vm5, %v25626_v22, %v12190_v46  ;;  %v12167_v51 = vsel %vm22665_vm13, %v12165_v1, %v12166_v13  ;;  %v12328_v31 = vrot.slane %v22750_v54, 4  ;;  %v22795_v1 = vmul.f32 %v22722_v34, %v22722_v34  ;;  %v25630_v46 = vld [vmem:[#allocation10_spill] sm:$0xff]  ;;  %v25631_v22 = vld [vmem:[#allocation13_spill] sm:$0xff] }
 0x4d7   : > { %v12201_v27 = vsel %vm12103_vm10, %v12191_v23, 0.0  ;;  %v12228_v58 = vsel %vm6874_vm5, %v25629_v52, %v12227_v29  ;;  %16019 = vst.msk [vmem:[%s22599_s4 + $0x1c] sm:$0xf] %vm12098_vm9, %v12167_v51  ;;  %v12275_v20 = vsel %vm22767_vm2, %v12273_v62, %v22776_v19  ;;  %v12299_v9 = vsel %vm12292_vm15, %v12296_v18, %v12298_v63  ;;  %v25632_v23 = vld [vmem:[#allocation11_spill] sm:$0xff] }
 0x4d8   : > { %v12202_v43 = vadd.f32 %v12201_v27, %v12200_v37  ;;  %v12238_v53 = vsel %vm12103_vm10, %v12228_v58, 0.0  ;;  %v22797_v37 = vpop.f32.mrb[16].mxu0  ;;  %16028 = vst.msk [vmem:[%s22599_s4 + $0x28] sm:$0xf] %vm12098_vm9, %v12275_v20  ;;  %v18342_v54 = vadd.f32 %v22688_v12, %v25630_v46  ;;  %v22818_v29 = vadd.f32 %v11451_v3, %v25632_v23 }
 0x4d9   : > { %17766 = vmatmul.mubr.msk.bf16.gmra.mrb[124].mxu1 %vm1213_vm3, %v22575_v39  ;;  %v12239_v25 = vadd.f32 %v12238_v53, %v12237_v14  ;;  %v22808_v2 = vpop.f32.mrb[17].mxu0  ;;  %v25483_v39 = vrot.slane %v22795_v1, 4  ;;  %v22815_v14 = vadd.f32 %v18207_v57, %v25631_v22 }
 0x4da   : > { %v12203_v6 = vrot.slane %v12202_v43, 4  ;;  %17769 = vmatprep.mubr.msk.bf16.mxu1 %vm1213_vm3, %v22585_v45  ;;  %v22820_v62 = vpop.f32.mrb[18].mxu0  ;;  %v16323_v12 = vpack.c.bf16 %v18342_v54, %v18342_v54  ;;  %v12294_v52 = vrot.slane %v18342_v54, 4  ;;  %v12309_v45 = vsel %vm12103_vm10, %v12299_v9, 0.0 }
 0x4db   : > { %v12240_v51 = vrot.slane %v12239_v25, 4  ;;  %v22822_v58 = vpop.f32.mrb[19].mxu0  ;;  %v12334_v57 = vsel %vm12292_vm15, %v12331_v21, %v25483_v39  ;;  %v12320_v53 = vmul.f32 %v18342_v54, %v18342_v54  ;;  %v16329_v3 = vpack.c.bf16 %v22815_v14, %v22815_v14 }
 0x4dc   : > { %v12204_v27 = vadd.f32 %v12203_v6, %v12202_v43  ;;  %v12268_v6 = vrot.slane %v16323_v12, 6  ;;  %v12403_v46 = vrot.slane %v22815_v14, 6  ;;  %18318 = vmatmul.mubr.msk.bf16.gmra.mrb[124].mxu0 %vm1213_vm3, %v22581_v35  ;;  %v12295_v9 = vsel %vm12292_vm15, %v12293_v8, %v12294_v52 }
 0x4dd   : > { %v12241_v20 = vadd.f32 %v12240_v51, %v12239_v25  ;;  %v12297_v22 = vsel %vm12292_vm15, %v12294_v52, %v12296_v18  ;;  %v12329_v23 = vrot.slane %v12320_v53, 4  ;;  %v22837_v39 = vrot.slane %v16329_v3, 7  ;;  %18321 = vmatprep.mubr.msk.bf16.mxu0 %vm1213_vm3, %v22588_v24 }
 0x4de   : > { %v12205_v43 = vrot.slane %v12204_v27, 2  ;;  %v12269_v25 = vsel %vm22767_vm2, %v16025_v17, %v12268_v6  ;;  %v12270_v51 = vrot.slane %v12268_v6, 4  ;;  %v12306_v35 = vsel %vm12103_vm10, %v12295_v9, 0.0 }
 0x4df   : > { %v12242_v13 = vrot.slane %v12241_v20, 2  ;;  %16026 = vst.msk [vmem:[%s22599_s4 + $0x20] sm:$0xf] %vm12098_vm9, %v12269_v25  ;;  %v12307_v8 = vsel %vm12103_vm10, %v12297_v22, 0.0  ;;  %v12330_v18 = vsel %vm12292_vm15, %v12328_v31, %v12329_v23  ;;  %v12332_v12 = vsel %vm12292_vm15, %v12329_v23, %v12331_v21  ;;  %v22851_v24 = vpop.f32.mrb[20].mxu0 }
 0x4e0   : > { %v12206_v54 = vadd.f32 %v12205_v43, %v12204_v27  ;;  %v12272_v52 = vsel %vm22767_vm2, %v12270_v51, %v22754_v49  ;;  %v12308_v53 = vadd.f32 %v12307_v8, %v12306_v35  ;;  %v22858_v3 = vpop.f32.mrb[21].mxu0  ;;  %v12344_v11 = vsel %vm12103_vm10, %v12334_v57, 0.0  ;;  %v25633_v35 = vld [vmem:[#allocation12_spill] sm:$0xff] }
 0x4e1   : > { %17770 = vmatmul.mubr.msk.bf16.gmra.mrb[128].mxu1 %vm1213_vm3, %v22593_v40  ;;  %v12243_v27 = vadd.f32 %v12242_v13, %v12241_v20  ;;  %16027 = vst.msk [vmem:[%s22599_s4 + $0x24] sm:$0xf] %vm12098_vm9, %v12272_v52  ;;  %v12341_v21 = vsel %vm12103_vm10, %v12330_v18, 0.0  ;;  %v12342_v40 = vsel %vm12103_vm10, %v12332_v12, 0.0  ;;  %v22869_v31 = vmul.f32 %v22815_v14, %v22815_v14  ;;  %v22871_v13 = vpop.f32.mrb[22].mxu0 }
 0x4e2   : > { %v12207_v17 = vrot.slane %v12206_v54, 1  ;;  %17773 = vmatprep.mubr.msk.bf16.mxu1 %vm1213_vm3, %v22618_v15  ;;  %v12310_v43 = vadd.f32 %v12309_v45, %v12308_v53  ;;  %v12343_v20 = vadd.f32 %v12342_v40, %v12341_v21  ;;  %v12381_v6 = vrot.slane %v22837_v39, 4  ;;  %v22874_v15 = vpop.f32.mrb[23].mxu0 }
 0x4e3   : > { %v12244_v49 = vrot.slane %v12243_v27, 1  ;;  %v16326_v9 = vpack.c.bf16 %v22818_v29, %v22818_v29  ;;  %v12300_v22 = vrot.slane %v22818_v29, 4  ;;  %v22883_v23 = vmul.f32 %v22818_v29, %v22818_v29 }
 0x4e4   : > { %v22876_v57 = vadd.f32 %v12207_v17, %v12206_v54  ;;  %v12345_v51 = vadd.f32 %v12344_v11, %v12343_v20  ;;  %v12438_v45 = vrot.slane %v22869_v31, 6  ;;  %v22890_v8 = vadd.f32 %v22740_v32, %v25633_v35  ;;  %18322 = vmatmul.mubr.msk.bf16.gmra.mrb[128].mxu0 %vm1213_vm3, %v22615_v59 }
 0x4e5   : > { %v22885_v25 = vadd.f32 %v12244_v49, %v12243_v27  ;;  %v12277_v54 = vrot.slane %v16326_v9, 6  ;;  %v12301_v18 = vsel %vm12292_vm15, %v12298_v63, %v12300_v22  ;;  %v12335_v12 = vrot.slane %v22883_v23, 4  ;;  %18325 = vmatprep.mubr.msk.bf16.mxu0 %vm1213_vm3, %v22628_v4  ;;  %v25638_v49 = vld [vmem:[#allocation14_spill] sm:$0xff] }
 0x4e6   : > { %v12400_v17 = vrot.slane %v22818_v29, 6  ;;  %v12311_v27 = vsel %vm12103_vm10, %v12301_v18, 0.0  ;;  %v16035_v32 = vrot.slane %v16326_v9, 11  ;;  %v16330_v52 = vpack.c.bf16 %v22890_v8, %v22890_v8 }
 0x4e7   : > { %v12405_v59 = vrot.slane %v22890_v8, 6  ;;  %v25636_v63 = vrot.slane %v22776_v19, 4  ;;  %v12312_v4 = vadd.f32 %v12311_v27, %v12310_v43  ;;  %v25637_v53 = vrot.slane %v22795_v1, 4  ;;  %v22922_v40 = vpop.f32.mrb[24].mxu0 }
 0x4e8   : > { %v22920_v21 = vmul.f32 %v22890_v8, %v22890_v8  ;;  %v22929_v31 = vrot.slane %v16330_v52, 7  ;;  %v18346_v43 = vadd.f32 %v22752_v36, %v25638_v49  ;;  %v22938_v20 = vpop.f32.mrb[25].mxu0  ;;  %v12435_v22 = vrot.slane %v22883_v23, 6 }
 0x4e9   : > { %v12278_v29 = vsel %vm22767_vm2, %v25636_v63, %v12277_v54  ;;  %v12336_v11 = vsel %vm12292_vm15, %v25637_v53, %v12335_v12  ;;  %17774 = vmatmul.mubr.msk.bf16.gmra.mrb[132].mxu1 %vm1213_vm3, %v22636_v38  ;;  %v12406_v1 = vsel %vm1419_vm1, %v12403_v46, %v12405_v59  ;;  %v12313_v9 = vrot.slane %v12312_v4, 4  ;;  %v22942_v54 = vpop.f32.mrb[26].mxu0 }
 0x4ea   : > { %16029 = vst.msk [vmem:[%s22599_s4 + $0x2c] sm:$0xf] %vm12098_vm9, %v12278_v29  ;;  %v12346_v19 = vsel %vm12103_vm10, %v12336_v11, 0.0  ;;  %v12440_v35 = vrot.slane %v22920_v21, 6  ;;  %v12383_v18 = vsel %vm22907_vm6, %v12381_v6, %v22929_v31  ;;  %v12416_v12 = vsel %vm12103_vm10, %v12406_v1, 0.0  ;;  %v22948_v63 = vpop.f32.mrb[27].mxu0 }
 0x4eb   : > { %v12347_v38 = vadd.f32 %v12346_v19, %v12345_v51  ;;  %v16328_v27 = vpack.c.bf16 %v18346_v43, %v18346_v43  ;;  %v12401_v52 = vrot.slane %v18346_v43, 6  ;;  %v12314_v36 = vadd.f32 %v12313_v9, %v12312_v4  ;;  %16038 = vst.msk [vmem:[%s22599_s4 + $0x38] sm:$0xf] %vm12098_vm9, %v12383_v18 }
 0x4ec   : > { %v12441_v23 = vsel %vm1419_vm1, %v12438_v45, %v12440_v35  ;;  %v12427_v51 = vmul.f32 %v18346_v43, %v18346_v43  ;;  %v12384_v53 = vrot.slane %v22929_v31, 4  ;;  %18326 = vmatmul.mubr.msk.bf16.gmra.mrb[132].mxu0 %vm1213_vm3, %v22642_v0 }
 0x4ed   : > { %v12348_v29 = vrot.slane %v12347_v38, 4  ;;  %v12376_v11 = vrot.slane %v16328_v27, 7  ;;  %v12402_v6 = vsel %vm1419_vm1, %v12400_v17, %v12401_v52  ;;  %v12404_v19 = vsel %vm1419_vm1, %v12401_v52, %v12403_v46  ;;  %v25639_v46 = vld [vmem:[#allocation17_spill] sm:$0xff] }
 0x4ee   : > { %v12315_v4 = vrot.slane %v12314_v36, 2  ;;  %v12413_v49 = vsel %vm12103_vm10, %v12402_v6, 0.0  ;;  %v12414_v9 = vsel %vm12103_vm10, %v12404_v19, 0.0  ;;  %v12436_v17 = vrot.slane %v12427_v51, 6 }
 0x4ef   : > { %v12349_v1 = vadd.f32 %v12348_v29, %v12347_v38  ;;  %v12377_v43 = vsel %vm22907_vm6, %v16035_v32, %v12376_v11  ;;  %v12378_v31 = vrot.slane %v12376_v11, 4  ;;  %v12415_v18 = vadd.f32 %v12414_v9, %v12413_v49  ;;  %v25640_v38 = vld [vmem:[#allocation15_spill] sm:$0xff]  ;;  %v22974_v29 = vpop.f32.mrb[28].mxu0 }
 0x4f0   : > { %v22966_v27 = vadd.f32 %v12315_v4, %v12314_v36  ;;  %16036 = vst.msk [vmem:[%s22599_s4 + $0x30] sm:$0xf] %vm12098_vm9, %v12377_v43  ;;  %v18347_v0 = vadd.f32 %v22797_v37, %v25639_v46  ;;  %v18348_v52 = vadd.f32 %v22808_v2, %v25640_v38  ;;  %v12437_v11 = vsel %vm1419_vm1, %v12435_v22, %v12436_v17  ;;  %v22981_v6 = vpop.f32.mrb[29].mxu0  ;;  %v25642_v38 = vld [vmem:[#allocation18_spill] sm:$0xff] }
 0x4f1   : > { %v12350_v14 = vrot.slane %v12349_v1, 2  ;;  %v12380_v32 = vsel %vm22907_vm6, %v12378_v31, %v22837_v39  ;;  %v12439_v36 = vsel %vm1419_vm1, %v12436_v17, %v12438_v45  ;;  %v12417_v51 = vadd.f32 %v12416_v12, %v12415_v18  ;;  %v22988_v49 = vpop.f32.mrb[30].mxu0 }
 0x4f2   : > { %v12451_v37 = vsel %vm12103_vm10, %v12441_v23, 0.0  ;;  %16037 = vst.msk [vmem:[%s22599_s4 + $0x34] sm:$0xf] %vm12098_vm9, %v12380_v32  ;;  %v12448_v2 = vsel %vm12103_vm10, %v12437_v11, 0.0  ;;  %v12449_v4 = vsel %vm12103_vm10, %v12439_v36, 0.0  ;;  %v12317_v39 = vrot.slane %v22966_v27, 1 }
 0x4f3   : > { %v12351_v19 = vadd.f32 %v12350_v14, %v12349_v1  ;;  %v12450_v22 = vadd.f32 %v12449_v4, %v12448_v2  ;;  %v16333_v9 = vpack.c.bf16 %v18347_v0, %v18347_v0  ;;  %v12498_v45 = vmul.f32 %v18347_v0, %v18347_v0  ;;  %v22991_v12 = vpop.f32.mrb[31].mxu0  ;;  %v25641_v14 = vld [vmem:[#allocation16_spill] sm:$0xff]  ;;  %v25643_v2 = vld [vmem:[#allocation21_spill] sm:$0xff] }
 0x4f4   : > { %v12484_v1 = vsel %vm12103_vm10, %v18347_v0, 0.0  ;;  %v16331_v43 = vpack.c.bf16 %v18348_v52, %v18348_v52  ;;  %v12407_v31 = vrot.slane %v18348_v52, 6  ;;  %v12430_v23 = vmul.f32 %v18348_v52, %v18348_v52 }
 0x4f5   : > { %v12352_v18 = vrot.slane %v12351_v19, 1  ;;  %16045 = vst.msk [vmem:[%s22599_s4 + $0x44] sm:$0xf] %vm12098_vm9, %v16333_v9  ;;  %v12452_v17 = vadd.f32 %v12451_v37, %v12450_v22  ;;  %v18349_v46 = vadd.f32 %v22820_v62, %v25641_v14  ;;  %v18350_v32 = vadd.f32 %v22822_v58, %v25642_v38 }
 0x4f6   : > { %v12385_v11 = vrot.slane %v16331_v43, 7  ;;  %v12408_v0 = vsel %vm1419_vm1, %v12405_v59, %v12407_v31  ;;  %v12442_v36 = vrot.slane %v12430_v23, 6  ;;  %v23005_v52 = vadd.f32 %v22851_v24, %v25643_v2 }
 0x4f7   : > { %v12502_v37 = vsel %vm12103_vm10, %v12498_v45, 0.0  ;;  %v12418_v4 = vsel %vm12103_vm10, %v12408_v0, 0.0  ;;  %v16334_v22 = vpack.c.bf16 %v18349_v46, %v18349_v46  ;;  %v12499_v62 = vmul.f32 %v18349_v46, %v18349_v46  ;;  %v23014_v43 = vpop.f32.mrb[32].mxu0 }
 0x4f8   : > { %v12386_v58 = vsel %vm22907_vm6, %v12384_v53, %v12385_v11  ;;  %v12419_v9 = vadd.f32 %v12418_v4, %v12417_v51  ;;  %v12443_v8 = vsel %vm1419_vm1, %v12440_v35, %v12442_v36  ;;  %v16332_v59 = vpack.c.bf16 %v18350_v32, %v18350_v32  ;;  %v23023_v53 = vpop.f32.mrb[33].mxu0  ;;  %v25644_v36 = vld [vmem:[#allocation19_spill] sm:$0xff] }
 0x4f9   : > { %16039 = vst.msk [vmem:[%s22599_s4 + $0x3c] sm:$0xf] %vm12098_vm9, %v12386_v58  ;;  %v12453_v24 = vsel %vm12103_vm10, %v12443_v8, 0.0  ;;  %16046 = vst.msk [vmem:[%s22599_s4 + $0x48] sm:$0xf] %vm12098_vm9, %v16334_v22  ;;  %v12486_v45 = vsel %vm12103_vm10, %v18349_v46, 0.0  ;;  %v12497_v23 = vmul.f32 %v18350_v32, %v18350_v32  ;;  %v16337_v14 = vpack.c.bf16 %v23005_v52, %v23005_v52 }
 0x4fa   : > { %v12483_v31 = vsel %vm12103_vm10, %v18350_v32, 0.0  ;;  %v12420_v51 = vrot.slane %v12419_v9, 4  ;;  %v12454_v21 = vadd.f32 %v12453_v24, %v12452_v17  ;;  %16044 = vst.msk [vmem:[%s22599_s4 + $0x40] sm:$0xf] %vm12098_vm9, %v16332_v59  ;;  %v23029_v38 = vpop.f32.mrb[34].mxu0  ;;  %v12504_v11 = vsel %vm12103_vm10, %v12499_v62, 0.0 }
 0x4fb   : > { %v12485_v35 = vadd.f32 %v12484_v1, %v12483_v31  ;;  %v12501_v0 = vsel %vm12103_vm10, %v12497_v23, 0.0  ;;  %v18352_v32 = vadd.f32 %v22858_v3, %v25644_v36  ;;  %v23036_v2 = vpop.f32.mrb[35].mxu0  ;;  %v23038_v1 = vrot.slane %v16337_v14, 5 }
 0x4fc   : > { %v12421_v17 = vadd.f32 %v12420_v51, %v12419_v9  ;;  %v12455_v4 = vrot.slane %v12454_v21, 4  ;;  %v12503_v22 = vadd.f32 %v12502_v37, %v12501_v0  ;;  %v23042_v58 = vmul.f32 %v23005_v52, %v23005_v52 }
 0x4fd   : > { %v12209_v62 = vadd.f32 %v22876_v57, %v22726_v5  ;;  %v12246_v8 = vadd.f32 %v22885_v25, %v22732_v48  ;;  %v12318_v3 = vadd.f32 %v12317_v39, %v22966_v27  ;;  %v12535_v9 = vrot.slane %v23038_v1, 4  ;;  %v25645_v27 = vld [vmem:[#allocation20_spill] sm:$0xff] }
 0x4fe   : > { %v12422_v59 = vrot.slane %v12421_v17, 2  ;;  %v12456_v24 = vadd.f32 %v12455_v4, %v12454_v21  ;;  %v12353_v37 = vadd.f32 %v12352_v18, %v12351_v19  ;;  %v16335_v23 = vpack.c.bf16 %v18352_v32, %v18352_v32  ;;  %v25646_v19 = vld [vmem:[#allocation22_spill] sm:$0xff] }
 0x4ff   : > { %v12319_v31 = vadd.f32 %v12318_v3, %v12209_v62  ;;  %v12487_v51 = vadd.f32 %v12486_v45, %v12485_v35  ;;  %v12488_v14 = vsel %vm12103_vm10, %v18352_v32, 0.0  ;;  %v12500_v5 = vmul.f32 %v18352_v32, %v18352_v32  ;;  %v23051_v57 = vpop.f32.mrb[36].mxu0  ;;  %v25647_v32 = vld [vmem:[#allocation25_spill] sm:$0xff] }
 0x500   : > { %v12423_v0 = vadd.f32 %v12422_v59, %v12421_v17  ;;  %v12457_v36 = vrot.slane %v12456_v24, 2  ;;  %v12354_v46 = vadd.f32 %v12353_v37, %v12246_v8  ;;  %16047 = vst.msk [vmem:[%s22599_s4 + $0x4c] sm:$0xf] %vm12098_vm9, %v16335_v23  ;;  %v12505_v25 = vadd.f32 %v12504_v11, %v12503_v22  ;;  %v23061_v45 = vpop.f32.mrb[37].mxu0 }
 0x501   : > { %v12489_v48 = vadd.f32 %v12488_v14, %v12487_v51  ;;  %v23057_v39 = vadd.f32 %v22871_v13, %v25645_v27  ;;  %v18354_v18 = vadd.f32 %v22874_v15, %v25646_v19  ;;  %v12506_v17 = vsel %vm12103_vm10, %v12500_v5, 0.0  ;;  %v23068_v62 = vpop.f32.mrb[38].mxu0 }
 0x502   : > { %v12424_v21 = vrot.slane %v12423_v0, 1  ;;  %v12458_v35 = vadd.f32 %v12457_v36, %v12456_v24  ;;  %v23066_v4 = vadd.f32 %v22922_v40, %v25647_v32  ;;  %v12507_v22 = vadd.f32 %v12506_v17, %v12505_v25  ;;  %v23073_v15 = vpop.f32.mrb[39].mxu0 }
 0x503   : > { %v12490_v11 = vrot.slane %v12489_v48, 4  ;;  %v16338_v13 = vpack.c.bf16 %v23057_v39, %v23057_v39  ;;  %v25485_v8 = vrot.slane %v23057_v39, 2  ;;  %v23077_v24 = vmul.f32 %v23057_v39, %v23057_v39 }
 0x504   : > { %v12425_v3 = vadd.f32 %v12424_v21, %v12423_v0  ;;  %v12459_v59 = vrot.slane %v12458_v35, 1  ;;  %v16336_v40 = vpack.c.bf16 %v18354_v18, %v18354_v18  ;;  %v12508_v23 = vrot.slane %v12507_v22, 4 }
 0x505   : > { %v12491_v37 = vadd.f32 %v12490_v11, %v12489_v48  ;;  %v12536_v51 = vrot.slane %v16338_v13, 5  ;;  %v25648_v14 = vrot.slane %v23005_v52, 2  ;;  %v12596_v25 = vrot.slane %v23042_v58, 2 }
 0x506   : > { %v12460_v5 = vadd.f32 %v12459_v59, %v12458_v35  ;;  %v12426_v0 = vadd.f32 %v12425_v3, %v12319_v31  ;;  %v25484_v27 = vrot.slane %v23077_v24, 2  ;;  %v12509_v21 = vadd.f32 %v12508_v23, %v12507_v22 }
 0x507   : > { %v12562_v36 = vsel %vm6874_vm5, %v25648_v14, %v25485_v8  ;;  %v12492_v19 = vrot.slane %v12491_v37, 2  ;;  %v12537_v17 = vsel %vm22665_vm13, %v12535_v9, %v12536_v51  ;;  %v16053_v35 = vrot.slane %v16336_v40, 9  ;;  %v23094_v31 = vpop.f32.mrb[40].mxu0 }
 0x508   : > { %v12572_v48 = vsel %vm12103_vm10, %v12562_v36, 0.0  ;;  %v12461_v32 = vadd.f32 %v12460_v5, %v12354_v46  ;;  %16055 = vst.msk [vmem:[%s22599_s4 + $0x54] sm:$0xf] %vm12098_vm9, %v12537_v17  ;;  %v12599_v11 = vsel %vm6874_vm5, %v12596_v25, %v25484_v27  ;;  %v12558_v58 = vrot.slane %v18354_v18, 2  ;;  %v23096_v23 = vpop.f32.mrb[41].mxu0 }
 0x509   : > { %v12493_v13 = vadd.f32 %v12492_v19, %v12491_v37  ;;  %v12510_v3 = vrot.slane %v12509_v21, 2  ;;  %v12538_v22 = vrot.slane %v12536_v51, 4  ;;  %v12585_v59 = vmul.f32 %v18354_v18, %v18354_v18  ;;  %v23107_v5 = vpop.f32.mrb[42].mxu0 }
 0x50a   : > { %v12609_v9 = vsel %vm12103_vm10, %v12599_v11, 0.0  ;;  %v12534_v46 = vsel %vm22665_vm13, %v16053_v35, %v23038_v1  ;;  %v12560_v36 = vsel %vm6874_vm5, %v12558_v58, %v25648_v14  ;;  %v16342_v40 = vpack.c.bf16 %v23066_v4, %v23066_v4  ;;  %v23112_v17 = vpop.f32.mrb[43].mxu0  ;;  %v25649_v35 = vld [vmem:[#allocation23_spill] sm:$0xff] }
 0x50b   : > { %v12494_v37 = vrot.slane %v12493_v13, 1  ;;  %v12511_v51 = vadd.f32 %v12510_v3, %v12509_v21  ;;  %16054 = vst.msk [vmem:[%s22599_s4 + $0x50] sm:$0xf] %vm12098_vm9, %v12534_v46  ;;  %v12571_v18 = vsel %vm12103_vm10, %v12560_v36, 0.0  ;;  %v12595_v19 = vrot.slane %v12585_v59, 2 }
 0x50c   : > { %v12573_v11 = vadd.f32 %v12572_v48, %v12571_v18  ;;  %v12640_v1 = vrot.slane %v16342_v40, 6  ;;  %v12665_v52 = vrot.slane %v23066_v4, 4  ;;  %v18356_v58 = vadd.f32 %v22938_v20, %v25649_v35 }
 0x50d   : > { %v12495_v14 = vadd.f32 %v12494_v37, %v12493_v13  ;;  %v12512_v27 = vrot.slane %v12511_v51, 1  ;;  %v12597_v8 = vsel %vm6874_vm5, %v12595_v19, %v12596_v25  ;;  %v23120_v21 = vadd.f32 %v22942_v54, %v22243_v50 }
 0x50e   : > { %v12608_v3 = vsel %vm12103_vm10, %v12597_v8, 0.0  ;;  %v12642_v59 = vrot.slane %v12640_v1, 4  ;;  %v23125_v48 = vmul.f32 %v23066_v4, %v23066_v4  ;;  %v16339_v46 = vpack.c.bf16 %v18356_v58, %v18356_v58 }
 0x50f   : > { %v23127_v36 = vadd.f32 %v12495_v14, %v12426_v0  ;;  %v12513_v40 = vadd.f32 %v12512_v27, %v12511_v51  ;;  %v12610_v20 = vadd.f32 %v12609_v9, %v12608_v3  ;;  %v12563_v13 = vrot.slane %v18356_v58, 2  ;;  %v23132_v8 = vpop.f32.mrb[44].mxu0 }
 0x510   : > { %v12539_v37 = vrot.slane %v16339_v46, 5  ;;  %v12588_v25 = vmul.f32 %v18356_v58, %v18356_v58  ;;  %v16343_v50 = vpack.c.bf16 %v23120_v21, %v23120_v21  ;;  %v25486_v54 = vrot.slane %v23120_v21, 4  ;;  %v23145_v51 = vpop.f32.mrb[45].mxu0 }
 0x511   : > { %v23134_v18 = vadd.f32 %v12513_v40, %v12461_v32  ;;  %v25650_v4 = vrot.slane %v23057_v39, 2  ;;  %v23141_v27 = vmul.f32 %v23120_v21, %v23120_v21  ;;  %v18358_v9 = vadd.f32 %v22948_v63, %v22246_v28  ;;  %v23151_v39 = vpop.f32.mrb[46].mxu0 }
 0x512   : > { %v12700_v19 = vrot.slane %v23125_v48, 4  ;;  %v12540_v35 = vsel %vm22665_vm13, %v12538_v22, %v12539_v37  ;;  %v12600_v58 = vrot.slane %v12588_v25, 2  ;;  %v12643_v3 = vrot.slane %v16343_v50, 6  ;;  %v23159_v48 = vpop.f32.mrb[47].mxu0 }
 0x513   : > { %v12564_v0 = vsel %vm6874_vm5, %v25650_v4, %v12563_v13  ;;  %16056 = vst.msk [vmem:[%s22599_s4 + $0x58] sm:$0xf] %vm12098_vm9, %v12540_v35  ;;  %v12668_v28 = vsel %vm12292_vm15, %v12665_v52, %v25486_v54  ;;  %v25487_v63 = vrot.slane %v23141_v27, 4  ;;  %v12541_v46 = vrot.slane %v12539_v37, 4 }
 0x514   : > { %v12574_v32 = vsel %vm12103_vm10, %v12564_v0, 0.0  ;;  %v25651_v22 = vrot.slane %v23077_v24, 2  ;;  %v16340_v25 = vpack.c.bf16 %v18358_v9, %v18358_v9  ;;  %v12565_v4 = vrot.slane %v18358_v9, 2 }
 0x515   : > { %v12575_v14 = vadd.f32 %v12574_v32, %v12573_v11  ;;  %v12644_v11 = vsel %vm22767_vm2, %v12642_v59, %v12643_v3  ;;  %v12678_v50 = vsel %vm12103_vm10, %v12668_v28, 0.0  ;;  %v12703_v35 = vsel %vm12292_vm15, %v12700_v19, %v25487_v63 }
 0x516   : > { %v12601_v40 = vsel %vm6874_vm5, %v25651_v22, %v12600_v58  ;;  %v12645_v37 = vrot.slane %v12643_v3, 4  ;;  %16065 = vst.msk [vmem:[%s22599_s4 + $0x64] sm:$0xf] %vm12098_vm9, %v12644_v11  ;;  %v12542_v24 = vrot.slane %v16340_v25, 5  ;;  %v12566_v22 = vsel %vm6874_vm5, %v12563_v13, %v12565_v4 }
 0x517   : > { %v12611_v0 = vsel %vm12103_vm10, %v12601_v40, 0.0  ;;  %v12576_v54 = vsel %vm12103_vm10, %v12566_v22, 0.0  ;;  %v12589_v40 = vmul.f32 %v18358_v9, %v18358_v9  ;;  %v16063_v60 = vrot.slane %v16340_v25, 10 }
 0x518   : > { %v12612_v32 = vadd.f32 %v12611_v0, %v12610_v20  ;;  %v12664_v59 = vrot.slane %v18358_v9, 4  ;;  %v12543_v28 = vsel %vm22665_vm13, %v12541_v46, %v12542_v24  ;;  %v12577_v44 = vadd.f32 %v12576_v54, %v12575_v14  ;;  %v25652_v20 = vld [vmem:[#allocation24_spill] sm:$0xff]  ;;  %v23185_v0 = vpop.f32.mrb[48].mxu0 }
 0x519   : > { %v23179_v63 = vadd.f32 %v22974_v29, %v22260_v56  ;;  %v23183_v3 = vadd.f32 %v22981_v6, %v25652_v20  ;;  %16057 = vst.msk [vmem:[%s22599_s4 + $0x5c] sm:$0xf] %vm12098_vm9, %v12543_v28  ;;  %v12602_v13 = vrot.slane %v12589_v40, 2  ;;  %v12641_v9 = vsel %vm22767_vm2, %v16063_v60, %v12640_v1  ;;  %v23192_v54 = vpop.f32.mrb[49].mxu0 }
 0x51a   : > { %v12666_v25 = vsel %vm12292_vm15, %v12664_v59, %v12665_v52  ;;  %v12699_v46 = vrot.slane %v12589_v40, 4  ;;  %v12713_v56 = vsel %vm12103_vm10, %v12703_v35, 0.0  ;;  %v12578_v29 = vrot.slane %v12577_v44, 4  ;;  %16064 = vst.msk [vmem:[%s22599_s4 + $0x60] sm:$0xf] %vm12098_vm9, %v12641_v9  ;;  %v23200_v4 = vpop.f32.mrb[50].mxu0 }
 0x51b   : > { %v12677_v6 = vsel %vm12103_vm10, %v12666_v25, 0.0  ;;  %v16347_v14 = vpack.c.bf16 %v23179_v63, %v23179_v63  ;;  %v12603_v11 = vsel %vm6874_vm5, %v12600_v58, %v12602_v13  ;;  %v23206_v1 = vmul.f32 %v23179_v63, %v23179_v63  ;;  %v23210_v35 = vpop.f32.mrb[51].mxu0 }
 0x51c   : > { %v12701_v60 = vsel %vm12292_vm15, %v12699_v46, %v12700_v19  ;;  %v16344_v52 = vpack.c.bf16 %v23183_v3, %v23183_v3  ;;  %v12579_v24 = vadd.f32 %v12578_v29, %v12577_v44  ;;  %v12613_v22 = vsel %vm12103_vm10, %v12603_v11, 0.0 }
 0x51d   : > { %v23213_v40 = vrot.slane %v16347_v14, 7  ;;  %v12669_v59 = vrot.slane %v23183_v3, 4  ;;  %v12614_v58 = vadd.f32 %v12613_v22, %v12612_v32  ;;  %v12679_v20 = vadd.f32 %v12678_v50, %v12677_v6 }
 0x51e   : > { %v12646_v28 = vrot.slane %v16344_v52, 6  ;;  %v12580_v13 = vrot.slane %v12579_v24, 2  ;;  %v25653_v25 = vrot.slane %v23120_v21, 4  ;;  %v12693_v44 = vmul.f32 %v23183_v3, %v23183_v3 }
 0x51f   : > { %v12615_v29 = vrot.slane %v12614_v58, 4  ;;  %v12746_v14 = vrot.slane %v23213_v40, 4  ;;  %v12712_v21 = vsel %vm12103_vm10, %v12701_v60, 0.0  ;;  %v23230_v22 = vpop.f32.mrb[52].mxu0  ;;  %v23234_v3 = vadd.f32 %v22988_v49, %v22266_v10 }
 0x520   : > { %v12670_v46 = vsel %vm12292_vm15, %v25653_v25, %v12669_v59  ;;  %v12647_v32 = vsel %vm22767_vm2, %v12645_v37, %v12646_v28  ;;  %v12581_v52 = vadd.f32 %v12580_v13, %v12579_v24  ;;  %v12704_v6 = vrot.slane %v12693_v44, 4  ;;  %v23238_v19 = vpop.f32.mrb[53].mxu0  ;;  %v25656_v44 = vld [vmem:[#allocation29_spill] sm:$0xff] }
 0x521   : > { %v12680_v11 = vsel %vm12103_vm10, %v12670_v46, 0.0  ;;  %16066 = vst.msk [vmem:[%s22599_s4 + $0x68] sm:$0xf] %vm12098_vm9, %v12647_v32  ;;  %v12616_v25 = vadd.f32 %v12615_v29, %v12614_v58  ;;  %v12714_v9 = vadd.f32 %v12713_v56, %v12712_v21  ;;  %v18362_v37 = vadd.f32 %v22991_v12, %v22269_v47  ;;  %v25655_v46 = vld [vmem:[#allocation26_spill] sm:$0xff]  ;;  %v23249_v58 = vpop.f32.mrb[54].mxu0 }
 0x522   : > { %v12681_v50 = vadd.f32 %v12680_v11, %v12679_v20  ;;  %v12582_v24 = vrot.slane %v12581_v52, 1  ;;  %v25654_v13 = vrot.slane %v23141_v27, 4  ;;  %v18363_v60 = vadd.f32 %v23014_v43, %v25655_v46  ;;  %v23255_v27 = vpop.f32.mrb[55].mxu0 }
 0x523   : > { %v23247_v56 = vadd.f32 %v23023_v53, %v25656_v44  ;;  %v12617_v10 = vrot.slane %v12616_v25, 2  ;;  %v16348_v47 = vpack.c.bf16 %v23234_v3, %v23234_v3  ;;  %v12771_v12 = vrot.slane %v23234_v3, 6 }
 0x524   : > { %v12705_v20 = vsel %vm12292_vm15, %v25654_v13, %v12704_v6  ;;  %v12648_v29 = vrot.slane %v12646_v28, 4  ;;  %v23259_v43 = vmul.f32 %v23234_v3, %v23234_v3  ;;  %v16345_v53 = vpack.c.bf16 %v18362_v37, %v18362_v37 }
 0x525   : > { %v12715_v49 = vsel %vm12103_vm10, %v12705_v20, 0.0  ;;  %v12618_v11 = vadd.f32 %v12617_v10, %v12616_v25  ;;  %v12747_v21 = vrot.slane %v16348_v47, 7  ;;  %v25657_v13 = vrot.slane %v23179_v63, 6 }
 0x526   : > { %v12716_v32 = vadd.f32 %v12715_v49, %v12714_v9  ;;  %v12671_v46 = vrot.slane %v18362_v37, 4  ;;  %v23264_v44 = vadd.f32 %v12582_v24, %v12581_v52  ;;  %v12806_v41 = vrot.slane %v23259_v43, 6 }
 0x527   : > { %v12772_v20 = vsel %vm1419_vm1, %v25657_v13, %v12771_v12  ;;  %v12649_v28 = vrot.slane %v16345_v53, 6  ;;  %v12694_v7 = vmul.f32 %v18362_v37, %v18362_v37  ;;  %v12619_v9 = vrot.slane %v12618_v11, 1  ;;  %v23279_v13 = vpop.f32.mrb[56].mxu0 }
 0x528   : > { %v12748_v3 = vsel %vm22907_vm6, %v12746_v14, %v12747_v21  ;;  %v12782_v49 = vsel %vm12103_vm10, %v12772_v20, 0.0  ;;  %v12672_v25 = vsel %vm12292_vm15, %v12669_v59, %v12671_v46  ;;  %v25658_v10 = vrot.slane %v23206_v1, 6  ;;  %25659 = vst [vmem:[#allocation10_spill] sm:$0xff] %v23279_v13  ;;  %v23285_v46 = vpop.f32.mrb[57].mxu0 }
 0x529   : > { %16075 = vst.msk [vmem:[%s22599_s4 + $0x74] sm:$0xf] %vm12098_vm9, %v12748_v3  ;;  %v12650_v24 = vsel %vm22767_vm2, %v12648_v29, %v12649_v28  ;;  %v12682_v47 = vsel %vm12103_vm10, %v12672_v25, 0.0  ;;  %v12706_v43 = vrot.slane %v12694_v7, 4  ;;  %v23281_v55 = vadd.f32 %v12619_v9, %v12618_v11  ;;  %v23288_v25 = vpop.f32.mrb[58].mxu0 }
 0x52a   : > { %v12807_v52 = vsel %vm1419_vm1, %v25658_v10, %v12806_v41  ;;  %v12749_v14 = vrot.slane %v12747_v21, 4  ;;  %16067 = vst.msk [vmem:[%s22599_s4 + $0x6c] sm:$0xf] %vm12098_vm9, %v12650_v24  ;;  %v12683_v59 = vadd.f32 %v12682_v47, %v12681_v50  ;;  %v16073_v20 = vrot.slane %v16345_v53, 11  ;;  %v23295_v53 = vpop.f32.mrb[59].mxu0 }
 0x52b   : > { %v12707_v3 = vsel %vm12292_vm15, %v12704_v6, %v12706_v43  ;;  %v12768_v10 = vrot.slane %v18362_v37, 6  ;;  %v12803_v29 = vrot.slane %v12694_v7, 6  ;;  %v16351_v28 = vpack.c.bf16 %v18363_v60, %v18363_v60 }
 0x52c   : > { %v12817_v13 = vsel %vm12103_vm10, %v12807_v52, 0.0  ;;  %v12684_v11 = vrot.slane %v12683_v59, 4  ;;  %v12717_v21 = vsel %vm12103_vm10, %v12707_v3, 0.0  ;;  %v12745_v50 = vsel %vm22907_vm6, %v16073_v20, %v23213_v40 }
 0x52d   : > { %v12718_v9 = vadd.f32 %v12717_v21, %v12716_v32  ;;  %16074 = vst.msk [vmem:[%s22599_s4 + $0x70] sm:$0xf] %vm12098_vm9, %v12745_v50  ;;  %v25660_v6 = vrot.slane %v23179_v63, 6  ;;  %v25661_v37 = vrot.slane %v23206_v1, 6  ;;  %16082 = vst.msk [vmem:[%s22599_s4 + $0x80] sm:$0xf] %vm12098_vm9, %v16351_v28  ;;  %v12865_v24 = vmul.f32 %v18363_v60, %v18363_v60 }
 0x52e   : > { %v12685_v47 = vadd.f32 %v12684_v11, %v12683_v59  ;;  %v16349_v40 = vpack.c.bf16 %v23247_v56, %v23247_v56  ;;  %v12773_v32 = vrot.slane %v23247_v56, 6  ;;  %v12851_v63 = vsel %vm12103_vm10, %v18363_v60, 0.0 }
 0x52f   : > { %v12770_v7 = vsel %vm1419_vm1, %v12768_v10, %v25660_v6  ;;  %v12805_v52 = vsel %vm1419_vm1, %v12803_v29, %v25661_v37  ;;  %v12719_v20 = vrot.slane %v12718_v9, 4  ;;  %v12797_v1 = vmul.f32 %v23247_v56, %v23247_v56 }
 0x530   : > { %v12781_v43 = vsel %vm12103_vm10, %v12770_v7, 0.0  ;;  %v12686_v10 = vrot.slane %v12685_v47, 2  ;;  %v12750_v29 = vrot.slane %v16349_v40, 7  ;;  %v12774_v28 = vsel %vm1419_vm1, %v12771_v12, %v12773_v32  ;;  %v23317_v7 = vpop.f32.mrb[60].mxu0  ;;  %v25663_v40 = vld [vmem:[#allocation27_spill] sm:$0xff] }
 0x531   : > { %v12783_v3 = vadd.f32 %v12782_v49, %v12781_v43  ;;  %v12816_v59 = vsel %vm12103_vm10, %v12805_v52, 0.0  ;;  %v12720_v11 = vadd.f32 %v12719_v20, %v12718_v9  ;;  %v12784_v21 = vsel %vm12103_vm10, %v12774_v28, 0.0  ;;  %v23324_v43 = vpop.f32.mrb[61].mxu0 }
 0x532   : > { %v12808_v50 = vrot.slane %v12797_v1, 6  ;;  %v12818_v6 = vadd.f32 %v12817_v13, %v12816_v59  ;;  %v23319_v37 = vadd.f32 %v12686_v10, %v12685_v47  ;;  %v12869_v60 = vsel %vm12103_vm10, %v12865_v24, 0.0  ;;  %v23333_v47 = vpop.f32.mrb[62].mxu0 }
 0x533   : > { %v12751_v56 = vsel %vm22907_vm6, %v12749_v14, %v12750_v29  ;;  %v12785_v49 = vadd.f32 %v12784_v21, %v12783_v3  ;;  %v12721_v12 = vrot.slane %v12720_v11, 2  ;;  %v18365_v13 = vadd.f32 %v23029_v38, %v22288_v16  ;;  %25662 = vst [vmem:[#allocation13_spill] sm:$0xff] %v23333_v47  ;;  %v25664_v3 = vld [vmem:[#allocation28_spill] sm:$0xff]  ;;  %v23340_v10 = vpop.f32.mrb[63].mxu0 }
 0x534   : > { %16076 = vst.msk [vmem:[%s22599_s4 + $0x78] sm:$0xf] %vm12098_vm9, %v12751_v56  ;;  %v12809_v9 = vsel %vm1419_vm1, %v12806_v41, %v12808_v50  ;;  %v18366_v52 = vadd.f32 %v23036_v2, %v22291_v30  ;;  %v12752_v24 = vrot.slane %v12750_v29, 4  ;;  %v18367_v20 = vadd.f32 %v23051_v57, %v25663_v40  ;;  %25665 = vst [vmem:[#allocation11_spill] sm:$0xff] %v23340_v10 }
 0x535   : > { %v12819_v14 = vsel %vm12103_vm10, %v12809_v9, 0.0  ;;  %v18368_v1 = vadd.f32 %v23061_v45, %v25664_v3  ;;  %v12722_v41 = vadd.f32 %v12721_v12, %v12720_v11  ;;  %v16352_v16 = vpack.c.bf16 %v18365_v13, %v18365_v13 }
 0x536   : > { %v12820_v28 = vadd.f32 %v12819_v14, %v12818_v6  ;;  %v12852_v38 = vsel %vm12103_vm10, %v18365_v13, 0.0  ;;  %v12866_v2 = vmul.f32 %v18365_v13, %v18365_v13  ;;  %v16350_v59 = vpack.c.bf16 %v18366_v52, %v18366_v52 }
 0x537   : > { %v12853_v30 = vadd.f32 %v12852_v38, %v12851_v63  ;;  %v12775_v21 = vrot.slane %v18366_v52, 6  ;;  %v12688_v29 = vrot.slane %v23319_v37, 1  ;;  %v12723_v56 = vrot.slane %v12722_v41, 1  ;;  %16083 = vst.msk [vmem:[%s22599_s4 + $0x84] sm:$0xf] %vm12098_vm9, %v16352_v16  ;;  %v23349_v3 = vpop.f32.mrb[64].mxu0 }
 0x538   : > { %v12798_v57 = vmul.f32 %v18366_v52, %v18366_v52  ;;  %v16355_v9 = vpack.c.bf16 %v18367_v20, %v18367_v20  ;;  %v12870_v45 = vsel %vm12103_vm10, %v12866_v2, 0.0  ;;  %v12753_v40 = vrot.slane %v16350_v59, 7  ;;  %v23353_v47 = vpop.f32.mrb[65].mxu0 }
 0x539   : > { %v12776_v11 = vsel %vm1419_vm1, %v12773_v32, %v12775_v21  ;;  %v12926_v6 = vrot.slane %v18367_v20, 2  ;;  %v12871_v12 = vadd.f32 %v12870_v45, %v12869_v60  ;;  %v12953_v14 = vmul.f32 %v18367_v20, %v18367_v20  ;;  %v23363_v59 = vpop.f32.mrb[66].mxu0 }
 0x53a   : > { %v12786_v63 = vsel %vm12103_vm10, %v12776_v11, 0.0  ;;  %v12810_v13 = vrot.slane %v12798_v57, 6  ;;  %v12754_v16 = vsel %vm22907_vm6, %v12752_v24, %v12753_v40  ;;  %v16091_v38 = vrot.slane %v16355_v9, 9  ;;  %v23370_v9 = vpop.f32.mrb[67].mxu0 }
 0x53b   : > { %v12787_v52 = vadd.f32 %v12786_v63, %v12785_v49  ;;  %v16353_v10 = vpack.c.bf16 %v18368_v1, %v18368_v1  ;;  %16077 = vst.msk [vmem:[%s22599_s4 + $0x7c] sm:$0xf] %vm12098_vm9, %v12754_v16  ;;  %v12854_v60 = vsel %vm12103_vm10, %v18368_v1, 0.0  ;;  %v12867_v2 = vmul.f32 %v18368_v1, %v18368_v1 }
 0x53c   : > { %v12811_v32 = vsel %vm1419_vm1, %v12808_v50, %v12810_v13  ;;  %v23361_v20 = vadd.f32 %v23068_v62, %v22310_v61  ;;  %v12855_v24 = vadd.f32 %v12854_v60, %v12853_v30  ;;  %v18370_v57 = vadd.f32 %v23073_v15, %v22313_v26  ;;  %v23372_v50 = vpop.f32.mrb[68].mxu1 }
 0x53d   : > { %v12788_v21 = vrot.slane %v12787_v52, 4  ;;  %v12821_v49 = vsel %vm12103_vm10, %v12811_v32, 0.0  ;;  %16084 = vst.msk [vmem:[%s22599_s4 + $0x88] sm:$0xf] %vm12098_vm9, %v16353_v10  ;;  %v12872_v45 = vsel %vm12103_vm10, %v12867_v2, 0.0  ;;  %v23378_v40 = vpop.f32.mrb[69].mxu1  ;;  %v12584_v26 = vadd.f32 %v23264_v44, %v23127_v36 }
 0x53e   : > { %v12822_v1 = vadd.f32 %v12821_v49, %v12820_v28  ;;  %v16356_v61 = vpack.c.bf16 %v23361_v20, %v23361_v20  ;;  %v25489_v62 = vrot.slane %v23361_v20, 2  ;;  %v12873_v10 = vadd.f32 %v12872_v45, %v12871_v12  ;;  %v23386_v15 = vpop.f32.mrb[70].mxu1 }
 0x53f   : > { %v12789_v11 = vadd.f32 %v12788_v21, %v12787_v52  ;;  %v23382_v30 = vmul.f32 %v23361_v20, %v23361_v20  ;;  %v12621_v12 = vadd.f32 %v23281_v55, %v23134_v18  ;;  %v23395_v16 = vpop.f32.mrb[71].mxu1  ;;  %v12963_v32 = vrot.slane %v12953_v14, 2  ;;  %v23405_v49 = vpop.f32.mrb[68].mxu0 }
 0x540   : > { %v12823_v28 = vrot.slane %v12822_v1, 4  ;;  %v23388_v63 = vrot.slane %v16356_v61, 5  ;;  %v12928_v13 = vsel %vm6874_vm5, %v12926_v6, %v25489_v62  ;;  %v12689_v36 = vadd.f32 %v12688_v29, %v23319_v37  ;;  %v23412_v14 = vpop.f32.mrb[69].mxu0 }
 0x541   : > { %v12790_v52 = vrot.slane %v12789_v11, 2  ;;  %v25488_v60 = vrot.slane %v23382_v30, 2  ;;  %v23403_v21 = vsel %vm12103_vm10, %v12928_v13, 0.0  ;;  %v12724_v6 = vadd.f32 %v12723_v56, %v12722_v41  ;;  %v23416_v41 = vpop.f32.mrb[70].mxu0  ;;  %v25666_v13 = vld [vmem:[#allocation30_spill] sm:$0xff] }
 0x542   : > { %v12824_v44 = vadd.f32 %v12823_v28, %v12822_v1  ;;  %v12902_v2 = vsel %vm22665_vm13, %v16091_v38, %v23388_v63  ;;  %v12690_v37 = vadd.f32 %v12689_v36, %v12584_v26  ;;  %v16354_v29 = vpack.c.bf16 %v18370_v57, %v18370_v57  ;;  %v23424_v26 = vpop.f32.mrb[71].mxu0 }
 0x543   : > { %v12791_v55 = vadd.f32 %v12790_v52, %v12789_v11  ;;  %16092 = vst.msk [vmem:[%s22599_s4 + $0x90] sm:$0xf] %vm12098_vm9, %v12902_v2  ;;  %v12965_v18 = vsel %vm6874_vm5, %v12963_v32, %v25488_v60  ;;  %v12903_v38 = vrot.slane %v23388_v63, 4  ;;  %v12725_v45 = vadd.f32 %v12724_v6, %v12621_v12  ;;  %25667 = vst [vmem:[#allocation12_spill] sm:$0xff] %v23424_v26  ;;  %v25669_v63 = vld [vmem:[#allocation33_spill] sm:$0xff]  ;;  %v25670_v2 = vld [vmem:[#allocation31_spill] sm:$0xff] }
 0x544   : > { %v12825_v1 = vrot.slane %v12824_v44, 2  ;;  %v12856_v61 = vsel %vm12103_vm10, %v18370_v57, 0.0  ;;  %16085 = vst.msk [vmem:[%s22599_s4 + $0x8c] sm:$0xf] %vm12098_vm9, %v16354_v29  ;;  %v12868_v28 = vmul.f32 %v18370_v57, %v18370_v57  ;;  %v23422_v52 = vadd.f32 %v23094_v31, %v25666_v13  ;;  %v23426_v32 = vpop.f32.mrb[72].mxu1  ;;  %v25671_v29 = vld [vmem:[#allocation32_spill] sm:$0xff] }
 0x545   : > { %v12792_v56 = vrot.slane %v12791_v55, 1  ;;  %v12857_v11 = vadd.f32 %v12856_v61, %v12855_v24  ;;  %25668 = vst [vmem:[#allocation14_spill] sm:$0xff] %v23426_v32  ;;  %v23430_v12 = vadd.f32 %v23096_v23, %v25669_v63  ;;  %v23434_v6 = vadd.f32 %v23107_v5, %v25670_v2  ;;  %v23440_v57 = vpop.f32.mrb[73].mxu1 }
 0x546   : > { %v12826_v36 = vadd.f32 %v12825_v1, %v12824_v44  ;;  %v23438_v24 = vadd.f32 %v23112_v17, %v25671_v29  ;;  %25672 = vst [vmem:[#allocation17_spill] sm:$0xff] %v23440_v57  ;;  %v12874_v13 = vsel %vm12103_vm10, %v12868_v28, 0.0  ;;  %v23445_v44 = vpack.c.bf16 %v23422_v52, %v23422_v52  ;;  %v23447_v23 = vpop.f32.mrb[74].mxu1 }
 0x547   : > { %v12793_v31 = vadd.f32 %v12792_v56, %v12791_v55  ;;  %v12858_v61 = vrot.slane %v12857_v11, 4  ;;  %25673 = vst [vmem:[#allocation15_spill] sm:$0xff] %v23447_v23  ;;  %v12976_v5 = vsel %vm12103_vm10, %v12965_v18, 0.0  ;;  %v12875_v63 = vadd.f32 %v12874_v13, %v12873_v10  ;;  %v23454_v2 = vpop.f32.mrb[75].mxu1  ;;  %v23460_v18 = vpop.f32.mrb[72].mxu0 }
 0x548   : > { %v12827_v1 = vrot.slane %v12826_v36, 1  ;;  %v23452_v17 = vmul.f32 %v23422_v52, %v23422_v52  ;;  %25674 = vst [vmem:[#allocation16_spill] sm:$0xff] %v23454_v2  ;;  %v12933_v29 = vrot.slane %v23422_v52, 2  ;;  %v16101_v57 = vrot.slane %v23445_v44, 10  ;;  %25675 = vst [vmem:[#allocation18_spill] sm:$0xff] %v23460_v18 }
 0x549   : > { %v12794_v55 = vadd.f32 %v12793_v31, %v12690_v37  ;;  %v12859_v56 = vadd.f32 %v12858_v61, %v12857_v11  ;;  %v12876_v62 = vrot.slane %v12875_v63, 4  ;;  %v13032_v13 = vrot.slane %v23422_v52, 4  ;;  %v23466_v11 = vpop.f32.mrb[73].mxu0 }
 0x54a   : > { %v12828_v60 = vadd.f32 %v12827_v1, %v12826_v36  ;;  %v16357_v2 = vpack.c.bf16 %v23430_v12, %v23430_v12  ;;  %v12929_v37 = vrot.slane %v23430_v12, 2  ;;  %25676 = vst [vmem:[#allocation21_spill] sm:$0xff] %v23466_v11  ;;  %v12955_v36 = vmul.f32 %v23430_v12, %v23430_v12  ;;  %v23472_v28 = vpop.f32.mrb[74].mxu0 }
 0x54b   : > { %v12860_v10 = vrot.slane %v12859_v56, 2  ;;  %v12877_v61 = vadd.f32 %v12876_v62, %v12875_v63  ;;  %v16361_v1 = vpack.c.bf16 %v23434_v6, %v23434_v6  ;;  %25677 = vst [vmem:[#allocation19_spill] sm:$0xff] %v23472_v28  ;;  %v25678_v52 = vrot.slane %v23361_v20, 2  ;;  %v23478_v11 = vpop.f32.mrb[75].mxu0 }
 0x54c   : > { %v12829_v31 = vadd.f32 %v12828_v60, %v12725_v45  ;;  %v12904_v18 = vrot.slane %v16357_v2, 5  ;;  %25679 = vst [vmem:[#allocation20_spill] sm:$0xff] %v23478_v11  ;;  %v12966_v45 = vrot.slane %v12955_v36, 2  ;;  %v23483_v63 = vpop.f32.mrb[76].mxu1  ;;  %v13067_v2 = vrot.slane %v23452_v17, 4 }
 0x54d   : > { %v12861_v23 = vadd.f32 %v12860_v10, %v12859_v56  ;;  %v12930_v32 = vsel %vm6874_vm5, %v25678_v52, %v12929_v37  ;;  %v12878_v62 = vrot.slane %v12877_v61, 2  ;;  %v23481_v12 = vrot.slane %v16361_v1, 6  ;;  %25680 = vst [vmem:[#allocation22_spill] sm:$0xff] %v23483_v63  ;;  %v23489_v52 = vpop.f32.mrb[77].mxu1 }
 0x54e   : > { %v12940_v60 = vsel %vm12103_vm10, %v12930_v32, 0.0  ;;  %v12905_v20 = vsel %vm22665_vm13, %v12903_v38, %v12904_v18  ;;  %v12906_v11 = vrot.slane %v12904_v18, 4  ;;  %v25681_v32 = vrot.slane %v23382_v30, 2  ;;  %v23509_v30 = vpop.f32.mrb[78].mxu1 }
 0x54f   : > { %v12862_v56 = vrot.slane %v12861_v23, 1  ;;  %v12941_v10 = vadd.f32 %v12940_v60, %v23403_v21  ;;  %v12879_v26 = vadd.f32 %v12878_v62, %v12877_v61  ;;  %16093 = vst.msk [vmem:[%s22599_s4 + $0x94] sm:$0xf] %vm12098_vm9, %v12905_v20  ;;  %v13009_v1 = vsel %vm22767_vm2, %v16101_v57, %v23481_v12  ;;  %25683 = vst [vmem:[#allocation25_spill] sm:$0xff] %v23509_v30  ;;  %v23534_v20 = vpop.f32.mrb[79].mxu1 }
 0x550   : > { %v12967_v36 = vsel %vm6874_vm5, %v25681_v32, %v12966_v45  ;;  %16102 = vst.msk [vmem:[%s22599_s4 + $0xa0] sm:$0xf] %vm12098_vm9, %v13009_v1  ;;  %v25682_v21 = vrot.slane %v23434_v6, 4  ;;  %v23507_v18 = vmul.f32 %v23434_v6, %v23434_v6  ;;  %v13010_v60 = vrot.slane %v23481_v12, 4  ;;  %25687 = vst [vmem:[#allocation24_spill] sm:$0xff] %v23534_v20 }
 0x551   : > { %v12863_v63 = vadd.f32 %v12862_v56, %v12861_v23  ;;  %v12977_v28 = vsel %vm12103_vm10, %v12967_v36, 0.0  ;;  %v12880_v61 = vrot.slane %v12879_v26, 1  ;;  %v16358_v57 = vpack.c.bf16 %v23438_v24, %v23438_v24  ;;  %v23514_v23 = vpop.f32.mrb[76].mxu0 }
 0x552   : > { %v13034_v38 = vsel %vm12292_vm15, %v13032_v13, %v25682_v21  ;;  %v12978_v62 = vadd.f32 %v12977_v28, %v12976_v5  ;;  %v12931_v13 = vrot.slane %v23438_v24, 2  ;;  %v12956_v32 = vmul.f32 %v23438_v24, %v23438_v24  ;;  %v23522_v36 = vpop.f32.mrb[77].mxu0  ;;  %v25684_v28 = vld [vmem:[#allocation34_spill] sm:$0xff]  ;;  %v25685_v21 = vld [vmem:[#allocation37_spill] sm:$0xff] }
 0x553   : > { %v23516_v56 = vadd.f32 %v12863_v63, %v12794_v55  ;;  %v12881_v1 = vadd.f32 %v12880_v61, %v12879_v26  ;;  %v12907_v5 = vrot.slane %v16358_v57, 5  ;;  %v23526_v12 = vadd.f32 %v23132_v8, %v25684_v28  ;;  %v23532_v63 = vpop.f32.mrb[78].mxu0 }
 0x554   : > { %v23530_v55 = vadd.f32 %v23145_v51, %v25685_v21  ;;  %25686 = vst [vmem:[#allocation23_spill] sm:$0xff] %v23532_v63  ;;  %v25688_v30 = vrot.slane %v23507_v18, 4  ;;  %v12932_v26 = vsel %vm6874_vm5, %v12929_v37, %v12931_v13  ;;  %v12934_v61 = vsel %vm6874_vm5, %v12931_v13, %v12933_v29  ;;  %v23541_v8 = vpop.f32.mrb[79].mxu0 }
 0x555   : > { %v12968_v57 = vrot.slane %v12956_v32, 2  ;;  %25689 = vst [vmem:[#allocation26_spill] sm:$0xff] %v23541_v8  ;;  %v23543_v28 = vadd.f32 %v12881_v1, %v12829_v31  ;;  %v13045_v51 = vsel %vm12103_vm10, %v13034_v38, 0.0  ;;  %v12908_v21 = vsel %vm22665_vm13, %v12906_v11, %v12907_v5 }
 0x556   : > { %v13069_v24 = vsel %vm12292_vm15, %v13067_v2, %v25688_v30  ;;  %v12909_v20 = vrot.slane %v12907_v5, 4  ;;  %16094 = vst.msk [vmem:[%s22599_s4 + $0x98] sm:$0xf] %vm12098_vm9, %v12908_v21  ;;  %v12942_v37 = vsel %vm12103_vm10, %v12932_v26, 0.0  ;;  %v25690_v2 = vrot.slane %v23452_v17, 2 }
 0x557   : > { %v13080_v63 = vsel %vm12103_vm10, %v13069_v24, 0.0  ;;  %v12969_v29 = vsel %vm6874_vm5, %v12966_v45, %v12968_v57  ;;  %v25691_v31 = vrot.slane %v23445_v44, 5  ;;  %v12943_v13 = vadd.f32 %v12942_v37, %v12941_v10 }
 0x558   : > { %v12971_v30 = vsel %vm6874_vm5, %v12968_v57, %v25690_v2  ;;  %v12944_v11 = vsel %vm12103_vm10, %v12934_v61, 0.0  ;;  %v12979_v32 = vsel %vm12103_vm10, %v12969_v29, 0.0  ;;  %v23567_v17 = vpack.c.bf16 %v23526_v12, %v23526_v12 }
 0x559   : > { %v12911_v38 = vsel %vm22665_vm13, %v12909_v20, %v25691_v31  ;;  %v12980_v1 = vadd.f32 %v12979_v32, %v12978_v62  ;;  %v12981_v5 = vsel %vm12103_vm10, %v12971_v30, 0.0  ;;  %v23571_v44 = vmul.f32 %v23526_v12, %v23526_v12  ;;  %v23599_v62 = vpop.f32.mrb[80].mxu1 }
 0x55a   : > { %16095 = vst.msk [vmem:[%s22599_s4 + $0x9c] sm:$0xf] %vm12098_vm9, %v12911_v38  ;;  %v12945_v45 = vadd.f32 %v12944_v11, %v12943_v13  ;;  %v13039_v10 = vrot.slane %v23526_v12, 4  ;;  %v16362_v20 = vpack.c.bf16 %v23530_v55, %v23530_v55  ;;  %v13035_v24 = vrot.slane %v23530_v55, 4  ;;  %v25693_v11 = vld [vmem:[#allocation35_spill] sm:$0xff]  ;;  %25694 = vst [vmem:[#allocation29_spill] sm:$0xff] %v23599_v62 }
 0x55b   : > { %v12982_v26 = vadd.f32 %v12981_v5, %v12980_v1  ;;  %v13136_v57 = vrot.slane %v23526_v12, 6  ;;  %v16111_v37 = vrot.slane %v23567_v17, 11  ;;  %v25692_v2 = vrot.slane %v23434_v6, 4 }
 0x55c   : > { %v12946_v21 = vrot.slane %v12945_v45, 4  ;;  %v13011_v29 = vrot.slane %v16362_v20, 6  ;;  %v13060_v13 = vmul.f32 %v23530_v55, %v23530_v55  ;;  %v23589_v32 = vadd.f32 %v23151_v39, %v25693_v11  ;;  %v23601_v39 = vpop.f32.mrb[80].mxu0 }
 0x55d   : > { %v13036_v30 = vsel %vm12292_vm15, %v25692_v2, %v13035_v24  ;;  %v12983_v31 = vrot.slane %v12982_v26, 4  ;;  %v13171_v12 = vrot.slane %v23571_v44, 6  ;;  %25695 = vst [vmem:[#allocation27_spill] sm:$0xff] %v23601_v39 }
 0x55e   : > { %v13046_v38 = vsel %vm12103_vm10, %v13036_v30, 0.0  ;;  %v12947_v1 = vadd.f32 %v12946_v21, %v12945_v45  ;;  %v13012_v5 = vsel %vm22767_vm2, %v13010_v60, %v13011_v29  ;;  %v13070_v2 = vrot.slane %v13060_v13, 4  ;;  %v25696_v60 = vld [vmem:[#allocation36_spill] sm:$0xff]  ;;  %v23615_v13 = vpop.f32.mrb[81].mxu0 }
 0x55f   : > { %v13047_v20 = vadd.f32 %v13046_v38, %v13045_v51  ;;  %v12984_v6 = vadd.f32 %v12983_v31, %v12982_v26  ;;  %16103 = vst.msk [vmem:[%s22599_s4 + $0xa4] sm:$0xf] %vm12098_vm9, %v13012_v5  ;;  %v16366_v30 = vpack.c.bf16 %v23589_v32, %v23589_v32  ;;  %v23605_v21 = vmul.f32 %v23589_v32, %v23589_v32  ;;  %v25697_v26 = vld [vmem:[#allocation38_spill] sm:$0xff]  ;;  %v23613_v38 = vpop.f32.mrb[81].mxu1 }
 0x560   : > { %v12948_v45 = vrot.slane %v12947_v1, 2  ;;  %v18378_v51 = vadd.f32 %v23159_v48, %v25696_v60  ;;  %v23611_v31 = vadd.f32 %v23185_v0, %v25697_v26  ;;  %25698 = vst [vmem:[#allocation28_spill] sm:$0xff] %v23613_v38  ;;  %25699 = vst [vmem:[#allocation30_spill] sm:$0xff] %v23615_v13  ;;  %v25700_v5 = vrot.slane %v23507_v18, 4  ;;  %v23627_v38 = vpop.f32.mrb[82].mxu1  ;;  %v23629_v13 = vpop.f32.mrb[82].mxu0 }
 0x561   : > { %v12985_v11 = vrot.slane %v12984_v6, 2  ;;  %v23620_v55 = vrot.slane %v16366_v30, 7  ;;  %v25701_v39 = vrot.slane %v23589_v32, 6  ;;  %v13013_v62 = vrot.slane %v13011_v29, 4  ;;  %25702 = vst [vmem:[#allocation33_spill] sm:$0xff] %v23627_v38  ;;  %25703 = vst [vmem:[#allocation31_spill] sm:$0xff] %v23629_v13 }
 0x562   : > { %v13071_v61 = vsel %vm12292_vm15, %v25700_v5, %v13070_v2  ;;  %v12949_v60 = vadd.f32 %v12948_v45, %v12947_v1  ;;  %v25490_v26 = vrot.slane %v23605_v21, 6  ;;  %v16363_v29 = vpack.c.bf16 %v18378_v51, %v18378_v51  ;;  %v23649_v13 = vpop.f32.mrb[83].mxu0 }
 0x563   : > { %v13138_v48 = vsel %vm1419_vm1, %v13136_v57, %v25701_v39  ;;  %v13081_v0 = vsel %vm12103_vm10, %v13071_v61, 0.0  ;;  %v12986_v8 = vadd.f32 %v12985_v11, %v12984_v6  ;;  %v13113_v30 = vsel %vm22907_vm6, %v16111_v37, %v23620_v55 }
 0x564   : > { %v13082_v18 = vadd.f32 %v13081_v0, %v13080_v63  ;;  %v23635_v5 = vsel %vm12103_vm10, %v13138_v48, 0.0  ;;  %v12950_v57 = vrot.slane %v12949_v60, 1  ;;  %16112 = vst.msk [vmem:[%s22599_s4 + $0xb0] sm:$0xf] %vm12098_vm9, %v13113_v30  ;;  %v13173_v61 = vsel %vm1419_vm1, %v13171_v12, %v25490_v26  ;;  %v23647_v30 = vpop.f32.mrb[83].mxu1 }
 0x565   : > { %v13037_v1 = vrot.slane %v18378_v51, 4  ;;  %v12987_v39 = vrot.slane %v12986_v8, 1  ;;  %v13114_v6 = vrot.slane %v23620_v55, 4  ;;  %v13061_v63 = vmul.f32 %v18378_v51, %v18378_v51 }
 0x566   : > { %v16369_v45 = vpack.c.bf16 %v23611_v31, %v23611_v31  ;;  %v12951_v37 = vadd.f32 %v12950_v57, %v12949_v60  ;;  %v13014_v11 = vrot.slane %v16363_v29, 6  ;;  %v13184_v26 = vsel %vm12103_vm10, %v13173_v61, 0.0 }
 0x567   : > { %v13038_v48 = vsel %vm12292_vm15, %v13035_v24, %v13037_v1  ;;  %v13040_v0 = vsel %vm12292_vm15, %v13037_v1, %v13039_v10  ;;  %v12988_v12 = vadd.f32 %v12987_v39, %v12986_v8  ;;  %v13072_v51 = vrot.slane %v13061_v63, 4 }
 0x568   : > { %v13048_v55 = vsel %vm12103_vm10, %v13038_v48, 0.0  ;;  %v23654_v38 = vadd.f32 %v12951_v37, %v23516_v56  ;;  %v13015_v60 = vsel %vm22767_vm2, %v13013_v62, %v13014_v11  ;;  %v13016_v24 = vrot.slane %v13014_v11, 4  ;;  %v25707_v48 = vld [vmem:[#allocation39_spill] sm:$0xff] }
 0x569   : > { %v13049_v57 = vadd.f32 %v13048_v55, %v13047_v20  ;;  %v23659_v10 = vadd.f32 %v12988_v12, %v23543_v28  ;;  %16104 = vst.msk [vmem:[%s22599_s4 + $0xa8] sm:$0xf] %vm12098_vm9, %v13015_v60  ;;  %v13050_v8 = vsel %vm12103_vm10, %v13040_v0, 0.0  ;;  %v13073_v61 = vsel %vm12292_vm15, %v13070_v2, %v13072_v51  ;;  %v25708_v12 = vld [vmem:[#allocation40_spill] sm:$0xff] }
 0x56a   : > { %v25704_v29 = vrot.slane %v23571_v44, 4  ;;  %v25705_v56 = vrot.slane %v23567_v17, 6  ;;  %v13083_v20 = vsel %vm12103_vm10, %v13073_v61, 0.0  ;;  %v13121_v28 = vrot.slane %v16369_v45, 7  ;;  %v25706_v44 = vld [vmem:[#allocation41_spill] sm:$0xff]  ;;  %v25709_v45 = vld [vmem:[#allocation42_spill] sm:$0xff] }
 0x56b   : > { %v13051_v39 = vadd.f32 %v13050_v8, %v13049_v57  ;;  %v13084_v63 = vadd.f32 %v13083_v20, %v13082_v18  ;;  %v23678_v2 = vmul.f32 %v23611_v31, %v23611_v31  ;;  %v18380_v11 = vadd.f32 %v23192_v54, %v25706_v44 }
 0x56c   : > { %v13075_v1 = vsel %vm12292_vm15, %v13072_v51, %v25704_v29  ;;  %v13018_v62 = vsel %vm22767_vm2, %v13016_v24, %v25705_v56  ;;  %v18381_v0 = vadd.f32 %v23200_v4, %v25707_v48  ;;  %v18382_v55 = vadd.f32 %v23210_v35, %v25708_v12  ;;  %v23694_v4 = vpop.f32.mrb[84].mxu0 }
 0x56d   : > { %16105 = vst.msk [vmem:[%s22599_s4 + $0xac] sm:$0xf] %vm12098_vm9, %v13018_v62  ;;  %v13085_v37 = vsel %vm12103_vm10, %v13075_v1, 0.0  ;;  %v13052_v17 = vrot.slane %v13051_v39, 4  ;;  %v23688_v51 = vadd.f32 %v23230_v22, %v25709_v45  ;;  %v13143_v60 = vrot.slane %v23611_v31, 6  ;;  %v23692_v1 = vpop.f32.mrb[84].mxu1 }
 0x56e   : > { %v13086_v18 = vadd.f32 %v13085_v37, %v13084_v63  ;;  %v16367_v24 = vpack.c.bf16 %v18380_v11, %v18380_v11  ;;  %v13139_v57 = vrot.slane %v18380_v11, 6  ;;  %v13178_v54 = vrot.slane %v23678_v2, 6  ;;  %v23702_v20 = vpop.f32.mrb[85].mxu1 }
 0x56f   : > { %v13053_v8 = vadd.f32 %v13052_v17, %v13051_v39  ;;  %v13164_v61 = vmul.f32 %v18380_v11, %v18380_v11  ;;  %v16370_v29 = vpack.c.bf16 %v18381_v0, %v18381_v0  ;;  %v25710_v22 = vrot.slane %v23589_v32, 6  ;;  %v23704_v39 = vpop.f32.mrb[85].mxu0  ;;  %v23712_v12 = vpop.f32.mrb[86].mxu1 }
 0x570   : > { %v13087_v35 = vrot.slane %v13086_v18, 4  ;;  %v13115_v56 = vrot.slane %v16367_v24, 7  ;;  %v23700_v31 = vsel %vm12103_vm10, %v18381_v0, 0.0  ;;  %v16368_v44 = vpack.c.bf16 %v18382_v55, %v18382_v55  ;;  %v23714_v45 = vpop.f32.mrb[86].mxu0 }
 0x571   : > { %v13140_v62 = vsel %vm1419_vm1, %v25710_v22, %v13139_v57  ;;  %v13054_v63 = vrot.slane %v13053_v8, 2  ;;  %v13174_v2 = vrot.slane %v13164_v61, 6  ;;  %16120 = vst.msk [vmem:[%s22599_s4 + $0xc0] sm:$0xf] %vm12098_vm9, %v16370_v29  ;;  %25711 = vst [vmem:[#allocation32_spill] sm:$0xff] %v23714_v45  ;;  %v25712_v61 = vrot.slane %v23605_v21, 6 }
 0x572   : > { %v13150_v37 = vsel %vm12103_vm10, %v13140_v62, 0.0  ;;  %v13088_v11 = vadd.f32 %v13087_v35, %v13086_v18  ;;  %v13116_v32 = vsel %vm22907_vm6, %v13114_v6, %v13115_v56  ;;  %v13117_v17 = vrot.slane %v13115_v56, 4  ;;  %v23724_v45 = vpop.f32.mrb[87].mxu1 }
 0x573   : > { %v13151_v48 = vadd.f32 %v13150_v37, %v23635_v5  ;;  %v13055_v24 = vadd.f32 %v13054_v63, %v13053_v8  ;;  %16113 = vst.msk [vmem:[%s22599_s4 + $0xb4] sm:$0xf] %vm12098_vm9, %v13116_v32  ;;  %v13175_v29 = vsel %vm1419_vm1, %v25712_v61, %v13174_v2  ;;  %v13233_v22 = vmul.f32 %v18381_v0, %v18381_v0  ;;  %v23726_v32 = vpop.f32.mrb[87].mxu0 }
 0x574   : > { %v13118_v18 = vrot.slane %v16368_v44, 7  ;;  %v13089_v35 = vrot.slane %v13088_v11, 2  ;;  %v13185_v6 = vsel %vm12103_vm10, %v13175_v29, 0.0  ;;  %v13141_v56 = vrot.slane %v18382_v55, 6 }
 0x575   : > { %v13165_v62 = vmul.f32 %v18382_v55, %v18382_v55  ;;  %v13056_v5 = vrot.slane %v13055_v24, 1  ;;  %v13186_v37 = vadd.f32 %v13185_v6, %v13184_v26  ;;  %v13237_v29 = vsel %vm12103_vm10, %v13233_v22, 0.0 }
 0x576   : > { %v13119_v8 = vsel %vm22907_vm6, %v13117_v17, %v13118_v18  ;;  %v13120_v63 = vrot.slane %v13118_v18, 4  ;;  %v13090_v21 = vadd.f32 %v13089_v35, %v13088_v11  ;;  %v13142_v0 = vsel %vm1419_vm1, %v13139_v57, %v13141_v56 }
 0x577   : > { %16114 = vst.msk [vmem:[%s22599_s4 + $0xb8] sm:$0xf] %vm12098_vm9, %v13119_v8  ;;  %v13144_v44 = vsel %vm1419_vm1, %v13141_v56, %v13143_v60  ;;  %v13176_v61 = vrot.slane %v13165_v62, 6  ;;  %v13057_v55 = vadd.f32 %v13056_v5, %v13055_v24  ;;  %v13152_v17 = vsel %vm12103_vm10, %v13142_v0, 0.0 }
 0x578   : > { %v13122_v26 = vsel %vm22907_vm6, %v13120_v63, %v13121_v28  ;;  %v13091_v18 = vrot.slane %v13090_v21, 1  ;;  %v13153_v11 = vadd.f32 %v13152_v17, %v13151_v48  ;;  %v13154_v24 = vsel %vm12103_vm10, %v13144_v44, 0.0  ;;  %v25714_v48 = vld [vmem:[#allocation44_spill] sm:$0xff]  ;;  %v23758_v44 = vpop.f32.mrb[88].mxu1  ;;  %v25717_v17 = vld [vmem:[#allocation10_spill] sm:$0xff] }
 0x579   : > { %16115 = vst.msk [vmem:[%s22599_s4 + $0xbc] sm:$0xf] %vm12098_vm9, %v13122_v26  ;;  %v13177_v35 = vsel %vm1419_vm1, %v13174_v2, %v13176_v61  ;;  %v13179_v57 = vsel %vm1419_vm1, %v13176_v61, %v13178_v54  ;;  %v23741_v60 = vadd.f32 %v13057_v55, %v23654_v38  ;;  %v16373_v28 = vpack.c.bf16 %v23688_v51, %v23688_v51  ;;  %v25713_v2 = vld [vmem:[#allocation43_spill] sm:$0xff]  ;;  %v25715_v63 = vld [vmem:[#allocation8_spill] sm:$0xff]  ;;  %v25716_v26 = vld [vmem:[#allocation9_spill] sm:$0xff] }
 0x57a   : > { %v13187_v22 = vsel %vm12103_vm10, %v13177_v35, 0.0  ;;  %v13092_v6 = vadd.f32 %v13091_v18, %v13090_v21  ;;  %v13155_v56 = vadd.f32 %v13154_v24, %v13153_v11  ;;  %v13189_v5 = vsel %vm12103_vm10, %v13179_v57, 0.0  ;;  %v23760_v21 = vpop.f32.mrb[88].mxu0 }
 0x57b   : > { %v13188_v62 = vadd.f32 %v13187_v22, %v13186_v37  ;;  %16123 = vst.msk [vmem:[%s22599_s4 + $0xcc] sm:$0xf] %vm12098_vm9, %v16373_v28  ;;  %v13236_v54 = vmul.f32 %v23688_v51, %v23688_v51  ;;  %v18384_v38 = vadd.f32 %v23238_v19, %v25713_v2  ;;  %v18385_v8 = vadd.f32 %v23249_v58, %v25714_v48  ;;  %v23769_v19 = vpop.f32.mrb[89].mxu1  ;;  %v23771_v58 = vpop.f32.mrb[89].mxu0 }
 0x57c   : > { %v18386_v0 = vadd.f32 %v23255_v27, %v25715_v63  ;;  %v23763_v37 = vadd.f32 %v13092_v6, %v23659_v10  ;;  %v13156_v61 = vrot.slane %v13155_v56, 4  ;;  %v23767_v18 = vadd.f32 %v25717_v17, %v25716_v26  ;;  %25718 = vst [vmem:[#allocation34_spill] sm:$0xff] %v23769_v19  ;;  %25719 = vst [vmem:[#allocation37_spill] sm:$0xff] %v23771_v58 }
 0x57d   : > { %v13190_v55 = vadd.f32 %v13189_v5, %v13188_v62  ;;  %v13224_v27 = vsel %vm12103_vm10, %v23688_v51, 0.0  ;;  %v16371_v11 = vpack.c.bf16 %v18384_v38, %v18384_v38  ;;  %v13220_v35 = vsel %vm12103_vm10, %v18384_v38, 0.0 }
 0x57e   : > { %v13234_v57 = vmul.f32 %v18384_v38, %v18384_v38  ;;  %v13157_v10 = vadd.f32 %v13156_v61, %v13155_v56  ;;  %v13221_v22 = vadd.f32 %v13220_v35, %v23700_v31  ;;  %v16374_v28 = vpack.c.bf16 %v18385_v8, %v18385_v8  ;;  %v23788_v61 = vpop.f32.mrb[90].mxu0 }
 0x57f   : > { %v13191_v24 = vrot.slane %v13190_v55, 4  ;;  %v13242_v6 = vsel %vm12103_vm10, %v13236_v54, 0.0  ;;  %16121 = vst.msk [vmem:[%s22599_s4 + $0xc4] sm:$0xf] %vm12098_vm9, %v16371_v11  ;;  %v13321_v5 = vmul.f32 %v18385_v8, %v18385_v8  ;;  %v16372_v2 = vpack.c.bf16 %v18386_v0, %v18386_v0  ;;  %v23786_v54 = vpop.f32.mrb[90].mxu1  ;;  %25721 = vst [vmem:[#allocation36_spill] sm:$0xff] %v23788_v61 }
 0x580   : > { %v13238_v62 = vsel %vm12103_vm10, %v13234_v57, 0.0  ;;  %v13158_v48 = vrot.slane %v13157_v10, 2  ;;  %v13294_v26 = vrot.slane %v18385_v8, 2  ;;  %v16129_v17 = vrot.slane %v16374_v28, 9  ;;  %25720 = vst [vmem:[#allocation35_spill] sm:$0xff] %v23786_v54  ;;  %v25724_v28 = vld [vmem:[#allocation45_spill] sm:$0xff] }
 0x581   : > { %v13192_v51 = vadd.f32 %v13191_v24, %v13190_v55  ;;  %v13239_v63 = vadd.f32 %v13238_v62, %v13237_v29  ;;  %16122 = vst.msk [vmem:[%s22599_s4 + $0xc8] sm:$0xf] %vm12098_vm9, %v16372_v2  ;;  %v13222_v56 = vsel %vm12103_vm10, %v18386_v0, 0.0  ;;  %v13235_v38 = vmul.f32 %v18386_v0, %v18386_v0  ;;  %v23790_v55 = vpop.f32.mrb[91].mxu1  ;;  %v23792_v29 = vpop.f32.mrb[91].mxu0 }
 0x582   : > { %v16377_v31 = vpack.c.bf16 %v23767_v18, %v23767_v18  ;;  %v13159_v11 = vadd.f32 %v13158_v48, %v13157_v10  ;;  %v13331_v57 = vrot.slane %v13321_v5, 2  ;;  %v13223_v58 = vadd.f32 %v13222_v56, %v13221_v22  ;;  %25722 = vst [vmem:[#allocation38_spill] sm:$0xff] %v23790_v55  ;;  %25723 = vst [vmem:[#allocation41_spill] sm:$0xff] %v23792_v29 }
 0x583   : > { %v13193_v35 = vrot.slane %v13192_v51, 2  ;;  %v13240_v8 = vsel %vm12103_vm10, %v13235_v38, 0.0  ;;  %v23800_v62 = vadd.f32 %v23285_v46, %v25724_v28  ;;  %v23805_v5 = vmul.f32 %v23767_v18, %v23767_v18 }
 0x584   : > { %v23795_v24 = vrot.slane %v16377_v31, 5  ;;  %v13160_v2 = vrot.slane %v13159_v11, 1  ;;  %v13225_v10 = vadd.f32 %v13224_v27, %v13223_v58  ;;  %v13241_v48 = vadd.f32 %v13240_v8, %v13239_v63 }
 0x585   : > { %v13194_v61 = vadd.f32 %v13193_v35, %v13192_v51  ;;  %v16375_v56 = vpack.c.bf16 %v23800_v62, %v23800_v62  ;;  %v25491_v38 = vrot.slane %v23800_v62, 2  ;;  %v23817_v27 = vmul.f32 %v23800_v62, %v23800_v62  ;;  %v25725_v51 = vld [vmem:[#allocation46_spill] sm:$0xff] }
 0x586   : > { %v13277_v22 = vrot.slane %v23795_v24, 4  ;;  %v13161_v31 = vadd.f32 %v13160_v2, %v13159_v11  ;;  %v13226_v29 = vrot.slane %v13225_v10, 4  ;;  %v13243_v46 = vadd.f32 %v13242_v6, %v13241_v48 }
 0x587   : > { %v13195_v0 = vrot.slane %v13194_v61, 1  ;;  %v23810_v28 = vrot.slane %v16375_v56, 5  ;;  %v13296_v58 = vsel %vm6874_vm5, %v13294_v26, %v25491_v38  ;;  %v23821_v63 = vadd.f32 %v23288_v25, %v25725_v51 }
 0x588   : > { %v13162_v11 = vadd.f32 %v13161_v31, %v23741_v60  ;;  %v13227_v8 = vadd.f32 %v13226_v29, %v13225_v10  ;;  %v13244_v6 = vrot.slane %v13243_v46, 4  ;;  %v13332_v56 = vrot.slane %v23817_v27, 2  ;;  %v23844_v10 = vpop.f32.mrb[92].mxu1 }
 0x589   : > { %v13196_v35 = vadd.f32 %v13195_v0, %v13194_v61  ;;  %v13270_v48 = vsel %vm22665_vm13, %v16129_v17, %v23810_v28  ;;  %v13271_v26 = vrot.slane %v23810_v28, 4  ;;  %v23835_v60 = vpack.c.bf16 %v23821_v63, %v23821_v63  ;;  %25726 = vst [vmem:[#allocation39_spill] sm:$0xff] %v23844_v10  ;;  %v25735_v10 = vld [vmem:[#allocation48_spill] sm:$0xff] }
 0x58a   : > { %v13228_v55 = vrot.slane %v13227_v8, 2  ;;  %v13245_v25 = vadd.f32 %v13244_v6, %v13243_v46  ;;  %16130 = vst.msk [vmem:[%s22599_s4 + $0xd0] sm:$0xf] %vm12098_vm9, %v13270_v48  ;;  %v13307_v61 = vsel %vm12103_vm10, %v13296_v58, 0.0  ;;  %v13333_v29 = vsel %vm6874_vm5, %v13331_v57, %v13332_v56  ;;  %v23850_v58 = vpop.f32.mrb[93].mxu1 }
 0x58b   : > { %v13197_v38 = vadd.f32 %v13196_v35, %v23763_v37  ;;  %v13301_v17 = vrot.slane %v23821_v63, 2  ;;  %v23842_v0 = vmul.f32 %v23821_v63, %v23821_v63  ;;  %v23846_v37 = vpop.f32.mrb[92].mxu0  ;;  %v13278_v28 = vrot.slane %v23835_v60, 5  ;;  %25728 = vst [vmem:[#allocation42_spill] sm:$0xff] %v23850_v58  ;;  %v23863_v58 = vpop.f32.mrb[94].mxu1 }
 0x58c   : > { %25727 = vst [vmem:[#allocation40_spill] sm:$0xff] %v23846_v37  ;;  %v13229_v31 = vadd.f32 %v13228_v55, %v13227_v8  ;;  %v13246_v46 = vrot.slane %v13245_v25, 2  ;;  %v23852_v57 = vpop.f32.mrb[93].mxu0  ;;  %v13344_v51 = vsel %vm12103_vm10, %v13333_v29, 0.0  ;;  %v25730_v35 = vrot.slane %v23767_v18, 2  ;;  %25731 = vst [vmem:[#allocation44_spill] sm:$0xff] %v23863_v58 }
 0x58d   : > { %25729 = vst [vmem:[#allocation43_spill] sm:$0xff] %v23852_v57  ;;  %v13338_v48 = vrot.slane %v23842_v0, 2  ;;  %v13279_v37 = vsel %vm22665_vm13, %v13277_v22, %v13278_v28  ;;  %v23865_v57 = vpop.f32.mrb[94].mxu0  ;;  %v25733_v29 = vrot.slane %v23805_v5, 2  ;;  %v25736_v22 = vld [vmem:[#allocation49_spill] sm:$0xff]  ;;  %v23882_v28 = vpop.f32.mrb[95].mxu1 }
 0x58e   : > { %v13302_v6 = vsel %vm6874_vm5, %v25730_v35, %v13301_v17  ;;  %v13230_v8 = vrot.slane %v13229_v31, 1  ;;  %v13247_v2 = vadd.f32 %v13246_v46, %v13245_v25  ;;  %25732 = vst [vmem:[#allocation8_spill] sm:$0xff] %v23865_v57  ;;  %16133 = vst.msk [vmem:[%s22599_s4 + $0xdc] sm:$0xf] %vm12098_vm9, %v13279_v37  ;;  %v25734_v35 = vld [vmem:[#allocation47_spill] sm:$0xff]  ;;  %v23876_v25 = vadd.f32 %v23317_v7, %v25735_v10  ;;  %v23884_v27 = vpop.f32.mrb[95].mxu0 }
 0x58f   : > { %v13339_v17 = vsel %vm6874_vm5, %v25733_v29, %v13338_v48  ;;  %v18390_v55 = vadd.f32 %v23295_v53, %v25734_v35  ;;  %v23880_v46 = vadd.f32 %v23324_v43, %v25736_v22  ;;  %25737 = vst [vmem:[#allocation9_spill] sm:$0xff] %v23882_v28  ;;  %25738 = vst [vmem:[#allocation10_spill] sm:$0xff] %v23884_v27  ;;  %v13312_v58 = vsel %vm12103_vm10, %v13302_v6, 0.0  ;;  %v25739_v48 = vld [vmem:[#allocation50_spill] sm:$0xff]  ;;  %v25740_v29 = vld [vmem:[#allocation13_spill] sm:$0xff] }
 0x590   : > { %v13231_v37 = vadd.f32 %v13230_v8, %v13229_v31  ;;  %v13248_v57 = vrot.slane %v13247_v2, 1  ;;  %v23889_v54 = vadd.f32 %v25740_v29, %v25739_v48  ;;  %v16382_v10 = vpack.c.bf16 %v23876_v25, %v23876_v25 }
 0x591   : > { %v16376_v53 = vpack.c.bf16 %v18390_v55, %v18390_v55  ;;  %v13297_v35 = vrot.slane %v18390_v55, 2  ;;  %v13323_v7 = vmul.f32 %v18390_v55, %v18390_v55  ;;  %v13349_v27 = vsel %vm12103_vm10, %v13339_v17, 0.0 }
 0x592   : > { %v23893_v43 = vadd.f32 %v13231_v37, %v13162_v11  ;;  %v13249_v22 = vadd.f32 %v13248_v57, %v13247_v2  ;;  %v25492_v31 = vrot.slane %v23876_v25, 4  ;;  %v25741_v6 = vrot.slane %v23800_v62, 2 }
 0x593   : > { %v13272_v8 = vrot.slane %v16376_v53, 5  ;;  %v25742_v29 = vrot.slane %v23767_v18, 2  ;;  %v13334_v28 = vrot.slane %v13323_v7, 2  ;;  %v23906_v2 = vrot.slane %v16382_v10, 6 }
 0x594   : > { %v13298_v48 = vsel %vm6874_vm5, %v25741_v6, %v13297_v35  ;;  %v23903_v19 = vadd.f32 %v13249_v22, %v13197_v38  ;;  %v23910_v57 = vmul.f32 %v23876_v25, %v23876_v25  ;;  %v25743_v53 = vrot.slane %v23805_v5, 2 }
 0x595   : > { %v13300_v55 = vsel %vm6874_vm5, %v13297_v35, %v25742_v29  ;;  %v13308_v11 = vsel %vm12103_vm10, %v13298_v48, 0.0  ;;  %v13273_v62 = vsel %vm22665_vm13, %v13271_v26, %v13272_v8  ;;  %v13274_v17 = vrot.slane %v13272_v8, 4 }
 0x596   : > { %v13309_v37 = vadd.f32 %v13308_v11, %v13307_v61  ;;  %v13335_v18 = vsel %vm6874_vm5, %v13332_v56, %v13334_v28  ;;  %16131 = vst.msk [vmem:[%s22599_s4 + $0xd4] sm:$0xf] %vm12098_vm9, %v13273_v62  ;;  %v13310_v38 = vsel %vm12103_vm10, %v13300_v55, 0.0  ;;  %v13337_v35 = vsel %vm6874_vm5, %v13334_v28, %v25743_v53  ;;  %v23945_v55 = vpop.f32.mrb[96].mxu1  ;;  %v23947_v11 = vpop.f32.mrb[96].mxu0 }
 0x597   : > { %v13345_v7 = vsel %vm12103_vm10, %v13335_v18, 0.0  ;;  %v13384_v10 = vrot.slane %v23906_v2, 4  ;;  %v13276_v26 = vsel %vm22665_vm13, %v13274_v17, %v23795_v24  ;;  %v13347_v56 = vsel %vm12103_vm10, %v13337_v35, 0.0  ;;  %25744 = vst [vmem:[#allocation45_spill] sm:$0xff] %v23947_v11  ;;  %v23954_v18 = vpop.f32.mrb[97].mxu1 }
 0x598   : > { %v13311_v22 = vadd.f32 %v13310_v38, %v13309_v37  ;;  %v13346_v61 = vadd.f32 %v13345_v7, %v13344_v51  ;;  %16132 = vst.msk [vmem:[%s22599_s4 + $0xd8] sm:$0xf] %vm12098_vm9, %v13276_v26  ;;  %v16380_v8 = vpack.c.bf16 %v23880_v46, %v23880_v46  ;;  %v13401_v5 = vrot.slane %v23880_v46, 4  ;;  %25746 = vst [vmem:[#allocation46_spill] sm:$0xff] %v23954_v18  ;;  %v23956_v38 = vpop.f32.mrb[97].mxu0 }
 0x599   : > { %v23934_v28 = vmul.f32 %v23880_v46, %v23880_v46  ;;  %v23938_v6 = vpack.c.bf16 %v23889_v54, %v23889_v54  ;;  %v13407_v51 = vrot.slane %v23889_v54, 4  ;;  %v23943_v29 = vmul.f32 %v23889_v54, %v23889_v54  ;;  %25747 = vst [vmem:[#allocation47_spill] sm:$0xff] %v23956_v38 }
 0x59a   : > { %v13313_v24 = vadd.f32 %v13312_v58, %v13311_v22  ;;  %v13348_v48 = vadd.f32 %v13347_v56, %v13346_v61  ;;  %v13376_v62 = vrot.slane %v16380_v8, 6  ;;  %v25745_v46 = vrot.slane %v23821_v63, 4 }
 0x59b   : > { %v13436_v37 = vrot.slane %v23934_v28, 4  ;;  %v13385_v58 = vrot.slane %v23938_v6, 6  ;;  %v13440_v7 = vrot.slane %v23910_v57, 4  ;;  %v13408_v63 = vsel %vm12292_vm15, %v25492_v31, %v13407_v51 }
 0x59c   : > { %v13402_v17 = vsel %vm12292_vm15, %v25745_v46, %v13401_v5  ;;  %v13314_v53 = vrot.slane %v13313_v24, 4  ;;  %v13350_v35 = vadd.f32 %v13349_v27, %v13348_v48  ;;  %v25748_v26 = vrot.slane %v23835_v60, 10 }
 0x59d   : > { %v13413_v61 = vsel %vm12103_vm10, %v13402_v17, 0.0  ;;  %v25749_v56 = vrot.slane %v23842_v0, 4  ;;  %v13386_v27 = vsel %vm22767_vm2, %v13384_v10, %v13385_v58  ;;  %v13378_v48 = vrot.slane %v13376_v62, 4  ;;  %v25750_v10 = vld [vmem:[#allocation51_spill] sm:$0xff] }
 0x59e   : > { %v13377_v22 = vsel %vm22767_vm2, %v25748_v26, %v13376_v62  ;;  %v13315_v28 = vadd.f32 %v13314_v53, %v13313_v24  ;;  %v13351_v57 = vrot.slane %v13350_v35, 4  ;;  %16143 = vst.msk [vmem:[%s22599_s4 + $0xec] sm:$0xf] %vm12098_vm9, %v13386_v27  ;;  %v13418_v60 = vsel %vm12103_vm10, %v13408_v63, 0.0  ;;  %v25751_v24 = vld [vmem:[#allocation11_spill] sm:$0xff]  ;;  %v25752_v62 = vld [vmem:[#allocation52_spill] sm:$0xff] }
 0x59f   : > { %v13437_v8 = vsel %vm12292_vm15, %v25749_v56, %v13436_v37  ;;  %16140 = vst.msk [vmem:[%s22599_s4 + $0xe0] sm:$0xf] %vm12098_vm9, %v13377_v22  ;;  %v13442_v46 = vrot.slane %v23943_v29, 4  ;;  %v13504_v17 = vrot.slane %v23889_v54, 6  ;;  %v18394_v58 = vadd.f32 %v25751_v24, %v25750_v10  ;;  %v23987_v22 = vpop.f32.mrb[98].mxu1  ;;  %v25755_v27 = vld [vmem:[#allocation53_spill] sm:$0xff] }
 0x5a0   : > { %v13448_v51 = vsel %vm12103_vm10, %v13437_v8, 0.0  ;;  %v13316_v26 = vrot.slane %v13315_v28, 2  ;;  %v13352_v56 = vadd.f32 %v13351_v57, %v13350_v35  ;;  %v23985_v53 = vadd.f32 %v23349_v3, %v25752_v62  ;;  %25753 = vst [vmem:[#allocation48_spill] sm:$0xff] %v23987_v22  ;;  %v23989_v8 = vpop.f32.mrb[98].mxu0  ;;  %v25756_v54 = vld [vmem:[#allocation54_spill] sm:$0xff]  ;;  %v25757_v57 = vld [vmem:[#allocation55_spill] sm:$0xff] }
 0x5a1   : > { %25754 = vst [vmem:[#allocation49_spill] sm:$0xff] %v23989_v8  ;;  %v13443_v63 = vsel %vm12292_vm15, %v13440_v7, %v13442_v46  ;;  %v23994_v0 = vadd.f32 %v23353_v47, %v25755_v27  ;;  %v23998_v35 = vadd.f32 %v23363_v59, %v25756_v54  ;;  %v24002_v10 = vadd.f32 %v23370_v9, %v25757_v57  ;;  %v24008_v27 = vpop.f32.mrb[99].mxu1  ;;  %v24010_v59 = vpop.f32.mrb[99].mxu0 }
 0x5a2   : > { %v13317_v3 = vadd.f32 %v13316_v26, %v13315_v28  ;;  %v13353_v24 = vrot.slane %v13352_v56, 2  ;;  %v16381_v62 = vpack.c.bf16 %v18394_v58, %v18394_v58  ;;  %v13403_v31 = vrot.slane %v18394_v58, 4  ;;  %25758 = vst [vmem:[#allocation50_spill] sm:$0xff] %v24008_v27  ;;  %25759 = vst [vmem:[#allocation13_spill] sm:$0xff] %v24010_v59 }
 0x5a3   : > { %v13539_v8 = vrot.slane %v23943_v29, 6  ;;  %v13428_v22 = vmul.f32 %v18394_v58, %v18394_v58  ;;  %v13453_v46 = vsel %vm12103_vm10, %v13443_v63, 0.0  ;;  %v16387_v47 = vpack.c.bf16 %v23985_v53, %v23985_v53 }
 0x5a4   : > { %v13318_v54 = vrot.slane %v13317_v3, 1  ;;  %v13354_v9 = vadd.f32 %v13353_v24, %v13352_v56  ;;  %v13379_v57 = vrot.slane %v16381_v62, 6  ;;  %v13404_v28 = vsel %vm12292_vm15, %v13401_v5, %v13403_v31 }
 0x5a5   : > { %v25760_v26 = vrot.slane %v23876_v25, 4  ;;  %v13414_v58 = vsel %vm12103_vm10, %v13404_v28, 0.0  ;;  %v13438_v63 = vrot.slane %v13428_v22, 4  ;;  %v24017_v38 = vrot.slane %v16387_v47, 7 }
 0x5a6   : > { %v13319_v18 = vadd.f32 %v13318_v54, %v13317_v3  ;;  %v13355_v11 = vrot.slane %v13354_v9, 1  ;;  %v13380_v59 = vsel %vm22767_vm2, %v13378_v48, %v13379_v57  ;;  %v13381_v27 = vrot.slane %v13379_v57, 4 }
 0x5a7   : > { %v13406_v29 = vsel %vm12292_vm15, %v13403_v31, %v25760_v26  ;;  %16141 = vst.msk [vmem:[%s22599_s4 + $0xe4] sm:$0xf] %vm12098_vm9, %v13380_v59  ;;  %v13415_v56 = vadd.f32 %v13414_v58, %v13413_v61  ;;  %v13439_v25 = vsel %vm12292_vm15, %v13436_v37, %v13438_v63  ;;  %v13441_v31 = vsel %vm12292_vm15, %v13438_v63, %v13440_v7 }
 0x5a8   : > { %v13416_v5 = vsel %vm12103_vm10, %v13406_v29, 0.0  ;;  %v24027_v24 = vadd.f32 %v13319_v18, %v23893_v43  ;;  %v13356_v22 = vadd.f32 %v13355_v11, %v13354_v9  ;;  %v13383_v3 = vsel %vm22767_vm2, %v13381_v27, %v23906_v2  ;;  %v24058_v29 = vpop.f32.mrb[100].mxu1 }
 0x5a9   : > { %v13449_v48 = vsel %vm12103_vm10, %v13439_v25, 0.0  ;;  %16142 = vst.msk [vmem:[%s22599_s4 + $0xe8] sm:$0xf] %vm12098_vm9, %v13383_v3  ;;  %v13417_v62 = vadd.f32 %v13416_v5, %v13415_v56  ;;  %v13451_v47 = vsel %vm12103_vm10, %v13441_v31, 0.0  ;;  %v13509_v37 = vrot.slane %v23985_v53, 6 }
 0x5aa   : > { %v13450_v61 = vadd.f32 %v13449_v48, %v13448_v51  ;;  %v24038_v7 = vadd.f32 %v13356_v22, %v23903_v19  ;;  %v24042_v43 = vmul.f32 %v23985_v53, %v23985_v53  ;;  %v16385_v2 = vpack.c.bf16 %v23994_v0, %v23994_v0 }
 0x5ab   : > { %v13505_v11 = vrot.slane %v23994_v0, 6  ;;  %v13419_v18 = vadd.f32 %v13418_v60, %v13417_v62  ;;  %v24049_v51 = vmul.f32 %v23994_v0, %v23994_v0  ;;  %v16388_v59 = vpack.c.bf16 %v23998_v35, %v23998_v35  ;;  %v24060_v0 = vpop.f32.mrb[100].mxu0 }
 0x5ac   : > { %v13452_v27 = vadd.f32 %v13451_v47, %v13450_v61  ;;  %v13488_v19 = vrot.slane %v24017_v38, 4  ;;  %v13480_v54 = vrot.slane %v16385_v2, 7  ;;  %v13511_v9 = vrot.slane %v23998_v35, 6  ;;  %v24070_v25 = vpop.f32.mrb[101].mxu0 }
 0x5ad   : > { %v13506_v53 = vsel %vm1419_vm1, %v13504_v17, %v13505_v11  ;;  %v13420_v57 = vrot.slane %v13419_v18, 4  ;;  %v13544_v60 = vrot.slane %v24042_v43, 6  ;;  %v13540_v26 = vrot.slane %v24049_v51, 6  ;;  %v24077_v62 = vpop.f32.mrb[102].mxu0 }
 0x5ae   : > { %v13454_v28 = vadd.f32 %v13453_v46, %v13452_v27  ;;  %v25761_v58 = vrot.slane %v23938_v6, 11  ;;  %v13517_v17 = vsel %vm12103_vm10, %v13506_v53, 0.0  ;;  %v13489_v56 = vrot.slane %v16388_v59, 7  ;;  %v24068_v46 = vpop.f32.mrb[101].mxu1 }
 0x5af   : > { %v13512_v5 = vsel %vm1419_vm1, %v13509_v37, %v13511_v9  ;;  %v13421_v31 = vadd.f32 %v13420_v57, %v13419_v18  ;;  %v13482_v3 = vrot.slane %v13480_v54, 4  ;;  %v13541_v6 = vsel %vm1419_vm1, %v13539_v8, %v13540_v26  ;;  %v24075_v48 = vpop.f32.mrb[102].mxu1 }
 0x5b0   : > { %v13481_v63 = vsel %vm22907_vm6, %v25761_v58, %v13480_v54  ;;  %v13455_v22 = vrot.slane %v13454_v28, 4  ;;  %v13490_v61 = vsel %vm22907_vm6, %v13488_v19, %v13489_v56  ;;  %v13522_v47 = vsel %vm12103_vm10, %v13512_v5, 0.0  ;;  %v24101_v5 = vpop.f32.mrb[103].mxu1 }
 0x5b1   : > { %16150 = vst.msk [vmem:[%s22599_s4 + $0xf0] sm:$0xf] %vm12098_vm9, %v13481_v63  ;;  %v13534_v43 = vmul.f32 %v23998_v35, %v23998_v35  ;;  %v16386_v2 = vpack.c.bf16 %v24002_v10, %v24002_v10  ;;  %v13422_v18 = vrot.slane %v13421_v31, 2  ;;  %16153 = vst.msk [vmem:[%s22599_s4 + $0xfc] sm:$0xf] %vm12098_vm9, %v13490_v61  ;;  %v13507_v8 = vrot.slane %v24002_v10, 6 }
 0x5b2   : > { %v13456_v27 = vadd.f32 %v13455_v22, %v13454_v28  ;;  %v13532_v51 = vmul.f32 %v24002_v10, %v24002_v10  ;;  %v18399_v19 = vadd.f32 %v23405_v49, %v23372_v50  ;;  %v18400_v35 = vadd.f32 %v23412_v14, %v23378_v40  ;;  %v24103_v50 = vpop.f32.mrb[103].mxu0 }
 0x5b3   : > { %v13546_v59 = vrot.slane %v13534_v43, 6  ;;  %v13483_v54 = vrot.slane %v16386_v2, 7  ;;  %v13423_v53 = vadd.f32 %v13422_v18, %v13421_v31  ;;  %v13508_v57 = vsel %vm1419_vm1, %v13505_v11, %v13507_v8 }
 0x5b4   : > { %v13457_v9 = vrot.slane %v13456_v27, 2  ;;  %v13510_v28 = vsel %vm1419_vm1, %v13507_v8, %v13509_v37  ;;  %v13518_v56 = vsel %vm12103_vm10, %v13508_v57, 0.0  ;;  %v13552_v14 = vsel %vm12103_vm10, %v13541_v6, 0.0 }
 0x5b5   : > { %v13547_v58 = vsel %vm1419_vm1, %v13544_v60, %v13546_v59  ;;  %v13484_v10 = vsel %vm22907_vm6, %v13482_v3, %v13483_v54  ;;  %v13485_v63 = vrot.slane %v13483_v54, 4  ;;  %v13424_v40 = vrot.slane %v13423_v53, 1 }
 0x5b6   : > { %v13458_v49 = vadd.f32 %v13457_v9, %v13456_v27  ;;  %16151 = vst.msk [vmem:[%s22599_s4 + $0xf4] sm:$0xf] %vm12098_vm9, %v13484_v10  ;;  %v13519_v37 = vadd.f32 %v13518_v56, %v13517_v17  ;;  %v13520_v31 = vsel %vm12103_vm10, %v13510_v28, 0.0  ;;  %v13542_v22 = vrot.slane %v13532_v51, 6  ;;  %v24125_v9 = vpop.f32.mrb[104].mxu0 }
 0x5b7   : > { %v13487_v11 = vsel %vm22907_vm6, %v13485_v63, %v24017_v38  ;;  %v16391_v3 = vpack.c.bf16 %v18399_v19, %v18399_v19  ;;  %v13425_v61 = vadd.f32 %v13424_v40, %v13423_v53  ;;  %v13557_v2 = vsel %vm12103_vm10, %v13547_v58, 0.0  ;;  %v24123_v53 = vpop.f32.mrb[104].mxu1 }
 0x5b8   : > { %v13459_v43 = vrot.slane %v13458_v49, 1  ;;  %16152 = vst.msk [vmem:[%s22599_s4 + $0xf8] sm:$0xf] %vm12098_vm9, %v13487_v11  ;;  %v13521_v18 = vadd.f32 %v13520_v31, %v13519_v37  ;;  %v13543_v6 = vsel %vm1419_vm1, %v13540_v26, %v13542_v22  ;;  %v13545_v17 = vsel %vm1419_vm1, %v13542_v22, %v13544_v60  ;;  %v24132_v58 = vpop.f32.mrb[105].mxu1  ;;  %v25765_v11 = vld [vmem:[#allocation14_spill] sm:$0xff] }
 0x5b9   : > { %16160 = vst.msk [vmem:[%s22599_s4 + $0x108] sm:$0xf] %vm12098_vm9, %v16391_v3  ;;  %v13603_v27 = vmul.f32 %v18399_v19, %v18399_v19  ;;  %v16389_v38 = vpack.c.bf16 %v18400_v35, %v18400_v35  ;;  %v24120_v8 = vadd.f32 %v13425_v61, %v24027_v24  ;;  %v13553_v54 = vsel %vm12103_vm10, %v13543_v6, 0.0  ;;  %v24134_v24 = vpop.f32.mrb[105].mxu0  ;;  %v24141_v40 = vpop.f32.mrb[106].mxu1  ;;  %v25766_v31 = vld [vmem:[#allocation18_spill] sm:$0xff] }
 0x5ba   : > { %v13460_v51 = vadd.f32 %v13459_v43, %v13458_v49  ;;  %v13523_v59 = vadd.f32 %v13522_v47, %v13521_v18  ;;  %v13554_v57 = vadd.f32 %v13553_v54, %v13552_v14  ;;  %v13555_v26 = vsel %vm12103_vm10, %v13545_v17, 0.0  ;;  %25762 = vst [vmem:[#allocation51_spill] sm:$0xff] %v24141_v40  ;;  %v24143_v49 = vpop.f32.mrb[106].mxu0  ;;  %v25764_v14 = vld [vmem:[#allocation12_spill] sm:$0xff]  ;;  %v25768_v3 = vld [vmem:[#allocation21_spill] sm:$0xff]  ;;  %v24155_v43 = vpop.f32.mrb[107].mxu1 }
 0x5bb   : > { %v13590_v60 = vsel %vm12103_vm10, %v18399_v19, 0.0  ;;  %v13608_v28 = vsel %vm12103_vm10, %v13603_v27, 0.0  ;;  %16158 = vst.msk [vmem:[%s22599_s4 + $0x100] sm:$0xf] %vm12098_vm9, %v16389_v38  ;;  %v13601_v63 = vmul.f32 %v18400_v35, %v18400_v35  ;;  %v18401_v56 = vadd.f32 %v23416_v41, %v23386_v15  ;;  %25763 = vst [vmem:[#allocation11_spill] sm:$0xff] %v24143_v49  ;;  %v24157_v15 = vpop.f32.mrb[107].mxu0 }
 0x5bc   : > { %v24137_v47 = vadd.f32 %v13460_v51, %v24038_v7  ;;  %v13524_v10 = vrot.slane %v13523_v59, 4  ;;  %v13556_v19 = vadd.f32 %v13555_v26, %v13554_v57  ;;  %v18402_v37 = vadd.f32 %v25764_v14, %v23395_v16  ;;  %v25767_v7 = vld [vmem:[#allocation17_spill] sm:$0xff]  ;;  %25769 = vst [vmem:[#allocation52_spill] sm:$0xff] %v24155_v43  ;;  %25770 = vst [vmem:[#allocation53_spill] sm:$0xff] %v24157_v15 }
 0x5bd   : > { %v24149_v22 = vadd.f32 %v25766_v31, %v25765_v11  ;;  %v24153_v61 = vadd.f32 %v25768_v3, %v25767_v7  ;;  %v13587_v18 = vsel %vm12103_vm10, %v18400_v35, 0.0  ;;  %v13605_v6 = vsel %vm12103_vm10, %v13601_v63, 0.0 }
 0x5be   : > { %v13525_v41 = vadd.f32 %v13524_v10, %v13523_v59  ;;  %v16392_v17 = vpack.c.bf16 %v18401_v56, %v18401_v56  ;;  %v13558_v16 = vadd.f32 %v13557_v2, %v13556_v19  ;;  %v13604_v27 = vmul.f32 %v18401_v56, %v18401_v56 }
 0x5bf   : > { %v16390_v38 = vpack.c.bf16 %v18402_v37, %v18402_v37  ;;  %v13588_v51 = vsel %vm12103_vm10, %v18402_v37, 0.0  ;;  %v13602_v26 = vmul.f32 %v18402_v37, %v18402_v37  ;;  %v16395_v14 = vpack.c.bf16 %v24149_v22, %v24149_v22 }
 0x5c0   : > { %v13526_v54 = vrot.slane %v13525_v41, 2  ;;  %16161 = vst.msk [vmem:[%s22599_s4 + $0x10c] sm:$0xf] %vm12098_vm9, %v16392_v17  ;;  %v13589_v57 = vadd.f32 %v13588_v51, %v13587_v18  ;;  %v13559_v59 = vrot.slane %v13558_v16, 4  ;;  %v13592_v10 = vsel %vm12103_vm10, %v18401_v56, 0.0 }
 0x5c1   : > { %v13610_v35 = vsel %vm12103_vm10, %v13604_v27, 0.0  ;;  %16159 = vst.msk [vmem:[%s22599_s4 + $0x104] sm:$0xf] %vm12098_vm9, %v16390_v38  ;;  %v24172_v2 = vmul.f32 %v24149_v22, %v24149_v22  ;;  %v13606_v11 = vsel %vm12103_vm10, %v13602_v26, 0.0  ;;  %v24175_v31 = vrot.slane %v16395_v14, 5  ;;  %v25775_v38 = vld [vmem:[#allocation22_spill] sm:$0xff] }
 0x5c2   : > { %v13527_v63 = vadd.f32 %v13526_v54, %v13525_v41  ;;  %v13591_v19 = vadd.f32 %v13590_v60, %v13589_v57  ;;  %v13560_v37 = vadd.f32 %v13559_v59, %v13558_v16  ;;  %v13607_v7 = vadd.f32 %v13606_v11, %v13605_v6  ;;  %v25771_v16 = vld [vmem:[#allocation15_spill] sm:$0xff]  ;;  %v25774_v59 = vld [vmem:[#allocation20_spill] sm:$0xff] }
 0x5c3   : > { %v13665_v3 = vrot.slane %v24149_v22, 2  ;;  %v16393_v56 = vpack.c.bf16 %v24153_v61, %v24153_v61  ;;  %v13642_v27 = vrot.slane %v24175_v31, 4  ;;  %v13662_v54 = vrot.slane %v24153_v61, 2  ;;  %v25772_v6 = vld [vmem:[#allocation19_spill] sm:$0xff]  ;;  %v25773_v22 = vld [vmem:[#allocation16_spill] sm:$0xff] }
 0x5c4   : > { %v13528_v18 = vrot.slane %v13527_v63, 1  ;;  %v13593_v17 = vadd.f32 %v13592_v10, %v13591_v19  ;;  %v13561_v51 = vrot.slane %v13560_v37, 2  ;;  %v13609_v41 = vadd.f32 %v13608_v28, %v13607_v7  ;;  %v24195_v7 = vpop.f32.mrb[108].mxu1 }
 0x5c5   : > { %v16167_v60 = vrot.slane %v16393_v56, 9  ;;  %v24185_v14 = vadd.f32 %v25772_v6, %v25771_v16  ;;  %v18406_v11 = vadd.f32 %v25774_v59, %v25773_v22  ;;  %v13689_v19 = vmul.f32 %v24153_v61, %v24153_v61  ;;  %25776 = vst [vmem:[#allocation54_spill] sm:$0xff] %v24195_v7 }
 0x5c6   : > { %v13529_v57 = vadd.f32 %v13528_v18, %v13527_v63  ;;  %v13594_v26 = vrot.slane %v13593_v17, 4  ;;  %v13562_v15 = vadd.f32 %v13561_v51, %v13560_v37  ;;  %v13611_v10 = vadd.f32 %v13610_v35, %v13609_v41  ;;  %v24197_v63 = vpop.f32.mrb[108].mxu0  ;;  %v24203_v35 = vpop.f32.mrb[109].mxu1 }
 0x5c7   : > { %v24193_v28 = vadd.f32 %v23514_v23, %v25775_v38  ;;  %25777 = vst [vmem:[#allocation55_spill] sm:$0xff] %v24197_v63  ;;  %v16396_v16 = vpack.c.bf16 %v24185_v14, %v24185_v14  ;;  %v25493_v37 = vrot.slane %v24185_v14, 2  ;;  %25778 = vst [vmem:[#allocation12_spill] sm:$0xff] %v24203_v35  ;;  %v24205_v51 = vpop.f32.mrb[109].mxu0  ;;  %v24209_v23 = vmul.f32 %v24185_v14, %v24185_v14 }
 0x5c8   : > { %v13530_v56 = vadd.f32 %v13529_v57, %v24120_v8  ;;  %v13595_v18 = vadd.f32 %v13594_v26, %v13593_v17  ;;  %25779 = vst [vmem:[#allocation14_spill] sm:$0xff] %v24205_v51  ;;  %v13563_v61 = vrot.slane %v13562_v15, 1  ;;  %v13612_v41 = vrot.slane %v13611_v10, 4  ;;  %v24216_v26 = vpop.f32.mrb[110].mxu1  ;;  %v24218_v22 = vpop.f32.mrb[110].mxu0 }
 0x5c9   : > { %v16394_v38 = vpack.c.bf16 %v18406_v11, %v18406_v11  ;;  %v24211_v8 = vrot.slane %v16396_v16, 5  ;;  %v13668_v17 = vsel %vm6874_vm5, %v13665_v3, %v25493_v37  ;;  %v13663_v57 = vrot.slane %v18406_v11, 2 }
 0x5ca   : > { %v13596_v6 = vrot.slane %v13595_v18, 2  ;;  %v13564_v59 = vadd.f32 %v13563_v61, %v13562_v15  ;;  %v13613_v51 = vadd.f32 %v13612_v41, %v13611_v10  ;;  %v13699_v35 = vrot.slane %v13689_v19, 2 }
 0x5cb   : > { %v13704_v63 = vrot.slane %v24209_v23, 2  ;;  %v13644_v16 = vsel %vm22665_vm13, %v13642_v27, %v24211_v8  ;;  %v13678_v43 = vsel %vm12103_vm10, %v13668_v17, 0.0  ;;  %v13637_v49 = vrot.slane %v16394_v38, 5 }
 0x5cc   : > { %v13597_v7 = vadd.f32 %v13596_v6, %v13595_v18  ;;  %v13565_v37 = vadd.f32 %v13564_v59, %v24137_v47  ;;  %v13614_v40 = vrot.slane %v13613_v51, 2  ;;  %16170 = vst.msk [vmem:[%s22599_s4 + $0x118] sm:$0xf] %vm12098_vm9, %v13644_v16  ;;  %v25780_v15 = vrot.slane %v24172_v2, 2  ;;  %v24241_v59 = vpop.f32.mrb[111].mxu1  ;;  %v24243_v16 = vpop.f32.mrb[111].mxu0 }
 0x5cd   : > { %v13664_v19 = vsel %vm6874_vm5, %v13662_v54, %v13663_v57  ;;  %v13645_v61 = vrot.slane %v24211_v8, 4  ;;  %v13638_v27 = vsel %vm22665_vm13, %v16167_v60, %v13637_v49  ;;  %v13639_v41 = vrot.slane %v13637_v49, 4 }
 0x5ce   : > { %v13705_v10 = vsel %vm6874_vm5, %v25780_v15, %v13704_v63  ;;  %v13598_v18 = vrot.slane %v13597_v7, 1  ;;  %v13615_v47 = vadd.f32 %v13614_v40, %v13613_v51  ;;  %16168 = vst.msk [vmem:[%s22599_s4 + $0x110] sm:$0xf] %vm12098_vm9, %v13638_v27  ;;  %v13666_v38 = vsel %vm6874_vm5, %v13663_v57, %v13665_v3 }
 0x5cf   : > { %v13675_v6 = vsel %vm12103_vm10, %v13664_v19, 0.0  ;;  %v13690_v17 = vmul.f32 %v18406_v11, %v18406_v11  ;;  %v13641_v8 = vsel %vm22665_vm13, %v13639_v41, %v24175_v31  ;;  %v13676_v60 = vsel %vm12103_vm10, %v13666_v38, 0.0 }
 0x5d0   : > { %v13599_v54 = vadd.f32 %v13598_v18, %v13597_v7  ;;  %v16400_v40 = vpack.c.bf16 %v24193_v28, %v24193_v28  ;;  %v13616_v49 = vrot.slane %v13615_v47, 1  ;;  %v13715_v3 = vsel %vm12103_vm10, %v13705_v10, 0.0  ;;  %16169 = vst.msk [vmem:[%s22599_s4 + $0x114] sm:$0xf] %vm12098_vm9, %v13641_v8 }
 0x5d1   : > { %v13677_v11 = vadd.f32 %v13676_v60, %v13675_v6  ;;  %v13700_v51 = vrot.slane %v13690_v17, 2  ;;  %v24260_v7 = vmul.f32 %v24193_v28, %v24193_v28  ;;  %v18408_v31 = vadd.f32 %v23522_v36, %v23489_v52 }
 0x5d2   : > { %v24254_v57 = vadd.f32 %v13599_v54, %v13530_v56  ;;  %v24256_v15 = vrot.slane %v16400_v40, 6  ;;  %v13617_v19 = vadd.f32 %v13616_v49, %v13615_v47  ;;  %v25781_v10 = vrot.slane %v24172_v2, 2  ;;  %v25782_v2 = vld [vmem:[#allocation25_spill] sm:$0xff]  ;;  %v25783_v47 = vld [vmem:[#allocation23_spill] sm:$0xff]  ;;  %v25784_v40 = vld [vmem:[#allocation24_spill] sm:$0xff] }
 0x5d3   : > { %v13679_v18 = vadd.f32 %v13678_v43, %v13677_v11  ;;  %v13701_v27 = vsel %vm6874_vm5, %v13699_v35, %v13700_v51  ;;  %v13771_v17 = vrot.slane %v24193_v28, 4  ;;  %v16397_v52 = vpack.c.bf16 %v18408_v31, %v18408_v31  ;;  %v25785_v49 = vld [vmem:[#allocation26_spill] sm:$0xff]  ;;  %v24285_v28 = vpop.f32.mrb[112].mxu0 }
 0x5d4   : > { %v13703_v41 = vsel %vm6874_vm5, %v13700_v51, %v25781_v10  ;;  %v13712_v56 = vsel %vm12103_vm10, %v13701_v27, 0.0  ;;  %v13749_v6 = vrot.slane %v24256_v15, 4  ;;  %v24272_v54 = vadd.f32 %v13617_v19, %v13565_v37  ;;  %v24283_v51 = vpop.f32.mrb[112].mxu1  ;;  %25786 = vst [vmem:[#allocation18_spill] sm:$0xff] %v24285_v28  ;;  %v25798_v28 = vld [vmem:[#allocation30_spill] sm:$0xff] }
 0x5d5   : > { %v13713_v38 = vsel %vm12103_vm10, %v13703_v41, 0.0  ;;  %v13669_v36 = vrot.slane %v18408_v31, 2  ;;  %v24275_v35 = vmul.f32 %v18408_v31, %v18408_v31  ;;  %v24279_v60 = vadd.f32 %v25783_v47, %v25782_v2 }
 0x5d6   : > { %v13714_v8 = vadd.f32 %v13713_v38, %v13712_v56  ;;  %v18410_v11 = vadd.f32 %v25785_v49, %v25784_v40  ;;  %v13646_v19 = vrot.slane %v16397_v52, 5  ;;  %v25787_v27 = vrot.slane %v24185_v14, 2  ;;  %v24294_v40 = vpop.f32.mrb[113].mxu1  ;;  %v24296_v49 = vpop.f32.mrb[113].mxu0 }
 0x5d7   : > { %v13768_v41 = vrot.slane %v18408_v31, 4  ;;  %v13706_v38 = vrot.slane %v24275_v35, 2  ;;  %v16177_v2 = vrot.slane %v16397_v52, 10  ;;  %v16401_v47 = vpack.c.bf16 %v24279_v60, %v24279_v60  ;;  %25788 = vst [vmem:[#allocation17_spill] sm:$0xff] %v24294_v40  ;;  %25789 = vst [vmem:[#allocation21_spill] sm:$0xff] %v24296_v49  ;;  %v25797_v40 = vld [vmem:[#allocation28_spill] sm:$0xff] }
 0x5d8   : > { %v13716_v37 = vadd.f32 %v13715_v3, %v13714_v8  ;;  %v13670_v10 = vsel %vm6874_vm5, %v25787_v27, %v13669_v36  ;;  %v13647_v3 = vsel %vm22665_vm13, %v13645_v61, %v13646_v19  ;;  %v25494_v14 = vrot.slane %v24279_v60, 4 }
 0x5d9   : > { %v13680_v56 = vsel %vm12103_vm10, %v13670_v10, 0.0  ;;  %v24303_v31 = vmul.f32 %v24279_v60, %v24279_v60  ;;  %16171 = vst.msk [vmem:[%s22599_s4 + $0x11c] sm:$0xf] %vm12098_vm9, %v13647_v3  ;;  %v13707_v52 = vsel %vm6874_vm5, %v13704_v63, %v13706_v38  ;;  %v24310_v36 = vrot.slane %v16401_v47, 6  ;;  %v24319_v3 = vpop.f32.mrb[114].mxu0 }
 0x5da   : > { %v13681_v8 = vadd.f32 %v13680_v56, %v13679_v18  ;;  %v16399_v27 = vpack.c.bf16 %v18410_v11, %v18410_v11  ;;  %v13769_v10 = vrot.slane %v18410_v11, 4  ;;  %v13717_v61 = vsel %vm12103_vm10, %v13707_v52, 0.0  ;;  %v24317_v56 = vpop.f32.mrb[114].mxu1  ;;  %25791 = vst [vmem:[#allocation19_spill] sm:$0xff] %v24319_v3 }
 0x5db   : > { %v13774_v18 = vsel %vm12292_vm15, %v13771_v17, %v25494_v14  ;;  %v25495_v19 = vrot.slane %v24303_v31, 4  ;;  %25790 = vst [vmem:[#allocation15_spill] sm:$0xff] %v24317_v56  ;;  %v13718_v23 = vadd.f32 %v13717_v61, %v13716_v37  ;;  %v13803_v63 = vrot.slane %v24275_v35, 4 }
 0x5dc   : > { %v13682_v43 = vrot.slane %v13681_v8, 4  ;;  %v13751_v38 = vsel %vm22767_vm2, %v13749_v6, %v24310_v36  ;;  %v13752_v47 = vrot.slane %v24310_v36, 4  ;;  %v25792_v14 = vrot.slane %v24260_v7, 4 }
 0x5dd   : > { %16180 = vst.msk [vmem:[%s22599_s4 + $0x128] sm:$0xf] %vm12098_vm9, %v13751_v38  ;;  %v13744_v3 = vrot.slane %v16399_v27, 6  ;;  %v13770_v37 = vsel %vm12292_vm15, %v13768_v41, %v13769_v10  ;;  %v13719_v35 = vrot.slane %v13718_v23, 4  ;;  %v13784_v61 = vsel %vm12103_vm10, %v13774_v18, 0.0 }
 0x5de   : > { %v13683_v52 = vadd.f32 %v13682_v43, %v13681_v8  ;;  %v13809_v56 = vsel %vm12292_vm15, %v25792_v14, %v25495_v19  ;;  %v13772_v6 = vsel %vm12292_vm15, %v13769_v10, %v13771_v17  ;;  %v13781_v36 = vsel %vm12103_vm10, %v13770_v37, 0.0  ;;  %v24337_v43 = vpop.f32.mrb[115].mxu1  ;;  %v24339_v8 = vpop.f32.mrb[115].mxu0  ;;  %v25795_v17 = vld [vmem:[#allocation29_spill] sm:$0xff]  ;;  %v25796_v10 = vld [vmem:[#allocation27_spill] sm:$0xff] }
 0x5df   : > { %25793 = vst [vmem:[#allocation16_spill] sm:$0xff] %v24337_v43  ;;  %25794 = vst [vmem:[#allocation20_spill] sm:$0xff] %v24339_v8  ;;  %v13745_v49 = vsel %vm22767_vm2, %v16177_v2, %v13744_v3  ;;  %v13746_v14 = vrot.slane %v13744_v3, 4  ;;  %v13782_v27 = vsel %vm12103_vm10, %v13772_v6, 0.0  ;;  %v13720_v41 = vadd.f32 %v13719_v35, %v13718_v23  ;;  %v25799_v3 = vld [vmem:[#allocation33_spill] sm:$0xff]  ;;  %v25800_v6 = vld [vmem:[#allocation31_spill] sm:$0xff] }
 0x5e0   : > { %v13684_v38 = vrot.slane %v13683_v52, 2  ;;  %16178 = vst.msk [vmem:[%s22599_s4 + $0x120] sm:$0xf] %vm12098_vm9, %v13745_v49  ;;  %v13783_v18 = vadd.f32 %v13782_v27, %v13781_v36  ;;  %v13795_v19 = vmul.f32 %v18410_v11, %v18410_v11  ;;  %v24348_v37 = vadd.f32 %v25796_v10, %v25795_v17 }
 0x5e1   : > { %v13748_v8 = vsel %vm22767_vm2, %v13746_v14, %v24256_v15  ;;  %v24355_v2 = vadd.f32 %v25798_v28, %v25797_v40  ;;  %v24359_v23 = vadd.f32 %v25800_v6, %v25799_v3  ;;  %v13721_v49 = vrot.slane %v13720_v41, 2 }
 0x5e2   : > { %v13685_v43 = vadd.f32 %v13684_v38, %v13683_v52  ;;  %16179 = vst.msk [vmem:[%s22599_s4 + $0x124] sm:$0xf] %vm12098_vm9, %v13748_v8  ;;  %v13785_v11 = vadd.f32 %v13784_v61, %v13783_v18  ;;  %v13804_v35 = vrot.slane %v13795_v19, 4  ;;  %v16405_v52 = vpack.c.bf16 %v24348_v37, %v24348_v37 }
 0x5e3   : > { %v13819_v38 = vsel %vm12103_vm10, %v13809_v56, 0.0  ;;  %v24368_v15 = vmul.f32 %v24348_v37, %v24348_v37  ;;  %v24372_v28 = vpack.c.bf16 %v24355_v2, %v24355_v2  ;;  %v13722_v40 = vadd.f32 %v13721_v49, %v13720_v41 }
 0x5e4   : > { %v13686_v36 = vrot.slane %v13685_v43, 1  ;;  %v13805_v14 = vsel %vm12292_vm15, %v13803_v63, %v13804_v35  ;;  %v25801_v61 = vrot.slane %v24260_v7, 4  ;;  %v24378_v8 = vrot.slane %v16405_v52, 7  ;;  %v24394_v52 = vpop.f32.mrb[116].mxu0 }
 0x5e5   : > { %v13816_v56 = vsel %vm12103_vm10, %v13805_v14, 0.0  ;;  %v13875_v17 = vrot.slane %v24348_v37, 6  ;;  %v13723_v10 = vrot.slane %v13722_v40, 1  ;;  %v13910_v41 = vrot.slane %v24368_v15, 6 }
 0x5e6   : > { %v13807_v19 = vsel %vm12292_vm15, %v13804_v35, %v25801_v61  ;;  %v24380_v27 = vadd.f32 %v13686_v36, %v13685_v43  ;;  %v13753_v63 = vrot.slane %v24372_v28, 6  ;;  %v13853_v7 = vrot.slane %v24378_v8, 4  ;;  %v24392_v35 = vpop.f32.mrb[116].mxu1 }
 0x5e7   : > { %v13817_v18 = vsel %vm12103_vm10, %v13807_v19, 0.0  ;;  %v13775_v6 = vrot.slane %v24355_v2, 4  ;;  %v13798_v43 = vmul.f32 %v24355_v2, %v24355_v2  ;;  %v16187_v49 = vrot.slane %v24372_v28, 11 }
 0x5e8   : > { %v13818_v3 = vadd.f32 %v13817_v18, %v13816_v56  ;;  %v13754_v36 = vsel %vm22767_vm2, %v13752_v47, %v13753_v63  ;;  %v13872_v15 = vrot.slane %v24355_v2, 6  ;;  %v16406_v14 = vpack.c.bf16 %v24359_v23, %v24359_v23 }
 0x5e9   : > { %v24401_v61 = vadd.f32 %v13723_v10, %v13722_v40  ;;  %16181 = vst.msk [vmem:[%s22599_s4 + $0x12c] sm:$0xf] %vm12098_vm9, %v13754_v36  ;;  %v25802_v19 = vrot.slane %v24279_v60, 4  ;;  %v13810_v56 = vrot.slane %v13798_v43, 4  ;;  %v25496_v18 = vrot.slane %v24359_v23, 6 }
 0x5ea   : > { %v13820_v37 = vadd.f32 %v13819_v38, %v13818_v3  ;;  %v24409_v38 = vpop.f32.mrb[117].mxu1  ;;  %v24411_v3 = vpop.f32.mrb[117].mxu0  ;;  %v24414_v2 = vrot.slane %v16406_v14, 7  ;;  %v24418_v40 = vmul.f32 %v24359_v23, %v24359_v23  ;;  %v18414_v60 = vadd.f32 %v23649_v13, %v23647_v30 }
 0x5eb   : > { %v13776_v28 = vsel %vm12292_vm15, %v25802_v19, %v13775_v6  ;;  %25803 = vst [vmem:[#allocation22_spill] sm:$0xff] %v24409_v38  ;;  %25804 = vst [vmem:[#allocation25_spill] sm:$0xff] %v24411_v3  ;;  %v25805_v63 = vrot.slane %v24303_v31, 4  ;;  %v13878_v36 = vsel %vm1419_vm1, %v13875_v17, %v25496_v18  ;;  %v18415_v14 = vadd.f32 %v23694_v4, %v23692_v1  ;;  %v24435_v30 = vpop.f32.mrb[118].mxu1  ;;  %v24437_v31 = vpop.f32.mrb[118].mxu0 }
 0x5ec   : > { %v13786_v47 = vsel %vm12103_vm10, %v13776_v28, 0.0  ;;  %v13907_v28 = vrot.slane %v13798_v43, 6  ;;  %v13855_v3 = vsel %vm22907_vm6, %v13853_v7, %v24414_v2  ;;  %25806 = vst [vmem:[#allocation23_spill] sm:$0xff] %v24435_v30  ;;  %25807 = vst [vmem:[#allocation24_spill] sm:$0xff] %v24437_v31  ;;  %v13912_v1 = vrot.slane %v24418_v40, 6  ;;  %v24443_v7 = vpop.f32.mrb[119].mxu1 }
 0x5ed   : > { %v13787_v10 = vadd.f32 %v13786_v47, %v13785_v11  ;;  %v13811_v6 = vsel %vm12292_vm15, %v25805_v63, %v13810_v56  ;;  %16190 = vst.msk [vmem:[%s22599_s4 + $0x138] sm:$0xf] %vm12098_vm9, %v13855_v3  ;;  %v16404_v4 = vpack.c.bf16 %v18414_v60, %v18414_v60  ;;  %v13888_v43 = vsel %vm12103_vm10, %v13878_v36, 0.0  ;;  %v24445_v13 = vpop.f32.mrb[119].mxu0 }
 0x5ee   : > { %v13821_v19 = vsel %vm12103_vm10, %v13811_v6, 0.0  ;;  %v13873_v47 = vrot.slane %v18414_v60, 6  ;;  %v13899_v63 = vmul.f32 %v18414_v60, %v18414_v60  ;;  %v16409_v6 = vpack.c.bf16 %v18415_v14, %v18415_v14  ;;  %25808 = vst [vmem:[#allocation26_spill] sm:$0xff] %v24445_v13 }
 0x5ef   : > { %v13788_v11 = vrot.slane %v13787_v10, 4  ;;  %v13822_v56 = vadd.f32 %v13821_v19, %v13820_v37  ;;  %v13913_v37 = vsel %vm1419_vm1, %v13910_v41, %v13912_v1  ;;  %v13848_v19 = vrot.slane %v16404_v4, 7 }
 0x5f0   : > { %v13874_v3 = vsel %vm1419_vm1, %v13872_v15, %v13873_v47  ;;  %v13876_v40 = vsel %vm1419_vm1, %v13873_v47, %v13875_v17  ;;  %v13908_v30 = vrot.slane %v13899_v63, 6  ;;  %16197 = vst.msk [vmem:[%s22599_s4 + $0x144] sm:$0xf] %vm12098_vm9, %v16409_v6  ;;  %v13956_v60 = vsel %vm12103_vm10, %v18415_v14, 0.0 }
 0x5f1   : > { %v13789_v18 = vadd.f32 %v13788_v11, %v13787_v10  ;;  %v13823_v31 = vrot.slane %v13822_v56, 4  ;;  %v13849_v13 = vsel %vm22907_vm6, %v16187_v49, %v13848_v19  ;;  %v13850_v10 = vrot.slane %v13848_v19, 4 }
 0x5f2   : > { %16188 = vst.msk [vmem:[%s22599_s4 + $0x130] sm:$0xf] %vm12098_vm9, %v13849_v13  ;;  %v13885_v11 = vsel %vm12103_vm10, %v13874_v3, 0.0  ;;  %v13886_v15 = vsel %vm12103_vm10, %v13876_v40, 0.0  ;;  %v13909_v17 = vsel %vm1419_vm1, %v13907_v28, %v13908_v30  ;;  %v13911_v4 = vsel %vm1419_vm1, %v13908_v30, %v13910_v41  ;;  %v24473_v3 = vpop.f32.mrb[120].mxu1  ;;  %v24475_v40 = vpop.f32.mrb[120].mxu0 }
 0x5f3   : > { %v13790_v36 = vrot.slane %v13789_v18, 2  ;;  %v13824_v38 = vadd.f32 %v13823_v31, %v13822_v56  ;;  %v13852_v31 = vsel %vm22907_vm6, %v13850_v10, %v24378_v8  ;;  %v13887_v56 = vadd.f32 %v13886_v15, %v13885_v11 }
 0x5f4   : > { %16189 = vst.msk [vmem:[%s22599_s4 + $0x134] sm:$0xf] %vm12098_vm9, %v13852_v31  ;;  %v13920_v49 = vsel %vm12103_vm10, %v13909_v17, 0.0  ;;  %v13921_v13 = vsel %vm12103_vm10, %v13911_v4, 0.0  ;;  %v13970_v6 = vmul.f32 %v18415_v14, %v18415_v14  ;;  %v18416_v28 = vadd.f32 %v23704_v39, %v23702_v20  ;;  %v25809_v17 = vld [vmem:[#allocation32_spill] sm:$0xff]  ;;  %v24490_v31 = vpop.f32.mrb[121].mxu1 }
 0x5f5   : > { %v24461_v47 = vadd.f32 %v13790_v36, %v13789_v18  ;;  %v13825_v63 = vrot.slane %v13824_v38, 2  ;;  %v13923_v41 = vsel %vm12103_vm10, %v13913_v37, 0.0  ;;  %v13922_v18 = vadd.f32 %v13921_v13, %v13920_v49 }
 0x5f6   : > { %v13889_v30 = vadd.f32 %v13888_v43, %v13887_v56  ;;  %v16407_v36 = vpack.c.bf16 %v18416_v28, %v18416_v28  ;;  %v13879_v10 = vrot.slane %v18416_v28, 6  ;;  %v13902_v11 = vmul.f32 %v18416_v28, %v18416_v28  ;;  %v24492_v56 = vpop.f32.mrb[121].mxu0 }
 0x5f7   : > { %v13826_v19 = vadd.f32 %v13825_v63, %v13824_v38  ;;  %v13792_v8 = vrot.slane %v24461_v47, 1  ;;  %v13974_v15 = vsel %vm12103_vm10, %v13970_v6, 0.0  ;;  %v13924_v14 = vadd.f32 %v13923_v41, %v13922_v18  ;;  %v24502_v41 = vpop.f32.mrb[122].mxu0 }
 0x5f8   : > { %v18417_v20 = vadd.f32 %v25809_v17, %v23712_v12  ;;  %v18418_v39 = vadd.f32 %v23726_v32, %v23724_v45  ;;  %v13857_v38 = vrot.slane %v16407_v36, 7  ;;  %v25810_v43 = vrot.slane %v24359_v23, 6 }
 0x5f9   : > { %v13914_v4 = vrot.slane %v13902_v11, 6  ;;  %v24488_v63 = vadd.f32 %v23760_v21, %v23758_v44  ;;  %v13827_v12 = vrot.slane %v13826_v19, 1  ;;  %v25811_v23 = vrot.slane %v24414_v2, 4  ;;  %v24500_v21 = vpop.f32.mrb[122].mxu1 }
 0x5fa   : > { %v13880_v37 = vsel %vm1419_vm1, %v25810_v43, %v13879_v10  ;;  %v16410_v45 = vpack.c.bf16 %v18417_v20, %v18417_v20  ;;  %v13971_v32 = vmul.f32 %v18417_v20, %v18417_v20  ;;  %v16408_v44 = vpack.c.bf16 %v18418_v39, %v18418_v39  ;;  %v24517_v43 = vpop.f32.mrb[123].mxu0 }
 0x5fb   : > { %v13890_v49 = vsel %vm12103_vm10, %v13880_v37, 0.0  ;;  %v13858_v13 = vsel %vm22907_vm6, %v25811_v23, %v13857_v38  ;;  %v13915_v28 = vsel %vm1419_vm1, %v13912_v1, %v13914_v4  ;;  %v13958_v36 = vsel %vm12103_vm10, %v18417_v20, 0.0  ;;  %v24515_v38 = vpop.f32.mrb[123].mxu1  ;;  %25812 = vst [vmem:[#allocation29_spill] sm:$0xff] %v24517_v43 }
 0x5fc   : > { %v13891_v6 = vadd.f32 %v13890_v49, %v13889_v30  ;;  %16191 = vst.msk [vmem:[%s22599_s4 + $0x13c] sm:$0xf] %vm12098_vm9, %v13858_v13  ;;  %v13925_v18 = vsel %vm12103_vm10, %v13915_v28, 0.0  ;;  %16198 = vst.msk [vmem:[%s22599_s4 + $0x148] sm:$0xf] %vm12098_vm9, %v16410_v45  ;;  %v13955_v2 = vsel %vm12103_vm10, %v18418_v39, 0.0  ;;  %v13969_v10 = vmul.f32 %v18418_v39, %v18418_v39 }
 0x5fd   : > { %v13926_v30 = vadd.f32 %v13925_v18, %v13924_v14  ;;  %16196 = vst.msk [vmem:[%s22599_s4 + $0x140] sm:$0xf] %vm12098_vm9, %v16408_v44  ;;  %v13957_v1 = vadd.f32 %v13956_v60, %v13955_v2  ;;  %v16413_v17 = vpack.c.bf16 %v24488_v63, %v24488_v63  ;;  %v13976_v37 = vsel %vm12103_vm10, %v13971_v32, 0.0  ;;  %v25813_v49 = vld [vmem:[#allocation34_spill] sm:$0xff]  ;;  %v25814_v39 = vld [vmem:[#allocation37_spill] sm:$0xff] }
 0x5fe   : > { %v13892_v11 = vrot.slane %v13891_v6, 4  ;;  %v13973_v4 = vsel %vm12103_vm10, %v13969_v10, 0.0  ;;  %v18420_v45 = vadd.f32 %v25814_v39, %v25813_v49  ;;  %v24528_v28 = vmul.f32 %v24488_v63, %v24488_v63 }
 0x5ff   : > { %v13927_v23 = vrot.slane %v13926_v30, 4  ;;  %v13975_v13 = vadd.f32 %v13974_v15, %v13973_v4  ;;  %v24524_v60 = vrot.slane %v16413_v17, 5  ;;  %v13688_v44 = vadd.f32 %v24380_v27, %v24254_v57  ;;  %v24537_v27 = vpop.f32.mrb[124].mxu1 }
 0x600   : > { %v13893_v14 = vadd.f32 %v13892_v11, %v13891_v6  ;;  %v13725_v32 = vadd.f32 %v24401_v61, %v24272_v54  ;;  %v13793_v18 = vadd.f32 %v13792_v8, %v24461_v47  ;;  %v13828_v15 = vadd.f32 %v13827_v12, %v13826_v19  ;;  %v24539_v54 = vpop.f32.mrb[124].mxu0  ;;  %v25816_v8 = vld [vmem:[#allocation35_spill] sm:$0xff]  ;;  %v25818_v12 = vld [vmem:[#allocation38_spill] sm:$0xff] }
 0x601   : > { %v13928_v10 = vadd.f32 %v13927_v23, %v13926_v30  ;;  %v14007_v6 = vrot.slane %v24524_v60, 4  ;;  %v16411_v17 = vpack.c.bf16 %v18420_v45, %v18420_v45  ;;  %v13959_v4 = vadd.f32 %v13958_v36, %v13957_v1  ;;  %25815 = vst [vmem:[#allocation27_spill] sm:$0xff] %v24539_v54  ;;  %v25817_v30 = vld [vmem:[#allocation36_spill] sm:$0xff]  ;;  %v25819_v36 = vld [vmem:[#allocation41_spill] sm:$0xff]  ;;  %v24549_v23 = vpop.f32.mrb[125].mxu1 }
 0x602   : > { %v13894_v2 = vrot.slane %v13893_v14, 2  ;;  %v13794_v11 = vadd.f32 %v13793_v18, %v13688_v44  ;;  %v13960_v49 = vsel %vm12103_vm10, %v18420_v45, 0.0  ;;  %v13829_v43 = vadd.f32 %v13828_v15, %v13725_v32  ;;  %25820 = vst [vmem:[#allocation28_spill] sm:$0xff] %v24549_v23  ;;  %v25822_v18 = vld [vmem:[#allocation39_spill] sm:$0xff] }
 0x603   : > { %v13929_v20 = vrot.slane %v13928_v10, 2  ;;  %v13972_v57 = vmul.f32 %v18420_v45, %v18420_v45  ;;  %16199 = vst.msk [vmem:[%s22599_s4 + $0x14c] sm:$0xf] %vm12098_vm9, %v16411_v17  ;;  %v13961_v61 = vadd.f32 %v13960_v49, %v13959_v4  ;;  %v13977_v47 = vadd.f32 %v13976_v37, %v13975_v13  ;;  %v24558_v37 = vpop.f32.mrb[126].mxu1 }
 0x604   : > { %v13895_v39 = vadd.f32 %v13894_v2, %v13893_v14  ;;  %v24545_v19 = vadd.f32 %v25817_v30, %v25816_v8  ;;  %v18422_v1 = vadd.f32 %v25819_v36, %v25818_v12  ;;  %v24551_v14 = vpop.f32.mrb[125].mxu0  ;;  %v25823_v2 = vld [vmem:[#allocation40_spill] sm:$0xff]  ;;  %25824 = vst [vmem:[#allocation33_spill] sm:$0xff] %v24558_v37 }
 0x605   : > { %25821 = vst [vmem:[#allocation30_spill] sm:$0xff] %v24551_v14  ;;  %v13930_v44 = vadd.f32 %v13929_v20, %v13928_v10  ;;  %v13978_v32 = vsel %vm12103_vm10, %v13972_v57, 0.0  ;;  %v24556_v15 = vadd.f32 %v25823_v2, %v25822_v18  ;;  %v24560_v13 = vpop.f32.mrb[126].mxu0  ;;  %v13962_v17 = vrot.slane %v13961_v61, 4 }
 0x606   : > { %v13896_v45 = vrot.slane %v13895_v39, 1  ;;  %25825 = vst [vmem:[#allocation31_spill] sm:$0xff] %v24560_v13  ;;  %v13979_v4 = vadd.f32 %v13978_v32, %v13977_v47  ;;  %v16414_v49 = vpack.c.bf16 %v24545_v19, %v24545_v19  ;;  %v14033_v8 = vrot.slane %v24545_v19, 2  ;;  %v24576_v14 = vpop.f32.mrb[127].mxu0 }
 0x607   : > { %v13931_v12 = vrot.slane %v13930_v44, 1  ;;  %v24567_v20 = vmul.f32 %v24545_v19, %v24545_v19  ;;  %v16412_v10 = vpack.c.bf16 %v18422_v1, %v18422_v1  ;;  %v13963_v57 = vadd.f32 %v13962_v17, %v13961_v61  ;;  %25828 = vst [vmem:[#allocation34_spill] sm:$0xff] %v24576_v14 }
 0x608   : > { %v13897_v30 = vadd.f32 %v13896_v45, %v13895_v39  ;;  %v13980_v36 = vrot.slane %v13979_v4, 4  ;;  %v14008_v18 = vrot.slane %v16414_v49, 5  ;;  %v25826_v2 = vrot.slane %v24488_v63, 2  ;;  %v24574_v45 = vpop.f32.mrb[127].mxu1 }
 0x609   : > { %v13932_v32 = vadd.f32 %v13931_v12, %v13930_v44  ;;  %v14068_v13 = vrot.slane %v24528_v28, 2  ;;  %v25497_v39 = vrot.slane %v24567_v20, 2  ;;  %25827 = vst [vmem:[#allocation32_spill] sm:$0xff] %v24574_v45  ;;  %v13964_v19 = vrot.slane %v13963_v57, 2  ;;  %v25833_v45 = vld [vmem:[#allocation8_spill] sm:$0xff] }
 0x60a   : > { %v14034_v47 = vsel %vm6874_vm5, %v25826_v2, %v14033_v8  ;;  %v13898_v37 = vadd.f32 %v13897_v30, %v13794_v11  ;;  %v13981_v23 = vadd.f32 %v13980_v36, %v13979_v4  ;;  %v14009_v61 = vsel %vm22665_vm13, %v14007_v6, %v14008_v18 }
 0x60b   : > { %v14044_v17 = vsel %vm12103_vm10, %v14034_v47, 0.0  ;;  %v13933_v49 = vadd.f32 %v13932_v32, %v13829_v43  ;;  %16207 = vst.msk [vmem:[%s22599_s4 + $0x154] sm:$0xf] %vm12098_vm9, %v14009_v61  ;;  %v14071_v28 = vsel %vm6874_vm5, %v14068_v13, %v25497_v39  ;;  %v16205_v11 = vrot.slane %v16412_v10, 9 }
 0x60c   : > { %v14030_v44 = vrot.slane %v18422_v1, 2  ;;  %v13965_v30 = vadd.f32 %v13964_v19, %v13963_v57  ;;  %v13982_v12 = vrot.slane %v13981_v23, 2  ;;  %v14010_v2 = vrot.slane %v14008_v18, 4 }
 0x60d   : > { %v14057_v14 = vmul.f32 %v18422_v1, %v18422_v1  ;;  %v14081_v4 = vsel %vm12103_vm10, %v14071_v28, 0.0  ;;  %v14006_v6 = vsel %vm22665_vm13, %v16205_v11, %v24524_v60  ;;  %v25829_v43 = vrot.slane %v24488_v63, 2  ;;  %v25830_v28 = vld [vmem:[#allocation42_spill] sm:$0xff]  ;;  %v25831_v60 = vld [vmem:[#allocation43_spill] sm:$0xff] }
 0x60e   : > { %v16418_v47 = vpack.c.bf16 %v24556_v15, %v24556_v15  ;;  %v13966_v32 = vrot.slane %v13965_v30, 1  ;;  %v13983_v10 = vadd.f32 %v13982_v12, %v13981_v23  ;;  %16206 = vst.msk [vmem:[%s22599_s4 + $0x150] sm:$0xf] %vm12098_vm9, %v14006_v6  ;;  %v14137_v61 = vrot.slane %v24556_v15, 4 }
 0x60f   : > { %v14032_v36 = vsel %vm6874_vm5, %v14030_v44, %v25829_v43  ;;  %v14067_v1 = vrot.slane %v14057_v14, 2  ;;  %v18424_v11 = vadd.f32 %v25831_v60, %v25830_v28  ;;  %v25832_v43 = vld [vmem:[#allocation44_spill] sm:$0xff]  ;;  %v24609_v14 = vmul.f32 %v24556_v15, %v24556_v15 }
 0x610   : > { %v14043_v57 = vsel %vm12103_vm10, %v14032_v36, 0.0  ;;  %v14112_v19 = vrot.slane %v16418_v47, 6  ;;  %v13967_v63 = vadd.f32 %v13966_v32, %v13965_v30  ;;  %v13984_v39 = vrot.slane %v13983_v10, 1  ;;  %v24613_v32 = vpop.f32.mrb[128].mxu1 }
 0x611   : > { %v14045_v18 = vadd.f32 %v14044_v17, %v14043_v57  ;;  %v14069_v44 = vsel %vm6874_vm5, %v14067_v1, %v14068_v13  ;;  %v24604_v54 = vadd.f32 %v25833_v45, %v25832_v43  ;;  %v16415_v17 = vpack.c.bf16 %v18424_v11, %v18424_v11  ;;  %25834 = vst [vmem:[#allocation37_spill] sm:$0xff] %v24613_v32  ;;  %v24615_v13 = vpop.f32.mrb[128].mxu0  ;;  %v25843_v32 = vld [vmem:[#allocation45_spill] sm:$0xff] }
 0x612   : > { %v14080_v23 = vsel %vm12103_vm10, %v14069_v44, 0.0  ;;  %v14114_v12 = vrot.slane %v14112_v19, 4  ;;  %v24611_v6 = vadd.f32 %v13967_v63, %v13898_v37  ;;  %v13985_v36 = vadd.f32 %v13984_v39, %v13983_v10  ;;  %25835 = vst [vmem:[#allocation35_spill] sm:$0xff] %v24615_v13  ;;  %v25837_v10 = vld [vmem:[#allocation10_spill] sm:$0xff]  ;;  %v24629_v63 = vpop.f32.mrb[129].mxu1  ;;  %v24631_v44 = vpop.f32.mrb[129].mxu0 }
 0x613   : > { %v14082_v47 = vadd.f32 %v14081_v4, %v14080_v23  ;;  %v14035_v30 = vrot.slane %v18424_v11, 2  ;;  %v14011_v45 = vrot.slane %v16415_v17, 5  ;;  %v14060_v57 = vmul.f32 %v18424_v11, %v18424_v11  ;;  %v25836_v4 = vld [vmem:[#allocation9_spill] sm:$0xff]  ;;  %25838 = vst [vmem:[#allocation36_spill] sm:$0xff] %v24629_v63  ;;  %25839 = vst [vmem:[#allocation38_spill] sm:$0xff] %v24631_v44 }
 0x614   : > { %v16419_v1 = vpack.c.bf16 %v24604_v54, %v24604_v54  ;;  %v25498_v28 = vrot.slane %v24604_v54, 4  ;;  %v24620_v15 = vadd.f32 %v13985_v36, %v13933_v49  ;;  %v24625_v39 = vmul.f32 %v24604_v54, %v24604_v54 }
 0x615   : > { %v14036_v37 = vsel %vm6874_vm5, %v14033_v8, %v14035_v30  ;;  %v18426_v60 = vadd.f32 %v25837_v10, %v25836_v4  ;;  %v14172_v11 = vrot.slane %v24609_v14, 4  ;;  %v14012_v43 = vsel %vm22665_vm13, %v14010_v2, %v14011_v45 }
 0x616   : > { %v14046_v49 = vsel %vm12103_vm10, %v14036_v37, 0.0  ;;  %v14072_v23 = vrot.slane %v14060_v57, 2  ;;  %16208 = vst.msk [vmem:[%s22599_s4 + $0x158] sm:$0xf] %vm12098_vm9, %v14012_v43  ;;  %v14115_v17 = vrot.slane %v16419_v1, 6  ;;  %v14140_v36 = vsel %vm12292_vm15, %v14137_v61, %v25498_v28  ;;  %v24646_v37 = vpop.f32.mrb[130].mxu1 }
 0x617   : > { %v14047_v8 = vadd.f32 %v14046_v49, %v14045_v18  ;;  %v25499_v4 = vrot.slane %v24625_v39, 4  ;;  %v14013_v10 = vrot.slane %v14011_v45, 4  ;;  %v25840_v14 = vrot.slane %v24567_v20, 2  ;;  %25841 = vst [vmem:[#allocation41_spill] sm:$0xff] %v24646_v37  ;;  %v24648_v57 = vpop.f32.mrb[130].mxu0 }
 0x618   : > { %v16416_v2 = vpack.c.bf16 %v18426_v60, %v18426_v60  ;;  %v14037_v63 = vrot.slane %v18426_v60, 2  ;;  %25842 = vst [vmem:[#allocation39_spill] sm:$0xff] %v24648_v57  ;;  %v14116_v1 = vsel %vm22767_vm2, %v14114_v12, %v14115_v17  ;;  %v14150_v43 = vsel %vm12103_vm10, %v14140_v36, 0.0 }
 0x619   : > { %v14073_v44 = vsel %vm6874_vm5, %v25840_v14, %v14072_v23  ;;  %v14175_v20 = vsel %vm12292_vm15, %v14172_v11, %v25499_v4  ;;  %v14117_v49 = vrot.slane %v14115_v17, 4  ;;  %16217 = vst.msk [vmem:[%s22599_s4 + $0x164] sm:$0xf] %vm12098_vm9, %v14116_v1  ;;  %v14061_v57 = vmul.f32 %v18426_v60, %v18426_v60  ;;  %v25845_v17 = vld [vmem:[#allocation47_spill] sm:$0xff]  ;;  %v24684_v1 = vpop.f32.mrb[131].mxu0 }
 0x61a   : > { %v14083_v18 = vsel %vm12103_vm10, %v14073_v44, 0.0  ;;  %v14014_v14 = vrot.slane %v16416_v2, 5  ;;  %v14038_v28 = vsel %vm6874_vm5, %v14035_v30, %v14037_v63  ;;  %v16215_v37 = vrot.slane %v16416_v2, 10  ;;  %v24682_v2 = vpop.f32.mrb[131].mxu1  ;;  %25847 = vst [vmem:[#allocation42_spill] sm:$0xff] %v24684_v1 }
 0x61b   : > { %v14084_v45 = vadd.f32 %v14083_v18, %v14082_v47  ;;  %v14048_v44 = vsel %vm12103_vm10, %v14038_v28, 0.0  ;;  %v14136_v12 = vrot.slane %v18426_v60, 4  ;;  %v24665_v4 = vadd.f32 %v25843_v32, %v23945_v55  ;;  %v25844_v47 = vld [vmem:[#allocation46_spill] sm:$0xff]  ;;  %25846 = vst [vmem:[#allocation40_spill] sm:$0xff] %v24682_v2  ;;  %v25853_v2 = vld [vmem:[#allocation13_spill] sm:$0xff] }
 0x61c   : > { %v14015_v36 = vsel %vm22665_vm13, %v14013_v10, %v14014_v14  ;;  %v14049_v13 = vadd.f32 %v14048_v44, %v14047_v8  ;;  %v24669_v18 = vadd.f32 %v25845_v17, %v25844_v47  ;;  %v14074_v30 = vrot.slane %v14061_v57, 2 }
 0x61d   : > { %16209 = vst.msk [vmem:[%s22599_s4 + $0x15c] sm:$0xf] %vm12098_vm9, %v14015_v36  ;;  %v14113_v28 = vsel %vm22767_vm2, %v16215_v37, %v14112_v19  ;;  %v14138_v60 = vsel %vm12292_vm15, %v14136_v12, %v14137_v61  ;;  %v14171_v63 = vrot.slane %v14061_v57, 4  ;;  %v14185_v10 = vsel %vm12103_vm10, %v14175_v20, 0.0 }
 0x61e   : > { %v14050_v8 = vrot.slane %v14049_v13, 4  ;;  %16216 = vst.msk [vmem:[%s22599_s4 + $0x160] sm:$0xf] %vm12098_vm9, %v14113_v28  ;;  %v14149_v55 = vsel %vm12103_vm10, %v14138_v60, 0.0  ;;  %v16423_v32 = vpack.c.bf16 %v24665_v4, %v24665_v4  ;;  %v14075_v14 = vsel %vm6874_vm5, %v14072_v23, %v14074_v30  ;;  %v25850_v30 = vld [vmem:[#allocation48_spill] sm:$0xff]  ;;  %v25851_v23 = vld [vmem:[#allocation49_spill] sm:$0xff] }
 0x61f   : > { %v14173_v19 = vsel %vm12292_vm15, %v14171_v63, %v14172_v11  ;;  %v24690_v61 = vmul.f32 %v24665_v4, %v24665_v4  ;;  %v16420_v37 = vpack.c.bf16 %v24669_v18, %v24669_v18  ;;  %v14085_v20 = vsel %vm12103_vm10, %v14075_v14, 0.0 }
 0x620   : > { %v14051_v57 = vadd.f32 %v14050_v8, %v14049_v13  ;;  %v24695_v44 = vrot.slane %v16423_v32, 7  ;;  %v14141_v12 = vrot.slane %v24669_v18, 4  ;;  %v14086_v36 = vadd.f32 %v14085_v20, %v14084_v45  ;;  %v24714_v20 = vpop.f32.mrb[132].mxu0 }
 0x621   : > { %v14118_v47 = vrot.slane %v16420_v37, 6  ;;  %v14151_v11 = vadd.f32 %v14150_v43, %v14149_v55  ;;  %v25848_v28 = vrot.slane %v24604_v54, 4  ;;  %v14165_v13 = vmul.f32 %v24669_v18, %v24669_v18  ;;  %v24712_v37 = vpop.f32.mrb[132].mxu1  ;;  %25849 = vst [vmem:[#allocation43_spill] sm:$0xff] %v24714_v20 }
 0x622   : > { %v14052_v17 = vrot.slane %v14051_v57, 2  ;;  %v14087_v63 = vrot.slane %v14086_v36, 4  ;;  %v14218_v8 = vrot.slane %v24695_v44, 4  ;;  %v14184_v54 = vsel %vm12103_vm10, %v14173_v19, 0.0 }
 0x623   : > { %v14142_v60 = vsel %vm12292_vm15, %v25848_v28, %v14141_v12  ;;  %v14119_v45 = vsel %vm22767_vm2, %v14117_v49, %v14118_v47  ;;  %v14176_v55 = vrot.slane %v14165_v13, 4  ;;  %v14186_v28 = vadd.f32 %v14185_v10, %v14184_v54  ;;  %v25852_v49 = vld [vmem:[#allocation50_spill] sm:$0xff] }
 0x624   : > { %v14152_v32 = vsel %vm12103_vm10, %v14142_v60, 0.0  ;;  %v14053_v14 = vadd.f32 %v14052_v17, %v14051_v57  ;;  %16218 = vst.msk [vmem:[%s22599_s4 + $0x168] sm:$0xf] %vm12098_vm9, %v14119_v45  ;;  %v14088_v18 = vadd.f32 %v14087_v63, %v14086_v36  ;;  %v24718_v1 = vadd.f32 %v25851_v23, %v25850_v30  ;;  %v24722_v57 = vpop.f32.mrb[133].mxu1  ;;  %v24724_v17 = vpop.f32.mrb[133].mxu0 }
 0x625   : > { %v14153_v43 = vadd.f32 %v14152_v32, %v14151_v11  ;;  %v18430_v60 = vadd.f32 %v25853_v2, %v25852_v49  ;;  %25854 = vst [vmem:[#allocation44_spill] sm:$0xff] %v24722_v57  ;;  %25855 = vst [vmem:[#allocation8_spill] sm:$0xff] %v24724_v17  ;;  %v25856_v19 = vrot.slane %v24625_v39, 4  ;;  %v18431_v36 = vadd.f32 %v24060_v0, %v24058_v29  ;;  %v24743_v0 = vpop.f32.mrb[134].mxu1 }
 0x626   : > { %v14054_v11 = vrot.slane %v14053_v14, 1  ;;  %v24733_v10 = vadd.f32 %v24070_v25, %v24068_v46  ;;  %v14089_v23 = vrot.slane %v14088_v18, 2  ;;  %v16424_v2 = vpack.c.bf16 %v24718_v1, %v24718_v1  ;;  %25857 = vst [vmem:[#allocation9_spill] sm:$0xff] %v24743_v0  ;;  %v24745_v46 = vpop.f32.mrb[134].mxu0 }
 0x627   : > { %v14177_v13 = vsel %vm12292_vm15, %v25856_v19, %v14176_v55  ;;  %v14243_v63 = vrot.slane %v24718_v1, 6  ;;  %v14120_v45 = vrot.slane %v14118_v47, 4  ;;  %v24741_v39 = vmul.f32 %v24718_v1, %v24718_v1  ;;  %25858 = vst [vmem:[#allocation10_spill] sm:$0xff] %v24745_v46 }
 0x628   : > { %v14187_v30 = vsel %vm12103_vm10, %v14177_v13, 0.0  ;;  %v16421_v29 = vpack.c.bf16 %v18430_v60, %v18430_v60  ;;  %v14090_v25 = vadd.f32 %v14089_v23, %v14088_v18  ;;  %v14219_v54 = vrot.slane %v16424_v2, 7 }
 0x629   : > { %v14188_v32 = vadd.f32 %v14187_v30, %v14186_v28  ;;  %v25859_v49 = vrot.slane %v24665_v4, 6  ;;  %v14143_v13 = vrot.slane %v18430_v60, 4  ;;  %v24750_v17 = vadd.f32 %v14054_v11, %v14053_v14 }
 0x62a   : > { %v14278_v47 = vrot.slane %v24741_v39, 6  ;;  %v14121_v1 = vrot.slane %v16421_v29, 6  ;;  %v14166_v28 = vmul.f32 %v18430_v60, %v18430_v60  ;;  %v14091_v30 = vrot.slane %v14090_v25, 1 }
 0x62b   : > { %v14244_v19 = vsel %vm1419_vm1, %v25859_v49, %v14243_v63  ;;  %v14220_v0 = vsel %vm22907_vm6, %v14218_v8, %v14219_v54  ;;  %v14144_v18 = vsel %vm12292_vm15, %v14141_v12, %v14143_v13  ;;  %v25860_v23 = vrot.slane %v24690_v61, 6  ;;  %v24765_v49 = vpop.f32.mrb[135].mxu1  ;;  %v24767_v8 = vpop.f32.mrb[135].mxu0 }
 0x62c   : > { %v14254_v46 = vsel %vm12103_vm10, %v14244_v19, 0.0  ;;  %16227 = vst.msk [vmem:[%s22599_s4 + $0x174] sm:$0xf] %vm12098_vm9, %v14220_v0  ;;  %v14122_v11 = vsel %vm22767_vm2, %v14120_v45, %v14121_v1  ;;  %v14154_v2 = vsel %vm12103_vm10, %v14144_v18, 0.0  ;;  %v14178_v39 = vrot.slane %v14166_v28, 4  ;;  %25861 = vst [vmem:[#allocation45_spill] sm:$0xff] %v24765_v49 }
 0x62d   : > { %v14279_v14 = vsel %vm1419_vm1, %v25860_v23, %v14278_v47  ;;  %v24769_v19 = vadd.f32 %v14091_v30, %v14090_v25  ;;  %v14221_v12 = vrot.slane %v14219_v54, 4  ;;  %16219 = vst.msk [vmem:[%s22599_s4 + $0x16c] sm:$0xf] %vm12098_vm9, %v14122_v11  ;;  %v14155_v0 = vadd.f32 %v14154_v2, %v14153_v43 }
 0x62e   : > { %v16225_v13 = vrot.slane %v16421_v29, 11  ;;  %v14179_v23 = vsel %vm12292_vm15, %v14176_v55, %v14178_v39  ;;  %v14240_v57 = vrot.slane %v18430_v60, 6  ;;  %v14275_v45 = vrot.slane %v14166_v28, 6 }
 0x62f   : > { %v16427_v1 = vpack.c.bf16 %v18431_v36, %v18431_v36  ;;  %v14289_v18 = vsel %vm12103_vm10, %v14279_v14, 0.0  ;;  %v14156_v20 = vrot.slane %v14155_v0, 4  ;;  %v14189_v49 = vsel %vm12103_vm10, %v14179_v23, 0.0 }
 0x630   : > { %v14217_v25 = vsel %vm22907_vm6, %v16225_v13, %v24695_v44  ;;  %v14190_v54 = vadd.f32 %v14189_v49, %v14188_v32  ;;  %v25862_v43 = vrot.slane %v24665_v4, 6  ;;  %v25863_v55 = vrot.slane %v24690_v61, 6 }
 0x631   : > { %16226 = vst.msk [vmem:[%s22599_s4 + $0x170] sm:$0xf] %vm12098_vm9, %v14217_v25  ;;  %16234 = vst.msk [vmem:[%s22599_s4 + $0x180] sm:$0xf] %vm12098_vm9, %v16427_v1  ;;  %v14337_v28 = vmul.f32 %v18431_v36, %v18431_v36  ;;  %v14157_v30 = vadd.f32 %v14156_v20, %v14155_v0  ;;  %v16425_v44 = vpack.c.bf16 %v24733_v10, %v24733_v10  ;;  %v14245_v32 = vrot.slane %v24733_v10, 6 }
 0x632   : > { %v14242_v29 = vsel %vm1419_vm1, %v14240_v57, %v25862_v43  ;;  %v14277_v60 = vsel %vm1419_vm1, %v14275_v45, %v25863_v55  ;;  %v14191_v11 = vrot.slane %v14190_v54, 4  ;;  %v14323_v4 = vsel %vm12103_vm10, %v18431_v36, 0.0 }
 0x633   : > { %v14253_v14 = vsel %vm12103_vm10, %v14242_v29, 0.0  ;;  %v14269_v61 = vmul.f32 %v24733_v10, %v24733_v10  ;;  %v14158_v2 = vrot.slane %v14157_v30, 2  ;;  %v14222_v39 = vrot.slane %v16425_v44, 7 }
 0x634   : > { %v14255_v57 = vadd.f32 %v14254_v46, %v14253_v14  ;;  %v14246_v49 = vsel %vm1419_vm1, %v14243_v63, %v14245_v32  ;;  %v14288_v20 = vsel %vm12103_vm10, %v14277_v60, 0.0  ;;  %v14192_v0 = vadd.f32 %v14191_v11, %v14190_v54 }
 0x635   : > { %v14256_v13 = vsel %vm12103_vm10, %v14246_v49, 0.0  ;;  %v14280_v23 = vrot.slane %v14269_v61, 6  ;;  %v14290_v45 = vadd.f32 %v14289_v18, %v14288_v20  ;;  %v24799_v1 = vadd.f32 %v14158_v2, %v14157_v30 }
 0x636   : > { %v14341_v36 = vsel %vm12103_vm10, %v14337_v28, 0.0  ;;  %v14223_v46 = vsel %vm22907_vm6, %v14221_v12, %v14222_v39  ;;  %v14257_v25 = vadd.f32 %v14256_v13, %v14255_v57  ;;  %v14193_v10 = vrot.slane %v14192_v0, 2 }
 0x637   : > { %16228 = vst.msk [vmem:[%s22599_s4 + $0x178] sm:$0xf] %vm12098_vm9, %v14223_v46  ;;  %v14281_v63 = vsel %vm1419_vm1, %v14278_v47, %v14280_v23  ;;  %v18433_v54 = vadd.f32 %v24077_v62, %v24075_v48  ;;  %v18434_v18 = vadd.f32 %v24103_v50, %v24101_v5  ;;  %v14224_v43 = vrot.slane %v14222_v39, 4 }
 0x638   : > { %v14291_v29 = vsel %vm12103_vm10, %v14281_v63, 0.0  ;;  %v18435_v55 = vadd.f32 %v24125_v9, %v24123_v53  ;;  %v18436_v12 = vadd.f32 %v24134_v24, %v24132_v58  ;;  %v14194_v60 = vadd.f32 %v14193_v10, %v14192_v0  ;;  %v25864_v10 = vld [vmem:[#allocation51_spill] sm:$0xff] }
 0x639   : > { %v14292_v28 = vadd.f32 %v14291_v29, %v14290_v45  ;;  %v16428_v30 = vpack.c.bf16 %v18433_v54, %v18433_v54  ;;  %v14324_v47 = vsel %vm12103_vm10, %v18433_v54, 0.0  ;;  %v14338_v48 = vmul.f32 %v18433_v54, %v18433_v54  ;;  %v25865_v63 = vld [vmem:[#allocation11_spill] sm:$0xff]  ;;  %v25867_v29 = vld [vmem:[#allocation53_spill] sm:$0xff] }
 0x63a   : > { %v14325_v14 = vadd.f32 %v14324_v47, %v14323_v4  ;;  %v16426_v62 = vpack.c.bf16 %v18434_v18, %v18434_v18  ;;  %v14247_v44 = vrot.slane %v18434_v18, 6  ;;  %v14160_v5 = vrot.slane %v24799_v1, 1 }
 0x63b   : > { %v14195_v50 = vrot.slane %v14194_v60, 1  ;;  %16235 = vst.msk [vmem:[%s22599_s4 + $0x184] sm:$0xf] %vm12098_vm9, %v16428_v30  ;;  %v14270_v11 = vmul.f32 %v18434_v18, %v18434_v18  ;;  %v16431_v53 = vpack.c.bf16 %v18435_v55, %v18435_v55  ;;  %v14342_v9 = vsel %vm12103_vm10, %v14338_v48, 0.0 }
 0x63c   : > { %v14225_v58 = vrot.slane %v16426_v62, 7  ;;  %v14248_v24 = vsel %vm1419_vm1, %v14245_v32, %v14247_v44  ;;  %v14398_v57 = vrot.slane %v18435_v55, 2  ;;  %v14343_v61 = vadd.f32 %v14342_v9, %v14341_v36 }
 0x63d   : > { %v14258_v4 = vsel %vm12103_vm10, %v14248_v24, 0.0  ;;  %v14282_v2 = vrot.slane %v14270_v11, 6  ;;  %v14425_v39 = vmul.f32 %v18435_v55, %v18435_v55  ;;  %v16243_v0 = vrot.slane %v16431_v53, 9 }
 0x63e   : > { %v14226_v49 = vsel %vm22907_vm6, %v14224_v43, %v14225_v58  ;;  %v14259_v20 = vadd.f32 %v14258_v4, %v14257_v25  ;;  %v16429_v13 = vpack.c.bf16 %v18436_v12, %v18436_v12  ;;  %v14326_v46 = vsel %vm12103_vm10, %v18436_v12, 0.0  ;;  %v25866_v25 = vld [vmem:[#allocation52_spill] sm:$0xff] }
 0x63f   : > { %16229 = vst.msk [vmem:[%s22599_s4 + $0x17c] sm:$0xf] %vm12098_vm9, %v14226_v49  ;;  %v14283_v45 = vsel %vm1419_vm1, %v14280_v23, %v14282_v2  ;;  %v14339_v32 = vmul.f32 %v18436_v12, %v18436_v12  ;;  %v24831_v36 = vadd.f32 %v25865_v63, %v25864_v10  ;;  %v14327_v43 = vadd.f32 %v14326_v46, %v14325_v14  ;;  %v25870_v10 = vld [vmem:[#allocation12_spill] sm:$0xff]  ;;  %v25871_v63 = vld [vmem:[#allocation14_spill] sm:$0xff] }
 0x640   : > { %v14260_v54 = vrot.slane %v14259_v20, 4  ;;  %v14293_v18 = vsel %vm12103_vm10, %v14283_v45, 0.0  ;;  %16236 = vst.msk [vmem:[%s22599_s4 + $0x188] sm:$0xf] %vm12098_vm9, %v16429_v13  ;;  %v18438_v55 = vadd.f32 %v25867_v29, %v25866_v25  ;;  %v14056_v14 = vadd.f32 %v24750_v17, %v24611_v6  ;;  %v25869_v45 = vld [vmem:[#allocation55_spill] sm:$0xff] }
 0x641   : > { %v14294_v30 = vadd.f32 %v14293_v18, %v14292_v28  ;;  %v14344_v47 = vsel %vm12103_vm10, %v14339_v32, 0.0  ;;  %v16432_v23 = vpack.c.bf16 %v24831_v36, %v24831_v36  ;;  %v14399_v12 = vrot.slane %v24831_v36, 2 }
 0x642   : > { %v14261_v48 = vadd.f32 %v14260_v54, %v14259_v20  ;;  %v14345_v62 = vadd.f32 %v14344_v47, %v14343_v61  ;;  %v24844_v44 = vmul.f32 %v24831_v36, %v24831_v36  ;;  %v14093_v9 = vadd.f32 %v24769_v19, %v24620_v15 }
 0x643   : > { %v14295_v11 = vrot.slane %v14294_v30, 4  ;;  %v24848_v53 = vrot.slane %v16432_v23, 5  ;;  %v14400_v28 = vsel %vm6874_vm5, %v14398_v57, %v14399_v12  ;;  %v14435_v24 = vrot.slane %v14425_v39, 2 }
 0x644   : > { %v14262_v58 = vrot.slane %v14261_v48, 2  ;;  %v14436_v61 = vrot.slane %v24844_v44, 2  ;;  %v14161_v4 = vadd.f32 %v14160_v5, %v24799_v1  ;;  %v14196_v17 = vadd.f32 %v14195_v50, %v14194_v60  ;;  %v25868_v50 = vld [vmem:[#allocation54_spill] sm:$0xff] }
 0x645   : > { %v14296_v2 = vadd.f32 %v14295_v11, %v14294_v30  ;;  %v14374_v6 = vsel %vm22665_vm13, %v16243_v0, %v24848_v53  ;;  %v16430_v57 = vpack.c.bf16 %v18438_v55, %v18438_v55  ;;  %v14411_v20 = vsel %vm12103_vm10, %v14400_v28, 0.0 }
 0x646   : > { %v14263_v49 = vadd.f32 %v14262_v58, %v14261_v48  ;;  %16244 = vst.msk [vmem:[%s22599_s4 + $0x190] sm:$0xf] %vm12098_vm9, %v14374_v6  ;;  %v14437_v15 = vsel %vm6874_vm5, %v14435_v24, %v14436_v61  ;;  %v14162_v19 = vadd.f32 %v14161_v4, %v14056_v14  ;;  %v14197_v13 = vadd.f32 %v14196_v17, %v14093_v9 }
 0x647   : > { %v14297_v39 = vrot.slane %v14296_v2, 2  ;;  %v14328_v1 = vsel %vm12103_vm10, %v18438_v55, 0.0  ;;  %16237 = vst.msk [vmem:[%s22599_s4 + $0x18c] sm:$0xf] %vm12098_vm9, %v16430_v57  ;;  %v14340_v60 = vmul.f32 %v18438_v55, %v18438_v55  ;;  %v24869_v46 = vadd.f32 %v25869_v45, %v25868_v50 }
 0x648   : > { %v14264_v5 = vrot.slane %v14263_v49, 1  ;;  %v14329_v0 = vadd.f32 %v14328_v1, %v14327_v43  ;;  %v24873_v36 = vadd.f32 %v25871_v63, %v25870_v10  ;;  %v24877_v54 = vadd.f32 %v24218_v22, %v24216_v26 }
 0x649   : > { %v14298_v32 = vadd.f32 %v14297_v39, %v14296_v2  ;;  %v24881_v18 = vadd.f32 %v24243_v16, %v24241_v59  ;;  %v14346_v29 = vsel %vm12103_vm10, %v14340_v60, 0.0  ;;  %v24886_v55 = vpack.c.bf16 %v24869_v46, %v24869_v46 }
 0x64a   : > { %v14265_v25 = vadd.f32 %v14264_v5, %v14263_v49  ;;  %v14330_v43 = vrot.slane %v14329_v0, 4  ;;  %v14375_v47 = vrot.slane %v24848_v53, 4  ;;  %v14347_v23 = vadd.f32 %v14346_v29, %v14345_v62 }
 0x64b   : > { %v14299_v30 = vrot.slane %v14298_v32, 1  ;;  %v24891_v26 = vmul.f32 %v24869_v46, %v24869_v46  ;;  %v14448_v22 = vsel %vm12103_vm10, %v14437_v15, 0.0  ;;  %v14405_v48 = vrot.slane %v24869_v46, 2 }
 0x64c   : > { %v14266_v59 = vadd.f32 %v14265_v25, %v14162_v19  ;;  %v14331_v16 = vadd.f32 %v14330_v43, %v14329_v0  ;;  %v14348_v11 = vrot.slane %v14347_v23, 4  ;;  %v14382_v28 = vrot.slane %v24886_v55, 5 }
 0x64d   : > { %v14300_v14 = vadd.f32 %v14299_v30, %v14298_v32  ;;  %v16253_v9 = vrot.slane %v24886_v55, 10  ;;  %v14442_v53 = vrot.slane %v24891_v26, 2  ;;  %v16433_v62 = vpack.c.bf16 %v24873_v36, %v24873_v36 }
 0x64e   : > { %v14332_v58 = vrot.slane %v14331_v16, 2  ;;  %v14401_v24 = vrot.slane %v24873_v36, 2  ;;  %v14349_v2 = vadd.f32 %v14348_v11, %v14347_v23  ;;  %v14427_v6 = vmul.f32 %v24873_v36, %v24873_v36 }
 0x64f   : > { %v14301_v4 = vadd.f32 %v14300_v14, %v14197_v13  ;;  %v16437_v17 = vpack.c.bf16 %v24877_v54, %v24877_v54  ;;  %v14376_v15 = vrot.slane %v16433_v62, 5  ;;  %v14505_v57 = vrot.slane %v24877_v54, 4  ;;  %v25872_v14 = vld [vmem:[#allocation18_spill] sm:$0xff] }
 0x650   : > { %v14333_v49 = vadd.f32 %v14332_v58, %v14331_v16  ;;  %v14402_v19 = vsel %vm6874_vm5, %v14399_v12, %v14401_v24  ;;  %v14350_v39 = vrot.slane %v14349_v2, 2  ;;  %v14438_v5 = vrot.slane %v14427_v6, 2 }
 0x651   : > { %v14412_v1 = vsel %vm12103_vm10, %v14402_v19, 0.0  ;;  %v24908_v13 = vrot.slane %v16437_v17, 6  ;;  %v14504_v60 = vrot.slane %v24869_v46, 4  ;;  %v14377_v50 = vsel %vm22665_vm13, %v14375_v47, %v14376_v15 }
 0x652   : > { %v14334_v0 = vrot.slane %v14333_v49, 1  ;;  %v14413_v45 = vadd.f32 %v14412_v1, %v14411_v20  ;;  %v14351_v32 = vadd.f32 %v14350_v39, %v14349_v2  ;;  %v14539_v10 = vrot.slane %v24891_v26, 4  ;;  %16245 = vst.msk [vmem:[%s22599_s4 + $0x194] sm:$0xf] %vm12098_vm9, %v14377_v50 }
 0x653   : > { %v14439_v12 = vsel %vm6874_vm5, %v14436_v61, %v14438_v5  ;;  %v14481_v63 = vsel %vm22767_vm2, %v16253_v9, %v24908_v13  ;;  %v14506_v20 = vsel %vm12292_vm15, %v14504_v60, %v14505_v57  ;;  %v24930_v25 = vmul.f32 %v24877_v54, %v24877_v54  ;;  %v25874_v9 = vld [vmem:[#allocation21_spill] sm:$0xff] }
 0x654   : > { %v14335_v36 = vadd.f32 %v14334_v0, %v14333_v49  ;;  %v14449_v46 = vsel %vm12103_vm10, %v14439_v12, 0.0  ;;  %16254 = vst.msk [vmem:[%s22599_s4 + $0x1a0] sm:$0xf] %vm12098_vm9, %v14481_v63  ;;  %v14352_v44 = vrot.slane %v14351_v32, 1  ;;  %v14378_v43 = vrot.slane %v14376_v15, 4 }
 0x655   : > { %v14450_v61 = vadd.f32 %v14449_v46, %v14448_v22  ;;  %v16434_v29 = vpack.c.bf16 %v24881_v18, %v24881_v18  ;;  %v14540_v30 = vrot.slane %v24930_v25, 4  ;;  %v14403_v47 = vrot.slane %v24881_v18, 2  ;;  %v25873_v22 = vld [vmem:[#allocation17_spill] sm:$0xff] }
 0x656   : > { %v24934_v55 = vadd.f32 %v14335_v36, %v14266_v59  ;;  %v14428_v23 = vmul.f32 %v24881_v18, %v24881_v18  ;;  %v14353_v26 = vadd.f32 %v14352_v44, %v14351_v32  ;;  %v24942_v11 = vadd.f32 %v25872_v14, %v24283_v51 }
 0x657   : > { %v14379_v16 = vrot.slane %v16434_v29, 5  ;;  %v24946_v58 = vadd.f32 %v25874_v9, %v25873_v22  ;;  %v14541_v59 = vsel %vm12292_vm15, %v14539_v10, %v14540_v30  ;;  %v14404_v62 = vsel %vm6874_vm5, %v14401_v24, %v14403_v47 }
 0x658   : > { %v14406_v2 = vsel %vm6874_vm5, %v14403_v47, %v14405_v48  ;;  %v14440_v6 = vrot.slane %v14428_v23, 2  ;;  %v24951_v17 = vadd.f32 %v14353_v26, %v14301_v4  ;;  %v14482_v18 = vrot.slane %v24908_v13, 4  ;;  %v25875_v47 = vld [vmem:[#allocation15_spill] sm:$0xff] }
 0x659   : > { %v14380_v51 = vsel %vm22665_vm13, %v14378_v43, %v14379_v16  ;;  %v14381_v49 = vrot.slane %v14379_v16, 4  ;;  %v14517_v15 = vsel %vm12103_vm10, %v14506_v20, 0.0  ;;  %v14414_v19 = vsel %vm12103_vm10, %v14404_v62, 0.0  ;;  %v25876_v23 = vld [vmem:[#allocation19_spill] sm:$0xff] }
 0x65a   : > { %16246 = vst.msk [vmem:[%s22599_s4 + $0x198] sm:$0xf] %vm12098_vm9, %v14380_v51  ;;  %v14441_v24 = vsel %vm6874_vm5, %v14438_v5, %v14440_v6  ;;  %v14443_v39 = vsel %vm6874_vm5, %v14440_v6, %v14442_v53  ;;  %v14552_v48 = vsel %vm12103_vm10, %v14541_v59, 0.0  ;;  %v14415_v1 = vadd.f32 %v14414_v19, %v14413_v45  ;;  %v25878_v6 = vld [vmem:[#allocation20_spill] sm:$0xff] }
 0x65b   : > { %v14383_v4 = vsel %vm22665_vm13, %v14381_v49, %v14382_v28  ;;  %v14451_v13 = vsel %vm12103_vm10, %v14441_v24, 0.0  ;;  %v14416_v0 = vsel %vm12103_vm10, %v14406_v2, 0.0  ;;  %v24971_v50 = vpack.c.bf16 %v24942_v11, %v24942_v11  ;;  %v25877_v2 = vld [vmem:[#allocation16_spill] sm:$0xff] }
 0x65c   : > { %16247 = vst.msk [vmem:[%s22599_s4 + $0x19c] sm:$0xf] %vm12098_vm9, %v14383_v4  ;;  %v14452_v60 = vadd.f32 %v14451_v13, %v14450_v61  ;;  %v24975_v53 = vmul.f32 %v24942_v11, %v24942_v11  ;;  %v14417_v5 = vadd.f32 %v14416_v0, %v14415_v1  ;;  %v14453_v32 = vsel %vm12103_vm10, %v14443_v39, 0.0 }
 0x65d   : > { %v16438_v28 = vpack.c.bf16 %v24946_v58, %v24946_v58  ;;  %v14507_v45 = vrot.slane %v24946_v58, 4  ;;  %v14489_v12 = vrot.slane %v24971_v50, 6  ;;  %v14511_v63 = vrot.slane %v24942_v11, 4 }
 0x65e   : > { %v14454_v10 = vadd.f32 %v14453_v32, %v14452_v60  ;;  %v14608_v36 = vrot.slane %v24942_v11, 6  ;;  %v14418_v46 = vrot.slane %v14417_v5, 4  ;;  %v14546_v20 = vrot.slane %v24975_v53, 4 }
 0x65f   : > { %v14483_v25 = vrot.slane %v16438_v28, 6  ;;  %v14508_v44 = vsel %vm12292_vm15, %v14505_v57, %v14507_v45  ;;  %v14532_v29 = vmul.f32 %v24946_v58, %v24946_v58  ;;  %v24993_v26 = vadd.f32 %v25876_v23, %v25875_v47 }
 0x660   : > { %v14455_v43 = vrot.slane %v14454_v10, 4  ;;  %v14518_v61 = vsel %vm12103_vm10, %v14508_v44, 0.0  ;;  %v14419_v16 = vadd.f32 %v14418_v46, %v14417_v5  ;;  %v16263_v14 = vrot.slane %v24971_v50, 11  ;;  %v25882_v50 = vld [vmem:[#allocation24_spill] sm:$0xff] }
 0x661   : > { %v14484_v11 = vsel %vm22767_vm2, %v14482_v18, %v14483_v25  ;;  %v14519_v22 = vadd.f32 %v14518_v61, %v14517_v15  ;;  %v14542_v57 = vrot.slane %v14532_v29, 4  ;;  %v16442_v9 = vpack.c.bf16 %v24993_v26, %v24993_v26 }
 0x662   : > { %v14456_v54 = vadd.f32 %v14455_v43, %v14454_v10  ;;  %16255 = vst.msk [vmem:[%s22599_s4 + $0x1a4] sm:$0xf] %vm12098_vm9, %v14484_v11  ;;  %v14609_v58 = vrot.slane %v24993_v26, 6  ;;  %v14420_v59 = vrot.slane %v14419_v16, 2  ;;  %v25005_v62 = vmul.f32 %v24993_v26, %v24993_v26 }
 0x663   : > { %v18446_v51 = vadd.f32 %v25878_v6, %v25877_v2  ;;  %v25011_v18 = vadd.f32 %v24394_v52, %v24392_v35  ;;  %v14543_v15 = vsel %vm12292_vm15, %v14540_v30, %v14542_v57  ;;  %v25014_v19 = vrot.slane %v16442_v9, 7 }
 0x664   : > { %v14457_v49 = vrot.slane %v14456_v54, 2  ;;  %v14610_v24 = vsel %vm1419_vm1, %v14608_v36, %v14609_v58  ;;  %v14421_v39 = vadd.f32 %v14420_v59, %v14419_v16  ;;  %v14643_v4 = vrot.slane %v24975_v53, 6 }
 0x665   : > { %v14553_v1 = vsel %vm12103_vm10, %v14543_v15, 0.0  ;;  %v14644_v13 = vrot.slane %v25005_v62, 6  ;;  %v14485_v60 = vrot.slane %v14483_v25, 4  ;;  %v14585_v52 = vsel %vm22907_vm6, %v16263_v14, %v25014_v19 }
 0x666   : > { %v14458_v0 = vadd.f32 %v14457_v49, %v14456_v54  ;;  %v14554_v35 = vadd.f32 %v14553_v1, %v14552_v48  ;;  %v14422_v30 = vrot.slane %v14421_v39, 1  ;;  %16264 = vst.msk [vmem:[%s22599_s4 + $0x1b0] sm:$0xf] %vm12098_vm9, %v14585_v52  ;;  %v16439_v32 = vpack.c.bf16 %v18446_v51, %v18446_v51  ;;  %v25879_v49 = vld [vmem:[#allocation22_spill] sm:$0xff] }
 0x667   : > { %v14645_v5 = vsel %vm1419_vm1, %v14643_v4, %v14644_v13  ;;  %v14509_v53 = vrot.slane %v18446_v51, 4  ;;  %v14586_v10 = vrot.slane %v25014_v19, 4  ;;  %v14621_v36 = vsel %vm12103_vm10, %v14610_v24, 0.0  ;;  %v25881_v24 = vld [vmem:[#allocation23_spill] sm:$0xff] }
 0x668   : > { %v14459_v28 = vrot.slane %v14458_v0, 1  ;;  %v14533_v48 = vmul.f32 %v18446_v51, %v18446_v51  ;;  %v14423_v46 = vadd.f32 %v14422_v30, %v14421_v39  ;;  %v14486_v25 = vrot.slane %v16439_v32, 6 }
 0x669   : > { %v14510_v44 = vsel %vm12292_vm15, %v14507_v45, %v14509_v53  ;;  %v14512_v43 = vsel %vm12292_vm15, %v14509_v53, %v14511_v63  ;;  %v16445_v23 = vpack.c.bf16 %v25011_v18, %v25011_v18  ;;  %v14656_v2 = vsel %vm12103_vm10, %v14645_v5, 0.0 }
 0x66a   : > { %v14460_v61 = vadd.f32 %v14459_v28, %v14458_v0  ;;  %v14520_v29 = vsel %vm12103_vm10, %v14510_v44, 0.0  ;;  %v14544_v47 = vrot.slane %v14533_v48, 4  ;;  %v25038_v16 = vadd.f32 %v14423_v46, %v24934_v55 }
 0x66b   : > { %v14487_v14 = vsel %vm22767_vm2, %v14485_v60, %v14486_v25  ;;  %v14488_v11 = vrot.slane %v14486_v25, 4  ;;  %v14521_v54 = vadd.f32 %v14520_v29, %v14519_v22  ;;  %v14522_v63 = vsel %vm12103_vm10, %v14512_v43, 0.0 }
 0x66c   : > { %v25043_v45 = vadd.f32 %v14460_v61, %v24951_v17  ;;  %16256 = vst.msk [vmem:[%s22599_s4 + $0x1a8] sm:$0xf] %vm12098_vm9, %v14487_v14  ;;  %v14545_v9 = vsel %vm12292_vm15, %v14542_v57, %v14544_v47  ;;  %v14547_v59 = vsel %vm12292_vm15, %v14544_v47, %v14546_v20  ;;  %v14638_v57 = vmul.f32 %v25011_v18, %v25011_v18  ;;  %v25880_v20 = vld [vmem:[#allocation25_spill] sm:$0xff] }
 0x66d   : > { %v14490_v55 = vsel %vm22767_vm2, %v14488_v11, %v14489_v12  ;;  %v14523_v6 = vadd.f32 %v14522_v63, %v14521_v54  ;;  %v14555_v22 = vsel %vm12103_vm10, %v14545_v9, 0.0  ;;  %v14557_v51 = vsel %vm12103_vm10, %v14547_v59, 0.0  ;;  %v25883_v12 = vld [vmem:[#allocation26_spill] sm:$0xff] }
 0x66e   : > { %16257 = vst.msk [vmem:[%s22599_s4 + $0x1ac] sm:$0xf] %vm12098_vm9, %v14490_v55  ;;  %v14556_v17 = vadd.f32 %v14555_v22, %v14554_v35  ;;  %v18448_v15 = vadd.f32 %v25880_v20, %v25879_v49  ;;  %v18449_v39 = vadd.f32 %v25882_v50, %v25881_v24  ;;  %v18450_v4 = vadd.f32 %v25883_v12, %v24443_v7 }
 0x66f   : > { %v14524_v19 = vrot.slane %v14523_v6, 4  ;;  %v25069_v1 = vadd.f32 %v24475_v40, %v24473_v3  ;;  %v14593_v60 = vrot.slane %v16445_v23, 7  ;;  %v14615_v5 = vrot.slane %v25011_v18, 6 }
 0x670   : > { %v14558_v0 = vadd.f32 %v14557_v51, %v14556_v17  ;;  %v16443_v35 = vpack.c.bf16 %v18448_v15, %v18448_v15  ;;  %v14611_v52 = vrot.slane %v18448_v15, 6  ;;  %v14636_v32 = vmul.f32 %v18448_v15, %v18448_v15 }
 0x671   : > { %v14525_v30 = vadd.f32 %v14524_v19, %v14523_v6  ;;  %v16446_v53 = vpack.c.bf16 %v18449_v39, %v18449_v39  ;;  %v14650_v48 = vrot.slane %v14638_v57, 6  ;;  %v16444_v44 = vpack.c.bf16 %v18450_v4, %v18450_v4 }
 0x672   : > { %v14559_v28 = vrot.slane %v14558_v0, 4  ;;  %v14587_v46 = vrot.slane %v16443_v35, 7  ;;  %v14612_v7 = vsel %vm1419_vm1, %v14609_v58, %v14611_v52  ;;  %v14646_v25 = vrot.slane %v14636_v32, 6 }
 0x673   : > { %v14526_v3 = vrot.slane %v14525_v30, 2  ;;  %v14622_v40 = vsel %vm12103_vm10, %v14612_v7, 0.0  ;;  %16272 = vst.msk [vmem:[%s22599_s4 + $0x1c0] sm:$0xf] %vm12098_vm9, %v16446_v53  ;;  %v14691_v58 = vsel %vm12103_vm10, %v18449_v39, 0.0  ;;  %v14590_v23 = vrot.slane %v16444_v44, 7 }
 0x674   : > { %v14560_v43 = vadd.f32 %v14559_v28, %v14558_v0  ;;  %v14588_v18 = vsel %vm22907_vm6, %v14586_v10, %v14587_v46  ;;  %v14589_v61 = vrot.slane %v14587_v46, 4  ;;  %v14623_v29 = vadd.f32 %v14622_v40, %v14621_v36 }
 0x675   : > { %v14527_v47 = vadd.f32 %v14526_v3, %v14525_v30  ;;  %16265 = vst.msk [vmem:[%s22599_s4 + $0x1b4] sm:$0xf] %vm12098_vm9, %v14588_v18  ;;  %v14647_v26 = vsel %vm1419_vm1, %v14644_v13, %v14646_v25  ;;  %v14613_v54 = vrot.slane %v18450_v4, 6  ;;  %v14637_v63 = vmul.f32 %v18450_v4, %v18450_v4  ;;  %v25884_v30 = vld [vmem:[#allocation29_spill] sm:$0xff] }
 0x676   : > { %v14561_v14 = vrot.slane %v14560_v43, 2  ;;  %v14657_v11 = vsel %vm12103_vm10, %v14647_v26, 0.0  ;;  %v14591_v36 = vsel %vm22907_vm6, %v14589_v61, %v14590_v23  ;;  %v14592_v59 = vrot.slane %v14590_v23, 4 }
 0x677   : > { %v14528_v10 = vrot.slane %v14527_v47, 1  ;;  %v14658_v9 = vadd.f32 %v14657_v11, %v14656_v2  ;;  %16266 = vst.msk [vmem:[%s22599_s4 + $0x1b8] sm:$0xf] %vm12098_vm9, %v14591_v36  ;;  %v14614_v62 = vsel %vm1419_vm1, %v14611_v52, %v14613_v54  ;;  %v14616_v13 = vsel %vm1419_vm1, %v14613_v54, %v14615_v5  ;;  %v25886_v36 = vld [vmem:[#allocation28_spill] sm:$0xff] }
 0x678   : > { %v14562_v55 = vadd.f32 %v14561_v14, %v14560_v43  ;;  %v14648_v6 = vrot.slane %v14637_v63, 6  ;;  %v14705_v17 = vmul.f32 %v18449_v39, %v18449_v39  ;;  %v14594_v51 = vsel %vm22907_vm6, %v14592_v59, %v14593_v60  ;;  %v25887_v59 = vld [vmem:[#allocation30_spill] sm:$0xff] }
 0x679   : > { %v14529_v22 = vadd.f32 %v14528_v10, %v14527_v47  ;;  %v14624_v2 = vsel %vm12103_vm10, %v14614_v62, 0.0  ;;  %16267 = vst.msk [vmem:[%s22599_s4 + $0x1bc] sm:$0xf] %vm12098_vm9, %v14594_v51  ;;  %v14626_v24 = vsel %vm12103_vm10, %v14616_v13, 0.0  ;;  %v16449_v39 = vpack.c.bf16 %v25069_v1, %v25069_v1 }
 0x67a   : > { %v14563_v57 = vrot.slane %v14562_v55, 1  ;;  %v14625_v49 = vadd.f32 %v14624_v2, %v14623_v29  ;;  %v14649_v20 = vsel %vm1419_vm1, %v14646_v25, %v14648_v6  ;;  %v14651_v15 = vsel %vm1419_vm1, %v14648_v6, %v14650_v48  ;;  %v25885_v48 = vld [vmem:[#allocation27_spill] sm:$0xff] }
 0x67b   : > { %v25101_v19 = vadd.f32 %v14529_v22, %v25038_v16  ;;  %v14659_v50 = vsel %vm12103_vm10, %v14649_v20, 0.0  ;;  %v14661_v60 = vsel %vm12103_vm10, %v14651_v15, 0.0  ;;  %16275 = vst.msk [vmem:[%s22599_s4 + $0x1cc] sm:$0xf] %vm12098_vm9, %v16449_v39  ;;  %v14708_v35 = vmul.f32 %v25069_v1, %v25069_v1 }
 0x67c   : > { %v14564_v12 = vadd.f32 %v14563_v57, %v14562_v55  ;;  %v14627_v4 = vadd.f32 %v14626_v24, %v14625_v49  ;;  %v14660_v0 = vadd.f32 %v14659_v50, %v14658_v9  ;;  %v18452_v16 = vadd.f32 %v24492_v56, %v24490_v31 }
 0x67d   : > { %v18453_v52 = vadd.f32 %v24502_v41, %v24500_v21  ;;  %v18454_v5 = vadd.f32 %v25884_v30, %v24515_v38  ;;  %v25123_v46 = vadd.f32 %v25885_v48, %v24537_v27  ;;  %v14709_v7 = vsel %vm12103_vm10, %v14705_v17, 0.0 }
 0x67e   : > { %v25119_v32 = vadd.f32 %v14564_v12, %v25043_v45  ;;  %v14628_v53 = vrot.slane %v14627_v4, 4  ;;  %v14662_v28 = vadd.f32 %v14661_v60, %v14660_v0  ;;  %v16447_v3 = vpack.c.bf16 %v18452_v16, %v18452_v16  ;;  %v25889_v0 = vld [vmem:[#allocation31_spill] sm:$0xff] }
 0x67f   : > { %v14692_v31 = vsel %vm12103_vm10, %v18452_v16, 0.0  ;;  %v14706_v56 = vmul.f32 %v18452_v16, %v18452_v16  ;;  %v16450_v38 = vpack.c.bf16 %v18453_v52, %v18453_v52  ;;  %v14696_v45 = vsel %vm12103_vm10, %v25069_v1, 0.0 }
 0x680   : > { %v14629_v21 = vadd.f32 %v14628_v53, %v14627_v4  ;;  %v14663_v41 = vrot.slane %v14662_v28, 4  ;;  %v14693_v40 = vadd.f32 %v14692_v31, %v14691_v58  ;;  %16273 = vst.msk [vmem:[%s22599_s4 + $0x1c4] sm:$0xf] %vm12098_vm9, %v16447_v3  ;;  %v14793_v27 = vmul.f32 %v18453_v52, %v18453_v52  ;;  %v25888_v4 = vld [vmem:[#allocation33_spill] sm:$0xff] }
 0x681   : > { %v14710_v25 = vsel %vm12103_vm10, %v14706_v56, 0.0  ;;  %v16448_v44 = vpack.c.bf16 %v18454_v5, %v18454_v5  ;;  %v14714_v61 = vsel %vm12103_vm10, %v14708_v35, 0.0  ;;  %v14766_v47 = vrot.slane %v18453_v52, 2 }
 0x682   : > { %v14630_v43 = vrot.slane %v14629_v21, 2  ;;  %v14664_v18 = vadd.f32 %v14663_v41, %v14662_v28  ;;  %v14711_v29 = vadd.f32 %v14710_v25, %v14709_v7  ;;  %v14694_v26 = vsel %vm12103_vm10, %v18454_v5, 0.0  ;;  %v25890_v41 = vld [vmem:[#allocation32_spill] sm:$0xff] }
 0x683   : > { %16274 = vst.msk [vmem:[%s22599_s4 + $0x1c8] sm:$0xf] %vm12098_vm9, %v16448_v44  ;;  %v14707_v58 = vmul.f32 %v18454_v5, %v18454_v5  ;;  %v16453_v1 = vpack.c.bf16 %v25123_v46, %v25123_v46  ;;  %v16281_v11 = vrot.slane %v16450_v38, 9  ;;  %v14695_v54 = vadd.f32 %v14694_v26, %v14693_v40  ;;  %v25891_v40 = vld [vmem:[#allocation34_spill] sm:$0xff] }
 0x684   : > { %v14631_v23 = vadd.f32 %v14630_v43, %v14629_v21  ;;  %v14665_v14 = vrot.slane %v14664_v18, 2  ;;  %v14803_v63 = vrot.slane %v14793_v27, 2  ;;  %v18456_v55 = vadd.f32 %v25887_v59, %v25886_v36  ;;  %v25892_v59 = vld [vmem:[#allocation37_spill] sm:$0xff] }
 0x685   : > { %v14712_v10 = vsel %vm12103_vm10, %v14707_v58, 0.0  ;;  %v25139_v9 = vrot.slane %v16453_v1, 5  ;;  %v14697_v6 = vadd.f32 %v14696_v45, %v14695_v54  ;;  %v14771_v17 = vrot.slane %v25123_v46, 2 }
 0x686   : > { %v14632_v62 = vrot.slane %v14631_v23, 1  ;;  %v14666_v13 = vadd.f32 %v14665_v14, %v14664_v18  ;;  %v14713_v22 = vadd.f32 %v14712_v10, %v14711_v29  ;;  %v25146_v51 = vmul.f32 %v25123_v46, %v25123_v46 }
 0x687   : > { %v16451_v2 = vpack.c.bf16 %v18456_v55, %v18456_v55  ;;  %v14767_v57 = vrot.slane %v18456_v55, 2  ;;  %v14698_v15 = vrot.slane %v14697_v6, 4  ;;  %v14794_v12 = vmul.f32 %v18456_v55, %v18456_v55  ;;  %v25893_v55 = vld [vmem:[#allocation35_spill] sm:$0xff] }
 0x688   : > { %v14633_v49 = vadd.f32 %v14632_v62, %v14631_v23  ;;  %v14667_v20 = vrot.slane %v14666_v13, 1  ;;  %v14715_v24 = vadd.f32 %v14714_v61, %v14713_v22  ;;  %v25151_v60 = vadd.f32 %v25889_v0, %v25888_v4 }
 0x689   : > { %v14741_v50 = vrot.slane %v16451_v2, 5  ;;  %v14768_v39 = vsel %vm6874_vm5, %v14766_v47, %v14767_v57  ;;  %v14699_v16 = vadd.f32 %v14698_v15, %v14697_v6  ;;  %v14749_v30 = vrot.slane %v25139_v9, 4 }
 0x68a   : > { %v14634_v35 = vadd.f32 %v14633_v49, %v25101_v19  ;;  %v14716_v52 = vrot.slane %v14715_v24, 4  ;;  %v25155_v5 = vadd.f32 %v14667_v20, %v14666_v13  ;;  %v14808_v53 = vrot.slane %v25146_v51, 2 }
 0x68b   : > { %v14742_v28 = vsel %vm22665_vm13, %v16281_v11, %v14741_v50  ;;  %v14804_v48 = vrot.slane %v14794_v12, 2  ;;  %v14700_v46 = vrot.slane %v14699_v16, 2  ;;  %v25164_v3 = vpack.c.bf16 %v25151_v60, %v25151_v60 }
 0x68c   : > { %v14717_v7 = vadd.f32 %v14716_v52, %v14715_v24  ;;  %16282 = vst.msk [vmem:[%s22599_s4 + $0x1d0] sm:$0xf] %vm12098_vm9, %v14742_v28  ;;  %v14773_v19 = vrot.slane %v25151_v60, 2  ;;  %v14743_v31 = vrot.slane %v14741_v50, 4  ;;  %v25170_v21 = vmul.f32 %v25151_v60, %v25151_v60 }
 0x68d   : > { %v14805_v56 = vsel %vm6874_vm5, %v14803_v63, %v14804_v48  ;;  %v18458_v38 = vadd.f32 %v25891_v40, %v25890_v41  ;;  %v14701_v45 = vadd.f32 %v14700_v46, %v14699_v16  ;;  %v14779_v27 = vsel %vm12103_vm10, %v14768_v39, 0.0  ;;  %v25900_v41 = vld [vmem:[#allocation43_spill] sm:$0xff] }
 0x68e   : > { %v14718_v25 = vrot.slane %v14717_v7, 2  ;;  %v14750_v44 = vrot.slane %v25164_v3, 5  ;;  %v14816_v43 = vsel %vm12103_vm10, %v14805_v56, 0.0  ;;  %v14774_v18 = vsel %vm6874_vm5, %v14771_v17, %v14773_v19  ;;  %v25899_v56 = vld [vmem:[#allocation42_spill] sm:$0xff] }
 0x68f   : > { %v14810_v61 = vrot.slane %v25170_v21, 2  ;;  %v14872_v29 = vrot.slane %v25151_v60, 4  ;;  %v14702_v47 = vrot.slane %v14701_v45, 1  ;;  %v16291_v1 = vrot.slane %v25164_v3, 10  ;;  %v25897_v3 = vld [vmem:[#allocation39_spill] sm:$0xff] }
 0x690   : > { %v14719_v26 = vadd.f32 %v14718_v25, %v14717_v7  ;;  %v14751_v58 = vsel %vm22665_vm13, %v14749_v30, %v14750_v44  ;;  %v16452_v14 = vpack.c.bf16 %v18458_v38, %v18458_v38  ;;  %v14769_v11 = vrot.slane %v18458_v38, 2  ;;  %v25896_v7 = vld [vmem:[#allocation41_spill] sm:$0xff] }
 0x691   : > { %16285 = vst.msk [vmem:[%s22599_s4 + $0x1dc] sm:$0xf] %vm12098_vm9, %v14751_v58  ;;  %v14811_v23 = vsel %vm6874_vm5, %v14808_v53, %v14810_v61  ;;  %v14795_v54 = vmul.f32 %v18458_v38, %v18458_v38  ;;  %v14703_v63 = vadd.f32 %v14702_v47, %v14701_v45  ;;  %v14784_v10 = vsel %vm12103_vm10, %v14774_v18, 0.0 }
 0x692   : > { %v14907_v36 = vrot.slane %v25170_v21, 4  ;;  %v25190_v62 = vadd.f32 %v25893_v55, %v25892_v59  ;;  %v14744_v13 = vrot.slane %v16452_v14, 5  ;;  %v14770_v6 = vsel %vm6874_vm5, %v14767_v57, %v14769_v11 }
 0x693   : > { %v14772_v22 = vsel %vm6874_vm5, %v14769_v11, %v14771_v17  ;;  %v14806_v51 = vrot.slane %v14795_v54, 2  ;;  %v25194_v2 = vadd.f32 %v14703_v63, %v14634_v35  ;;  %v14720_v49 = vrot.slane %v14719_v26, 1 }
 0x694   : > { %v14780_v20 = vsel %vm12103_vm10, %v14770_v6, 0.0  ;;  %v14821_v15 = vsel %vm12103_vm10, %v14811_v23, 0.0  ;;  %v14745_v24 = vsel %vm22665_vm13, %v14743_v31, %v14744_v13  ;;  %v14746_v50 = vrot.slane %v14744_v13, 4 }
 0x695   : > { %v14781_v39 = vadd.f32 %v14780_v20, %v14779_v27  ;;  %v14807_v12 = vsel %vm6874_vm5, %v14804_v48, %v14806_v51  ;;  %16283 = vst.msk [vmem:[%s22599_s4 + $0x1d4] sm:$0xf] %vm12098_vm9, %v14745_v24  ;;  %v14782_v17 = vsel %vm12103_vm10, %v14772_v22, 0.0  ;;  %v14809_v57 = vsel %vm6874_vm5, %v14806_v51, %v14808_v53  ;;  %v25894_v53 = vld [vmem:[#allocation36_spill] sm:$0xff]  ;;  %v25895_v48 = vld [vmem:[#allocation38_spill] sm:$0xff] }
 0x696   : > { %v14817_v4 = vsel %vm12103_vm10, %v14807_v12, 0.0  ;;  %v16458_v0 = vpack.c.bf16 %v25190_v62, %v25190_v62  ;;  %v14748_v60 = vsel %vm22665_vm13, %v14746_v50, %v25139_v9  ;;  %v14877_v52 = vrot.slane %v25190_v62, 4  ;;  %v25898_v9 = vld [vmem:[#allocation40_spill] sm:$0xff] }
 0x697   : > { %v14783_v35 = vadd.f32 %v14782_v17, %v14781_v39  ;;  %v14818_v16 = vadd.f32 %v14817_v4, %v14816_v43  ;;  %16284 = vst.msk [vmem:[%s22599_s4 + $0x1d8] sm:$0xf] %vm12098_vm9, %v14748_v60  ;;  %v14819_v30 = vsel %vm12103_vm10, %v14809_v57, 0.0  ;;  %v18460_v46 = vadd.f32 %v25895_v48, %v25894_v53 }
 0x698   : > { %v25215_v28 = vrot.slane %v16458_v0, 6  ;;  %v25221_v19 = vadd.f32 %v25897_v3, %v25896_v7  ;;  %v18462_v21 = vadd.f32 %v25899_v56, %v25898_v9  ;;  %v25227_v40 = vadd.f32 %v25900_v41, %v24712_v37 }
 0x699   : > { %v14785_v31 = vadd.f32 %v14784_v10, %v14783_v35  ;;  %v14820_v33 = vadd.f32 %v14819_v30, %v14818_v16  ;;  %v14901_v45 = vmul.f32 %v25190_v62, %v25190_v62  ;;  %v16456_v25 = vpack.c.bf16 %v18460_v46, %v18460_v46 }
 0x69a   : > { %v14856_v38 = vrot.slane %v25215_v28, 4  ;;  %v14873_v27 = vrot.slane %v18460_v46, 4  ;;  %v14899_v18 = vmul.f32 %v18460_v46, %v18460_v46  ;;  %v25234_v61 = vpack.c.bf16 %v25221_v19, %v25221_v19 }
 0x69b   : > { %v14786_v44 = vrot.slane %v14785_v31, 4  ;;  %v14822_v43 = vadd.f32 %v14821_v15, %v14820_v33  ;;  %v14848_v47 = vrot.slane %v16456_v25, 6  ;;  %v14879_v37 = vrot.slane %v25221_v19, 4 }
 0x69c   : > { %v14874_v58 = vsel %vm12292_vm15, %v14872_v29, %v14873_v27  ;;  %v25240_v23 = vmul.f32 %v25221_v19, %v25221_v19  ;;  %v25242_v14 = vadd.f32 %v14720_v49, %v14719_v26  ;;  %v14908_v63 = vrot.slane %v14899_v18, 4 }
 0x69d   : > { %v14787_v11 = vadd.f32 %v14786_v44, %v14785_v31  ;;  %v14823_v54 = vrot.slane %v14822_v43, 4  ;;  %v14912_v10 = vrot.slane %v14901_v45, 4  ;;  %v14849_v59 = vsel %vm22767_vm2, %v16291_v1, %v14848_v47  ;;  %v25901_v44 = vld [vmem:[#allocation44_spill] sm:$0xff] }
 0x69e   : > { %v14857_v55 = vrot.slane %v25234_v61, 6  ;;  %v14880_v29 = vsel %vm12292_vm15, %v14877_v52, %v14879_v37  ;;  %16292 = vst.msk [vmem:[%s22599_s4 + $0x1e0] sm:$0xf] %vm12098_vm9, %v14849_v59  ;;  %v14885_v6 = vsel %vm12103_vm10, %v14874_v58, 0.0  ;;  %v14909_v26 = vsel %vm12292_vm15, %v14907_v36, %v14908_v63  ;;  %v25905_v37 = vld [vmem:[#allocation45_spill] sm:$0xff] }
 0x69f   : > { %v14788_v62 = vrot.slane %v14787_v11, 2  ;;  %v14824_v13 = vadd.f32 %v14823_v54, %v14822_v43  ;;  %v14850_v22 = vrot.slane %v14848_v47, 4  ;;  %v14890_v49 = vsel %vm12103_vm10, %v14880_v29, 0.0  ;;  %v25902_v43 = vld [vmem:[#allocation8_spill] sm:$0xff]  ;;  %v25904_v47 = vld [vmem:[#allocation10_spill] sm:$0xff] }
 0x6a0   : > { %v14858_v51 = vsel %vm22767_vm2, %v14856_v38, %v14857_v55  ;;  %v14914_v1 = vrot.slane %v25240_v23, 4  ;;  %v14920_v24 = vsel %vm12103_vm10, %v14909_v26, 0.0  ;;  %v16301_v50 = vrot.slane %v25234_v61, 11  ;;  %v25903_v61 = vld [vmem:[#allocation9_spill] sm:$0xff] }
 0x6a1   : > { %v25256_v20 = vadd.f32 %v14788_v62, %v14787_v11  ;;  %v14825_v15 = vrot.slane %v14824_v13, 2  ;;  %16295 = vst.msk [vmem:[%s22599_s4 + $0x1ec] sm:$0xf] %vm12098_vm9, %v14858_v51  ;;  %v16457_v36 = vpack.c.bf16 %v18462_v21, %v18462_v21  ;;  %v14875_v12 = vrot.slane %v18462_v21, 4 }
 0x6a2   : > { %v14915_v39 = vsel %vm12292_vm15, %v14912_v10, %v14914_v1  ;;  %v14900_v17 = vmul.f32 %v18462_v21, %v18462_v21  ;;  %v14976_v4 = vrot.slane %v25221_v19, 6  ;;  %v15011_v0 = vrot.slane %v25240_v23, 6 }
 0x6a3   : > { %v25263_v57 = vadd.f32 %v14825_v15, %v14824_v13  ;;  %v16463_v60 = vpack.c.bf16 %v25227_v40, %v25227_v40  ;;  %v14851_v35 = vrot.slane %v16457_v36, 6  ;;  %v14876_v16 = vsel %vm12292_vm15, %v14873_v27, %v14875_v12 }
 0x6a4   : > { %v14878_v30 = vsel %vm12292_vm15, %v14875_v12, %v14877_v52  ;;  %v14910_v53 = vrot.slane %v14900_v17, 4  ;;  %v14886_v48 = vsel %vm12103_vm10, %v14876_v16, 0.0  ;;  %v14925_v46 = vsel %vm12103_vm10, %v14915_v39, 0.0 }
 0x6a5   : > { %v25273_v7 = vrot.slane %v16463_v60, 7  ;;  %v14981_v3 = vrot.slane %v25227_v40, 6  ;;  %v14852_v19 = vsel %vm22767_vm2, %v14850_v22, %v14851_v35  ;;  %v14853_v31 = vrot.slane %v14851_v35, 4 }
 0x6a6   : > { %v14887_v33 = vadd.f32 %v14886_v48, %v14885_v6  ;;  %v14911_v9 = vsel %vm12292_vm15, %v14908_v63, %v14910_v53  ;;  %16293 = vst.msk [vmem:[%s22599_s4 + $0x1e4] sm:$0xf] %vm12098_vm9, %v14852_v19  ;;  %v14888_v52 = vsel %vm12103_vm10, %v14878_v30, 0.0  ;;  %v14913_v56 = vsel %vm12292_vm15, %v14910_v53, %v14912_v10 }
 0x6a7   : > { %v14921_v21 = vsel %vm12103_vm10, %v14911_v9, 0.0  ;;  %v25286_v41 = vmul.f32 %v25227_v40, %v25227_v40  ;;  %v14855_v38 = vsel %vm22767_vm2, %v14853_v31, %v25215_v28  ;;  %v14923_v27 = vsel %vm12103_vm10, %v14913_v56, 0.0 }
 0x6a8   : > { %v14889_v45 = vadd.f32 %v14888_v52, %v14887_v33  ;;  %v14922_v25 = vadd.f32 %v14921_v21, %v14920_v24  ;;  %16294 = vst.msk [vmem:[%s22599_s4 + $0x1e8] sm:$0xf] %vm12098_vm9, %v14855_v38  ;;  %v18464_v18 = vadd.f32 %v25902_v43, %v25901_v44  ;;  %v18465_v58 = vadd.f32 %v25904_v47, %v25903_v61 }
 0x6a9   : > { %v18466_v40 = vadd.f32 %v24767_v8, %v25905_v37  ;;  %v14669_v23 = vadd.f32 %v25155_v5, %v25119_v32  ;;  %v14960_v11 = vrot.slane %v25273_v7, 4  ;;  %v14790_v54 = vrot.slane %v25256_v20, 1 }
 0x6aa   : > { %v14891_v42 = vadd.f32 %v14890_v49, %v14889_v45  ;;  %v14924_v28 = vadd.f32 %v14923_v27, %v14922_v25  ;;  %v16461_v63 = vpack.c.bf16 %v18464_v18, %v18464_v18  ;;  %v14977_v10 = vrot.slane %v18464_v18, 6 }
 0x6ab   : > { %v15003_v59 = vmul.f32 %v18464_v18, %v18464_v18  ;;  %v16464_v55 = vpack.c.bf16 %v18465_v58, %v18465_v58  ;;  %v14983_v13 = vrot.slane %v18465_v58, 6  ;;  %v15006_v6 = vmul.f32 %v18465_v58, %v18465_v58 }
 0x6ac   : > { %v14892_v29 = vrot.slane %v14891_v42, 4  ;;  %v14926_v62 = vadd.f32 %v14925_v46, %v14924_v28  ;;  %v14952_v26 = vrot.slane %v16461_v63, 7  ;;  %v14978_v8 = vsel %vm1419_vm1, %v14976_v4, %v14977_v10 }
 0x6ad   : > { %v15012_v32 = vrot.slane %v15003_v59, 6  ;;  %v14961_v5 = vrot.slane %v16464_v55, 7  ;;  %v14984_v49 = vsel %vm1419_vm1, %v14981_v3, %v14983_v13  ;;  %v14827_v1 = vrot.slane %v25263_v57, 1 }
 0x6ae   : > { %v14893_v22 = vadd.f32 %v14892_v29, %v14891_v42  ;;  %v14927_v51 = vrot.slane %v14926_v62, 4  ;;  %v14953_v15 = vsel %vm22907_vm6, %v16301_v50, %v14952_v26  ;;  %v15016_v12 = vrot.slane %v25286_v41, 6 }
 0x6af   : > { %v15013_v24 = vsel %vm1419_vm1, %v15011_v0, %v15012_v32  ;;  %v14962_v39 = vsel %vm22907_vm6, %v14960_v11, %v14961_v5  ;;  %v14954_v17 = vrot.slane %v14952_v26, 4  ;;  %16302 = vst.msk [vmem:[%s22599_s4 + $0x1f0] sm:$0xf] %vm12098_vm9, %v14953_v15  ;;  %v14989_v4 = vsel %vm12103_vm10, %v14978_v8, 0.0 }
 0x6b0   : > { %v14928_v36 = vadd.f32 %v14927_v51, %v14926_v62  ;;  %16305 = vst.msk [vmem:[%s22599_s4 + $0x1fc] sm:$0xf] %vm12098_vm9, %v14962_v39  ;;  %v15018_v60 = vrot.slane %v15006_v6, 6  ;;  %v16462_v35 = vpack.c.bf16 %v18466_v40, %v18466_v40  ;;  %v14979_v16 = vrot.slane %v18466_v40, 6 }
 0x6b1   : > { %v15004_v30 = vmul.f32 %v18466_v40, %v18466_v40  ;;  %v14894_v50 = vrot.slane %v14893_v22, 2  ;;  %v14722_v0 = vadd.f32 %v25242_v14, %v14669_v23  ;;  %v14791_v53 = vadd.f32 %v14790_v54, %v25256_v20 }
 0x6b2   : > { %v14828_v48 = vadd.f32 %v14827_v1, %v25263_v57  ;;  %v15019_v46 = vsel %vm1419_vm1, %v15016_v12, %v15018_v60  ;;  %v14955_v19 = vrot.slane %v16462_v35, 7  ;;  %v14980_v31 = vsel %vm1419_vm1, %v14977_v10, %v14979_v16 }
 0x6b3   : > { %v14982_v33 = vsel %vm1419_vm1, %v14979_v16, %v14981_v3  ;;  %v14929_v9 = vrot.slane %v14928_v36, 2  ;;  %v14990_v52 = vsel %vm12103_vm10, %v14980_v31, 0.0  ;;  %v15014_v21 = vrot.slane %v15004_v30, 6 }
 0x6b4   : > { %v14992_v56 = vsel %vm12103_vm10, %v14982_v33, 0.0  ;;  %v14956_v14 = vsel %vm22907_vm6, %v14954_v17, %v14955_v19  ;;  %v14957_v20 = vrot.slane %v14955_v19, 4  ;;  %v14991_v41 = vadd.f32 %v14990_v52, %v14989_v4 }
 0x6b5   : > { %v14792_v57 = vadd.f32 %v14791_v53, %v25194_v2  ;;  %16303 = vst.msk [vmem:[%s22599_s4 + $0x1f4] sm:$0xf] %vm12098_vm9, %v14956_v14  ;;  %v15015_v3 = vsel %vm1419_vm1, %v15012_v32, %v15014_v21  ;;  %v15017_v38 = vsel %vm1419_vm1, %v15014_v21, %v15016_v12  ;;  %v14829_v45 = vadd.f32 %v14828_v48, %v14722_v0 }
 0x6b6   : > { %v14895_v25 = vadd.f32 %v14894_v50, %v14893_v22  ;;  %v15024_v27 = vsel %vm12103_vm10, %v15013_v24, 0.0  ;;  %v14959_v44 = vsel %vm22907_vm6, %v14957_v20, %v25273_v7  ;;  %v14993_v43 = vadd.f32 %v14992_v56, %v14991_v41 }
 0x6b7   : > { %v15025_v2 = vsel %vm12103_vm10, %v15015_v3, 0.0  ;;  %v14994_v18 = vsel %vm12103_vm10, %v14984_v49, 0.0  ;;  %16304 = vst.msk [vmem:[%s22599_s4 + $0x1f8] sm:$0xf] %vm12098_vm9, %v14959_v44  ;;  %v14930_v58 = vadd.f32 %v14929_v9, %v14928_v36  ;;  %v15027_v40 = vsel %vm12103_vm10, %v15017_v38, 0.0 }
 0x6b8   : > { %v15026_v61 = vadd.f32 %v15025_v2, %v15024_v27  ;;  %v14896_v47 = vrot.slane %v14895_v25, 1  ;;  %v14995_v37 = vadd.f32 %v14994_v18, %v14993_v43 }
 0x6b9   : > { %19984 = shalt.err (!%p19981_p3)
}
 0x6ba   : > { %s19985_s24 = scalar_lea.hbm %s25333_s9, 8192  ;;  %s19989_s27 = scalar_lea.hbm %s25426_s2, 16384 }
 0x6bb   : > { %p19986_p4 = scmp.ne.s32.totalorder %s25333_s9, %s19985_s24  ;;  %p19990_p9 = scmp.lt.u32.totalorder %s25333_s9, %s25426_s2 }
 0x6bc   : > { %p19991_p10 = scmp.lt.u32.totalorder %s19989_s27, %s19985_s24  ;;  %p19993_p12 = scmp.lt.u32.totalorder %s19985_s24, %s25333_s9 }
 0x6bd   : > { %p19987_p7 = pnand %p19986_p4, %p20130_p5 }
 0x6be   : > { %p19992_p11 = por %p19991_p10, %p19990_p9 }
 0x6bf   : > { %p19988_p8 = pneg %p19987_p7 }
 0x6c0   : > { %p19994_p13 = por %p19993_p12, %p19992_p11 }
 0x6c2   : > { %p19995_p0 = pnand %p19994_p13, %p19988_p8 }
 0x6c4   : > { %19998 = shalt.err (!%p19995_p0)
}
 0x6c5   : > { %s20069_s4 = smov 64   ;;  %s20070_s5 = smov 4   ;;  %v15028_v34 = vadd.f32 %v15027_v40, %v15026_v61  ;;  %v14897_v7 = vadd.f32 %v14896_v47, %v14895_v25  ;;  %v14931_v23 = vrot.slane %v14930_v58, 1  ;;  %v15029_v42 = vsel %vm12103_vm10, %v15019_v46, 0.0 }
 0x6c6   : > { %19420 = dma.vmem_to_hbm [thread:$0]  (%p20130_p5), %s25335_s6, 8192, %s25333_s9, %s15042_s10, %s20069_s4, %s20069_s4, %s20070_s5   ;;  %v14996_v28 = vrot.slane %v14995_v37, 4  ;;  %vm15038_vm0 = vcmask 516096  }
 0x6c7   : > { %v15030_v11 = vadd.f32 %v15029_v42, %v15028_v34  ;;  %v14898_v54 = vadd.f32 %v14897_v7, %v14792_v57  ;;  %v14932_v63 = vadd.f32 %v14931_v23, %v14930_v58  ;;  %s15172_s7 = sshll.u32 %s22539_s29, 1  ;;  %s16310_s6 = sshll.u32 %s20113_s16, 5 }
 0x6c8   : > { %v14997_v10 = vadd.f32 %v14996_v28, %v14995_v37  ;;  %s174_s8 = scalar_lea.vmem [#allocation4], %s15172_s7  ;;  %s25381_s17 = scalar_lea.hbm %s25427_s3, %s16310_s6 }
 0x6c9   : > { %v15031_v59 = vrot.slane %v15030_v11, 4  ;;  %v14933_v55 = vadd.f32 %v14932_v63, %v14829_v45  ;;  %s15076_s9 = sshll.u32 %s174_s8, 4  ;;  %s15047_s19 = scalar_lea.sflag [#allocation5], %s22539_s29  ;;  %s25383_s9 = int_to_ptr.vmem [resolvable:$true] %s15076_s9 }
 0x6ca   : > { %v14998_v29 = vrot.slane %v14997_v10, 2  ;;  %s19999_s20 = scalar_lea.vmem %s25383_s9, 32  ;;  %s20071_s16 = smov [#allocation4]  }
 0x6cb   : > { %v15032_v62 = vadd.f32 %v15031_v59, %v15030_v11  ;;  %p20000_p1 = scmp.ne.s32.totalorder %s25383_s9, %s19999_s20  ;;  %s20003_s24 = sshll.u32 %s20071_s16, 4  ;;  %s20004_s24 = int_to_ptr.vmem [resolvable:$false] %s20003_s24 }
 0x6cc   : > { %v14999_v13 = vadd.f32 %v14998_v29, %v14997_v10  ;;  %s20005_s25 = scalar_lea.vmem %s20004_s24, 64  ;;  %p20006_p4 = scmp.lt.s32.totalorder %s25383_s9, %s20004_s24 }
 0x6cd   : > { %v15033_v6 = vrot.slane %v15032_v62, 2  ;;  %p20001_p2 = pnand %p20000_p1, %p20130_p5  ;;  %p20007_p7 = scmp.lt.s32.totalorder %s20005_s25, %s19999_s20 }
 0x6ce   : > { %v15000_v26 = vrot.slane %v14999_v13, 1 }
 0x6cf   : > { %v15034_v8 = vadd.f32 %v15033_v6, %v15032_v62  ;;  %p20002_p3 = pneg %p20001_p2  ;;  %p20008_p8 = por %p20007_p7, %p20006_p4 }
 0x6d0   : > { %v15001_v32 = vadd.f32 %v15000_v26, %v14999_v13 }
 0x6d1   : > { %v15035_v5 = vrot.slane %v15034_v8, 1  ;;  %p20009_p9 = pnand %p20008_p8, %p20002_p3 }
 0x6d2   : > { %v15002_v22 = vadd.f32 %v15001_v32, %v14898_v54 }
 0x6d3   : > { %v15036_v51 = vadd.f32 %v15035_v5, %v15034_v8 }
 0x6d4   : > { %15039 = vst.msk [vmem:[%s174_s8] sm:$0x1] %vm15038_vm0, %v15002_v22 }
 0x6d5   : > { %v15037_v49 = vadd.f32 %v15036_v51, %v14933_v55 }
 0x6d7   : > { %15040 = vst.msk [vmem:[%s174_s8 + $0x1] sm:$0x1] %vm15038_vm0, %v15037_v49 }
 0x6d8   : > { %20012 = shalt.err (!%p20009_p9)
}
 0x6d9   : > { %s20013_s29 = scalar_lea.hbm %s25381_s17, 32  ;;  %s20017_s28 = scalar_lea.hbm %s25427_s3, 64 }
 0x6da   : > { %p20014_p10 = scmp.ne.s32.totalorder %s25381_s17, %s20013_s29  ;;  %p20018_p13 = scmp.lt.u32.totalorder %s25381_s17, %s25427_s3 }
 0x6db   : > { %p20019_p0 = scmp.lt.u32.totalorder %s20017_s28, %s20013_s29  ;;  %p20021_p2 = scmp.lt.u32.totalorder %s20013_s29, %s25381_s17 }
 0x6dc   : > { %p20015_p11 = pnand %p20014_p10, %p20130_p5 }
 0x6dd   : > { %p20020_p1 = por %p20019_p0, %p20018_p13 }
 0x6de   : > { %p20016_p12 = pneg %p20015_p11 }
 0x6df   : > { %p20022_p3 = por %p20021_p2, %p20020_p1 }
 0x6e1   : > { %p20023_p4 = pnand %p20022_p3, %p20016_p12 }
 0x6e3   : > { %20026 = shalt.err (!%p20023_p4)
}
 0x6e4   : > { %19421 = dma.vmem_to_hbm [thread:$0]  (%p20130_p5), %s25383_s9, 32, %s25381_s17, %s15047_s19  }
 0x6e5 PF: > { %p19431_p7 = scmp.ge.s32.totalorder %s20065_s15, 2  ;;  %s15088_s5 = sand.u32 1, %s20053_s12  }
 0x6e6   : > { %s15089_s7 = scalar_lea.sflag [#allocation3], %s15088_s5 }
 0x6e7   : > { %p19425_p8 = pnand %p19431_p7, %p20134_p6 }
 0x6e9   : > { %20044 = dma.done.wait (!%p19425_p8), %s15089_s7, 8192  }
 0x6ea   : > { %20046 = vsyncadd (!%p19425_p8), %s15089_s7, 4294959104  ;;  %s15098_s6 = scalar_lea.sflag [#allocation5], %s15088_s5 }
 0x6eb   : > { %20048 = dma.done.wait (!%p19425_p8), %s15098_s6, 32  }
 0x6ec   : > { %20050 = vsyncadd (!%p19425_p8), %s15098_s6, 4294967264  ;;  %p17_p5 = scmp.ge.s32.totalorder %s20117_s18, 4   ;;  %s25906_s12 = smov %s20057_s13 }
 0x6ed   : > { %s25907_s13 = smov %s20061_s14  ;;  %s25908_s14 = smov %s20128_s21 }
 0x6ee   : > { %s25909_s15 = smov %s20117_s18  ;;  %19 = sbr.rel (!%p17_p5) target bundleno = 5 (0x5), region = 119 }
 0x6f5   :  { %15103 = vsyncpa [#allocation3], 1 }
 0x6f6   :  { %15105 = vsyncpa [#allocation3 + $0x1], 1 }
 0x6f7   :  { %15106 = vsyncpa [#allocation5], 1 }
 0x6f8   :  { %15108 = vsyncpa [#allocation5 + $0x1], 1 }

</bundles_post_ra>
